<compile_context>
chip_gen: v5e
topology: v5e:2x2
jax: 0.10.0
libtpu: 0.0.40
codegen_flags: <defaults>
</compile_context>

<pallas_src>
import functools

import jax
import jax.numpy as jnp
from jax.experimental import pallas as pl
from jax.experimental.pallas import tpu as pltpu

TILE_B = 64           # images per grid step (multiple of 8); shrunk for small batches
CHUNK = 8             # images per conv GEMM chunk inside the kernel
KH = KW = 3
OC = 16               # conv output channels
OH = OW = 26
P = OH * OW           # 676 valid spatial positions per image
SPAN = 768            # per-image lane span (676 padded up to a multiple of 128)
K = KH * KW           # 9
NCLS = 10


# ----------------------------- fused Pallas kernel ---------------------------

def make_fused_kernel(tb):
    assert tb % CHUNK == 0

    def kernel(p_ref, wc_ref, bc_ref, wfc_ref, bfc_ref, o_ref, act_ref):
        # p_ref:   (1, 9, tb*SPAN) bf16  im2col patches, lane index = img*SPAN + p
        # wc_ref:  (16, 9)         bf16  conv weight   (resident across grid steps)
        # bc_ref:  (16, 1)         f32   conv bias     (resident)
        # wfc_ref: (16, 10, SPAN)  bf16  fc weight, [c,o,p] == wfc[o, c*676+p] (resident)
        # bfc_ref: (1, 10)         f32   fc bias       (resident)
        # o_ref:   (tb, 10)        f32   logits
        # act_ref: (16, tb, SPAN)  bf16  VMEM scratch: ReLU(conv) activations
        wc = wc_ref[...]
        bc = bc_ref[...]
        # Conv + bias + ReLU as wide MXU GEMMs over CHUNK images at a time.
        for g in range(tb // CHUNK):
            lo = g * CHUNK * SPAN
            pk = p_ref[0, :, lo:lo + CHUNK * SPAN]                     # (9, CHUNK*SPAN)
            conv = jnp.dot(wc, pk, preferred_element_type=jnp.float32)  # (16, CHUNK*SPAN)
            acts = jnp.maximum(conv + bc, 0.0).astype(jnp.bfloat16)
            # Lane-aligned per-image slices -> (c, image, p) scratch layout for the FC.
            for j in range(CHUNK):
                act_ref[:, g * CHUNK + j, :] = acts[:, j * SPAN:(j + 1) * SPAN]
        # FC: per-channel batched MXU contraction over p, then reduce over channels.
        # Equivalent to PyTorch's NCHW flatten (c*676 + p) followed by x @ wfc.T + bfc.
        partial = jnp.einsum("cbp,cop->cbo", act_ref[...], wfc_ref[...],
                             preferred_element_type=jnp.float32)        # (16, tb, 10)
        o_ref[...] = jnp.sum(partial, axis=0) + bfc_ref[...]
    return kernel


# ------------------------------ wrappers --------------------------------------

def _pick_tb(batch):
    """Tile size: big for large batches, but keep the grid >= 2 steps when possible."""
    if batch >= 2 * TILE_B:
        return TILE_B
    half = -(-batch // 2)                       # ceil(batch / 2)
    return max(8, min(TILE_B, ((half + 7) // 8) * 8))


def _make_patch_blocks(x, tb):
    """x: (B,1,28,28) f32 -> (nb, 9, tb*SPAN) bf16, lane index = img*SPAN + (h*26+w)."""
    B = x.shape[0]
    bp = pl.cdiv(B, tb) * tb
    cols = []
    for kh in range(KH):
        for kw in range(KW):
            cols.append(x[:, 0, kh:kh + OH, kw:kw + OW].reshape(B, P))
    pat = jnp.stack(cols, axis=1).astype(jnp.bfloat16)                  # (B, 9, 676)
    pat = jnp.pad(pat, ((0, bp - B), (0, 0), (0, SPAN - P)))            # (bp, 9, 768)
    pat = pat.reshape(bp // tb, tb, K, SPAN).transpose(0, 2, 1, 3)      # (nb, 9, tb, 768)
    return pat.reshape(bp // tb, K, tb * SPAN)


def prepare_params(params):
    """One-time re-layout of PyTorch-style params into kernel-friendly layout."""
    wc, bc, wfc, bfc = params          # (16,1,3,3), (16,), (10,10816), (10,)
    wc_mat = wc.reshape(OC, K).astype(jnp.bfloat16)                     # (16, 9)
    bc_col = bc.reshape(OC, 1).astype(jnp.float32)                      # (16, 1)
    wfc3 = wfc.reshape(NCLS, OC, P).transpose(1, 0, 2)                  # (16, 10, 676)
    wfc3 = jnp.pad(wfc3, ((0, 0), (0, 0), (0, SPAN - P))).astype(jnp.bfloat16)
    bfc_row = bfc.reshape(1, NCLS).astype(jnp.float32)                  # (1, 10)
    return wc_mat, bc_col, wfc3, bfc_row


@jax.jit
def simple_cnn_forward(x, kparams):
    """x: (B, 1, 28, 28) f32, kparams from prepare_params -> (B, 10) f32 logits."""
    wc_mat, bc_col, wfc3, bfc_row = kparams
    B = x.shape[0]
    tb = _pick_tb(B)
    nb = pl.cdiv(B, tb)
    bp = nb * tb
    patches = _make_patch_blocks(x, tb)                                 # (nb, 9, tb*SPAN)
    out = pl.pallas_call(
        make_fused_kernel(tb),
        out_shape=jax.ShapeDtypeStruct((bp, NCLS), jnp.float32),
        grid=(nb,),
        in_specs=[
            pl.BlockSpec((1, K, tb * SPAN), lambda b: (b, 0, 0)),   # patches: batch-tiled
            pl.BlockSpec((OC, K), lambda b: (0, 0)),                # wc: resident in VMEM
            pl.BlockSpec((OC, 1), lambda b: (0, 0)),                # bc: resident
            pl.BlockSpec((OC, NCLS, SPAN), lambda b: (0, 0, 0)),    # wfc: resident
            pl.BlockSpec((1, NCLS), lambda b: (0, 0)),              # bfc: resident
        ],
        out_specs=pl.BlockSpec((tb, NCLS), lambda b: (b, 0)),
        scratch_shapes=[pltpu.VMEM((OC, tb, SPAN), jnp.bfloat16)],      # bf16 act scratch
        compiler_params=pltpu.CompilerParams(
            dimension_semantics=("parallel",),       # batch tiles may shard across TCs
            vmem_limit_bytes=32 * 1024 * 1024),
    )(patches, wc_mat, bc_col, wfc3, bfc_row)
    return out[:B]        # padded batch rows hold ReLU(bias) garbage -> must be sliced


# ------------------------------ reference / init ------------------------------

def init_params(key):
    k1, k2, k3, k4 = jax.random.split(key, 4)
    conv_bound = 1.0 / jnp.sqrt(9.0)
    fc_bound = 1.0 / jnp.sqrt(float(OC * P))
    wc = jax.random.uniform(k1, (OC, 1, KH, KW), jnp.float32, -conv_bound, conv_bound)
    bc = jax.random.uniform(k2, (OC,), jnp.float32, -conv_bound, conv_bound)
    wfc = jax.random.uniform(k3, (NCLS, OC * P), jnp.float32, -fc_bound, fc_bound)
    bfc = jax.random.uniform(k4, (NCLS,), jnp.float32, -fc_bound, fc_bound)
    return wc, bc, wfc, bfc


def reference_forward(x, params):
    # Pure-JAX f32 reference with PyTorch semantics (conv -> relu -> NCHW flatten -> fc).
    wc, bc, wfc, bfc = params
    B = x.shape[0]
    cols = []
    for kh in range(KH):
        for kw in range(KW):
            cols.append(x[:, 0, kh:kh + OH, kw:kw + OW].reshape(B, P))
    patches = jnp.stack(cols, axis=1)                                   # (B, 9, 676)
    conv = jnp.einsum("bkp,ck->bcp", patches, wc.reshape(OC, K))
    conv = jnp.maximum(conv + bc.reshape(1, OC, 1), 0.0)                # (B, 16, 676)
    flat = conv.reshape(B, OC * P)                                      # c*676 + p
    return flat @ wfc.T + bfc


if __name__ == "__main__":
    key = jax.random.PRNGKey(0)
    kx, kp = jax.random.split(key)
    batch = 12                       # not a multiple of 8 -> exercises padding; grid=(2,)
    x = jax.random.normal(kx, (batch, 1, 28, 28), jnp.float32)
    params = init_params(kp)
    kparams = prepare_params(params)

    out = jax.block_until_ready(simple_cnn_forward(x, kparams))
    ref = reference_forward(x, params)

    assert out.shape == (batch, NCLS)
    # bf16 matmul inputs with f32 accumulation -> slightly loose tolerance vs f32 reference.
    assert jnp.allclose(out, ref, atol=2e-2, rtol=2e-2), float(jnp.max(jnp.abs(out - ref)))
    print("KERNEL_OK")
</pallas_src>

<mosaic_0001>
module attributes {stable_mosaic.version = 11 : i64} {
  func.func @kernel(%arg0: i32, %arg1: memref<1x9x6144xbf16, #tpu.memory_space<vmem>>, %arg2: memref<16x9xbf16, #tpu.memory_space<vmem>>, %arg3: memref<16x1xf32, #tpu.memory_space<vmem>>, %arg4: memref<16x10x768xbf16, #tpu.memory_space<vmem>>, %arg5: memref<1x10xf32, #tpu.memory_space<vmem>>, %arg6: memref<8x10xf32, #tpu.memory_space<vmem>>, %arg7: memref<16x8x768xbf16, #tpu.memory_space<vmem>>) attributes {dimension_semantics = [#tpu.dimension_semantics<parallel>], iteration_bounds = array<i64: 2>, scalar_prefetch = 0 : i64, scratch_operands = 1 : i64, tpu.core_type = #tpu.core_type<tc>, window_params = [{transform_indices = @transform_0, window_bounds = array<i64: 1, 9, 6144>}, {pipeline_mode = #tpu.pipeline_mode<synchronous>, transform_indices = @transform_1, window_bounds = array<i64: 16, 9>}, {pipeline_mode = #tpu.pipeline_mode<synchronous>, transform_indices = @transform_2, window_bounds = array<i64: 16, 1>}, {pipeline_mode = #tpu.pipeline_mode<synchronous>, transform_indices = @transform_3, window_bounds = array<i64: 16, 10, 768>}, {pipeline_mode = #tpu.pipeline_mode<synchronous>, transform_indices = @transform_4, window_bounds = array<i64: 1, 10>}, {transform_indices = @transform_5, window_bounds = array<i64: 8, 10>}]} {
    %c0 = arith.constant 0 : index
    %c0_0 = arith.constant 0 : index
    %0 = vector.load %arg2[%c0, %c0_0] : memref<16x9xbf16, #tpu.memory_space<vmem>>, vector<16x9xbf16>
    %c0_1 = arith.constant 0 : index
    %c0_2 = arith.constant 0 : index
    %1 = vector.load %arg3[%c0_1, %c0_2] : memref<16x1xf32, #tpu.memory_space<vmem>>, vector<16x1xf32>
    %c0_3 = arith.constant 0 : index
    %c0_4 = arith.constant 0 : index
    %c0_5 = arith.constant 0 : index
    %2 = vector.load %arg1[%c0_3, %c0_4, %c0_5] : memref<1x9x6144xbf16, #tpu.memory_space<vmem>>, vector<1x9x6144xbf16>
    %3 = vector.shape_cast %2 : vector<1x9x6144xbf16> to vector<9x6144xbf16>
    %cst = arith.constant dense<0.000000e+00> : vector<16x6144xf32>
    %4 = tpu.matmul %0, %3, %cst {dimension_numbers = #tpu.dot_dimension_numbers<[1], [0], [0], [1], [0, 0, 1, 1], [], []>} : vector<16x9xbf16>, vector<9x6144xbf16>, vector<16x6144xf32> -> vector<16x6144xf32>
    %5 = vector.broadcast %1 : vector<16x1xf32> to vector<16x6144xf32>
    %6 = arith.addf %4, %5 : vector<16x6144xf32>
    %cst_6 = arith.constant 0.000000e+00 : f32
    %7 = vector.broadcast %cst_6 : f32 to vector<16x6144xf32>
    %8 = arith.maximumf %6, %7 : vector<16x6144xf32>
    %9 = arith.truncf %8 : vector<16x6144xf32> to vector<16x6144xbf16>
    %10 = vector.extract_strided_slice %9 {offsets = [0, 0], sizes = [16, 768], strides = [1, 1]} : vector<16x6144xbf16> to vector<16x768xbf16>
    %c0_7 = arith.constant 0 : index
    %c0_8 = arith.constant 0 : index
    %c0_9 = arith.constant 0 : index
    %11 = vector.load %arg7[%c0_7, %c0_8, %c0_9] : memref<16x8x768xbf16, #tpu.memory_space<vmem>>, vector<16x1x768xbf16>
    %12 = vector.shape_cast %11 : vector<16x1x768xbf16> to vector<16x768xbf16>
    %13 = vector.shape_cast %10 : vector<16x768xbf16> to vector<16x1x768xbf16>
    tpu.vector_store %arg7[%c0_7, %c0_8, %c0_9], %13 {strides = array<i32>} : memref<16x8x768xbf16, #tpu.memory_space<vmem>>, vector<16x1x768xbf16>,
    %14 = vector.extract_strided_slice %9 {offsets = [0, 768], sizes = [16, 768], strides = [1, 1]} : vector<16x6144xbf16> to vector<16x768xbf16>
    %c0_10 = arith.constant 0 : index
    %c1 = arith.constant 1 : index
    %c0_11 = arith.constant 0 : index
    %15 = vector.load %arg7[%c0_10, %c1, %c0_11] : memref<16x8x768xbf16, #tpu.memory_space<vmem>>, vector<16x1x768xbf16>
    %16 = vector.shape_cast %15 : vector<16x1x768xbf16> to vector<16x768xbf16>
    %17 = vector.shape_cast %14 : vector<16x768xbf16> to vector<16x1x768xbf16>
    tpu.vector_store %arg7[%c0_10, %c1, %c0_11], %17 {strides = array<i32>} : memref<16x8x768xbf16, #tpu.memory_space<vmem>>, vector<16x1x768xbf16>,
    %18 = vector.extract_strided_slice %9 {offsets = [0, 1536], sizes = [16, 768], strides = [1, 1]} : vector<16x6144xbf16> to vector<16x768xbf16>
    %c0_12 = arith.constant 0 : index
    %c2 = arith.constant 2 : index
    %c0_13 = arith.constant 0 : index
    %19 = vector.load %arg7[%c0_12, %c2, %c0_13] : memref<16x8x768xbf16, #tpu.memory_space<vmem>>, vector<16x1x768xbf16>
    %20 = vector.shape_cast %19 : vector<16x1x768xbf16> to vector<16x768xbf16>
    %21 = vector.shape_cast %18 : vector<16x768xbf16> to vector<16x1x768xbf16>
    tpu.vector_store %arg7[%c0_12, %c2, %c0_13], %21 {strides = array<i32>} : memref<16x8x768xbf16, #tpu.memory_space<vmem>>, vector<16x1x768xbf16>,
    %22 = vector.extract_strided_slice %9 {offsets = [0, 2304], sizes = [16, 768], strides = [1, 1]} : vector<16x6144xbf16> to vector<16x768xbf16>
    %c0_14 = arith.constant 0 : index
    %c3 = arith.constant 3 : index
    %c0_15 = arith.constant 0 : index
    %23 = vector.load %arg7[%c0_14, %c3, %c0_15] : memref<16x8x768xbf16, #tpu.memory_space<vmem>>, vector<16x1x768xbf16>
    %24 = vector.shape_cast %23 : vector<16x1x768xbf16> to vector<16x768xbf16>
    %25 = vector.shape_cast %22 : vector<16x768xbf16> to vector<16x1x768xbf16>
    tpu.vector_store %arg7[%c0_14, %c3, %c0_15], %25 {strides = array<i32>} : memref<16x8x768xbf16, #tpu.memory_space<vmem>>, vector<16x1x768xbf16>,
    %26 = vector.extract_strided_slice %9 {offsets = [0, 3072], sizes = [16, 768], strides = [1, 1]} : vector<16x6144xbf16> to vector<16x768xbf16>
    %c0_16 = arith.constant 0 : index
    %c4 = arith.constant 4 : index
    %c0_17 = arith.constant 0 : index
    %27 = vector.load %arg7[%c0_16, %c4, %c0_17] : memref<16x8x768xbf16, #tpu.memory_space<vmem>>, vector<16x1x768xbf16>
    %28 = vector.shape_cast %27 : vector<16x1x768xbf16> to vector<16x768xbf16>
    %29 = vector.shape_cast %26 : vector<16x768xbf16> to vector<16x1x768xbf16>
    tpu.vector_store %arg7[%c0_16, %c4, %c0_17], %29 {strides = array<i32>} : memref<16x8x768xbf16, #tpu.memory_space<vmem>>, vector<16x1x768xbf16>,
    %30 = vector.extract_strided_slice %9 {offsets = [0, 3840], sizes = [16, 768], strides = [1, 1]} : vector<16x6144xbf16> to vector<16x768xbf16>
    %c0_18 = arith.constant 0 : index
    %c5 = arith.constant 5 : index
    %c0_19 = arith.constant 0 : index
    %31 = vector.load %arg7[%c0_18, %c5, %c0_19] : memref<16x8x768xbf16, #tpu.memory_space<vmem>>, vector<16x1x768xbf16>
    %32 = vector.shape_cast %31 : vector<16x1x768xbf16> to vector<16x768xbf16>
    %33 = vector.shape_cast %30 : vector<16x768xbf16> to vector<16x1x768xbf16>
    tpu.vector_store %arg7[%c0_18, %c5, %c0_19], %33 {strides = array<i32>} : memref<16x8x768xbf16, #tpu.memory_space<vmem>>, vector<16x1x768xbf16>,
    %34 = vector.extract_strided_slice %9 {offsets = [0, 4608], sizes = [16, 768], strides = [1, 1]} : vector<16x6144xbf16> to vector<16x768xbf16>
    %c0_20 = arith.constant 0 : index
    %c6 = arith.constant 6 : index
    %c0_21 = arith.constant 0 : index
    %35 = vector.load %arg7[%c0_20, %c6, %c0_21] : memref<16x8x768xbf16, #tpu.memory_space<vmem>>, vector<16x1x768xbf16>
    %36 = vector.shape_cast %35 : vector<16x1x768xbf16> to vector<16x768xbf16>
    %37 = vector.shape_cast %34 : vector<16x768xbf16> to vector<16x1x768xbf16>
    tpu.vector_store %arg7[%c0_20, %c6, %c0_21], %37 {strides = array<i32>} : memref<16x8x768xbf16, #tpu.memory_space<vmem>>, vector<16x1x768xbf16>,
    %38 = vector.extract_strided_slice %9 {offsets = [0, 5376], sizes = [16, 768], strides = [1, 1]} : vector<16x6144xbf16> to vector<16x768xbf16>
    %c0_22 = arith.constant 0 : index
    %c7 = arith.constant 7 : index
    %c0_23 = arith.constant 0 : index
    %39 = vector.load %arg7[%c0_22, %c7, %c0_23] : memref<16x8x768xbf16, #tpu.memory_space<vmem>>, vector<16x1x768xbf16>
    %40 = vector.shape_cast %39 : vector<16x1x768xbf16> to vector<16x768xbf16>
    %41 = vector.shape_cast %38 : vector<16x768xbf16> to vector<16x1x768xbf16>
    tpu.vector_store %arg7[%c0_22, %c7, %c0_23], %41 {strides = array<i32>} : memref<16x8x768xbf16, #tpu.memory_space<vmem>>, vector<16x1x768xbf16>,
    %c0_24 = arith.constant 0 : index
    %c0_25 = arith.constant 0 : index
    %c0_26 = arith.constant 0 : index
    %42 = vector.load %arg7[%c0_24, %c0_25, %c0_26] : memref<16x8x768xbf16, #tpu.memory_space<vmem>>, vector<16x8x768xbf16>
    %c0_27 = arith.constant 0 : index
    %c0_28 = arith.constant 0 : index
    %c0_29 = arith.constant 0 : index
    %43 = vector.load %arg4[%c0_27, %c0_28, %c0_29] : memref<16x10x768xbf16, #tpu.memory_space<vmem>>, vector<16x10x768xbf16>
    "tpu.trace_start"() <{level = 10 : i32, message = "cbp,cop->cbo"}> : () -> ()
    %cst_30 = arith.constant dense<0.000000e+00> : vector<16x8x10xf32>
    %44 = tpu.matmul %42, %43, %cst_30 {dimension_numbers = #tpu.dot_dimension_numbers<[2], [2], [1], [1], [0, 0, 0, 1, 1, 1], [0], [0]>} : vector<16x8x768xbf16>, vector<16x10x768xbf16>, vector<16x8x10xf32> -> vector<16x8x10xf32>
    "tpu.trace_stop"() : () -> ()
    %cst_31 = arith.constant dense<0.000000e+00> : vector<8x10xf32>
    %45 = vector.multi_reduction <add>, %44, %cst_31 [0] : vector<16x8x10xf32> to vector<8x10xf32>
    %c0_32 = arith.constant 0 : index
    %c0_33 = arith.constant 0 : index
    %46 = vector.load %arg5[%c0_32, %c0_33] : memref<1x10xf32, #tpu.memory_space<vmem>>, vector<1x10xf32>
    %47 = vector.broadcast %46 : vector<1x10xf32> to vector<8x10xf32>
    %48 = arith.addf %45, %47 : vector<8x10xf32>
    %c0_34 = arith.constant 0 : index
    %c0_35 = arith.constant 0 : index
    %49 = vector.load %arg6[%c0_34, %c0_35] : memref<8x10xf32, #tpu.memory_space<vmem>>, vector<8x10xf32>
    tpu.vector_store %arg6[%c0_34, %c0_35], %48 {strides = array<i32>} : memref<8x10xf32, #tpu.memory_space<vmem>>, vector<8x10xf32>,
    return
  }
  func.func @transform_0(%arg0: i32) -> (i32, i32, i32) {
    %c0_i32 = arith.constant 0 : i32
    %c0_i32_0 = arith.constant 0 : i32
    %c0_i32_1 = arith.constant 0 : i32
    return %arg0, %c0_i32, %c0_i32_0 : i32, i32, i32
  }
  func.func @transform_1(%arg0: i32) -> (i32, i32) {
    %c0_i32 = arith.constant 0 : i32
    %c0_i32_0 = arith.constant 0 : i32
    %c0_i32_1 = arith.constant 0 : i32
    return %c0_i32, %c0_i32_0 : i32, i32
  }
  func.func @transform_2(%arg0: i32) -> (i32, i32) {
    %c0_i32 = arith.constant 0 : i32
    %c0_i32_0 = arith.constant 0 : i32
    %c0_i32_1 = arith.constant 0 : i32
    return %c0_i32, %c0_i32_0 : i32, i32
  }
  func.func @transform_3(%arg0: i32) -> (i32, i32, i32) {
    %c0_i32 = arith.constant 0 : i32
    %c0_i32_0 = arith.constant 0 : i32
    %c0_i32_1 = arith.constant 0 : i32
    %c0_i32_2 = arith.constant 0 : i32
    return %c0_i32, %c0_i32_0, %c0_i32_1 : i32, i32, i32
  }
  func.func @transform_4(%arg0: i32) -> (i32, i32) {
    %c0_i32 = arith.constant 0 : i32
    %c0_i32_0 = arith.constant 0 : i32
    %c0_i32_1 = arith.constant 0 : i32
    return %c0_i32, %c0_i32_0 : i32, i32
  }
  func.func @transform_5(%arg0: i32) -> (i32, i32) {
    %c0_i32 = arith.constant 0 : i32
    %c0_i32_0 = arith.constant 0 : i32
    return %arg0, %c0_i32 : i32, i32
  }
}

</mosaic_0001>

<bundles_post_ra>
// kernel: squeeze.8
= control target key start
LH: loop header
LB: loop body
LE: loop exit
PB: predicated region body
PF: predicated region fallthrough
CT: control target
= control target key end

     0   :  { %vm725_vm0 = vcmask 1041409   ;;  %vm729_vm1 = vcmask 1042434   ;;  %vm733_vm2 = vcmask 1043459   ;;  %vm868_vm3 = vcmask 130048   ;;  %s2856_s5 = smov 112   ;;  %s2857_s18 = smov 110   ;;  %s3402_s0 = inlined_call_operand.vmem [shape: bf16[12,26,26], index: 0, kind: input, shape index: {}]   ;;  %s3403_s1 = inlined_call_operand.vmem [shape: bf16[12,1,676], index: 1, kind: output, shape index: {}]  }
   0x1   :  { %v2678_v0 = vld [vmem:[%s3402_s0 + $0xb8] sm:$0xff]   ;;  %v2680_v1 = vld [vmem:[%s3402_s0 + $0xa8] sm:$0xff]   ;;  %v2946_v45 = vld [vmem:[%s3402_s0 + $0xb0] sm:$0xff]   ;;  %vm978_vm4 = vcmask 146432   ;;  %vm737_vm5 = vcmask 1044484   ;;  %vm741_vm6 = vcmask 1045509  }
   0x2   :  { %v2682_v2 = vld [vmem:[%s3402_s0 + $0x98] sm:$0xff]   ;;  %v2555_v3 = vunpack.c.h.bf16 %v2678_v0  ;;  %v2563_v4 = vunpack.c.h.bf16 %v2680_v1  ;;  %v2684_v6 = vld [vmem:[%s3402_s0 + $0x88] sm:$0xff]   ;;  %v2554_v8 = vunpack.c.l.bf16 %v2678_v0  ;;  %v2562_v9 = vunpack.c.l.bf16 %v2680_v1  ;;  %v2952_v50 = vld [vmem:[%s3402_s0 + $0xa0] sm:$0xff]   ;;  %s2859_s27 = smov 108   ;;  %s2860_s28 = smov 104  }
   0x3   :  { %v2571_v5 = vunpack.c.h.bf16 %v2682_v2  ;;  %v2579_v7 = vunpack.c.h.bf16 %v2684_v6  ;;  %v2686_v10 = vld [vmem:[%s3402_s0 + $0x78] sm:$0xff]   ;;  %v2570_v11 = vunpack.c.l.bf16 %v2682_v2  ;;  %v2688_v12 = vld [vmem:[%s3402_s0 + $0x68] sm:$0xff]   ;;  %v2578_v13 = vunpack.c.l.bf16 %v2684_v6  ;;  %v2960_v53 = vld [vmem:[%s3402_s0 + $0x90] sm:$0xff]   ;;  %s2861_s29 = smov 86   ;;  %s2862_s30 = smov 82  }
   0x4   :  { %18 = vst [vmem:[#allocation1 + $0x178] sm:$0xff] %v2555_v3  ;;  %v2690_v14 = vld [vmem:[%s3402_s0 + $0x58] sm:$0xff]   ;;  %v2586_v15 = vunpack.c.l.bf16 %v2686_v10  ;;  %v2594_v16 = vunpack.c.l.bf16 %v2688_v12  ;;  %v2692_v17 = vld [vmem:[%s3402_s0 + $0x48] sm:$0xff]   ;;  %v2587_v27 = vunpack.c.h.bf16 %v2686_v10  ;;  %v2595_v31 = vunpack.c.h.bf16 %v2688_v12  ;;  %v2966_v55 = vld [vmem:[%s3402_s0 + $0x80] sm:$0xff]   ;;  %s2863_s2 = smov 80   ;;  %s2864_s3 = smov 60  }
   0x5   :  { %78 = vst [vmem:[#allocation1 + $0x158] sm:$0xff] %v2563_v4  ;;  %v2602_v18 = vunpack.c.l.bf16 %v2690_v14  ;;  %v2611_v19 = vunpack.c.h.bf16 %v2692_v17  ;;  %v2610_v24 = vunpack.c.l.bf16 %v2692_v17  ;;  %v2918_v28 = vld [vmem:[%s3402_s0 + $0x38] sm:$0xff]   ;;  %v2923_v32 = vld [vmem:[%s3402_s0 + $0x28] sm:$0xff]   ;;  %v2603_v35 = vunpack.c.h.bf16 %v2690_v14  ;;  %v2973_v60 = vld [vmem:[%s3402_s0 + $0x70] sm:$0xff]   ;;  %s2865_s4 = smov 84   ;;  %s2867_s6 = smov 54  }
   0x6   :  { %138 = vst [vmem:[#allocation1 + $0x138] sm:$0xff] %v2571_v5  ;;  %v2930_v36 = vld [vmem:[%s3402_s0 + $0x18] sm:$0xff]   ;;  %v2619_v39 = vunpack.c.h.bf16 %v2918_v28  ;;  %v2938_v40 = vld [vmem:[%s3402_s0 + $0x8] sm:$0xff]   ;;  %v2627_v44 = vunpack.c.h.bf16 %v2923_v32  ;;  %v2559_v54 = vunpack.c.h.bf16 %v2946_v45  ;;  %v2567_v59 = vunpack.c.h.bf16 %v2952_v50  ;;  %v2979_v63 = vld [vmem:[%s3402_s0 + $0x60] sm:$0xff]   ;;  %s2868_s7 = smov 78   ;;  %s2869_s8 = smov 52  }
   0x7   :  { %198 = vst [vmem:[#allocation1 + $0x118] sm:$0xff] %v2579_v7  ;;  %v2635_v49 = vunpack.c.h.bf16 %v2930_v36  ;;  %v2643_v52 = vunpack.c.h.bf16 %v2938_v40  ;;  %v2575_v62 = vunpack.c.h.bf16 %v2960_v53  ;;  %v2583_v2 = vunpack.c.h.bf16 %v2966_v55  ;;  %v2985_v3 = vld [vmem:[%s3402_s0 + $0x50] sm:$0xff]   ;;  %v2693_v7 = vld [vmem:[%s3402_s0 + $0x40] sm:$0xff]   ;;  %s2870_s9 = smov 32   ;;  %s2871_s10 = smov 56  }
   0x8   :  { %33 = vst [vmem:[#allocation1 + $0x170] sm:$0xff] %v2554_v8  ;;  %v2591_v6 = vunpack.c.h.bf16 %v2973_v60  ;;  %vm745_vm7 = vcmask 1046534   ;;  %vm749_vm8 = vcmask 1047559   ;;  %vm1200_vm9 = vcmask 179200   ;;  %s2872_s11 = smov 30   ;;  %s2873_s12 = smov 26  }
   0x9   :  { %93 = vst [vmem:[#allocation1 + $0x150] sm:$0xff] %v2562_v9  ;;  %v2599_v9 = vunpack.c.h.bf16 %v2979_v63  ;;  %vm1090_vm10 = vcmask 162816   ;;  %v2618_v28 = vunpack.c.l.bf16 %v2918_v28  ;;  %v2626_v32 = vunpack.c.l.bf16 %v2923_v32  ;;  %s2874_s13 = smov 34   ;;  %s2875_s14 = smov 10  }
   0xa   :  { %153 = vst [vmem:[#allocation1 + $0x130] sm:$0xff] %v2570_v11  ;;  %v2607_v11 = vunpack.c.h.bf16 %v2985_v3  ;;  %v2634_v36 = vunpack.c.l.bf16 %v2930_v36  ;;  %v2642_v40 = vunpack.c.l.bf16 %v2938_v40  ;;  %v2566_v50 = vunpack.c.l.bf16 %v2952_v50  ;;  %s2876_s15 = smov 6   ;;  %s2877_s16 = smov 28  }
   0xb   :  { %213 = vst [vmem:[#allocation1 + $0x110] sm:$0xff] %v2578_v13  ;;  %v851_v21 = vld [vmem:[#allocation1 + $0x175] sm:$0x8]   ;;  %v2615_v13 = vunpack.c.h.bf16 %v2693_v7  ;;  %v2558_v45 = vunpack.c.l.bf16 %v2946_v45  ;;  %vm1307_vm11 = vcmask 195584   ;;  %s2878_s17 = smov 4   ;;  %vm1057_vm12 = vcmask 1048416  }
   0xc   :  { %v847_v20 = vld [vmem:[#allocation1 + $0x156] sm:$0x4]   ;;  %273 = vst [vmem:[#allocation1 + $0xf0] sm:$0xff] %v2586_v15  ;;  %vm802_vm13 = vcmask 80896   ;;  %vm837_vm14 = vcmask 1048448   ;;  %vm910_vm15 = vcmask 64512  }
   0xd   :  { %v861_v22 = vld [vmem:[#allocation1 + $0x156] sm:$0x4]   ;;  %333 = vst [vmem:[#allocation1 + $0xd0] sm:$0xff] %v2594_v16  ;;  %s2880_s19 = smov 2  }
   0xe   :  { %v865_v23 = vld [vmem:[#allocation1 + $0x175] sm:$0x8]   ;;  %393 = vst [vmem:[#allocation1 + $0xb0] sm:$0xff] %v2602_v18  ;;  %v2614_v18 = vunpack.c.l.bf16 %v2693_v7 }
   0xf   :  { %v843_v25 = vld [vmem:[#allocation1 + $0x137] sm:$0x2]   ;;  %438 = vst [vmem:[#allocation1 + $0x98] sm:$0xff] %v2611_v19  ;;  %v961_v57 = vld [vmem:[#allocation1 + $0x170] sm:$0x8]  }
  0x10   :  { %v857_v26 = vld [vmem:[#allocation1 + $0x137] sm:$0x2]   ;;  %453 = vst [vmem:[#allocation1 + $0x90] sm:$0xff] %v2610_v24  ;;  %v957_v48 = vld [vmem:[#allocation1 + $0x151] sm:$0x4]  }
  0x11   :  { %v841_v29 = vld [vmem:[#allocation1 + $0x118] sm:$0x1]   ;;  %v953_v43 = vld [vmem:[#allocation1 + $0x132] sm:$0x2]   ;;  %258 = vst [vmem:[#allocation1 + $0xf8] sm:$0xff] %v2587_v27 }
  0x12   :  { %v855_v30 = vld [vmem:[#allocation1 + $0x118] sm:$0x1]   ;;  %v845_v33 = vsel %vm725_vm0, %v843_v25, %v841_v29  ;;  %v951_v47 = vld [vmem:[#allocation1 + $0x113] sm:$0x1]   ;;  %318 = vst [vmem:[#allocation1 + $0xd8] sm:$0xff] %v2595_v31 }
  0x13   :  { %v859_v34 = vsel %vm725_vm0, %v857_v26, %v855_v30  ;;  %v849_v37 = vsel %vm729_vm1, %v847_v20, %v845_v33  ;;  %v955_v51 = vsel %vm725_vm0, %v953_v43, %v951_v47  ;;  %378 = vst [vmem:[#allocation1 + $0xb8] sm:$0xff] %v2603_v35  ;;  %v975_v1 = vld [vmem:[#allocation1 + $0xf0] sm:$0x8]   ;;  %v2598_v26 = vunpack.c.l.bf16 %v2979_v63 }
  0x14   :  { %v863_v38 = vsel %vm729_vm1, %v861_v22, %v859_v34  ;;  %v853_v41 = vsel %vm733_vm2, %v851_v21, %v849_v37  ;;  %498 = vst [vmem:[#allocation1 + $0x78] sm:$0xff] %v2619_v39  ;;  %v959_v56 = vsel %vm729_vm1, %v957_v48, %v955_v51  ;;  %v971_v61 = vld [vmem:[#allocation1 + $0xd1] sm:$0x4]  }
  0x15   :  { %v867_v42 = vsel %vm733_vm2, %v865_v23, %v863_v38  ;;  %v967_v58 = vld [vmem:[#allocation1 + $0xb2] sm:$0x2]   ;;  %558 = vst [vmem:[#allocation1 + $0x58] sm:$0xff] %v2627_v44  ;;  %v963_v4 = vsel %vm733_vm2, %v961_v57, %v959_v56  ;;  %v2590_v23 = vunpack.c.l.bf16 %v2973_v60  ;;  %v3030_v60 = vld [vmem:[%s3402_s0] sm:$0xff]  }
  0x16   :  { %v869_v46 = vsel %vm868_vm3, %v867_v42, %v853_v41  ;;  %618 = vst [vmem:[#allocation1 + $0x38] sm:$0xff] %v2635_v49  ;;  %v785_v20 = vld [vmem:[#allocation1 + $0x94] sm:$0x10]   ;;  %v3005_v33 = vld [vmem:[%s3402_s0 + $0x30] sm:$0xff]   ;;  %vm945_vm3 = vcmask 1048432  }
  0x17   :  { %870 = vrot.lane.b32.xlu0 %v869_v46, %s2856_s5  ;;  %v965_v0 = vld [vmem:[#allocation1 + $0x93] sm:$0x1]   ;;  %678 = vst [vmem:[#allocation1 + $0x18] sm:$0xff] %v2643_v52  ;;  %v820_v22 = vld [vmem:[#allocation1 + $0x94] sm:$0x10]   ;;  %v3014_v46 = vld [vmem:[%s3402_s0 + $0x20] sm:$0xff]   ;;  %v2606_v52 = vunpack.c.l.bf16 %v2985_v3 }
  0x18   :  { %v969_v5 = vsel %vm725_vm0, %v967_v58, %v965_v0  ;;  %48 = vst [vmem:[#allocation1 + $0x168] sm:$0xff] %v2559_v54  ;;  %v797_v37 = vld [vmem:[#allocation1 + $0xf1] sm:$0x80]  }
  0x19   :  { %v973_v8 = vsel %vm729_vm1, %v971_v61, %v969_v5  ;;  %108 = vst [vmem:[#allocation1 + $0x148] sm:$0xff] %v2567_v59  ;;  %v793_v29 = vld [vmem:[#allocation1 + $0xd2] sm:$0x40]   ;;  %v3025_v59 = vld [vmem:[%s3402_s0 + $0x10] sm:$0xff]   ;;  %s2858_s0 = smov 106  }
  0x1a   :  { %v977_v10 = vsel %vm733_vm2, %v975_v1, %v973_v8  ;;  %168 = vst [vmem:[#allocation1 + $0x128] sm:$0xff] %v2575_v62  ;;  %v828_v31 = vld [vmem:[#allocation1 + $0xd2] sm:$0x40]  }
  0x1b   :  { %v979_v12 = vsel %vm978_vm4, %v977_v10, %v963_v4  ;;  %228 = vst [vmem:[#allocation1 + $0x108] sm:$0xff] %v2583_v2  ;;  %v781_v15 = vld [vmem:[#allocation1 + $0x75] sm:$0x8]   ;;  %vm1020_vm4 = vcmask 48128  }
  0x1c   :  { %980 = vrot.lane.b32.xlu1 %v979_v12, %s2857_s18  ;;  %v777_v14 = vld [vmem:[#allocation1 + $0x56] sm:$0x4]   ;;  %288 = vst [vmem:[#allocation1 + $0xe8] sm:$0xff] %v2591_v6  ;;  %v2623_v6 = vunpack.c.h.bf16 %v3005_v33  ;;  %v2631_v12 = vunpack.c.h.bf16 %v3014_v46  ;;  %v2622_v33 = vunpack.c.l.bf16 %v3005_v33 }
  0x1d   :  { %v812_v16 = vld [vmem:[#allocation1 + $0x56] sm:$0x4]   ;;  %348 = vst [vmem:[#allocation1 + $0xc8] sm:$0xff] %v2599_v9 }
  0x1e   :  { %v816_v17 = vld [vmem:[#allocation1 + $0x75] sm:$0x8]   ;;  %408 = vst [vmem:[#allocation1 + $0xa8] sm:$0xff] %v2607_v11 }
  0x1f   :  { %v773_v19 = vld [vmem:[#allocation1 + $0x37] sm:$0x2]   ;;  %468 = vst [vmem:[#allocation1 + $0x88] sm:$0xff] %v2615_v13  ;;  %v1197_v58 = vld [vmem:[#allocation1 + $0x166] sm:$0x8]  }
  0x20   :  { %v808_v21 = vld [vmem:[#allocation1 + $0x37] sm:$0x2]   ;;  %483 = vst [vmem:[#allocation1 + $0x80] sm:$0xff] %v2614_v18  ;;  %v1193_v44 = vld [vmem:[#allocation1 + $0x147] sm:$0x4]   ;;  %v2647_v18 = vunpack.c.h.bf16 %v3030_v60 }
  0x21   :  { %v771_v24 = vld [vmem:[#allocation1 + $0x18] sm:$0x1]   ;;  %v1189_v43 = vld [vmem:[#allocation1 + $0x128] sm:$0x2]   ;;  %303 = vst [vmem:[#allocation1 + $0xe0] sm:$0xff] %v2590_v23 }
  0x22   :  { %v806_v25 = vld [vmem:[#allocation1 + $0x18] sm:$0x1]   ;;  %v775_v27 = vsel %vm725_vm0, %v773_v19, %v771_v24  ;;  %v1187_v51 = vld [vmem:[#allocation1 + $0x109] sm:$0x1]   ;;  %363 = vst [vmem:[#allocation1 + $0xc0] sm:$0xff] %v2598_v26 }
  0x23   :  { %v810_v30 = vsel %vm725_vm0, %v808_v21, %v806_v25  ;;  %v779_v34 = vsel %vm729_vm1, %v777_v14, %v775_v27  ;;  %v789_v35 = vld [vmem:[#allocation1 + $0xb3] sm:$0x20]   ;;  %v1191_v57 = vsel %vm725_vm0, %v1189_v43, %v1187_v51  ;;  %v1183_v0 = vld [vmem:[#allocation1 + $0xe6] sm:$0x8]   ;;  %v1073_v3 = vld [vmem:[#allocation1 + $0xeb] sm:$0x8]   ;;  %v2630_v43 = vunpack.c.l.bf16 %v3014_v46 }
  0x24   :  { %v814_v38 = vsel %vm729_vm1, %v812_v16, %v810_v30  ;;  %v824_v39 = vld [vmem:[#allocation1 + $0xb3] sm:$0x20]   ;;  %v783_v41 = vsel %vm733_vm2, %v781_v15, %v779_v34  ;;  %v1179_v63 = vld [vmem:[#allocation1 + $0xc7] sm:$0x4]   ;;  %v1195_v1 = vsel %vm729_vm1, %v1193_v44, %v1191_v57  ;;  %v1069_v2 = vld [vmem:[#allocation1 + $0xcc] sm:$0x4]  }
  0x25   :  { %v818_v42 = vsel %vm733_vm2, %v816_v17, %v814_v38  ;;  %v787_v47 = vsel %vm737_vm5, %v785_v20, %v783_v41  ;;  %v832_v49 = vld [vmem:[#allocation1 + $0xf1] sm:$0x80]   ;;  %v1083_v4 = vld [vmem:[#allocation1 + $0xcc] sm:$0x4]   ;;  %v1175_v9 = vld [vmem:[#allocation1 + $0xa8] sm:$0x2]   ;;  %v2639_v17 = vunpack.c.h.bf16 %v3025_v59  ;;  %v1199_v20 = vsel %vm733_vm2, %v1197_v58, %v1195_v1 }
  0x26   :  { %v822_v48 = vsel %vm737_vm5, %v820_v22, %v818_v42  ;;  %v791_v54 = vsel %vm741_vm6, %v789_v35, %v787_v47  ;;  %v1087_v5 = vld [vmem:[#allocation1 + $0xeb] sm:$0x8]   ;;  %v1173_v14 = vld [vmem:[#allocation1 + $0x89] sm:$0x1]   ;;  %423 = vst [vmem:[#allocation1 + $0xa0] sm:$0xff] %v2606_v52  ;;  %v2638_v47 = vunpack.c.l.bf16 %v3025_v59 }
  0x27   :  { %v826_v56 = vsel %vm741_vm6, %v824_v39, %v822_v48  ;;  %v795_v61 = vsel %vm745_vm7, %v793_v29, %v791_v54  ;;  %v1065_v10 = vld [vmem:[#allocation1 + $0xad] sm:$0x2]   ;;  %v1177_v19 = vsel %vm725_vm0, %v1175_v9, %v1173_v14  ;;  %v1101_v23 = vld [vmem:[#allocation1 + $0x109] sm:$0x1]   ;;  %528 = vst [vmem:[#allocation1 + $0x68] sm:$0xff] %v2623_v6  ;;  %v2574_v9 = vunpack.c.l.bf16 %v2960_v53 }
  0x28   :  { %v830_v62 = vsel %vm745_vm7, %v828_v31, %v826_v56  ;;  %v799_v7 = vsel %vm749_vm8, %v797_v37, %v795_v61  ;;  %v1079_v11 = vld [vmem:[#allocation1 + $0xad] sm:$0x2]   ;;  %v1103_v24 = vld [vmem:[#allocation1 + $0x128] sm:$0x2]   ;;  %v1181_v25 = vsel %vm729_vm1, %v1179_v63, %v1177_v19  ;;  %588 = vst [vmem:[#allocation1 + $0x48] sm:$0xff] %v2631_v12 }
  0x29   :  { %v834_v8 = vsel %vm749_vm8, %v832_v49, %v830_v62  ;;  %v1063_v15 = vld [vmem:[#allocation1 + $0x8e] sm:$0x1]   ;;  %v1185_v29 = vsel %vm733_vm2, %v1183_v0, %v1181_v25  ;;  %648 = vst [vmem:[#allocation1 + $0x28] sm:$0xff] %v2639_v17  ;;  %v1105_v37 = vsel %vm725_vm0, %v1103_v24, %v1101_v23  ;;  %v1107_v38 = vld [vmem:[#allocation1 + $0x147] sm:$0x4]  }
  0x2a   :  { %v2731_v13 = vpack.i.bf16 %v834_v8, %v799_v7  ;;  %v1077_v16 = vld [vmem:[#allocation1 + $0x8e] sm:$0x1]   ;;  %v1067_v21 = vsel %vm725_vm0, %v1065_v10, %v1063_v15  ;;  %v1201_v34 = vsel %vm1200_vm9, %v1199_v20, %v1185_v29  ;;  %708 = vst [vmem:[#allocation1 + $0x8] sm:$0xff] %v2647_v18  ;;  %v914_v39 = vld [vmem:[#allocation1 + $0x113] sm:$0x1]   ;;  %v1109_v46 = vsel %vm729_vm1, %v1107_v38, %v1105_v37 }
  0x2b   :  { %v1081_v22 = vsel %vm725_vm0, %v1079_v11, %v1077_v16  ;;  %v1071_v26 = vsel %vm729_vm1, %v1069_v2, %v1067_v21  ;;  %1202 = vrot.lane.b32.xlu1 %v1201_v34, %s2858_s0  ;;  %v916_v41 = vld [vmem:[#allocation1 + $0x132] sm:$0x2]   ;;  %v1111_v42 = vld [vmem:[#allocation1 + $0x166] sm:$0x8]   ;;  %513 = vst [vmem:[#allocation1 + $0x70] sm:$0xff] %v2618_v28  ;;  %v2582_v10 = vunpack.c.l.bf16 %v2966_v55  ;;  %v2646_v34 = vunpack.c.l.bf16 %v3030_v60 }
  0x2c   :  { %2732 = vrot.lane.b32.xlu0 %v2731_v13, %s2856_s5  ;;  %v1085_v27 = vsel %vm729_vm1, %v1083_v4, %v1081_v22  ;;  %v1075_v30 = vsel %vm733_vm2, %v1073_v3, %v1071_v26  ;;  %v989_v44 = vld [vmem:[#allocation1 + $0x10e] sm:$0x1]   ;;  %573 = vst [vmem:[#allocation1 + $0x50] sm:$0xff] %v2626_v32  ;;  %v918_v51 = vsel %vm725_vm0, %v916_v41, %v914_v39  ;;  %v920_v52 = vld [vmem:[#allocation1 + $0x151] sm:$0x4]   ;;  %s2866_s5 = smov 58  }
  0x2d   :  { %v1089_v31 = vsel %vm733_vm2, %v1087_v5, %v1085_v27  ;;  %v991_v48 = vld [vmem:[#allocation1 + $0x12d] sm:$0x2]   ;;  %633 = vst [vmem:[#allocation1 + $0x30] sm:$0xff] %v2634_v36  ;;  %v924_v57 = vld [vmem:[#allocation1 + $0x170] sm:$0x8]   ;;  %v1113_v59 = vsel %vm733_vm2, %v1111_v42, %v1109_v46  ;;  %v922_v4 = vsel %vm729_vm1, %v920_v52, %v918_v51  ;;  %vm1569_vm9 = vcmask 851568  }
  0x2e   :  { %v1091_v35 = vsel %vm1090_vm10, %v1089_v31, %v1075_v30  ;;  %v995_v49 = vld [vmem:[#allocation1 + $0x14c] sm:$0x4]   ;;  %v993_v54 = vsel %vm725_vm0, %v991_v48, %v989_v44  ;;  %693 = vst [vmem:[#allocation1 + $0x10] sm:$0xff] %v2642_v40  ;;  %v1148_v63 = vld [vmem:[#allocation1 + $0x66] sm:$0x8]   ;;  %v926_v23 = vsel %vm733_vm2, %v924_v57, %v922_v4  ;;  %vm1459_vm10 = vcmask 884368  }
  0x2f   :  { %1092 = vrot.lane.b32.xlu2 %v1091_v35, %s2859_s27  ;;  %v999_v56 = vld [vmem:[#allocation1 + $0x16b] sm:$0x8]   ;;  %v997_v58 = vsel %vm729_vm1, %v995_v49, %v993_v54  ;;  %v1123_v61 = vld [vmem:[#allocation1 + $0x43] sm:$0x40]   ;;  %603 = vst [vmem:[#allocation1 + $0x40] sm:$0xff] %v2630_v43 }
  0x30   :  { %v1144_v62 = vld [vmem:[#allocation1 + $0x47] sm:$0x4]   ;;  %v1001_v0 = vsel %vm733_vm2, %v999_v56, %v997_v58  ;;  %663 = vst [vmem:[#allocation1 + $0x20] sm:$0xff] %v2638_v47  ;;  %v1007_v16 = vld [vmem:[#allocation1 + $0x29] sm:$0x20]  }
  0x31   :  { %v1119_v1 = vld [vmem:[#allocation1 + $0x24] sm:$0x20]   ;;  %v1003_v8 = vld [vmem:[#allocation1 + $0xa] sm:$0x10]   ;;  %v893_v30 = vld [vmem:[#allocation1 + $0x8f] sm:$0x10]  }
  0x32   :  { %v1140_v2 = vld [vmem:[#allocation1 + $0x28] sm:$0x2]   ;;  %v1005_v15 = vsel %vm737_vm5, %v1003_v8, %v1001_v0  ;;  %v1026_v17 = vld [vmem:[#allocation1 + $0x10e] sm:$0x1]   ;;  %v889_v22 = vld [vmem:[#allocation1 + $0x70] sm:$0x8]  }
  0x33   :  { %v1152_v3 = vld [vmem:[#allocation1 + $0x85] sm:$0x10]   ;;  %v885_v21 = vld [vmem:[#allocation1 + $0x51] sm:$0x4]   ;;  %v1009_v25 = vsel %vm741_vm6, %v1007_v16, %v1005_v15  ;;  %v1011_v26 = vld [vmem:[#allocation1 + $0x48] sm:$0x40]  }
  0x34   :  { %v1115_v5 = vld [vmem:[#allocation1 + $0x5] sm:$0x10]   ;;  %v936_v24 = vld [vmem:[#allocation1 + $0x4d] sm:$0x40]   ;;  %v1015_v32 = vld [vmem:[#allocation1 + $0x67] sm:$0x80]   ;;  %v1013_v41 = vsel %vm745_vm7, %v1011_v26, %v1009_v25 }
  0x35   :  { %v1138_v6 = vld [vmem:[#allocation1 + $0x9] sm:$0x1]   ;;  %v1117_v11 = vsel %vm737_vm5, %v1115_v5, %v1113_v59  ;;  %v881_v29 = vld [vmem:[#allocation1 + $0x32] sm:$0x2]   ;;  %v1028_v42 = vld [vmem:[#allocation1 + $0x12d] sm:$0x2]   ;;  %v1017_v8 = vsel %vm749_vm8, %v1015_v32, %v1013_v41 }
  0x36   :  { %v1156_v7 = vld [vmem:[#allocation1 + $0xa4] sm:$0x20]   ;;  %v1142_v13 = vsel %vm725_vm0, %v1140_v2, %v1138_v6  ;;  %v1121_v18 = vsel %vm741_vm6, %v1119_v1, %v1117_v11  ;;  %v932_v31 = vld [vmem:[#allocation1 + $0x2e] sm:$0x20]   ;;  %v1030_v48 = vsel %vm725_vm0, %v1028_v42, %v1026_v17  ;;  %v1032_v49 = vld [vmem:[#allocation1 + $0x14c] sm:$0x4]  }
  0x37   :  { %v1127_v12 = vld [vmem:[#allocation1 + $0x62] sm:$0x80]   ;;  %v1146_v19 = vsel %vm729_vm1, %v1144_v62, %v1142_v13  ;;  %v1125_v27 = vsel %vm745_vm7, %v1123_v61, %v1121_v18  ;;  %v879_v38 = vld [vmem:[#allocation1 + $0x13] sm:$0x1]   ;;  %v1036_v51 = vld [vmem:[#allocation1 + $0x16b] sm:$0x8]   ;;  %v1034_v59 = vsel %vm729_vm1, %v1032_v49, %v1030_v48 }
  0x38   :  { %v1160_v14 = vld [vmem:[#allocation1 + $0xc3] sm:$0x40]   ;;  %v1150_v28 = vsel %vm733_vm2, %v1148_v63, %v1146_v19  ;;  %v1129_v35 = vsel %vm749_vm8, %v1127_v12, %v1125_v27  ;;  %v897_v36 = vld [vmem:[#allocation1 + $0xae] sm:$0x20]   ;;  %v883_v44 = vsel %vm725_vm0, %v881_v29, %v879_v38  ;;  %v1040_v52 = vld [vmem:[#allocation1 + $0xa] sm:$0x10]  }
  0x39   :  { %v1164_v20 = vld [vmem:[#allocation1 + $0xe2] sm:$0x80]   ;;  %v1154_v37 = vsel %vm737_vm5, %v1152_v3, %v1150_v28  ;;  %v928_v40 = vld [vmem:[#allocation1 + $0xf] sm:$0x10]   ;;  %v887_v56 = vsel %vm729_vm1, %v885_v21, %v883_v44  ;;  %v1044_v61 = vld [vmem:[#allocation1 + $0x29] sm:$0x20]   ;;  %v1038_v3 = vsel %vm733_vm2, %v1036_v51, %v1034_v59 }
  0x3a   :  { %v940_v39 = vld [vmem:[#allocation1 + $0x6c] sm:$0x80]   ;;  %v1158_v43 = vsel %vm741_vm6, %v1156_v7, %v1154_v37  ;;  %v930_v47 = vsel %vm737_vm5, %v928_v40, %v926_v23  ;;  %v1048_v62 = vld [vmem:[#allocation1 + $0x48] sm:$0x40]   ;;  %v891_v1 = vsel %vm733_vm2, %v889_v22, %v887_v56  ;;  %63 = vst [vmem:[#allocation1 + $0x160] sm:$0xff] %v2558_v45  ;;  %v1042_v11 = vsel %vm737_vm5, %v1040_v52, %v1038_v3 }
  0x3b   :  { %v901_v46 = vld [vmem:[#allocation1 + $0xcd] sm:$0x40]   ;;  %v1162_v54 = vsel %vm745_vm7, %v1160_v14, %v1158_v43  ;;  %v934_v58 = vsel %vm741_vm6, %v932_v31, %v930_v47  ;;  %v1052_v63 = vld [vmem:[#allocation1 + $0x67] sm:$0x80]   ;;  %v1318_v4 = vld [vmem:[#allocation1 + $0x17] sm:$0x1]   ;;  %v895_v7 = vsel %vm737_vm5, %v893_v30, %v891_v1  ;;  %v1046_v16 = vsel %vm741_vm6, %v1044_v61, %v1042_v11 }
  0x3c   :  { %v905_v57 = vld [vmem:[#allocation1 + $0xec] sm:$0x80]   ;;  %v1166_v0 = vsel %vm749_vm8, %v1164_v20, %v1162_v54  ;;  %v938_v2 = vsel %vm745_vm7, %v936_v24, %v934_v58  ;;  %v1320_v5 = vld [vmem:[#allocation1 + $0x36] sm:$0x2]   ;;  %123 = vst [vmem:[#allocation1 + $0x140] sm:$0xff] %v2566_v50  ;;  %v899_v14 = vsel %vm741_vm6, %v897_v36, %v895_v7  ;;  %v1050_v50 = vsel %vm745_vm7, %v1048_v62, %v1046_v16 }
  0x3d   :  { %v2746_v6 = vpack.i.bf16 %v1166_v0, %v1129_v35  ;;  %v1324_v12 = vld [vmem:[#allocation1 + $0x55] sm:$0x4]   ;;  %v942_v15 = vsel %vm749_vm8, %v940_v39, %v938_v2  ;;  %183 = vst [vmem:[#allocation1 + $0x120] sm:$0xff] %v2574_v9  ;;  %v1322_v53 = vsel %vm725_vm0, %v1320_v5, %v1318_v4  ;;  %v903_v17 = vsel %vm745_vm7, %v901_v46, %v899_v14  ;;  %v1213_v46 = vld [vmem:[#allocation1 + $0x23] sm:$0x2]  }
  0x3e   :  { %v1328_v13 = vld [vmem:[#allocation1 + $0x74] sm:$0x8]   ;;  %243 = vst [vmem:[#allocation1 + $0x100] sm:$0xff] %v2582_v10  ;;  %v1326_v55 = vsel %vm729_vm1, %v1324_v12, %v1322_v53  ;;  %v907_v19 = vsel %vm749_vm8, %v905_v57, %v903_v17  ;;  %v1054_v20 = vsel %vm749_vm8, %v1052_v63, %v1050_v50  ;;  %v1217_v47 = vld [vmem:[#allocation1 + $0x42] sm:$0x4]  }
  0x3f   :  { %v1332_v9 = vld [vmem:[#allocation1 + $0x93] sm:$0x10]   ;;  %2747 = vrot.lane.b32.xlu0 %v2746_v6, %s2858_s0  ;;  %v1330_v21 = vsel %vm733_vm2, %v1328_v13, %v1326_v55  ;;  %v2736_v25 = vpack.i.bf16 %v942_v15, %v907_v19  ;;  %v2741_v26 = vpack.i.bf16 %v1054_v20, %v1017_v8  ;;  %543 = vst [vmem:[#allocation1 + $0x60] sm:$0xff] %v2622_v33  ;;  %v1248_v48 = vld [vmem:[#allocation1 + $0x23] sm:$0x2]  }
  0x40   :  { %v1336_v10 = vld [vmem:[#allocation1 + $0xb2] sm:$0x20]   ;;  %v1334_v27 = vsel %vm737_vm5, %v1332_v9, %v1330_v21  ;;  %721 = vst [vmem:[#allocation1] sm:$0xff] %v2646_v34  ;;  %v1225_v54 = vld [vmem:[#allocation1 + $0x80] sm:$0x10]  }
  0x41   :  { %v1340_v18 = vld [vmem:[#allocation1 + $0xd1] sm:$0x40]   ;;  %v1338_v31 = vsel %vm741_vm6, %v1336_v10, %v1334_v27  ;;  %2737 = vrot.lane.b32.xlu1 %v2736_v25, %s2857_s18  ;;  %2742 = vrot.lane.b32.xlu2 %v2741_v26, %s2859_s27  ;;  %v1290_v34 = vld [vmem:[#allocation1 + $0x161] sm:$0x8]   ;;  %v1428_v7 = vld [vmem:[#allocation1 + $0x10d] sm:$0x1]  }
  0x42   :  { %v1353_v22 = vld [vmem:[#allocation1 + $0x117] sm:$0x1]   ;;  %v1342_v60 = vsel %vm745_vm7, %v1340_v18, %v1338_v31  ;;  %v1304_v42 = vld [vmem:[#allocation1 + $0x161] sm:$0x8]   ;;  %v1430_v8 = vld [vmem:[#allocation1 + $0x12c] sm:$0x2]  }
  0x43   :  { %v1355_v23 = vld [vmem:[#allocation1 + $0x136] sm:$0x2]   ;;  %v1286_v45 = vld [vmem:[#allocation1 + $0x142] sm:$0x4]   ;;  %v1434_v11 = vld [vmem:[#allocation1 + $0x14b] sm:$0x4]   ;;  %v1432_v16 = vsel %vm725_vm0, %v1430_v8, %v1428_v7 }
  0x44   :  { %v1359_v24 = vld [vmem:[#allocation1 + $0x155] sm:$0x4]   ;;  %v1357_v29 = vsel %vm725_vm0, %v1355_v23, %v1353_v22  ;;  %v1282_v38 = vld [vmem:[#allocation1 + $0x123] sm:$0x2]   ;;  %v1438_v53 = vld [vmem:[#allocation1 + $0x16a] sm:$0x8]   ;;  %v1436_v55 = vsel %vm729_vm1, %v1434_v11, %v1432_v16 }
  0x45   :  { %v1344_v28 = vld [vmem:[#allocation1 + $0xf0] sm:$0x80]   ;;  %v1361_v32 = vsel %vm729_vm1, %v1359_v24, %v1357_v29  ;;  %v1296_v36 = vld [vmem:[#allocation1 + $0x123] sm:$0x2]   ;;  %v1442_v9 = vld [vmem:[#allocation1 + $0x9] sm:$0x10]   ;;  %v1440_v22 = vsel %vm733_vm2, %v1438_v53, %v1436_v55 }
  0x46   :  { %v1363_v30 = vld [vmem:[#allocation1 + $0x174] sm:$0x8]   ;;  %v1346_v35 = vsel %vm749_vm8, %v1344_v28, %v1342_v60  ;;  %v1300_v40 = vld [vmem:[#allocation1 + $0x142] sm:$0x4]   ;;  %v1446_v10 = vld [vmem:[#allocation1 + $0x28] sm:$0x20]   ;;  %v1444_v28 = vsel %vm737_vm5, %v1442_v9, %v1440_v22 }
  0x47   :  { %v1365_v37 = vsel %vm733_vm2, %v1363_v30, %v1361_v32  ;;  %v1280_v39 = vld [vmem:[#allocation1 + $0x104] sm:$0x1]   ;;  %v1450_v18 = vld [vmem:[#allocation1 + $0x47] sm:$0x40]   ;;  %v1484_v31 = vld [vmem:[#allocation1 + $0x8] sm:$0x1]  }
  0x48   :  { %v1294_v41 = vld [vmem:[#allocation1 + $0x104] sm:$0x1]   ;;  %v1284_v33 = vsel %vm725_vm0, %v1282_v38, %v1280_v39  ;;  %v2756_v44 = vpack.i.bf16 %v1365_v37, %v1346_v35  ;;  %v1465_v19 = vld [vmem:[#allocation1 + $0x8d] sm:$0x1]   ;;  %v1486_v32 = vld [vmem:[#allocation1 + $0x27] sm:$0x2]  }
  0x49   :  { %v1298_v43 = vsel %vm725_vm0, %v1296_v36, %v1294_v41  ;;  %v1288_v49 = vsel %vm729_vm1, %v1286_v45, %v1284_v33  ;;  %v1221_v52 = vld [vmem:[#allocation1 + $0x61] sm:$0x8]   ;;  %v1467_v23 = vld [vmem:[#allocation1 + $0xac] sm:$0x2]   ;;  %v1490_v37 = vld [vmem:[#allocation1 + $0x46] sm:$0x4]  }
  0x4a   :  { %v1302_v51 = vsel %vm729_vm1, %v1300_v40, %v1298_v43  ;;  %v1252_v56 = vld [vmem:[#allocation1 + $0x42] sm:$0x4]   ;;  %v1292_v58 = vsel %vm733_vm2, %v1290_v34, %v1288_v49  ;;  %2757 = vrot.lane.b32.xlu1 %v2756_v44, %s2861_s29  ;;  %v1471_v24 = vld [vmem:[#allocation1 + $0xcb] sm:$0x4]   ;;  %v1469_v30 = vsel %vm725_vm0, %v1467_v23, %v1465_v19  ;;  %v1448_v34 = vsel %vm741_vm6, %v1446_v10, %v1444_v28  ;;  %v1494_v38 = vld [vmem:[#allocation1 + $0x65] sm:$0x8]  }
  0x4b   :  { %v1260_v57 = vld [vmem:[#allocation1 + $0x80] sm:$0x10]   ;;  %v1306_v59 = vsel %vm733_vm2, %v1304_v42, %v1302_v51  ;;  %v1475_v25 = vld [vmem:[#allocation1 + $0xea] sm:$0x8]   ;;  %v1473_v35 = vsel %vm729_vm1, %v1471_v24, %v1469_v30  ;;  %v1452_v39 = vsel %vm745_vm7, %v1450_v18, %v1448_v34  ;;  %v1498_v42 = vld [vmem:[#allocation1 + $0x84] sm:$0x10]  }
  0x4c   :  { %v1211_v61 = vld [vmem:[#allocation1 + $0x4] sm:$0x1]   ;;  %v1308_v2 = vsel %vm1307_vm11, %v1306_v59, %v1292_v58  ;;  %v1454_v29 = vld [vmem:[#allocation1 + $0x66] sm:$0x80]   ;;  %v1477_v41 = vsel %vm733_vm2, %v1475_v25, %v1473_v35  ;;  %v1502_v33 = vld [vmem:[#allocation1 + $0xa3] sm:$0x20]  }
  0x4d   :  { %v1229_v62 = vld [vmem:[#allocation1 + $0x9f] sm:$0x20]   ;;  %v1215_v3 = vsel %vm725_vm0, %v1213_v46, %v1211_v61  ;;  %1309 = vrot.lane.b32.xlu0 %v1308_v2, %s2860_s28  ;;  %v1519_v43 = vld [vmem:[#allocation1 + $0x108] sm:$0x1]   ;;  %v1456_v46 = vsel %vm749_vm8, %v1454_v29, %v1452_v39  ;;  %v1591_v59 = vld [vmem:[#allocation1 + $0x16] sm:$0x1]  }
  0x4e   :  { %v1246_v63 = vld [vmem:[#allocation1 + $0x4] sm:$0x1]   ;;  %v1219_v12 = vsel %vm729_vm1, %v1217_v47, %v1215_v3  ;;  %v1488_v47 = vsel %vm725_vm0, %v1486_v32, %v1484_v31  ;;  %v1521_v49 = vld [vmem:[#allocation1 + $0x127] sm:$0x2]   ;;  %v1593_v61 = vld [vmem:[#allocation1 + $0x35] sm:$0x2]  }
  0x4f   :  { %v1256_v0 = vld [vmem:[#allocation1 + $0x61] sm:$0x8]   ;;  %v1250_v5 = vsel %vm725_vm0, %v1248_v48, %v1246_v63  ;;  %v1223_v17 = vsel %vm733_vm2, %v1221_v52, %v1219_v12  ;;  %v1506_v48 = vld [vmem:[#allocation1 + $0xc2] sm:$0x40]   ;;  %v1523_v58 = vsel %vm725_vm0, %v1521_v49, %v1519_v43  ;;  %v1601_v2 = vld [vmem:[#allocation1 + $0x73] sm:$0x8]  }
  0x50   :  { %v1264_v1 = vld [vmem:[#allocation1 + $0x9f] sm:$0x20]   ;;  %v1254_v14 = vsel %vm729_vm1, %v1252_v56, %v1250_v5  ;;  %v1227_v20 = vsel %vm737_vm5, %v1225_v54, %v1223_v17  ;;  %v1525_v51 = vld [vmem:[#allocation1 + $0x146] sm:$0x4]   ;;  %v2766_v54 = vpack.i.bf16 %v1477_v41, %v1456_v46  ;;  %v1492_v56 = vsel %vm729_vm1, %v1490_v37, %v1488_v47  ;;  %v1605_v3 = vld [vmem:[#allocation1 + $0x92] sm:$0x10]  }
  0x51   :  { %v1233_v4 = vld [vmem:[#allocation1 + $0xbe] sm:$0x40]   ;;  %v1258_v50 = vsel %vm733_vm2, %v1256_v0, %v1254_v14  ;;  %v1231_v26 = vsel %vm741_vm6, %v1229_v62, %v1227_v20  ;;  %v1529_v52 = vld [vmem:[#allocation1 + $0x165] sm:$0x8]   ;;  %v1597_v62 = vld [vmem:[#allocation1 + $0x54] sm:$0x4]   ;;  %v1496_v63 = vsel %vm733_vm2, %v1494_v38, %v1492_v56  ;;  %v1527_v0 = vsel %vm729_vm1, %v1525_v51, %v1523_v58 }
  0x52   :  { %v1268_v6 = vld [vmem:[#allocation1 + $0xbe] sm:$0x40]   ;;  %v1262_v21 = vsel %vm737_vm5, %v1260_v57, %v1258_v50  ;;  %v1235_v60 = vsel %vm745_vm7, %v1233_v4, %v1231_v26  ;;  %v1510_v57 = vld [vmem:[#allocation1 + $0xe1] sm:$0x80]   ;;  %v1609_v4 = vld [vmem:[#allocation1 + $0xb1] sm:$0x20]   ;;  %v1500_v5 = vsel %vm737_vm5, %v1498_v42, %v1496_v63 }
  0x53   :  { %v1237_v13 = vld [vmem:[#allocation1 + $0xdd] sm:$0x80]   ;;  %v1266_v27 = vsel %vm741_vm6, %v1264_v1, %v1262_v21  ;;  %v1595_v1 = vsel %vm725_vm0, %v1593_v61, %v1591_v59  ;;  %v1613_v7 = vld [vmem:[#allocation1 + $0xd0] sm:$0x40]   ;;  %v1504_v12 = vsel %vm741_vm6, %v1502_v33, %v1500_v5  ;;  %v1372_v55 = vld [vmem:[#allocation1 + $0x112] sm:$0x1]  }
  0x54   :  { %v1272_v15 = vld [vmem:[#allocation1 + $0xdd] sm:$0x80]   ;;  %v1270_v45 = vsel %vm745_vm7, %v1268_v6, %v1266_v27  ;;  %v1239_v36 = vsel %vm749_vm8, %v1237_v13, %v1235_v60  ;;  %v1599_v6 = vsel %vm729_vm1, %v1597_v62, %v1595_v1  ;;  %v1617_v8 = vld [vmem:[#allocation1 + $0xef] sm:$0x80]   ;;  %v1531_v13 = vsel %vm733_vm2, %v1529_v52, %v1527_v0  ;;  %v1374_v10 = vld [vmem:[#allocation1 + $0x131] sm:$0x2]  }
  0x55   :  { %v1274_v40 = vsel %vm749_vm8, %v1272_v15, %v1270_v45  ;;  %2767 = vrot.lane.b32.xlu0 %v2766_v54, %s2862_s30  ;;  %v1626_v11 = vld [vmem:[#allocation1 + $0x116] sm:$0x1]   ;;  %v1603_v14 = vsel %vm733_vm2, %v1601_v2, %v1599_v6  ;;  %v1508_v9 = vsel %vm745_vm7, %v1506_v48, %v1504_v12  ;;  %v1378_v18 = vld [vmem:[#allocation1 + $0x150] sm:$0x4]   ;;  %v1376_v22 = vsel %vm725_vm0, %v1374_v10, %v1372_v55  ;;  %v1645_v39 = vld [vmem:[#allocation1 + $0x111] sm:$0x1]  }
  0x56   :  { %v2751_v44 = vpack.i.bf16 %v1274_v40, %v1239_v36  ;;  %v1628_v15 = vld [vmem:[#allocation1 + $0x135] sm:$0x2]   ;;  %v1607_v17 = vsel %vm737_vm5, %v1605_v3, %v1603_v14  ;;  %v1512_v19 = vsel %vm749_vm8, %v1510_v57, %v1508_v9  ;;  %v1382_v23 = vld [vmem:[#allocation1 + $0x16f] sm:$0x8]   ;;  %v1380_v29 = vsel %vm729_vm1, %v1378_v18, %v1376_v22  ;;  %v1647_v41 = vld [vmem:[#allocation1 + $0x130] sm:$0x2]  }
  0x57   :  { %v1632_v16 = vld [vmem:[#allocation1 + $0x154] sm:$0x4]   ;;  %v1630_v50 = vsel %vm725_vm0, %v1628_v15, %v1626_v11  ;;  %v1611_v20 = vsel %vm741_vm6, %v1609_v4, %v1607_v17  ;;  %v1386_v24 = vld [vmem:[#allocation1 + $0xe] sm:$0x10]   ;;  %v2771_v26 = vpack.i.bf16 %v1531_v13, %v1512_v19  ;;  %v1384_v45 = vsel %vm733_vm2, %v1382_v23, %v1380_v29  ;;  %v1651_v42 = vld [vmem:[#allocation1 + $0x14f] sm:$0x4]  }
  0x58   :  { %2752 = vrot.lane.b32.xlu2 %v2751_v44, %s2860_s28  ;;  %v1636_v53 = vld [vmem:[#allocation1 + $0x173] sm:$0x8]   ;;  %v1634_v21 = vsel %vm729_vm1, %v1632_v16, %v1630_v50  ;;  %v1390_v25 = vld [vmem:[#allocation1 + $0x2d] sm:$0x20]   ;;  %v1615_v27 = vsel %vm745_vm7, %v1613_v7, %v1611_v20  ;;  %v1388_v36 = vsel %vm737_vm5, %v1386_v24, %v1384_v45  ;;  %v1649_v44 = vsel %vm725_vm0, %v1647_v41, %v1645_v39  ;;  %v1655_v46 = vld [vmem:[#allocation1 + $0x16e] sm:$0x8]  }
  0x59   :  { %v1638_v28 = vsel %vm733_vm2, %v1636_v53, %v1634_v21  ;;  %v1394_v30 = vld [vmem:[#allocation1 + $0x4c] sm:$0x40]   ;;  %v1619_v60 = vsel %vm749_vm8, %v1617_v8, %v1615_v27  ;;  %2772 = vrot.lane.b32.xlu1 %v2771_v26, %s2863_s2  ;;  %v1392_v33 = vsel %vm741_vm6, %v1390_v25, %v1388_v36  ;;  %v1659_v47 = vld [vmem:[#allocation1 + $0xd] sm:$0x10]   ;;  %v1653_v52 = vsel %vm729_vm1, %v1651_v42, %v1649_v44  ;;  %v1757_v3 = vld [vmem:[#allocation1 + $0x7] sm:$0x1]  }
  0x5a   :  { %v1398_v31 = vld [vmem:[#allocation1 + $0x6b] sm:$0x80]   ;;  %v2781_v38 = vpack.i.bf16 %v1638_v28, %v1619_v60  ;;  %v1663_v48 = vld [vmem:[#allocation1 + $0x2c] sm:$0x20]   ;;  %v1396_v49 = vsel %vm745_vm7, %v1394_v30, %v1392_v33  ;;  %v1657_v59 = vsel %vm733_vm2, %v1655_v46, %v1653_v52  ;;  %v1759_v4 = vld [vmem:[#allocation1 + $0x26] sm:$0x2]  }
  0x5b   :  { %v1409_v32 = vld [vmem:[#allocation1 + $0x92] sm:$0x1]   ;;  %v1667_v54 = vld [vmem:[#allocation1 + $0x4b] sm:$0x40]   ;;  %v1400_v58 = vsel %vm749_vm8, %v1398_v31, %v1396_v49  ;;  %v1661_v1 = vsel %vm737_vm5, %v1659_v47, %v1657_v59  ;;  %v1763_v5 = vld [vmem:[#allocation1 + $0x45] sm:$0x4]   ;;  %v1761_v8 = vsel %vm725_vm0, %v1759_v4, %v1757_v3 }
  0x5c   :  { %v1411_v34 = vld [vmem:[#allocation1 + $0xb1] sm:$0x2]   ;;  %v1671_v56 = vld [vmem:[#allocation1 + $0x6a] sm:$0x80]   ;;  %v1665_v6 = vsel %vm741_vm6, %v1663_v48, %v1661_v1  ;;  %v1767_v11 = vld [vmem:[#allocation1 + $0x64] sm:$0x8]   ;;  %v1765_v16 = vsel %vm729_vm1, %v1763_v5, %v1761_v8 }
  0x5d   :  { %v1415_v35 = vld [vmem:[#allocation1 + $0xd0] sm:$0x4]   ;;  %v1413_v40 = vsel %vm725_vm0, %v1411_v34, %v1409_v32  ;;  %2782 = vrot.lane.b32.xlu0 %v2781_v38, %s2864_s3  ;;  %v1682_v57 = vld [vmem:[#allocation1 + $0x91] sm:$0x1]   ;;  %v1771_v12 = vld [vmem:[#allocation1 + $0x83] sm:$0x10]   ;;  %v1669_v14 = vsel %vm745_vm7, %v1667_v54, %v1665_v6  ;;  %v1769_v55 = vsel %vm733_vm2, %v1767_v11, %v1765_v16 }
  0x5e   :  { %v1419_v37 = vld [vmem:[#allocation1 + $0xef] sm:$0x8]   ;;  %v1417_v43 = vsel %vm729_vm1, %v1415_v35, %v1413_v40  ;;  %v1684_v61 = vld [vmem:[#allocation1 + $0xb0] sm:$0x2]   ;;  %v1775_v13 = vld [vmem:[#allocation1 + $0xa2] sm:$0x20]   ;;  %v1673_v50 = vsel %vm749_vm8, %v1671_v56, %v1669_v14  ;;  %v1773_v21 = vsel %vm737_vm5, %v1771_v12, %v1769_v55 }
  0x5f   :  { %v1421_v51 = vsel %vm733_vm2, %v1419_v37, %v1417_v43  ;;  %v1688_v62 = vld [vmem:[#allocation1 + $0xcf] sm:$0x4]   ;;  %v1686_v2 = vsel %vm725_vm0, %v1684_v61, %v1682_v57  ;;  %v1779_v53 = vld [vmem:[#allocation1 + $0xc1] sm:$0x40]   ;;  %v1538_v23 = vld [vmem:[#allocation1 + $0x3] sm:$0x1]   ;;  %v1777_v26 = vsel %vm741_vm6, %v1775_v13, %v1773_v21 }
  0x60   :  { %v1692_v63 = vld [vmem:[#allocation1 + $0xee] sm:$0x8]   ;;  %v2761_v0 = vpack.i.bf16 %v1421_v51, %v1400_v58  ;;  %v1690_v7 = vsel %vm729_vm1, %v1688_v62, %v1686_v2  ;;  %v1783_v9 = vld [vmem:[#allocation1 + $0xe0] sm:$0x80]   ;;  %v1540_v24 = vld [vmem:[#allocation1 + $0x22] sm:$0x2]   ;;  %v1781_v32 = vsel %vm745_vm7, %v1779_v53, %v1777_v26 }
  0x61   :  { %v1694_v15 = vsel %vm733_vm2, %v1692_v63, %v1690_v7  ;;  %v1792_v17 = vld [vmem:[#allocation1 + $0x107] sm:$0x1]   ;;  %v1544_v25 = vld [vmem:[#allocation1 + $0x41] sm:$0x4]   ;;  %v1542_v28 = vsel %vm725_vm0, %v1540_v24, %v1538_v23  ;;  %v1785_v38 = vsel %vm749_vm8, %v1783_v9, %v1781_v32  ;;  %v1811_v44 = vld [vmem:[#allocation1 + $0x2] sm:$0x1]  }
  0x62   :  { %2762 = vrot.lane.b32.xlu2 %v2761_v0, %s2865_s4  ;;  %v1794_v10 = vld [vmem:[#allocation1 + $0x126] sm:$0x2]   ;;  %v2786_v20 = vpack.i.bf16 %v1694_v15, %v1673_v50  ;;  %v1548_v29 = vld [vmem:[#allocation1 + $0x60] sm:$0x8]   ;;  %v1546_v45 = vsel %vm729_vm1, %v1544_v25, %v1542_v28  ;;  %v1813_v46 = vld [vmem:[#allocation1 + $0x21] sm:$0x2]  }
  0x63   :  { %v1798_v18 = vld [vmem:[#allocation1 + $0x145] sm:$0x4]   ;;  %v1796_v22 = vsel %vm725_vm0, %v1794_v10, %v1792_v17  ;;  %v1552_v30 = vld [vmem:[#allocation1 + $0x7f] sm:$0x10]   ;;  %v1550_v36 = vsel %vm733_vm2, %v1548_v29, %v1546_v45  ;;  %v1817_v47 = vld [vmem:[#allocation1 + $0x40] sm:$0x4]   ;;  %v1815_v51 = vsel %vm725_vm0, %v1813_v46, %v1811_v44 }
  0x64   :  { %v1802_v19 = vld [vmem:[#allocation1 + $0x164] sm:$0x8]   ;;  %v1800_v27 = vsel %vm729_vm1, %v1798_v18, %v1796_v22  ;;  %v1556_v31 = vld [vmem:[#allocation1 + $0x9e] sm:$0x20]   ;;  %2787 = vrot.lane.b32.xlu1 %v2786_v20, %s2866_s5  ;;  %v1554_v33 = vsel %vm737_vm5, %v1552_v30, %v1550_v36  ;;  %v1821_v52 = vld [vmem:[#allocation1 + $0x5f] sm:$0x8]   ;;  %v1819_v59 = vsel %vm729_vm1, %v1817_v47, %v1815_v51 }
  0x65   :  { %v1804_v60 = vsel %vm733_vm2, %v1802_v19, %v1800_v27  ;;  %v1560_v34 = vld [vmem:[#allocation1 + $0xbd] sm:$0x40]   ;;  %v1558_v48 = vsel %vm741_vm6, %v1556_v31, %v1554_v33  ;;  %v1825_v54 = vld [vmem:[#allocation1 + $0x7e] sm:$0x10]   ;;  %v1823_v1 = vsel %vm733_vm2, %v1821_v52, %v1819_v59  ;;  %v1918_v8 = vld [vmem:[#allocation1 + $0x110] sm:$0x1]  }
  0x66   :  { %v1564_v35 = vld [vmem:[#allocation1 + $0xdc] sm:$0x80]   ;;  %v2796_v42 = vpack.i.bf16 %v1804_v60, %v1785_v38  ;;  %v1829_v56 = vld [vmem:[#allocation1 + $0x9d] sm:$0x20]   ;;  %v1562_v57 = vsel %vm745_vm7, %v1560_v34, %v1558_v48  ;;  %v1827_v6 = vsel %vm737_vm5, %v1825_v54, %v1823_v1  ;;  %v1920_v11 = vld [vmem:[#allocation1 + $0x12f] sm:$0x2]  }
  0x67   :  { %v1572_v37 = vld [vmem:[#allocation1 + $0x103] sm:$0x1]   ;;  %v1833_v61 = vld [vmem:[#allocation1 + $0xbc] sm:$0x40]   ;;  %v1566_v0 = vsel %vm749_vm8, %v1564_v35, %v1562_v57  ;;  %v1924_v12 = vld [vmem:[#allocation1 + $0x14e] sm:$0x4]   ;;  %v1831_v13 = vsel %vm741_vm6, %v1829_v56, %v1827_v6  ;;  %v1922_v15 = vsel %vm725_vm0, %v1920_v11, %v1918_v8 }
  0x68   :  { %v1574_v40 = vld [vmem:[#allocation1 + $0x122] sm:$0x2]   ;;  %2797 = vrot.lane.b32.xlu0 %v2796_v42, %s2867_s6  ;;  %v1837_v62 = vld [vmem:[#allocation1 + $0xdb] sm:$0x80]   ;;  %v1928_v16 = vld [vmem:[#allocation1 + $0x16d] sm:$0x8]   ;;  %v1835_v17 = vsel %vm745_vm7, %v1833_v61, %v1831_v13  ;;  %v1926_v55 = vsel %vm729_vm1, %v1924_v12, %v1922_v15 }
  0x69   :  { %v1578_v39 = vld [vmem:[#allocation1 + $0x141] sm:$0x4]   ;;  %v1576_v43 = vsel %vm725_vm0, %v1574_v40, %v1572_v37  ;;  %v1845_v63 = vld [vmem:[#allocation1 + $0x102] sm:$0x1]   ;;  %v1932_v53 = vld [vmem:[#allocation1 + $0xc] sm:$0x10]   ;;  %v1839_v20 = vsel %vm749_vm8, %v1837_v62, %v1835_v17  ;;  %v1930_v21 = vsel %vm733_vm2, %v1928_v16, %v1926_v55 }
  0x6a   :  { %v1582_v41 = vld [vmem:[#allocation1 + $0x160] sm:$0x8]   ;;  %v1580_v49 = vsel %vm729_vm1, %v1578_v39, %v1576_v43  ;;  %v1847_v2 = vld [vmem:[#allocation1 + $0x121] sm:$0x2]   ;;  %v1936_v9 = vld [vmem:[#allocation1 + $0x2b] sm:$0x20]   ;;  %v1934_v26 = vsel %vm737_vm5, %v1932_v53, %v1930_v21 }
  0x6b   :  { %v1584_v58 = vsel %vm733_vm2, %v1582_v41, %v1580_v49  ;;  %v1851_v3 = vld [vmem:[#allocation1 + $0x140] sm:$0x4]   ;;  %v1849_v7 = vsel %vm725_vm0, %v1847_v2, %v1845_v63  ;;  %v1940_v10 = vld [vmem:[#allocation1 + $0x4a] sm:$0x40]   ;;  %v1701_v28 = vld [vmem:[#allocation1 + $0x10c] sm:$0x1]   ;;  %v1938_v31 = vsel %vm741_vm6, %v1936_v9, %v1934_v26 }
  0x6c   :  { %v1855_v4 = vld [vmem:[#allocation1 + $0x15f] sm:$0x8]   ;;  %v2776_v5 = vpack.i.bf16 %v1584_v58, %v1566_v0  ;;  %v1853_v14 = vsel %vm729_vm1, %v1851_v3, %v1849_v7  ;;  %v1944_v18 = vld [vmem:[#allocation1 + $0x69] sm:$0x80]   ;;  %v1703_v29 = vld [vmem:[#allocation1 + $0x12b] sm:$0x2]   ;;  %v1942_v37 = vsel %vm745_vm7, %v1940_v10, %v1938_v31 }
  0x6d   :  { %v1857_v50 = vsel %vm733_vm2, %v1855_v4, %v1853_v14  ;;  %v1955_v19 = vld [vmem:[#allocation1 + $0x90] sm:$0x1]   ;;  %v1707_v30 = vld [vmem:[#allocation1 + $0x14a] sm:$0x4]   ;;  %v1705_v60 = vsel %vm725_vm0, %v1703_v29, %v1701_v28  ;;  %v1946_v42 = vsel %vm749_vm8, %v1944_v18, %v1942_v37  ;;  %v1974_v51 = vld [vmem:[#allocation1 + $0x10b] sm:$0x1]  }
  0x6e   :  { %2777 = vrot.lane.b32.xlu2 %v2776_v5, %s2868_s7  ;;  %v1957_v22 = vld [vmem:[#allocation1 + $0xaf] sm:$0x2]   ;;  %v2801_v25 = vpack.i.bf16 %v1857_v50, %v1839_v20  ;;  %v1711_v45 = vld [vmem:[#allocation1 + $0x169] sm:$0x8]   ;;  %v1709_v36 = vsel %vm729_vm1, %v1707_v30, %v1705_v60  ;;  %v1976_v52 = vld [vmem:[#allocation1 + $0x12a] sm:$0x2]  }
  0x6f   :  { %v1961_v23 = vld [vmem:[#allocation1 + $0xce] sm:$0x4]   ;;  %v1959_v27 = vsel %vm725_vm0, %v1957_v22, %v1955_v19  ;;  %v1715_v34 = vld [vmem:[#allocation1 + $0x8] sm:$0x10]   ;;  %v1713_v33 = vsel %vm733_vm2, %v1711_v45, %v1709_v36  ;;  %v1980_v54 = vld [vmem:[#allocation1 + $0x149] sm:$0x4]   ;;  %v1978_v58 = vsel %vm725_vm0, %v1976_v52, %v1974_v51 }
  0x70   :  { %v1965_v24 = vld [vmem:[#allocation1 + $0xed] sm:$0x8]   ;;  %v1963_v32 = vsel %vm729_vm1, %v1961_v23, %v1959_v27  ;;  %v1719_v35 = vld [vmem:[#allocation1 + $0x27] sm:$0x20]   ;;  %2802 = vrot.lane.b32.xlu1 %v2801_v25, %s2869_s8  ;;  %v1717_v48 = vsel %vm737_vm5, %v1715_v34, %v1713_v33  ;;  %v1984_v59 = vld [vmem:[#allocation1 + $0x168] sm:$0x8]   ;;  %v1982_v1 = vsel %vm729_vm1, %v1980_v54, %v1978_v58 }
  0x71   :  { %v1967_v38 = vsel %vm733_vm2, %v1965_v24, %v1963_v32  ;;  %v1723_v40 = vld [vmem:[#allocation1 + $0x46] sm:$0x40]   ;;  %v1721_v56 = vsel %vm741_vm6, %v1719_v35, %v1717_v48  ;;  %v1988_v61 = vld [vmem:[#allocation1 + $0x7] sm:$0x10]   ;;  %v1986_v6 = vsel %vm733_vm2, %v1984_v59, %v1982_v1  ;;  %v2084_v15 = vld [vmem:[#allocation1 + $0x1] sm:$0x1]  }
  0x72   :  { %v1727_v39 = vld [vmem:[#allocation1 + $0x65] sm:$0x80]   ;;  %v2811_v47 = vpack.i.bf16 %v1967_v38, %v1946_v42  ;;  %v1992_v62 = vld [vmem:[#allocation1 + $0x26] sm:$0x20]   ;;  %v1725_v63 = vsel %vm745_vm7, %v1723_v40, %v1721_v56  ;;  %v1990_v13 = vsel %vm737_vm5, %v1988_v61, %v1986_v6  ;;  %v2086_v16 = vld [vmem:[#allocation1 + $0x20] sm:$0x2]  }
  0x73   :  { %v1738_v41 = vld [vmem:[#allocation1 + $0x8c] sm:$0x1]   ;;  %v1996_v2 = vld [vmem:[#allocation1 + $0x45] sm:$0x40]   ;;  %v1729_v5 = vsel %vm749_vm8, %v1727_v39, %v1725_v63  ;;  %v2090_v53 = vld [vmem:[#allocation1 + $0x3f] sm:$0x4]   ;;  %v1994_v9 = vsel %vm741_vm6, %v1992_v62, %v1990_v13  ;;  %v2088_v50 = vsel %vm725_vm0, %v2086_v16, %v2084_v15 }
  0x74   :  { %v1740_v43 = vld [vmem:[#allocation1 + $0xab] sm:$0x2]   ;;  %2812 = vrot.lane.b32.xlu0 %v2811_v47, %s2870_s9  ;;  %v2000_v3 = vld [vmem:[#allocation1 + $0x64] sm:$0x80]   ;;  %v2094_v55 = vld [vmem:[#allocation1 + $0x5e] sm:$0x8]   ;;  %v1998_v19 = vsel %vm745_vm7, %v1996_v2, %v1994_v9  ;;  %v2092_v21 = vsel %vm729_vm1, %v2090_v53, %v2088_v50 }
  0x75   :  { %v1744_v44 = vld [vmem:[#allocation1 + $0xca] sm:$0x4]   ;;  %v1742_v49 = vsel %vm725_vm0, %v1740_v43, %v1738_v41  ;;  %v2011_v4 = vld [vmem:[#allocation1 + $0x8b] sm:$0x1]   ;;  %v2098_v10 = vld [vmem:[#allocation1 + $0x7d] sm:$0x10]   ;;  %v2002_v25 = vsel %vm749_vm8, %v2000_v3, %v1998_v19  ;;  %v2096_v26 = vsel %vm733_vm2, %v2094_v55, %v2092_v21 }
  0x76   :  { %v1748_v46 = vld [vmem:[#allocation1 + $0xe9] sm:$0x8]   ;;  %v1746_v57 = vsel %vm729_vm1, %v1744_v44, %v1742_v49  ;;  %v2013_v7 = vld [vmem:[#allocation1 + $0xaa] sm:$0x2]   ;;  %v2102_v18 = vld [vmem:[#allocation1 + $0x9c] sm:$0x20]   ;;  %v2100_v31 = vsel %vm737_vm5, %v2098_v10, %v2096_v26 }
  0x77   :  { %v1750_v0 = vsel %vm733_vm2, %v1748_v46, %v1746_v57  ;;  %v2017_v8 = vld [vmem:[#allocation1 + $0xc9] sm:$0x4]   ;;  %v2015_v14 = vsel %vm725_vm0, %v2013_v7, %v2011_v4  ;;  %v2106_v22 = vld [vmem:[#allocation1 + $0xbb] sm:$0x40]   ;;  %v1864_v60 = vld [vmem:[#allocation1 + $0x15] sm:$0x1]   ;;  %v2104_v35 = vsel %vm741_vm6, %v2102_v18, %v2100_v31 }
  0x78   :  { %v2021_v11 = vld [vmem:[#allocation1 + $0xe8] sm:$0x8]   ;;  %v2791_v12 = vpack.i.bf16 %v1750_v0, %v1729_v5  ;;  %v2019_v17 = vsel %vm729_vm1, %v2017_v8, %v2015_v14  ;;  %v2110_v23 = vld [vmem:[#allocation1 + $0xda] sm:$0x80]   ;;  %v1866_v45 = vld [vmem:[#allocation1 + $0x34] sm:$0x2]   ;;  %v2108_v41 = vsel %vm745_vm7, %v2106_v22, %v2104_v35 }
  0x79   :  { %v2023_v20 = vsel %vm733_vm2, %v2021_v11, %v2019_v17  ;;  %v2118_v24 = vld [vmem:[#allocation1 + $0x101] sm:$0x1]   ;;  %v1870_v34 = vld [vmem:[#allocation1 + $0x53] sm:$0x4]   ;;  %v1868_v38 = vsel %vm725_vm0, %v1866_v45, %v1864_v60  ;;  %v2112_v47 = vsel %vm749_vm8, %v2110_v23, %v2108_v41  ;;  %v2137_v58 = vld [vmem:[#allocation1 + $0x19] sm:$0x1]  }
  0x7a   :  { %2792 = vrot.lane.b32.xlu2 %v2791_v12, %s2871_s10  ;;  %v2120_v27 = vld [vmem:[#allocation1 + $0x120] sm:$0x2]   ;;  %v2816_v30 = vpack.i.bf16 %v2023_v20, %v2002_v25  ;;  %v1874_v36 = vld [vmem:[#allocation1 + $0x72] sm:$0x8]   ;;  %v1872_v33 = vsel %vm729_vm1, %v1870_v34, %v1868_v38  ;;  %v2139_v59 = vld [vmem:[#allocation1 + $0x38] sm:$0x2]  }
  0x7b   :  { %v2124_v28 = vld [vmem:[#allocation1 + $0x13f] sm:$0x4]   ;;  %v2122_v32 = vsel %vm725_vm0, %v2120_v27, %v2118_v24  ;;  %v1878_v40 = vld [vmem:[#allocation1 + $0x91] sm:$0x10]   ;;  %v1876_v48 = vsel %vm733_vm2, %v1874_v36, %v1872_v33  ;;  %v2143_v61 = vld [vmem:[#allocation1 + $0x57] sm:$0x4]   ;;  %v2141_v0 = vsel %vm725_vm0, %v2139_v59, %v2137_v58 }
  0x7c   :  { %v2128_v29 = vld [vmem:[#allocation1 + $0x15e] sm:$0x8]   ;;  %v2126_v37 = vsel %vm729_vm1, %v2124_v28, %v2122_v32  ;;  %v1882_v39 = vld [vmem:[#allocation1 + $0xb0] sm:$0x20]   ;;  %2817 = vrot.lane.b32.xlu1 %v2816_v30, %s2872_s11  ;;  %v1880_v56 = vsel %vm737_vm5, %v1878_v40, %v1876_v48  ;;  %v2147_v1 = vld [vmem:[#allocation1 + $0x76] sm:$0x8]   ;;  %v2145_v6 = vsel %vm729_vm1, %v2143_v61, %v2141_v0 }
  0x7d   :  { %v2130_v42 = vsel %vm733_vm2, %v2128_v29, %v2126_v37  ;;  %v1886_v43 = vld [vmem:[#allocation1 + $0xcf] sm:$0x40]   ;;  %v1884_v62 = vsel %vm741_vm6, %v1882_v39, %v1880_v56  ;;  %v2151_v2 = vld [vmem:[#allocation1 + $0x95] sm:$0x10]   ;;  %v2149_v13 = vsel %vm733_vm2, %v2147_v1, %v2145_v6  ;;  %v2245_v50 = vld [vmem:[#allocation1 + $0x10f] sm:$0x1]  }
  0x7e   :  { %v1890_v44 = vld [vmem:[#allocation1 + $0xee] sm:$0x80]   ;;  %v2826_v54 = vpack.i.bf16 %v2130_v42, %v2112_v47  ;;  %v2155_v3 = vld [vmem:[#allocation1 + $0xb4] sm:$0x20]   ;;  %v1888_v4 = vsel %vm745_vm7, %v1886_v43, %v1884_v62  ;;  %v2153_v9 = vsel %vm737_vm5, %v2151_v2, %v2149_v13  ;;  %v2247_v55 = vld [vmem:[#allocation1 + $0x12e] sm:$0x2]  }
  0x7f   :  { %v1899_v46 = vld [vmem:[#allocation1 + $0x115] sm:$0x1]   ;;  %v2159_v7 = vld [vmem:[#allocation1 + $0xd3] sm:$0x40]   ;;  %v1892_v12 = vsel %vm749_vm8, %v1890_v44, %v1888_v4  ;;  %v2251_v10 = vld [vmem:[#allocation1 + $0x14d] sm:$0x4]   ;;  %v2157_v18 = vsel %vm741_vm6, %v2155_v3, %v2153_v9  ;;  %v2249_v20 = vsel %vm725_vm0, %v2247_v55, %v2245_v50 }
  0x80   :  { %v1901_v49 = vld [vmem:[#allocation1 + $0x134] sm:$0x2]   ;;  %2827 = vrot.lane.b32.xlu0 %v2826_v54, %s2873_s12  ;;  %v2163_v8 = vld [vmem:[#allocation1 + $0xf2] sm:$0x80]   ;;  %v2255_v21 = vld [vmem:[#allocation1 + $0x16c] sm:$0x8]   ;;  %v2161_v24 = vsel %vm745_vm7, %v2159_v7, %v2157_v18  ;;  %v2253_v26 = vsel %vm729_vm1, %v2251_v10, %v2249_v20 }
  0x81   :  { %v1905_v51 = vld [vmem:[#allocation1 + $0x153] sm:$0x4]   ;;  %v1903_v57 = vsel %vm725_vm0, %v1901_v49, %v1899_v46  ;;  %v2172_v11 = vld [vmem:[#allocation1 + $0x119] sm:$0x1]   ;;  %v2259_v22 = vld [vmem:[#allocation1 + $0xb] sm:$0x10]   ;;  %v2165_v30 = vsel %vm749_vm8, %v2163_v8, %v2161_v24  ;;  %v2257_v31 = vsel %vm733_vm2, %v2255_v21, %v2253_v26 }
  0x82   :  { %v1909_v52 = vld [vmem:[#allocation1 + $0x172] sm:$0x8]   ;;  %v1907_v63 = vsel %vm729_vm1, %v1905_v51, %v1903_v57  ;;  %v2174_v14 = vld [vmem:[#allocation1 + $0x138] sm:$0x2]   ;;  %v2263_v23 = vld [vmem:[#allocation1 + $0x2a] sm:$0x20]   ;;  %v2261_v35 = vsel %vm737_vm5, %v2259_v22, %v2257_v31 }
  0x83   :  { %v1911_v5 = vsel %vm733_vm2, %v1909_v52, %v1907_v63  ;;  %v2178_v15 = vld [vmem:[#allocation1 + $0x157] sm:$0x4]   ;;  %v2176_v17 = vsel %vm725_vm0, %v2174_v14, %v2172_v11  ;;  %v2267_v27 = vld [vmem:[#allocation1 + $0x49] sm:$0x40]   ;;  %v2030_v38 = vld [vmem:[#allocation1 + $0x6] sm:$0x1]   ;;  %v2265_v39 = vsel %vm741_vm6, %v2263_v23, %v2261_v35 }
  0x84   :  { %v2182_v16 = vld [vmem:[#allocation1 + $0x176] sm:$0x8]   ;;  %v2806_v53 = vpack.i.bf16 %v1911_v5, %v1892_v12  ;;  %v2180_v19 = vsel %vm729_vm1, %v2178_v15, %v2176_v17  ;;  %v2271_v28 = vld [vmem:[#allocation1 + $0x68] sm:$0x80]   ;;  %v2032_v36 = vld [vmem:[#allocation1 + $0x25] sm:$0x2]   ;;  %v2269_v46 = vsel %vm745_vm7, %v2267_v27, %v2265_v39 }
  0x85   :  { %v2184_v25 = vsel %vm733_vm2, %v2182_v16, %v2180_v19  ;;  %v2282_v29 = vld [vmem:[#allocation1 + $0x8f] sm:$0x1]   ;;  %v2036_v40 = vld [vmem:[#allocation1 + $0x44] sm:$0x4]   ;;  %v2034_v42 = vsel %vm725_vm0, %v2032_v36, %v2030_v38  ;;  %v2273_v57 = vsel %vm749_vm8, %v2271_v28, %v2269_v46  ;;  %v2301_v2 = vld [vmem:[#allocation1 + $0x10a] sm:$0x1]  }
  0x86   :  { %2807 = vrot.lane.b32.xlu2 %v2806_v53, %s2874_s13  ;;  %v2284_v32 = vld [vmem:[#allocation1 + $0xae] sm:$0x2]   ;;  %v2831_v34 = vpack.i.bf16 %v2184_v25, %v2165_v30  ;;  %v2040_v33 = vld [vmem:[#allocation1 + $0x63] sm:$0x8]   ;;  %v2038_v48 = vsel %vm729_vm1, %v2036_v40, %v2034_v42  ;;  %v2303_v3 = vld [vmem:[#allocation1 + $0x129] sm:$0x2]  }
  0x87   :  { %v2288_v60 = vld [vmem:[#allocation1 + $0xcd] sm:$0x4]   ;;  %v2286_v37 = vsel %vm725_vm0, %v2284_v32, %v2282_v29  ;;  %v2044_v43 = vld [vmem:[#allocation1 + $0x82] sm:$0x10]   ;;  %v2042_v58 = vsel %vm733_vm2, %v2040_v33, %v2038_v48  ;;  %v2307_v4 = vld [vmem:[#allocation1 + $0x148] sm:$0x4]   ;;  %v2305_v7 = vsel %vm725_vm0, %v2303_v3, %v2301_v2 }
  0x88   :  { %v2292_v45 = vld [vmem:[#allocation1 + $0xec] sm:$0x8]   ;;  %v2290_v41 = vsel %vm729_vm1, %v2288_v60, %v2286_v37  ;;  %v2048_v44 = vld [vmem:[#allocation1 + $0xa1] sm:$0x20]   ;;  %2832 = vrot.lane.b32.xlu1 %v2831_v34, %s2875_s14  ;;  %v2046_v0 = vsel %vm737_vm5, %v2044_v43, %v2042_v58  ;;  %v2311_v8 = vld [vmem:[#allocation1 + $0x167] sm:$0x8]   ;;  %v2309_v15 = vsel %vm729_vm1, %v2307_v4, %v2305_v7 }
  0x89   :  { %v2294_v47 = vsel %vm733_vm2, %v2292_v45, %v2290_v41  ;;  %v2052_v49 = vld [vmem:[#allocation1 + $0xc0] sm:$0x40]   ;;  %v3303_v54 = vpop.permute.xlu2 %1092   ;;  %v3305_v56 = vpop.permute.xlu0 %870   ;;  %v2050_v5 = vsel %vm741_vm6, %v2048_v44, %v2046_v0  ;;  %v2315_v11 = vld [vmem:[#allocation1 + $0x6] sm:$0x10]   ;;  %v2313_v50 = vsel %vm733_vm2, %v2311_v8, %v2309_v15  ;;  %v2191_v22 = vld [vmem:[#allocation1 + $0x14] sm:$0x1]  }
  0x8a   :  { %v2056_v51 = vld [vmem:[#allocation1 + $0xdf] sm:$0x80]   ;;  %v2841_v63 = vpack.i.bf16 %v2294_v47, %v2273_v57  ;;  %v2319_v12 = vld [vmem:[#allocation1 + $0x25] sm:$0x20]   ;;  %v2054_v13 = vsel %vm745_vm7, %v2052_v49, %v2050_v5  ;;  %v2317_v20 = vsel %vm737_vm5, %v2315_v11, %v2313_v50  ;;  %v2193_v23 = vld [vmem:[#allocation1 + $0x33] sm:$0x2]  }
  0x8b   :  { %v2065_v52 = vld [vmem:[#allocation1 + $0x106] sm:$0x1]   ;;  %v2323_v16 = vld [vmem:[#allocation1 + $0x44] sm:$0x40]   ;;  %v2058_v17 = vsel %vm749_vm8, %v2056_v51, %v2054_v13  ;;  %v2197_v24 = vld [vmem:[#allocation1 + $0x52] sm:$0x4]   ;;  %v2321_v25 = vsel %vm741_vm6, %v2319_v12, %v2317_v20  ;;  %v2195_v27 = vsel %vm725_vm0, %v2193_v23, %v2191_v22 }
  0x8c   :  { %v2067_v59 = vld [vmem:[#allocation1 + $0x125] sm:$0x2]   ;;  %2842 = vrot.lane.b32.xlu0 %v2841_v63, %s2876_s15  ;;  %v2327_v53 = vld [vmem:[#allocation1 + $0x63] sm:$0x80]   ;;  %v2201_v28 = vld [vmem:[#allocation1 + $0x71] sm:$0x8]   ;;  %v2325_v31 = vsel %vm745_vm7, %v2323_v16, %v2321_v25  ;;  %v2199_v60 = vsel %vm729_vm1, %v2197_v24, %v2195_v27 }
  0x8d   :  { %v2071_v61 = vld [vmem:[#allocation1 + $0x144] sm:$0x4]   ;;  %v2069_v1 = vsel %vm725_vm0, %v2067_v59, %v2065_v52  ;;  %v2338_v9 = vld [vmem:[#allocation1 + $0x8a] sm:$0x1]   ;;  %v2205_v29 = vld [vmem:[#allocation1 + $0x90] sm:$0x10]   ;;  %v2329_v37 = vsel %vm749_vm8, %v2327_v53, %v2325_v31  ;;  %v2203_v38 = vsel %vm733_vm2, %v2201_v28, %v2199_v60 }
  0x8e   :  { %v2075_v62 = vld [vmem:[#allocation1 + $0x163] sm:$0x8]   ;;  %v2073_v6 = vsel %vm729_vm1, %v2071_v61, %v2069_v1  ;;  %v2340_v55 = vld [vmem:[#allocation1 + $0xa9] sm:$0x2]   ;;  %v2209_v30 = vld [vmem:[#allocation1 + $0xaf] sm:$0x20]   ;;  %v981_v41 = vpop.permute.xlu1 %980   ;;  %v2207_v33 = vsel %vm737_vm5, %v2205_v29, %v2203_v38 }
  0x8f   :  { %v2077_v14 = vsel %vm733_vm2, %v2075_v62, %v2073_v6  ;;  %v2344_v10 = vld [vmem:[#allocation1 + $0xc8] sm:$0x4]   ;;  %v2342_v21 = vsel %vm725_vm0, %v2340_v55, %v2338_v9  ;;  %v2213_v45 = vld [vmem:[#allocation1 + $0xce] sm:$0x40]   ;;  %v2357_v44 = vld [vmem:[#allocation1 + $0x5] sm:$0x1]   ;;  %v2211_v48 = vsel %vm741_vm6, %v2209_v30, %v2207_v33 }
  0x90   :  { %v2348_v18 = vld [vmem:[#allocation1 + $0xe7] sm:$0x8]   ;;  %v2821_v19 = vpack.i.bf16 %v2077_v14, %v2058_v17  ;;  %v2346_v26 = vsel %vm729_vm1, %v2344_v10, %v2342_v21  ;;  %v2217_v34 = vld [vmem:[#allocation1 + $0xed] sm:$0x80]   ;;  %v2359_v46 = vld [vmem:[#allocation1 + $0x24] sm:$0x2]   ;;  %v2215_v58 = vsel %vm745_vm7, %v2213_v45, %v2211_v48 }
  0x91   :  { %v2350_v32 = vsel %vm733_vm2, %v2348_v18, %v2346_v26  ;;  %v2226_v35 = vld [vmem:[#allocation1 + $0x114] sm:$0x1]   ;;  %v2363_v47 = vld [vmem:[#allocation1 + $0x43] sm:$0x4]   ;;  %v2361_v51 = vsel %vm725_vm0, %v2359_v46, %v2357_v44  ;;  %v2219_v0 = vsel %vm749_vm8, %v2217_v34, %v2215_v58  ;;  %v722_v14 = vld [vmem:[#allocation1] sm:$0x1]  }
  0x92   :  { %2822 = vrot.lane.b32.xlu2 %v2821_v19, %s2877_s16  ;;  %v2228_v36 = vld [vmem:[#allocation1 + $0x133] sm:$0x2]   ;;  %v2846_v42 = vpack.i.bf16 %v2350_v32, %v2329_v37  ;;  %v2367_v52 = vld [vmem:[#allocation1 + $0x62] sm:$0x8]   ;;  %v2365_v61 = vsel %vm729_vm1, %v2363_v47, %v2361_v51  ;;  %v724_v15 = vld [vmem:[#allocation1 + $0x1f] sm:$0x2]  }
  0x93   :  { %v2232_v40 = vld [vmem:[#allocation1 + $0x152] sm:$0x4]   ;;  %v2230_v43 = vsel %vm725_vm0, %v2228_v36, %v2226_v35  ;;  %v2371_v57 = vld [vmem:[#allocation1 + $0x81] sm:$0x10]   ;;  %v2369_v1 = vsel %vm733_vm2, %v2367_v52, %v2365_v61  ;;  %s2879_s18 = smov 8   ;;  %vm1515_vm11 = vcmask 867968  }
  0x94   :  { %v2236_v39 = vld [vmem:[#allocation1 + $0x171] sm:$0x8]   ;;  %v2234_v49 = vsel %vm729_vm1, %v2232_v40, %v2230_v43  ;;  %2847 = vrot.lane.b32.xlu1 %v2846_v42, %s2878_s17  ;;  %v2375_v62 = vld [vmem:[#allocation1 + $0xa0] sm:$0x20]   ;;  %v2373_v6 = vsel %vm737_vm5, %v2371_v57, %v2369_v1  ;;  %1099 = vst.msk [vmem:[#allocation0 + $0x14] sm:$0xf] %vm1057_vm12, %v3303_v54  }
  0x95   :  { %v2238_v59 = vsel %vm733_vm2, %v2236_v39, %v2234_v49  ;;  %v2392_v63 = vld [vmem:[#allocation1 + $0x105] sm:$0x1]   ;;  %v2377_v12 = vsel %vm741_vm6, %v2375_v62, %v2373_v6  ;;  %v728_v53 = vld [vmem:[#allocation1 + $0x3e] sm:$0x4]   ;;  %874 = vst.msk [vmem:[#allocation0 + $0x58] sm:$0xf] %vm802_vm13, %v3305_v56  }
  0x96   :  { %v2379_v2 = vld [vmem:[#allocation1 + $0xbf] sm:$0x40]   ;;  %v2836_v5 = vpack.i.bf16 %v2238_v59, %v2219_v0  ;;  %v732_v50 = vld [vmem:[#allocation1 + $0x5d] sm:$0x8]   ;;  %877 = vst.msk [vmem:[#allocation0 + $0x50] sm:$0xf] %vm837_vm14, %v3305_v56   ;;  %v726_v56 = vsel %vm725_vm0, %v724_v15, %v722_v14 }
  0x97   :  { %v2394_v3 = vld [vmem:[#allocation1 + $0x124] sm:$0x2]   ;;  %v2381_v16 = vsel %vm745_vm7, %v2379_v2, %v2377_v12  ;;  %v736_v55 = vld [vmem:[#allocation1 + $0x7c] sm:$0x10]   ;;  %984 = vst.msk [vmem:[#allocation0 + $0x50] sm:$0xf] %vm910_vm15, %v981_v41   ;;  %v730_v10 = vsel %vm729_vm1, %v728_v53, %v726_v56 }
  0x98   :  { %v2398_v4 = vld [vmem:[#allocation1 + $0x143] sm:$0x4]   ;;  %v2396_v8 = vsel %vm725_vm0, %v2394_v3, %v2392_v63  ;;  %v740_v18 = vld [vmem:[#allocation1 + $0x9b] sm:$0x20]   ;;  %987 = vst.msk [vmem:[#allocation0 + $0x1c] sm:$0xf] %vm945_vm3, %v981_v41   ;;  %v734_v20 = vsel %vm733_vm2, %v732_v50, %v730_v10 }
  0x99   :  { %v2383_v7 = vld [vmem:[#allocation1 + $0xde] sm:$0x80]   ;;  %v2400_v13 = vsel %vm729_vm1, %v2398_v4, %v2396_v8  ;;  %v744_v21 = vld [vmem:[#allocation1 + $0xba] sm:$0x40]   ;;  %1096 = vst.msk [vmem:[#allocation0 + $0x1c] sm:$0xf] %vm1020_vm4, %v3303_v54   ;;  %v738_v54 = vsel %vm737_vm5, %v736_v55, %v734_v20 }
  0x9a   :  { %v2402_v11 = vld [vmem:[#allocation1 + $0x162] sm:$0x8]   ;;  %2837 = vrot.lane.b32.xlu2 %v2836_v5, %s2879_s18  ;;  %v2385_v9 = vsel %vm749_vm8, %v2383_v7, %v2381_v16  ;;  %v748_v23 = vld [vmem:[#allocation1 + $0xd9] sm:$0x80]   ;;  %v742_v26 = vsel %vm741_vm6, %v740_v18, %v738_v54  ;;  %vm751_vm5 = vcmask 211968   ;;  %vm1242_vm6 = vcmask 15360  }
  0x9b   :  { %v2404_v17 = vsel %vm733_vm2, %v2402_v11, %v2400_v13  ;;  %v2743_v22 = vpop.permute.xlu2 %2742  ;;  %v746_v27 = vsel %vm745_vm7, %v744_v21, %v742_v26  ;;  %v754_v29 = vld [vmem:[#allocation1 + $0x100] sm:$0x1]   ;;  %vm1403_vm7 = vcmask 900768  }
  0x9c   :  { %v2851_v19 = vpack.i.bf16 %v2404_v17, %v2385_v9  ;;  %v2745_v25 = vunpack.i.h.bf16 %v2743_v22  ;;  %v756_v30 = vld [vmem:[#allocation1 + $0x11f] sm:$0x2]   ;;  %v750_v32 = vsel %vm749_vm8, %v748_v23, %v746_v27  ;;  %v2744_v46 = vunpack.i.l.bf16 %v2743_v22 }
  0x9d   :  { %v760_v31 = vld [vmem:[#allocation1 + $0x13e] sm:$0x4]   ;;  %v1203_v45 = vpop.permute.xlu1 %1202   ;;  %v758_v34 = vsel %vm725_vm0, %v756_v30, %v754_v29  ;;  %752 = vst.msk [vmem:[#allocation0] sm:$0xff] %vm751_vm5, %v750_v32   ;;  %vm1132_vm0 = vcmask 31744   ;;  %vm1349_vm8 = vcmask 917168  }
  0x9e   :  { %v2733_v24 = vpop.permute.xlu0 %2732  ;;  %1059 = vst.msk [vmem:[#allocation0 + $0x40] sm:$0xf] %vm1057_vm12, %v2745_v25   ;;  %v762_v35 = vsel %vm729_vm1, %v760_v31, %v758_v34  ;;  %v764_v37 = vld [vmem:[#allocation1 + $0x15d] sm:$0x8]   ;;  %vm1169_vm1 = vcmask 1048400  }
  0x9f   :  { %v2735_v28 = vunpack.i.h.bf16 %v2733_v24  ;;  %v2734_v60 = vunpack.i.l.bf16 %v2733_v24  ;;  %1061 = vst.msk [vmem:[#allocation0 + $0xc] sm:$0xf0] %vm1057_vm12, %v2745_v25   ;;  %v766_v38 = vsel %vm733_vm2, %v764_v37, %v762_v35  ;;  %vm1277_vm2 = vcmask 1048384  }
  0xa0   :  { %1206 = vst.msk [vmem:[#allocation0 + $0x14] sm:$0xf] %vm1132_vm0, %v1203_v45   ;;  %vm1622_vm12 = vcmask 703968  }
  0xa1   :  { %839 = vst.msk [vmem:[#allocation0 + $0x20] sm:$0xff] %vm837_vm14, %v2735_v28   ;;  %vm1676_vm14 = vcmask 687568  }
  0xa2   :  { %2852 = vrot.lane.b32.xlu2 %v2851_v19, %s2880_s19  ;;  %804 = vst.msk [vmem:[#allocation0 + $0x28] sm:$0xff] %vm802_vm13, %v2734_v60   ;;  %vm1732_vm13 = vcmask 671168  }
  0xa3   :  { %1209 = vst.msk [vmem:[#allocation0 + $0x38] sm:$0xf] %vm1169_vm1, %v1203_v45  }
  0xa4   :  { %769 = vst.msk [vmem:[#allocation0 + $0x30] sm:$0xf] %vm751_vm5, %v766_v38   ;;  %vm1949_vm5 = vcmask 474368  }
  0xb1   :  { %v2748_v41 = vpop.permute.xlu0 %2747 }
  0xb2   :  { %v2753_v36 = vpop.permute.xlu2 %2752  ;;  %v2750_v42 = vunpack.i.h.bf16 %v2748_v41  ;;  %v2749_v33 = vunpack.i.l.bf16 %v2748_v41 }
  0xb3   :  { %v2755_v40 = vunpack.i.h.bf16 %v2753_v36  ;;  %v2754_v39 = vunpack.i.l.bf16 %v2753_v36  ;;  %v2738_v43 = vpop.permute.xlu1 %2737 }
  0xb4   :  { %1171 = vst.msk [vmem:[#allocation0 + $0x8] sm:$0xff] %vm1169_vm1, %v2750_v42   ;;  %v2740_v44 = vunpack.i.h.bf16 %v2738_v43  ;;  %v2739_v47 = vunpack.i.l.bf16 %v2738_v43  ;;  %vm2005_vm1 = vcmask 457968  }
  0xb5   :  { %1278 = vst.msk [vmem:[#allocation0] sm:$0xff] %vm1277_vm2, %v2755_v40  }
  0xb6   :  { %1244 = vst.msk [vmem:[#allocation0 + $0x8] sm:$0xff] %vm1242_vm6, %v2754_v39  }
  0xb7   :  { %1134 = vst.msk [vmem:[#allocation0 + $0x40] sm:$0xf] %vm1132_vm0, %v2749_v33  }
  0xb8   :  { %1136 = vst.msk [vmem:[#allocation0 + $0xc] sm:$0xf0] %vm1132_vm0, %v2749_v33   ;;  %vm2061_vm0 = vcmask 441568  }
  0xb9   :  { %947 = vst.msk [vmem:[#allocation0 + $0x48] sm:$0xf] %vm945_vm3, %v2740_v44  }
  0xba   :  { %949 = vst.msk [vmem:[#allocation0 + $0x14] sm:$0xf0] %vm945_vm3, %v2740_v44   ;;  %vm1895_vm3 = vcmask 490768  }
  0xbb   :  { %1022 = vst.msk [vmem:[#allocation0 + $0x48] sm:$0xf] %vm1020_vm4, %v2744_v46  }
  0xbc   :  { %v2763_v48 = vpop.permute.xlu2 %2762  ;;  %1024 = vst.msk [vmem:[#allocation0 + $0x14] sm:$0xf0] %vm1020_vm4, %v2744_v46   ;;  %v2758_v57 = vpop.permute.xlu1 %2757  ;;  %vm1842_vm4 = vcmask 638368  }
  0xbd   :  { %v2765_v49 = vunpack.i.h.bf16 %v2763_v48  ;;  %v2764_v51 = vunpack.i.l.bf16 %v2763_v48  ;;  %912 = vst.msk [vmem:[#allocation0 + $0x20] sm:$0xff] %vm910_vm15, %v2739_v47   ;;  %v2759_v58 = vunpack.i.l.bf16 %v2758_v57  ;;  %v2760_v59 = vunpack.i.h.bf16 %v2758_v57 }
  0xbe   :  { %vm1788_vm15 = vcmask 654768  }
  0xbf   :  { %1426 = vst.msk [vmem:[#allocation0 + $0x1c] sm:$0xf] %vm1403_vm7, %v2765_v49   ;;  %v1310_v52 = vpop.permute.xlu0 %1309  }
  0xc0   :  { %1405 = vst.msk [vmem:[#allocation0 + $0x48] sm:$0xf] %vm1403_vm7, %v2764_v51  }
  0xc1   :  { %1407 = vst.msk [vmem:[#allocation0 + $0x14] sm:$0xf0] %vm1403_vm7, %v2764_v51   ;;  %vm2388_vm7 = vcmask 228368  }
  0xc2   :  { %1313 = vst.msk [vmem:[#allocation0 + $0x38] sm:$0xf] %vm1242_vm6, %v1310_v52   ;;  %vm2115_vm6 = vcmask 425168  }
  0xc3   :  { %1316 = vst.msk [vmem:[#allocation0 + $0x30] sm:$0xf] %vm1277_vm2, %v1310_v52   ;;  %vm2222_vm2 = vcmask 277568  }
  0xc4   :  { %1351 = vst.msk [vmem:[#allocation0 + $0x20] sm:$0xff] %vm1349_vm8, %v2759_v58  }
  0xc5   :  { %1370 = vst.msk [vmem:[#allocation0 + $0x50] sm:$0xf] %vm1349_vm8, %v2760_v59   ;;  %vm2168_vm8 = vcmask 293968  }
  0xc7   :  { %v2768_v62 = vpop.permute.xlu0 %2767 }
  0xc8   :  { %v2778_v61 = vpop.permute.xlu2 %2777  ;;  %v2769_v1 = vunpack.i.l.bf16 %v2768_v62  ;;  %v2770_v2 = vunpack.i.h.bf16 %v2768_v62 }
  0xc9   :  { %v2780_v63 = vunpack.i.h.bf16 %v2778_v61  ;;  %v2779_v0 = vunpack.i.l.bf16 %v2778_v61 }
  0xca   :  { %1461 = vst.msk [vmem:[#allocation0 + $0x40] sm:$0xf] %vm1459_vm10, %v2769_v1  }
  0xcb   :  { %1570 = vst.msk [vmem:[#allocation0] sm:$0xff] %vm1569_vm9, %v2779_v0   ;;  %v2773_v3 = vpop.permute.xlu1 %2772 }
  0xcc   :  { %1589 = vst.msk [vmem:[#allocation0 + $0x30] sm:$0xf] %vm1569_vm9, %v2780_v63   ;;  %v2775_v4 = vunpack.i.h.bf16 %v2773_v3  ;;  %v2774_v5 = vunpack.i.l.bf16 %v2773_v3  ;;  %vm2276_vm9 = vcmask 261168  }
  0xcd   :  { %1463 = vst.msk [vmem:[#allocation0 + $0xc] sm:$0xf0] %vm1459_vm10, %v2769_v1  }
  0xce   :  { %1482 = vst.msk [vmem:[#allocation0 + $0x14] sm:$0xf] %vm1459_vm10, %v2770_v2   ;;  %vm2332_vm10 = vcmask 244768  }
  0xcf   :  { %v2783_v6 = vpop.permute.xlu0 %2782  ;;  %1517 = vst.msk [vmem:[#allocation0 + $0x8] sm:$0xff] %vm1515_vm11, %v2774_v5  }
  0xd0   :  { %v2785_v7 = vunpack.i.h.bf16 %v2783_v6  ;;  %v2784_v8 = vunpack.i.l.bf16 %v2783_v6  ;;  %1536 = vst.msk [vmem:[#allocation0 + $0x38] sm:$0xf] %vm1515_vm11, %v2775_v4  }
  0xd2   :  { %1624 = vst.msk [vmem:[#allocation0 + $0x20] sm:$0xff] %vm1622_vm12, %v2784_v8  }
  0xd3   :  { %1643 = vst.msk [vmem:[#allocation0 + $0x50] sm:$0xf] %vm1622_vm12, %v2785_v7  }
  0xd4   :  { %v2793_v11 = vpop.permute.xlu2 %2792 }
  0xd5   :  { %v2795_v12 = vunpack.i.h.bf16 %v2793_v11  ;;  %v2794_v13 = vunpack.i.l.bf16 %v2793_v11 }
  0xd6   :  { %v2788_v14 = vpop.permute.xlu1 %2787 }
  0xd7   :  { %1734 = vst.msk [vmem:[#allocation0 + $0x40] sm:$0xf] %vm1732_vm13, %v2794_v13   ;;  %v2790_v15 = vunpack.i.h.bf16 %v2788_v14  ;;  %v2789_v16 = vunpack.i.l.bf16 %v2788_v14 }
  0xd8   :  { %1736 = vst.msk [vmem:[#allocation0 + $0xc] sm:$0xf0] %vm1732_vm13, %v2794_v13  }
  0xd9   :  { %1755 = vst.msk [vmem:[#allocation0 + $0x14] sm:$0xf] %vm1732_vm13, %v2795_v12  }
  0xda   :  { %1699 = vst.msk [vmem:[#allocation0 + $0x1c] sm:$0xf] %vm1676_vm14, %v2790_v15   ;;  %v2798_v53 = vpop.permute.xlu0 %2797 }
  0xdb   :  { %1678 = vst.msk [vmem:[#allocation0 + $0x48] sm:$0xf] %vm1676_vm14, %v2789_v16   ;;  %v2800_v9 = vunpack.i.h.bf16 %v2798_v53  ;;  %v2799_v17 = vunpack.i.l.bf16 %v2798_v53 }
  0xdc   :  { %1680 = vst.msk [vmem:[#allocation0 + $0x14] sm:$0xf0] %vm1676_vm14, %v2789_v16  }
  0xdd   :  { %1790 = vst.msk [vmem:[#allocation0 + $0x8] sm:$0xff] %vm1788_vm15, %v2799_v17  }
  0xde   :  { %1809 = vst.msk [vmem:[#allocation0 + $0x38] sm:$0xf] %vm1788_vm15, %v2800_v9  }
  0xe0   :  { %v2808_v50 = vpop.permute.xlu2 %2807 }
  0xe1   :  { %v2810_v56 = vunpack.i.h.bf16 %v2808_v50  ;;  %v2809_v55 = vunpack.i.l.bf16 %v2808_v50 }
  0xe2   :  { %v2803_v10 = vpop.permute.xlu1 %2802 }
  0xe3   :  { %1897 = vst.msk [vmem:[#allocation0 + $0x20] sm:$0xff] %vm1895_vm3, %v2809_v55   ;;  %v2805_v18 = vunpack.i.h.bf16 %v2803_v10  ;;  %v2804_v19 = vunpack.i.l.bf16 %v2803_v10 }
  0xe4   :  { %1916 = vst.msk [vmem:[#allocation0 + $0x50] sm:$0xf] %vm1895_vm3, %v2810_v56  }
  0xe5   :  { %1862 = vst.msk [vmem:[#allocation0 + $0x30] sm:$0xf] %vm1842_vm4, %v2805_v18  }
  0xe6   :  { %1843 = vst.msk [vmem:[#allocation0] sm:$0xff] %vm1842_vm4, %v2804_v19   ;;  %v2813_v20 = vpop.permute.xlu0 %2812 }
  0xe7   :  { %v2815_v21 = vunpack.i.h.bf16 %v2813_v20  ;;  %v2814_v22 = vunpack.i.l.bf16 %v2813_v20 }
  0xe9   :  { %1951 = vst.msk [vmem:[#allocation0 + $0x48] sm:$0xf] %vm1949_vm5, %v2814_v22  }
  0xea   :  { %1953 = vst.msk [vmem:[#allocation0 + $0x14] sm:$0xf0] %vm1949_vm5, %v2814_v22  }
  0xeb   :  { %1972 = vst.msk [vmem:[#allocation0 + $0x1c] sm:$0xf] %vm1949_vm5, %v2815_v21  }
  0xec   :  { %v2823_v54 = vpop.permute.xlu2 %2822 }
  0xed   :  { %v2825_v23 = vunpack.i.h.bf16 %v2823_v54  ;;  %v2824_v24 = vunpack.i.l.bf16 %v2823_v54 }
  0xee   :  { %v2818_v25 = vpop.permute.xlu1 %2817 }
  0xef   :  { %2063 = vst.msk [vmem:[#allocation0 + $0x8] sm:$0xff] %vm2061_vm0, %v2824_v24   ;;  %v2820_v26 = vunpack.i.h.bf16 %v2818_v25  ;;  %v2819_v27 = vunpack.i.l.bf16 %v2818_v25 }
  0xf0   :  { %2082 = vst.msk [vmem:[#allocation0 + $0x38] sm:$0xf] %vm2061_vm0, %v2825_v23  }
  0xf1   :  { %2028 = vst.msk [vmem:[#allocation0 + $0x14] sm:$0xf] %vm2005_vm1, %v2820_v26  }
  0xf2   :  { %2007 = vst.msk [vmem:[#allocation0 + $0x40] sm:$0xf] %vm2005_vm1, %v2819_v27   ;;  %v2828_v29 = vpop.permute.xlu0 %2827 }
  0xf3   :  { %2009 = vst.msk [vmem:[#allocation0 + $0xc] sm:$0xf0] %vm2005_vm1, %v2819_v27   ;;  %v2829_v32 = vunpack.i.l.bf16 %v2828_v29  ;;  %v2830_v60 = vunpack.i.h.bf16 %v2828_v29 }
  0xf4   :  { %v2838_v28 = vpop.permute.xlu2 %2837 }
  0xf5   :  { %v2840_v30 = vunpack.i.h.bf16 %v2838_v28  ;;  %v2839_v31 = vunpack.i.l.bf16 %v2838_v28  ;;  %2116 = vst.msk [vmem:[#allocation0] sm:$0xff] %vm2115_vm6, %v2829_v32  }
  0xf6   :  { %2135 = vst.msk [vmem:[#allocation0 + $0x30] sm:$0xf] %vm2115_vm6, %v2830_v60  }
  0xf7   :  { %2224 = vst.msk [vmem:[#allocation0 + $0x20] sm:$0xff] %vm2222_vm2, %v2839_v31  }
  0xf8   :  { %2243 = vst.msk [vmem:[#allocation0 + $0x50] sm:$0xf] %vm2222_vm2, %v2840_v30  }
  0xfa   :  { %v2833_v34 = vpop.permute.xlu1 %2832 }
  0xfb   :  { %v2834_v38 = vunpack.i.l.bf16 %v2833_v34  ;;  %v2835_v36 = vunpack.i.h.bf16 %v2833_v34 }
  0xfc   :  { %v2853_v45 = vpop.permute.xlu2 %2852  ;;  %v2412_v42 = vld [vmem:[#allocation0] sm:$0xff] }
  0xfd   :  { %v2855_v35 = vunpack.i.h.bf16 %v2853_v45  ;;  %v2854_v37 = vunpack.i.l.bf16 %v2853_v45  ;;  %2170 = vst.msk [vmem:[#allocation0 + $0x28] sm:$0xff] %vm2168_vm8, %v2834_v38   ;;  %v2453_v33 = vld [vmem:[#allocation0 + $0x30] sm:$0xff] }
  0xfe   :  { %v2843_v40 = vpop.permute.xlu0 %2842  ;;  %2189 = vst.msk [vmem:[#allocation0 + $0x58] sm:$0xf] %vm2168_vm8, %v2835_v36   ;;  %v2439_v44 = vld [vmem:[#allocation0 + $0x20] sm:$0xff] }
  0xff   :  { %2390 = vst.msk [vmem:[#allocation0 + $0x8] sm:$0xff] %vm2388_vm7, %v2854_v37   ;;  %v2845_v39 = vunpack.i.h.bf16 %v2843_v40  ;;  %v2844_v41 = vunpack.i.l.bf16 %v2843_v40  ;;  %v2481_v48 = vld [vmem:[#allocation0 + $0x50] sm:$0xff] }
 0x100   :  { %2409 = vst.msk [vmem:[#allocation0 + $0x38] sm:$0xf] %vm2388_vm7, %v2855_v35  }
 0x101   :  { %2278 = vst.msk [vmem:[#allocation0 + $0x48] sm:$0xf] %vm2276_vm9, %v2844_v41  }
 0x102   :  { %2280 = vst.msk [vmem:[#allocation0 + $0x14] sm:$0xf0] %vm2276_vm9, %v2844_v41  }
 0x103   :  { %2299 = vst.msk [vmem:[#allocation0 + $0x1c] sm:$0xf] %vm2276_vm9, %v2845_v39  }
 0x104   :  { %v2446_v51 = vld [vmem:[#allocation0 + $0x28] sm:$0xff] }
 0x105   :  { %v2488_v57 = vld [vmem:[#allocation0 + $0x58] sm:$0xff]  ;;  %v2661_v61 = vpack.c.bf16 %v2446_v51, %v2439_v44 }
 0x106   :  { %v2418_v43 = vld [vmem:[#allocation0 + $0x8] sm:$0xff]  ;;  %v2848_v52 = vpop.permute.xlu1 %2847  ;;  %v2676_v62 = vpack.c.bf16 %v2488_v57, %v2481_v48 }
 0x107   :  { %v2651_v46 = vpack.c.bf16 %v2418_v43, %v2412_v42  ;;  %v2460_v47 = vld [vmem:[#allocation0 + $0x38] sm:$0xff]  ;;  %v2850_v58 = vunpack.i.h.bf16 %v2848_v52  ;;  %v2849_v59 = vunpack.i.l.bf16 %v2848_v52  ;;  %2702 = vst [vmem:[%s3403_s1 + $0x10] sm:$0xff] %v2661_v61  }
 0x108   :  { %v2666_v49 = vpack.c.bf16 %v2460_v47, %v2453_v33  ;;  %2705 = vst [vmem:[%s3403_s1 + $0x28] sm:$0xff] %v2676_v62   ;;  %v2474_v63 = vld [vmem:[#allocation0 + $0x48] sm:$0xff] }
 0x109   :  { %2652 = vst [vmem:[%s3403_s1] sm:$0xff] %v2651_v46  }
 0x10a   :  { %2703 = vst [vmem:[%s3403_s1 + $0x18] sm:$0xff] %v2666_v49   ;;  %v2432_v0 = vld [vmem:[#allocation0 + $0x18] sm:$0xff] }
 0x10b   :  { %2334 = vst.msk [vmem:[#allocation0 + $0x40] sm:$0xf] %vm2332_vm10, %v2849_v59  }
 0x10c   :  { %2336 = vst.msk [vmem:[#allocation0 + $0xc] sm:$0xf0] %vm2332_vm10, %v2849_v59  }
 0x10d   :  { %2355 = vst.msk [vmem:[#allocation0 + $0x14] sm:$0xf] %vm2332_vm10, %v2850_v58  }
 0x112   :  { %v2467_v1 = vld [vmem:[#allocation0 + $0x40] sm:$0xff] }
 0x113   :  { %v2671_v2 = vpack.c.bf16 %v2474_v63, %v2467_v1 }
 0x114   :  { %v2425_v3 = vld [vmem:[#allocation0 + $0x10] sm:$0xff] }
 0x115   :  { %v2656_v4 = vpack.c.bf16 %v2432_v0, %v2425_v3  ;;  %2704 = vst [vmem:[%s3403_s1 + $0x20] sm:$0xff] %v2671_v2  }
 0x117   :  { %2701 = vst [vmem:[%s3403_s1 + $0x8] sm:$0xff] %v2656_v4  }

// kernel: simple_cnn_forward.1
= control target key start
LH: loop header
LB: loop body
LE: loop exit
PB: predicated region body
PF: predicated region fallthrough
CT: control target
= control target key end

     0   :  { %10 = vsyncpa [#allocation4], 0  ;;  %s12413_s0 = inlined_call_operand.vmem [shape: bf16[2,9,6144], index: 0, kind: input, shape index: {}]   ;;  %s12414_s1 = inlined_call_operand.vmem [shape: bf16[16,9], index: 1, kind: input, shape index: {}]   ;;  %s12415_s2 = inlined_call_operand.vmem [shape: f32[16,1], index: 2, kind: input, shape index: {}]   ;;  %s12416_s3 = inlined_call_operand.vmem [shape: bf16[16,10,768], index: 3, kind: input, shape index: {}]   ;;  %s12417_s4 = inlined_call_operand.vmem [shape: f32[1,10], index: 4, kind: input, shape index: {}]   ;;  %s12418_s5 = inlined_call_operand.hbm [shape: f32[16,10], index: 5, kind: output, shape index: {}]  }
   0x1   :  { %12 = vsyncpa [#allocation4 + $0x1], 0  ;;  %s8816_s18 = smov 0   ;;  %s8818_s19 = smov 0  }
   0x2   :  { %s8820_s20 = smov 0   ;;  %s8822_s21 = smov 0  }
   0x3 LB: > { %s8837_s22 = sadd.s32 4294967295, %s8779_s21   ;;  %s7822_s23 = sadd.s32 4294967294, %s8779_s21   ;;  %s8779_s21 = sphi %s8822_s21, %s12636_s21   ;;  %s8775_s20 = sphi %s8820_s20, %s12635_s20   ;;  %s8771_s19 = sphi %s8818_s19, %s12634_s19   ;;  %s8767_s18 = sphi %s8816_s18, %s12633_s18  }
   0x4   : > { %s8841_s24 = sadd.s32 1, %s8779_s21   ;;  %s135_s25 = sadd.s32 1, %s8775_s20 }
   0x5   : > { %s132_s26 = ssub.s32 %s8779_s21, %s8841_s24  ;;  %p145_p0 = scmp.ne.s32.totalorder %s8775_s20, %s8771_s19 }
   0x6   : > { %p133_p1 = scmp.eq.s32.totalorder %s132_s26, 0  ;;  %p146_p2 = scmp.eq.s32.totalorder %s8837_s22, 1 }
   0x7   : > { %p151_p3 = scmp.ne.s32.totalorder %s8771_s19, %s8767_s18  ;;  %p152_p4 = scmp.eq.s32.totalorder %s7822_s23, 1 }
   0x8   : > { %s8852_s27 = scalar_select %p133_p1, %s8775_s20, %s135_s25  }
   0x9   : > { %p8854_p5 = por %p146_p2, %p145_p0  ;;  %p8858_p6 = por %p152_p4, %p151_p3 }
   0xa   : > { %p7825_p7 = scmp.ge.s32.totalorder %s8779_s21, 1  ;;  %p190_p8 = scmp.lt.s32.totalorder %s8779_s21, 3 }
   0xc   : > { %p191_p9 = pnand %p7825_p7, %p190_p8 }
   0xd   : > { %p218_p10 = scmp.lt.s32.totalorder (!%p191_p9), %s8837_s22, 1  ;;  %s215_s23 = sand.u32 (!%p191_p9), 1, %s8771_s19  }
   0xe   : > { %194 = sbr.rel (%p191_p9) target bundleno = 1141 (0x475), region = 40  ;;  %s7826_s25 = sshll.u32 (!%p191_p9), %s215_s23, 3 }
   0xf   : > { %s8521_s26 = sshll.u32 (!%p191_p9), %s8837_s22, 3  ;;  %s7748_s12 = scalar_lea.sflag (!%p191_p9), [#allocation4], %s215_s23 }
  0x10   : > { %s8737_s17 = scalar_lea.hbm (!%p191_p9), %s12418_s5, 16 }
  0x13   : > { %vm487_vm0 = vcmask 1043456   ;;  %v226_v0 = vld [vmem:[%s12415_s2] sm:$0xff]  ;;  %s219_s7 = scalar_select %p218_p10, %s8837_s22, 1  ;;  %v8781_v1 = vmov 0   ;;  %vm488_vm1 = vcmask 1044480   ;;  %v8782_v2 = vmov 65535  }
  0x14   : > { %8714 = vset.pattern.permute.xlu0 %v8781_v1  ;;  %v489_v3 = vsel %vm487_vm0, 4294967295, %v8782_v2  ;;  %vm12419_vm2 = vcmask 72704   ;;  %v227_v5 = vld [vmem:[%s12415_s2 + $0x8] sm:$0xff]  ;;  %v8890_v17 = vld [vmem:[%s12414_s1] sm:$0xff]  ;;  %vm12425_vm3 = vcmask 1040384   ;;  %vm12420_vm4 = vcmask 1041408  }
  0x15   : > { %278 = vperm.xlu0 %8714, %v226_v0   ;;  %s8669_s8 = smul.u32 384, %s219_s7  ;;  %v8874_v4 = vsel %vm488_vm1, %v489_v3, 0  ;;  %vm12421_vm5 = vcmask 1041409   ;;  %vm1486_vm6 = vcmask 1042433   ;;  %vm1488_vm7 = vcmask 1044484   ;;  %s7758_s7 = scalar_lea.hbm %s12418_s5, %s8521_s26 }
  0x16   : > { %vm1500_vm8 = vcmask 1045509   ;;  %vm1474_vm9 = vcmask 1043459   ;;  %vm12424_vm10 = vcmask 1042434   ;;  %vm12422_vm12 = vcmask 1045508   ;;  %s217_s22 = scalar_lea.vmem [#allocation3], %s7826_s25 }
  0x17   : > { %s8872_s11 = scalar_lea.vmem %s12413_s0, %s8669_s8  ;;  %vm12423_vm13 = vcmask 1046534   ;;  %vm1478_vm14 = vcmask 1044483   ;;  %vm1502_vm1 = vcmask 1046533   ;;  %vm1504_vm15 = vcmask 1044482   ;;  %s7760_s10 = sshll.u32 %s217_s22, 4  ;;  %s7761_s10 = int_to_ptr.vmem [resolvable:$true] %s7760_s10 }
  0x18   : > { %v7834_v6 = vld [vmem:[%s8872_s11] sm:$0xf]  ;;  %v8525_v8 = vld [vmem:[%s8872_s11 + $0x4] sm:$0xf]  ;;  %v7842_v11 = vld [vmem:[%s8872_s11 + $0x8] sm:$0xf] }
  0x19   : > { %v8549_v7 = vld [vmem:[%s8872_s11 + $0xbc] sm:$0x10]  ;;  %v7836_v10 = vld [vmem:[%s8872_s11 + $0xc0] sm:$0x10]  ;;  %v8550_v12 = vld [vmem:[%s8872_s11 + $0xc4] sm:$0x10] }
  0x1a   : > { %v7835_v9 = vor.u32 %v8549_v7, %v7834_v6  ;;  %v7839_v13 = vor.u32 %v8525_v8, %v7836_v10  ;;  %v7843_v14 = vor.u32 %v8550_v12, %v7842_v11  ;;  %v8526_v15 = vld [vmem:[%s8872_s11 + $0xc] sm:$0xf]  ;;  %v7858_v18 = vld [vmem:[%s8872_s11 + $0x18] sm:$0xf]  ;;  %v8528_v22 = vld [vmem:[%s8872_s11 + $0x1c] sm:$0xf] }
  0x1b   : > { %v7844_v16 = vld [vmem:[%s8872_s11 + $0xc8] sm:$0x10]  ;;  %v8552_v21 = vld [vmem:[%s8872_s11 + $0xd4] sm:$0x10]  ;;  %v7860_v23 = vld [vmem:[%s8872_s11 + $0xd8] sm:$0x10] }
  0x1c   : > { %v492_v19 = vand.u32 %v7835_v9, %v8874_v4  ;;  %v7847_v20 = vor.u32 %v8526_v15, %v7844_v16  ;;  %v495_v24 = vand.u32 %v7839_v13, %v8874_v4  ;;  %v498_v25 = vand.u32 %v7843_v14, %v8874_v4  ;;  %v7850_v28 = vld [vmem:[%s8872_s11 + $0x10] sm:$0xf]  ;;  %v8527_v30 = vld [vmem:[%s8872_s11 + $0x14] sm:$0xf]  ;;  %v7874_v34 = vld [vmem:[%s8872_s11 + $0x28] sm:$0xf] }
  0x1d   : > { %v7859_v26 = vor.u32 %v8552_v21, %v7858_v18  ;;  %v7863_v27 = vor.u32 %v8528_v22, %v7860_v23  ;;  %v8551_v29 = vld [vmem:[%s8872_s11 + $0xcc] sm:$0x10]  ;;  %283 = vperm.xlu0 %8714, %v227_v5   ;;  %v7852_v33 = vld [vmem:[%s8872_s11 + $0xd0] sm:$0x10]  ;;  %v8554_v35 = vld [vmem:[%s8872_s11 + $0xe4] sm:$0x10] }
  0x1e   : > { %642 = vmatpush.bf16.msra.mxu0 %v492_v19  ;;  %v501_v31 = vand.u32 %v7847_v20, %v8874_v4  ;;  %v7851_v32 = vor.u32 %v8551_v29, %v7850_v28  ;;  %656 = vmatpush.bf16.msra.mxu1 %v495_v24  ;;  %v7855_v37 = vor.u32 %v8527_v30, %v7852_v33  ;;  %v8530_v38 = vld [vmem:[%s8872_s11 + $0x2c] sm:$0xf]  ;;  %v7866_v40 = vld [vmem:[%s8872_s11 + $0x20] sm:$0xf]  ;;  %v8529_v46 = vld [vmem:[%s8872_s11 + $0x24] sm:$0xf] }
  0x1f   : > { %670 = vmatpush.bf16.msra.mxu2 %v498_v25  ;;  %v510_v36 = vand.u32 %v7859_v26, %v8874_v4  ;;  %v7876_v39 = vld [vmem:[%s8872_s11 + $0xe8] sm:$0x10]  ;;  %v513_v41 = vand.u32 %v7863_v27, %v8874_v4  ;;  %v7875_v43 = vor.u32 %v8554_v35, %v7874_v34  ;;  %v8553_v45 = vld [vmem:[%s8872_s11 + $0xdc] sm:$0x10]  ;;  %v7868_v47 = vld [vmem:[%s8872_s11 + $0xe0] sm:$0x10] }
  0x20   : > { %684 = vmatpush.bf16.msra.mxu3 %v501_v31  ;;  %v504_v42 = vand.u32 %v7851_v32, %v8874_v4  ;;  %v7879_v44 = vor.u32 %v8530_v38, %v7876_v39  ;;  %v507_v48 = vand.u32 %v7855_v37, %v8874_v4  ;;  %v7867_v49 = vor.u32 %v8553_v45, %v7866_v40  ;;  %v7890_v55 = vld [vmem:[%s8872_s11 + $0x38] sm:$0xf]  ;;  %v8532_v57 = vld [vmem:[%s8872_s11 + $0x3c] sm:$0xf]  ;;  %v7882_v59 = vld [vmem:[%s8872_s11 + $0x30] sm:$0xf] }
  0x21   : > { %8024 = vmatmul.msk.bf16.vlgmr.msra.gmra.mxu0 %vm12419_vm2, %v8890_v17  ;;  %v7871_v50 = vor.u32 %v8529_v46, %v7868_v47  ;;  %8025 = vmatmul.msk.bf16.vlgmr.msra.gmra.mxu1 %vm12419_vm2, %v8890_v17  ;;  %v522_v51 = vand.u32 %v7875_v43, %v8874_v4  ;;  %v8556_v56 = vld [vmem:[%s8872_s11 + $0xf4] sm:$0x10]  ;;  %v7892_v58 = vld [vmem:[%s8872_s11 + $0xf8] sm:$0x10]  ;;  %v8555_v60 = vld [vmem:[%s8872_s11 + $0xec] sm:$0x10] }
  0x22   : > { %8026 = vmatmul.msk.bf16.vlgmr.msra.gmra.mxu2 %vm12419_vm2, %v8890_v17  ;;  %v525_v52 = vand.u32 %v7879_v44, %v8874_v4  ;;  %698 = vmatpush.bf16.msrb.mxu0 %v504_v42  ;;  %v516_v53 = vand.u32 %v7867_v49, %v8874_v4  ;;  %v8531_v61 = vld [vmem:[%s8872_s11 + $0x34] sm:$0xf]  ;;  %v7891_v63 = vor.u32 %v8556_v56, %v7890_v55  ;;  %v7906_v8 = vld [vmem:[%s8872_s11 + $0x48] sm:$0xf]  ;;  %v8534_v10 = vld [vmem:[%s8872_s11 + $0x4c] sm:$0xf] }
  0x23   : > { %726 = vmatpush.bf16.msrb.mxu2 %v510_v36  ;;  %8027 = vmatmul.msk.bf16.vlgmr.msra.gmra.mxu3 %vm12419_vm2, %v8890_v17  ;;  %v519_v54 = vand.u32 %v7871_v50, %v8874_v4  ;;  %v7884_v62 = vld [vmem:[%s8872_s11 + $0xf0] sm:$0x10]  ;;  %v7895_v0 = vor.u32 %v8532_v57, %v7892_v58  ;;  %v7883_v1 = vor.u32 %v8555_v60, %v7882_v59  ;;  %v8558_v9 = vld [vmem:[%s8872_s11 + $0x104] sm:$0x10]  ;;  %v7908_v11 = vld [vmem:[%s8872_s11 + $0x108] sm:$0x10] }
  0x24   : > { %740 = vmatpush.bf16.msrb.mxu3 %v513_v41  ;;  %712 = vmatpush.bf16.msrb.mxu1 %v507_v48  ;;  %v7887_v2 = vor.u32 %v8531_v61, %v7884_v62  ;;  %v534_v3 = vand.u32 %v7891_v63, %v8874_v4  ;;  %v7898_v12 = vld [vmem:[%s8872_s11 + $0x40] sm:$0xf]  ;;  %v8533_v14 = vld [vmem:[%s8872_s11 + $0x44] sm:$0xf]  ;;  %v7907_v16 = vor.u32 %v8558_v9, %v7906_v8  ;;  %v7922_v25 = vld [vmem:[%s8872_s11 + $0x58] sm:$0xf] }
  0x25   : > { %v537_v5 = vand.u32 %v7895_v0, %v8874_v4  ;;  %v528_v6 = vand.u32 %v7883_v1, %v8874_v4  ;;  %v8557_v13 = vld [vmem:[%s8872_s11 + $0xfc] sm:$0x10]  ;;  %v7900_v15 = vld [vmem:[%s8872_s11 + $0x100] sm:$0x10]  ;;  %v7911_v18 = vor.u32 %v8534_v10, %v7908_v11  ;;  %v8560_v26 = vld [vmem:[%s8872_s11 + $0x114] sm:$0x10] }
  0x26   : > { %754 = vmatpush.bf16.msra.mxu0 %v516_v53  ;;  %v531_v7 = vand.u32 %v7887_v2, %v8874_v4  ;;  %v7899_v19 = vor.u32 %v8557_v13, %v7898_v12  ;;  %v7903_v20 = vor.u32 %v8533_v14, %v7900_v15  ;;  %v546_v21 = vand.u32 %v7907_v16, %v8874_v4  ;;  %v8536_v27 = vld [vmem:[%s8872_s11 + $0x5c] sm:$0xf]  ;;  %v7914_v29 = vld [vmem:[%s8872_s11 + $0x50] sm:$0xf]  ;;  %v8535_v31 = vld [vmem:[%s8872_s11 + $0x54] sm:$0xf] }
  0x27   : > { %782 = vmatpush.bf16.msra.mxu2 %v522_v51  ;;  %v549_v22 = vand.u32 %v7911_v18, %v8874_v4  ;;  %v7924_v28 = vld [vmem:[%s8872_s11 + $0x118] sm:$0x10]  ;;  %v8559_v30 = vld [vmem:[%s8872_s11 + $0x10c] sm:$0x10]  ;;  %v7916_v32 = vld [vmem:[%s8872_s11 + $0x110] sm:$0x10]  ;;  %v7923_v33 = vor.u32 %v8560_v26, %v7922_v25 }
  0x28   : > { %796 = vmatpush.bf16.msra.mxu3 %v525_v52  ;;  %768 = vmatpush.bf16.msra.mxu1 %v519_v54  ;;  %v540_v23 = vand.u32 %v7899_v19, %v8874_v4  ;;  %v543_v24 = vand.u32 %v7903_v20, %v8874_v4  ;;  %v7927_v34 = vor.u32 %v8536_v27, %v7924_v28  ;;  %v7938_v41 = vld [vmem:[%s8872_s11 + $0x68] sm:$0xf]  ;;  %v8538_v43 = vld [vmem:[%s8872_s11 + $0x6c] sm:$0xf]  ;;  %v7930_v45 = vld [vmem:[%s8872_s11 + $0x60] sm:$0xf] }
  0x29   : > { %v7915_v35 = vor.u32 %v8559_v30, %v7914_v29  ;;  %v7919_v36 = vor.u32 %v8535_v31, %v7916_v32  ;;  %v558_v37 = vand.u32 %v7923_v33, %v8874_v4  ;;  %v8562_v42 = vld [vmem:[%s8872_s11 + $0x124] sm:$0x10]  ;;  %v7940_v44 = vld [vmem:[%s8872_s11 + $0x128] sm:$0x10]  ;;  %v8561_v46 = vld [vmem:[%s8872_s11 + $0x11c] sm:$0x10] }
  0x2a   : > { %v561_v38 = vand.u32 %v7927_v34, %v8874_v4  ;;  %v8537_v47 = vld [vmem:[%s8872_s11 + $0x64] sm:$0xf]  ;;  %v7939_v49 = vor.u32 %v8562_v42, %v7938_v41  ;;  %v7943_v50 = vor.u32 %v8538_v43, %v7940_v44  ;;  %v7931_v51 = vor.u32 %v8561_v46, %v7930_v45  ;;  %v7954_v57 = vld [vmem:[%s8872_s11 + $0x78] sm:$0xf]  ;;  %v8540_v59 = vld [vmem:[%s8872_s11 + $0x7c] sm:$0xf] }
  0x2b   : > { %v552_v39 = vand.u32 %v7915_v35, %v8874_v4  ;;  %v555_v40 = vand.u32 %v7919_v36, %v8874_v4  ;;  %v7932_v48 = vld [vmem:[%s8872_s11 + $0x120] sm:$0x10]  ;;  %v8564_v58 = vld [vmem:[%s8872_s11 + $0x134] sm:$0x10]  ;;  %v7956_v60 = vld [vmem:[%s8872_s11 + $0x138] sm:$0x10] }
  0x2c   : > { %v7935_v52 = vor.u32 %v8537_v47, %v7932_v48  ;;  %v570_v53 = vand.u32 %v7939_v49, %v8874_v4  ;;  %v573_v54 = vand.u32 %v7943_v50, %v8874_v4  ;;  %v564_v55 = vand.u32 %v7931_v51, %v8874_v4  ;;  %v7946_v61 = vld [vmem:[%s8872_s11 + $0x70] sm:$0xf]  ;;  %v8539_v63 = vld [vmem:[%s8872_s11 + $0x74] sm:$0xf]  ;;  %v7970_v10 = vld [vmem:[%s8872_s11 + $0x88] sm:$0xf] }
  0x2d   : > { %v8563_v62 = vld [vmem:[%s8872_s11 + $0x12c] sm:$0x10]  ;;  %v7948_v0 = vld [vmem:[%s8872_s11 + $0x130] sm:$0x10]  ;;  %v7955_v1 = vor.u32 %v8564_v58, %v7954_v57  ;;  %v7959_v2 = vor.u32 %v8540_v59, %v7956_v60  ;;  %v8566_v11 = vld [vmem:[%s8872_s11 + $0x144] sm:$0x10] }
  0x2e   : > { %v567_v56 = vand.u32 %v7935_v52, %v8874_v4  ;;  %v8542_v12 = vld [vmem:[%s8872_s11 + $0x8c] sm:$0xf]  ;;  %v7962_v14 = vld [vmem:[%s8872_s11 + $0x80] sm:$0xf]  ;;  %v8541_v16 = vld [vmem:[%s8872_s11 + $0x84] sm:$0xf]  ;;  %v7971_v19 = vor.u32 %v8566_v11, %v7970_v10 }
  0x2f   : > { %v7972_v13 = vld [vmem:[%s8872_s11 + $0x148] sm:$0x10]  ;;  %v8565_v15 = vld [vmem:[%s8872_s11 + $0x13c] sm:$0x10]  ;;  %v7964_v18 = vld [vmem:[%s8872_s11 + $0x140] sm:$0x10] }
  0x30   : > { %v7975_v20 = vor.u32 %v8542_v12, %v7972_v13  ;;  %v7986_v27 = vld [vmem:[%s8872_s11 + $0x98] sm:$0xf]  ;;  %v8544_v29 = vld [vmem:[%s8872_s11 + $0x9c] sm:$0xf]  ;;  %v7978_v33 = vld [vmem:[%s8872_s11 + $0x90] sm:$0xf] }
  0x31   : > { %8028 = vmatmul.msk.bf16.vlgmr.msrb.gmra.mxu0 %vm12419_vm2, %v8890_v17  ;;  %8029 = vmatmul.msk.bf16.vlgmr.msrb.gmra.mxu1 %vm12419_vm2, %v8890_v17  ;;  %v8568_v28 = vld [vmem:[%s8872_s11 + $0x154] sm:$0x10]  ;;  %v7988_v30 = vld [vmem:[%s8872_s11 + $0x158] sm:$0x10]  ;;  %v8567_v34 = vld [vmem:[%s8872_s11 + $0x14c] sm:$0x10] }
  0x32   : > { %8030 = vmatmul.msk.bf16.vlgmr.msrb.gmra.mxu2 %vm12419_vm2, %v8890_v17  ;;  %810 = vmatpush.bf16.msrb.mxu0 %v528_v6  ;;  %v582_v6 = vand.u32 %v7955_v1, %v8874_v4  ;;  %v7987_v31 = vor.u32 %v8568_v28, %v7986_v27  ;;  %v7991_v32 = vor.u32 %v8544_v29, %v7988_v30  ;;  %v8543_v35 = vld [vmem:[%s8872_s11 + $0x94] sm:$0xf]  ;;  %v8784_v10 = vmov 858989090   ;;  %v8004_v27 = vld [vmem:[%s8872_s11 + $0x168] sm:$0x10] }
  0x33   : > { %8031 = vmatmul.msk.bf16.vlgmr.msrb.gmra.mxu3 %vm12419_vm2, %v8890_v17  ;;  %838 = vmatpush.bf16.msrb.mxu2 %v534_v3  ;;  %v7947_v3 = vor.u32 %v8563_v62, %v7946_v61  ;;  %v7979_v36 = vor.u32 %v8567_v34, %v7978_v33  ;;  %v1588_v11 = vunpack.c.l.s4 %v8784_v10  ;;  %v8785_v12 = vmov 1431651396  }
  0x34   : > { %852 = vmatpush.bf16.msrb.mxu3 %v537_v5  ;;  %824 = vmatpush.bf16.msrb.mxu1 %v531_v7  ;;  %v7951_v5 = vor.u32 %v8539_v63, %v7948_v0  ;;  %v585_v7 = vand.u32 %v7959_v2, %v8874_v4  ;;  %v1592_v13 = vunpack.c.l.s4 %v8785_v12  ;;  %vm12426_vm0 = vcmask 1045507  }
  0x35   : > { %v576_v8 = vand.u32 %v7947_v3, %v8874_v4  ;;  %v600_v41 = vand.u32 %v7979_v36, %v8874_v4  ;;  %vm1824_vm11 = vsmask.f32 256 }
  0x36   : > { %v579_v9 = vand.u32 %v7951_v5, %v8874_v4  ;;  %v8783_v5 = vmov 286326784  }
  0x41   : > { %8032 = vmatmul.msk.bf16.vlgmr.msra.gmra.mxu0 %vm12419_vm2, %v8890_v17  ;;  %8033 = vmatmul.msk.bf16.vlgmr.msra.gmra.mxu1 %vm12419_vm2, %v8890_v17 }
  0x42   : > { %8034 = vmatmul.msk.bf16.vlgmr.msra.gmra.mxu2 %vm12419_vm2, %v8890_v17  ;;  %866 = vmatpush.bf16.msra.mxu0 %v540_v23  ;;  %v594_v23 = vand.u32 %v7971_v19, %v8874_v4 }
  0x43   : > { %8035 = vmatmul.msk.bf16.vlgmr.msra.gmra.mxu3 %vm12419_vm2, %v8890_v17  ;;  %894 = vmatpush.bf16.msra.mxu2 %v546_v21  ;;  %v7963_v21 = vor.u32 %v8565_v15, %v7962_v14  ;;  %v8002_v14 = vld [vmem:[%s8872_s11 + $0xa8] sm:$0xf] }
  0x44   : > { %908 = vmatpush.bf16.msra.mxu3 %v549_v22  ;;  %880 = vmatpush.bf16.msra.mxu1 %v543_v24  ;;  %v7967_v22 = vor.u32 %v8541_v16, %v7964_v18  ;;  %v597_v24 = vand.u32 %v7975_v20, %v8874_v4  ;;  %v8570_v15 = vld [vmem:[%s8872_s11 + $0x164] sm:$0x10] }
  0x45   : > { %v588_v25 = vand.u32 %v7963_v21, %v8874_v4  ;;  %v8003_v21 = vor.u32 %v8570_v15, %v8002_v14 }
  0x46   : > { %v591_v26 = vand.u32 %v7967_v22, %v8874_v4 }
  0x51   : > { %8036 = vmatmul.msk.bf16.vlgmr.msrb.gmra.mxu0 %vm12419_vm2, %v8890_v17  ;;  %8037 = vmatmul.msk.bf16.vlgmr.msrb.gmra.mxu1 %vm12419_vm2, %v8890_v17 }
  0x52   : > { %8038 = vmatmul.msk.bf16.vlgmr.msrb.gmra.mxu2 %vm12419_vm2, %v8890_v17  ;;  %922 = vmatpush.bf16.msrb.mxu0 %v552_v39 }
  0x53   : > { %8039 = vmatmul.msk.bf16.vlgmr.msrb.gmra.mxu3 %vm12419_vm2, %v8890_v17  ;;  %950 = vmatpush.bf16.msrb.mxu2 %v558_v37  ;;  %v7980_v37 = vld [vmem:[%s8872_s11 + $0x150] sm:$0x10] }
  0x54   : > { %964 = vmatpush.bf16.msrb.mxu3 %v561_v38  ;;  %936 = vmatpush.bf16.msrb.mxu1 %v555_v40  ;;  %v606_v38 = vand.u32 %v7987_v31, %v8874_v4  ;;  %v7983_v39 = vor.u32 %v8543_v35, %v7980_v37  ;;  %v609_v40 = vand.u32 %v7991_v32, %v8874_v4 }
  0x55   : > { %v618_v31 = vand.u32 %v8003_v21, %v8874_v4 }
  0x56   : > { %v603_v42 = vand.u32 %v7983_v39, %v8874_v4 }
  0x61   : > { %8040 = vmatmul.msk.bf16.vlgmr.msra.gmra.mxu0 %vm12419_vm2, %v8890_v17  ;;  %8041 = vmatmul.msk.bf16.vlgmr.msra.gmra.mxu1 %vm12419_vm2, %v8890_v17 }
  0x62   : > { %8042 = vmatmul.msk.bf16.vlgmr.msra.gmra.mxu2 %vm12419_vm2, %v8890_v17  ;;  %978 = vmatpush.bf16.msra.mxu0 %v564_v55 }
  0x63   : > { %8043 = vmatmul.msk.bf16.vlgmr.msra.gmra.mxu3 %vm12419_vm2, %v8890_v17  ;;  %1006 = vmatpush.bf16.msra.mxu2 %v570_v53 }
  0x64   : > { %1020 = vmatpush.bf16.msra.mxu3 %v573_v54  ;;  %992 = vmatpush.bf16.msra.mxu1 %v567_v56 }
  0x71   : > { %8044 = vmatmul.msk.bf16.vlgmr.msrb.gmra.mxu0 %vm12419_vm2, %v8890_v17  ;;  %8045 = vmatmul.msk.bf16.vlgmr.msrb.gmra.mxu1 %vm12419_vm2, %v8890_v17 }
  0x72   : > { %8046 = vmatmul.msk.bf16.vlgmr.msrb.gmra.mxu2 %vm12419_vm2, %v8890_v17  ;;  %1034 = vmatpush.bf16.msrb.mxu0 %v576_v8 }
  0x73   : > { %8047 = vmatmul.msk.bf16.vlgmr.msrb.gmra.mxu3 %vm12419_vm2, %v8890_v17  ;;  %1062 = vmatpush.bf16.msrb.mxu2 %v582_v6  ;;  %v1584_v6 = vunpack.c.l.s4 %v8783_v5 }
  0x74   : > { %1076 = vmatpush.bf16.msrb.mxu3 %v585_v7  ;;  %1048 = vmatpush.bf16.msrb.mxu1 %v579_v9 }
  0x81   : > { %8048 = vmatmul.msk.bf16.vlgmr.msra.gmra.mxu0 %vm12419_vm2, %v8890_v17  ;;  %8049 = vmatmul.msk.bf16.vlgmr.msra.gmra.mxu1 %vm12419_vm2, %v8890_v17 }
  0x82   : > { %8050 = vmatmul.msk.bf16.vlgmr.msra.gmra.mxu2 %vm12419_vm2, %v8890_v17  ;;  %1090 = vmatpush.bf16.msra.mxu0 %v588_v25  ;;  %v9105_v25 = vunpack.c.0.s8 %v1584_v6 }
  0x83   : > { %8051 = vmatmul.msk.bf16.vlgmr.msra.gmra.mxu3 %vm12419_vm2, %v8890_v17  ;;  %1118 = vmatpush.bf16.msra.mxu2 %v594_v23 }
  0x84   : > { %1132 = vmatpush.bf16.msra.mxu3 %v597_v24  ;;  %1104 = vmatpush.bf16.msra.mxu1 %v591_v26  ;;  %v8546_v26 = vld [vmem:[%s8872_s11 + $0xac] sm:$0xf] }
  0x87   : > { %v9076_v45 = vpop.permute.xlu0 %278 }
  0x8f   : > { %v9084_v60 = vpop.permute.xlu0 %283 }
  0x91   : > { %8052 = vmatmul.msk.bf16.vlgmr.msrb.gmra.mxu0 %vm12419_vm2, %v8890_v17  ;;  %8053 = vmatmul.msk.bf16.vlgmr.msrb.gmra.mxu1 %vm12419_vm2, %v8890_v17 }
  0x92   : > { %8054 = vmatmul.msk.bf16.vlgmr.msrb.gmra.mxu2 %vm12419_vm2, %v8890_v17  ;;  %1146 = vmatpush.bf16.msrb.mxu0 %v600_v41 }
  0x93   : > { %8055 = vmatmul.msk.bf16.vlgmr.msrb.gmra.mxu3 %vm12419_vm2, %v8890_v17  ;;  %1174 = vmatpush.bf16.msrb.mxu2 %v606_v38  ;;  %v8007_v38 = vor.u32 %v8546_v26, %v8004_v27 }
  0x94   : > { %1188 = vmatpush.bf16.msrb.mxu3 %v609_v40  ;;  %1160 = vmatpush.bf16.msrb.mxu1 %v603_v42 }
  0x9e   : > { %v644_v43 = vpop.f32.mrf.mxu0  ;;  %v658_v44 = vpop.f32.mrf.mxu1 }
  0x9f   : > { %v645_v46 = vadd.f32 %v644_v43, %v9076_v45  ;;  %v659_v47 = vadd.f32 %v658_v44, %v9076_v45 }
  0xa1   : > { %8056 = vmatmul.msk.bf16.vlgmr.msra.gmra.mxu0 %vm12419_vm2, %v8890_v17  ;;  %8057 = vmatmul.msk.bf16.vlgmr.msra.gmra.mxu1 %vm12419_vm2, %v8890_v17  ;;  %v1307_v54 = vmax.f32 %v645_v46, 0.0  ;;  %v1308_v55 = vmax.f32 %v659_v47, 0.0 }
  0xa2   : > { %8058 = vmatmul.msk.bf16.vlgmr.msra.gmra.mxu2 %vm12419_vm2, %v8890_v17 }
  0xa3   : > { %8059 = vmatmul.msk.bf16.vlgmr.msra.gmra.mxu3 %vm12419_vm2, %v8890_v17  ;;  %v9082_v58 = vpack.c.bf16 %v1308_v55, %v1307_v54  ;;  %1230 = vmatpush.bf16.msra.mxu2 %v618_v31  ;;  %v621_v55 = vand.u32 %v8007_v38, %v8874_v4 }
  0xa5   : > { %v672_v48 = vpop.f32.mrf.mxu2  ;;  %v1457_v0 = vrot.slane %v9082_v58, 3  ;;  %1244 = vmatpush.bf16.msra.mxu3 %v621_v55  ;;  %v7994_v55 = vld [vmem:[%s8872_s11 + $0xa0] sm:$0xf] }
  0xa6   : > { %v686_v49 = vpop.f32.mrf.mxu3  ;;  %v646_v50 = vpop.f32.mrf.mxu0  ;;  %v673_v52 = vadd.f32 %v672_v48, %v9076_v45 }
  0xa7   : > { %v660_v51 = vpop.f32.mrf.mxu1  ;;  %v687_v53 = vadd.f32 %v686_v49, %v9076_v45  ;;  %v647_v2 = vadd.f32 %v646_v50, %v9084_v60  ;;  %v1470_v16 = vsel %vm12425_vm3, %v9082_v58, %v1457_v0  ;;  %v1485_v22 = vsel %vm12421_vm5, %v9082_v58, %v1457_v0 }
  0xa8   : > { %v1309_v56 = vmax.f32 %v673_v52, 0.0  ;;  %v661_v3 = vadd.f32 %v660_v51, %v9084_v60  ;;  %v1497_v43 = vsel %vm12424_vm10, %v9082_v58, %v1457_v0  ;;  %vm12430_vm5 = vcmask 1043457  }
  0xa9   : > { %v1310_v57 = vmax.f32 %v687_v53, 0.0  ;;  %v1355_v23 = vmax.f32 %v647_v2, 0.0  ;;  %v1508_v48 = vsel %vm1474_vm9, %v9082_v58, %v1457_v0 }
  0xaa   : > { %v1356_v24 = vmax.f32 %v661_v3, 0.0 }
  0xab   : > { %v1404_v62 = vpack.c.bf16 %v1310_v57, %v1309_v56 }
  0xac   : > { %v9122_v44 = vpack.c.bf16 %v1356_v24, %v1355_v23  ;;  %v1839_v23 = vld [vmem:[#allocation2 + $0x48] sm:$0x11] }
  0xad   : > { %v1458_v9 = vrot.slane %v1404_v62, 6  ;;  %v674_v18 = vpop.f32.mrf.mxu2  ;;  %v1459_v28 = vrot.slane %v1404_v62, 1 }
  0xae   : > { %v700_v59 = vpop.f32.mrf.mxu0  ;;  %v688_v19 = vpop.f32.mrf.mxu3  ;;  %v675_v33 = vadd.f32 %v674_v18, %v9084_v60  ;;  %v1462_v58 = vrot.slane %v9122_v44, 3  ;;  %v1833_v18 = vld [vmem:[#allocation2 + $0xd0] sm:$0x11] }
  0xaf   : > { %v714_v61 = vpop.f32.mrf.mxu1  ;;  %v701_v63 = vadd.f32 %v700_v59, %v9076_v45  ;;  %v1473_v32 = vsel %vm12420_vm4, %v1470_v16, %v1458_v9  ;;  %v689_v34 = vadd.f32 %v688_v19, %v9084_v60  ;;  %v1487_v39 = vsel %vm1486_vm6, %v1485_v22, %v1458_v9  ;;  %v1830_v16 = vld [vmem:[#allocation2 + $0xb0] sm:$0x11] }
  0xb0   : > { %v715_v1 = vadd.f32 %v714_v61, %v9076_v45  ;;  %vm12429_vm4 = vcmask 1042432   ;;  %v1357_v49 = vmax.f32 %v675_v33, 0.0  ;;  %v9132_v59 = vunpack.c.0.s8 %v1588_v11  ;;  %v1836_v22 = vld [vmem:[#allocation2 + $0x10] sm:$0x11] }
  0xb1   : > { %8060 = vmatmul.msk.bf16.vlgmr.msrb.gmra.mxu0 %vm12419_vm2, %v8890_v17  ;;  %8061 = vmatmul.msk.bf16.vlgmr.msrb.gmra.mxu1 %vm12419_vm2, %v8890_v17  ;;  %v1311_v7 = vmax.f32 %v701_v63, 0.0  ;;  %v1358_v52 = vmax.f32 %v689_v34, 0.0  ;;  %v9134_v61 = vunpack.c.0.s8 %v1592_v13  ;;  %v1509_v62 = vsel %vm1478_vm14, %v1508_v48, %v1458_v9  ;;  %v1857_v48 = vld [vmem:[#allocation2 + $0x110] sm:$0x11] }
  0xb2   : > { %8062 = vmatmul.msk.bf16.vlgmr.msrb.gmra.mxu2 %vm12419_vm2, %v8890_v17  ;;  %v1312_v8 = vmax.f32 %v715_v1, 0.0  ;;  %v1520_v11 = vsel %vm12425_vm3, %v9122_v44, %v1462_v58  ;;  %v7996_v1 = vld [vmem:[%s8872_s11 + $0x160] sm:$0x10] }
  0xb3   : > { %8063 = vmatmul.msk.bf16.vlgmr.msrb.gmra.mxu3 %vm12419_vm2, %v8890_v17  ;;  %vm1827_vm2 = vsmask.f32 4352  ;;  %v1428_v3 = vpack.c.bf16 %v1358_v52, %v1357_v49 }
  0xb4   : > { %v1405_v20 = vpack.c.bf16 %v1312_v8, %v1311_v7 }
  0xb5   : > { %v728_v6 = vpop.f32.mrf.mxu2  ;;  %v9176_v26 = vrot.slane %v1428_v3, 6  ;;  %v9178_v27 = vrot.slane %v1428_v3, 1 }
  0xb6   : > { %v1460_v29 = vrot.slane %v1405_v20, 4  ;;  %v1461_v30 = vrot.slane %v1405_v20, 7  ;;  %v9170_v20 = vsel %vm12424_vm10, %v9122_v44, %v1462_v58  ;;  %v9174_v24 = vadd.f32 %v728_v6, %v9076_v45 }
  0xb8   : > { %v1477_v35 = vsel %vm1474_vm9, %v1459_v28, %v1460_v29  ;;  %v1489_v36 = vsel %vm1488_vm7, %v1459_v28, %v1460_v29  ;;  %v1501_v37 = vsel %vm1500_vm8, %v1459_v28, %v1460_v29  ;;  %v1511_v42 = vsel %vm12423_vm13, %v1459_v28, %v1460_v29 }
  0xb9   : > { %v1480_v40 = vsel %vm1478_vm14, %v1477_v35, %v1461_v30  ;;  %v1491_v41 = vsel %vm12422_vm12, %v1489_v36, %v1461_v30  ;;  %v1503_v50 = vsel %vm1502_vm1, %v1501_v37, %v1461_v30  ;;  %vm12431_vm12 = vcmask 1045504   ;;  %v1845_v35 = vld [vmem:[#allocation2 + $0x128] sm:$0x11]  ;;  %v1848_v36 = vld [vmem:[#allocation2 + $0x40] sm:$0x11] }
  0xba   : > { %v1482_v46 = vsel %vm12429_vm4, %v1473_v32, %v1480_v40  ;;  %v1493_v47 = vsel %vm12430_vm5, %v1487_v39, %v1491_v41  ;;  %v1513_v54 = vsel %vm12431_vm12, %v1461_v30, %v1511_v42  ;;  %vm12432_vm13 = vcmask 1043458   ;;  %vm9141_vm4 = vmand %vm12425_vm3, %vm1824_vm11  ;;  %v1842_v30 = vld [vmem:[#allocation2 + $0x160] sm:$0x11]  ;;  %v1851_v41 = vld [vmem:[#allocation2 + $0x178] sm:$0x11] }
  0xbb   : > { %v1552_v51 = vunpack.i.h.s16 %v1482_v46  ;;  %v1495_v53 = vrot.slane %v1493_v47, 1  ;;  %v1499_v56 = vsel %vm12432_vm13, %v1497_v43, %v1458_v9  ;;  %v8072_v57 = vpack.i.b16 %v1482_v46, %v1482_v46  ;;  %vm1828_vm5 = vmand %vm1488_vm7, %vm1827_vm2  ;;  %v1854_v42 = vld [vmem:[#allocation2 + $0x108] sm:$0x11] }
  0xbc   : > { %v1505_v63 = vsel %vm1504_vm15, %v1499_v56, %v1503_v50  ;;  %v1515_v2 = vsel %vm12426_vm0, %v1509_v62, %v1513_v54  ;;  %vm12435_vm11 = vcmask 72704   ;;  %vm9160_vm2 = vmor %vm1828_vm5, %vm9141_vm4  ;;  %vm12439_vm13 = vcmask 1041409   ;;  %v702_v54 = vpop.f32.mrf.mxu0  ;;  %v8569_v56 = vld [vmem:[%s8872_s11 + $0x15c] sm:$0x10] }
  0xbd   : > { %v1568_v0 = vpack.i.b16 %v1552_v51, %v1552_v51  ;;  %v1554_v5 = vunpack.i.h.s16 %v1495_v53  ;;  %v1507_v7 = vrot.slane %v1505_v63, 2  ;;  %v9148_v8 = vpack.i.b16 %v1495_v53, %v1495_v53  ;;  %vm12438_vm12 = vmmov %vm12435_vm11  ;;  %v716_v63 = vpop.f32.mrf.mxu1 }
  0xbe   : > { %v1586_v9 = vperm.slane %v8072_v57, %v9105_v25  ;;  %v1590_v10 = vperm.slane %v8072_v57, %v9132_v59  ;;  %v1517_v12 = vrot.slane %v1515_v2, 3  ;;  %v1594_v13 = vperm.slane %v8072_v57, %v9134_v61  ;;  %vm12441_vm5 = vmmov %vm12435_vm11 }
  0xbf   : > { %v1598_v14 = vperm.slane %v1568_v0, %v9105_v25  ;;  %v1530_v19 = vsel %vm12439_vm13, %v9122_v44, %v1462_v58  ;;  %v1602_v21 = vperm.slane %v1568_v0, %v9132_v59  ;;  %v9180_v28 = vpack.i.b16 %v1554_v5, %v1554_v5 }
  0xc0   : > { %v1606_v29 = vperm.slane %v1568_v0, %v9134_v61  ;;  %v1556_v31 = vunpack.i.h.s16 %v1507_v7  ;;  %v1610_v32 = vperm.slane %v9148_v8, %v9105_v25  ;;  %v1831_v33 = vsel %vm9160_vm2, %v1586_v9, %v1830_v16  ;;  %v8545_v0 = vld [vmem:[%s8872_s11 + $0xa4] sm:$0xf]  ;;  %v742_v16 = vpop.f32.mrf.mxu3 }
  0xc1   : > { %v1834_v34 = vsel %vm9160_vm2, %v1590_v10, %v1833_v18  ;;  %v1558_v37 = vunpack.i.h.s16 %v1517_v12  ;;  %v1614_v38 = vperm.slane %v9148_v8, %v9132_v59  ;;  %1832 = vst [vmem:[#allocation2 + $0xb0] sm:$0x11] %v1831_v33  ;;  %v1837_v39 = vsel %vm9160_vm2, %v1594_v13, %v1836_v22 }
  0xc2   : > { %8066 = vmatmul.msk.bf16.vlgmr.msra.gmra.mxu2 %vm12435_vm11, %v8890_v17  ;;  %v1840_v40 = vsel %vm9160_vm2, %v1598_v14, %v1839_v23  ;;  %v9195_v43 = vpack.i.b16 %v1507_v7, %v1507_v7  ;;  %v1618_v46 = vperm.slane %v9148_v8, %v9134_v61  ;;  %1835 = vst [vmem:[#allocation2 + $0xd0] sm:$0x11] %v1834_v34  ;;  %v1313_v49 = vmax.f32 %v9174_v24, 0.0  ;;  %v1860_v7 = vld [vmem:[#allocation2 + $0x90] sm:$0x11]  ;;  %vm12442_vm11 = vmmov %vm12441_vm5 }
  0xc3   : > { %8067 = vmatmul.msk.bf16.vlgmr.msra.gmra.mxu3 %vm12438_vm12, %v8890_v17  ;;  %v1843_v47 = vsel %vm9160_vm2, %v1602_v21, %v1842_v30  ;;  %vm12440_vm4 = vcmask 1041408   ;;  %v9208_v51 = vsel %vm1474_vm9, %v9122_v44, %v1462_v58  ;;  %v1622_v52 = vperm.slane %v9180_v28, %v9105_v25  ;;  %1838 = vst [vmem:[#allocation2 + $0x10] sm:$0x11] %v1837_v39  ;;  %v1866_v14 = vld [vmem:[#allocation2 + $0x148] sm:$0x11] }
  0xc4   : > { %v9204_v50 = vsel %vm12440_vm4, %v1520_v11, %v9176_v26  ;;  %v1846_v53 = vsel %vm9160_vm2, %v1606_v29, %v1845_v35  ;;  %v9218_v57 = vsel %vm1486_vm6, %v1530_v19, %v9176_v26  ;;  %v9220_v62 = vpack.i.b16 %v1556_v31, %v1556_v31  ;;  %1841 = vst [vmem:[#allocation2 + $0x48] sm:$0x11] %v1840_v40  ;;  %v1863_v11 = vld [vmem:[#allocation2 + $0x118] sm:$0x11]  ;;  %v1869_v29 = vld [vmem:[#allocation2 + $0x100] sm:$0x11] }
  0xc5   : > { %v1626_v44 = vperm.slane %v9180_v28, %v9132_v59  ;;  %v1849_v58 = vsel %vm9160_vm2, %v1610_v32, %v1848_v36  ;;  %v9228_v2 = vpack.i.b16 %v1517_v12, %v1517_v12  ;;  %v9230_v3 = vpack.i.b16 %v1558_v37, %v1558_v37  ;;  %1844 = vst [vmem:[#allocation2 + $0x160] sm:$0x11] %v1843_v47  ;;  %v1872_v32 = vld [vmem:[#allocation2 + $0x58] sm:$0x11] }
  0xc6   : > { %v1630_v5 = vperm.slane %v9180_v28, %v9134_v61  ;;  %v1852_v6 = vsel %vm9160_vm2, %v1614_v38, %v1851_v41  ;;  %v1634_v8 = vperm.slane %v9195_v43, %v9105_v25  ;;  %v1638_v9 = vperm.slane %v9195_v43, %v9132_v59  ;;  %1847 = vst [vmem:[#allocation2 + $0x128] sm:$0x11] %v1846_v53  ;;  %v1875_v39 = vld [vmem:[#allocation2 + $0xd8] sm:$0x11] }
  0xc7   : > { %v1855_v10 = vsel %vm9160_vm2, %v1618_v46, %v1854_v42  ;;  %v703_v12 = vadd.f32 %v702_v54, %v9084_v60  ;;  %1850 = vst [vmem:[#allocation2 + $0x40] sm:$0x11] %v1849_v58  ;;  %v1858_v13 = vsel %vm9160_vm2, %v1622_v52, %v1857_v48  ;;  %v717_v18 = vadd.f32 %v716_v63, %v9084_v60  ;;  %v1881_v46 = vld [vmem:[#allocation2 + $0x130] sm:$0x11] }
  0xc8   : > { %v7995_v19 = vor.u32 %v8569_v56, %v7994_v55  ;;  %v7999_v21 = vor.u32 %v8545_v0, %v7996_v1  ;;  %v1642_v22 = vperm.slane %v9195_v43, %v9134_v61  ;;  %v1646_v23 = vperm.slane %v9220_v62, %v9105_v25  ;;  %1853 = vst [vmem:[#allocation2 + $0x178] sm:$0x11] %v1852_v6  ;;  %v1878_v43 = vld [vmem:[#allocation2 + $0x80] sm:$0x11]  ;;  %v1884_v55 = vld [vmem:[#allocation2 + $0x138] sm:$0x11] }
  0xc9   : > { %v1861_v28 = vsel %vm9160_vm2, %v1626_v44, %v1860_v7  ;;  %v1359_v30 = vmax.f32 %v703_v12, 0.0  ;;  %1856 = vst [vmem:[#allocation2 + $0x108] sm:$0x11] %v1855_v10  ;;  %v1864_v31 = vsel %vm9160_vm2, %v1630_v5, %v1863_v11  ;;  %v1360_v33 = vmax.f32 %v717_v18, 0.0  ;;  %v1890_v6 = vld [vmem:[#allocation2 + $0xe0] sm:$0x11] }
  0xca   : > { %v612_v34 = vand.u32 %v7995_v19, %v8874_v4  ;;  %v615_v35 = vand.u32 %v7999_v21, %v8874_v4  ;;  %v1650_v36 = vperm.slane %v9220_v62, %v9132_v59  ;;  %v1654_v37 = vperm.slane %v9220_v62, %v9134_v61  ;;  %1859 = vst [vmem:[#allocation2 + $0x110] sm:$0x11] %v1858_v13  ;;  %v756_v13 = vpop.f32.mrf.mxu0  ;;  %v1896_v18 = vld [vmem:[#allocation2 + $0xb8] sm:$0x11] }
  0xcb   : > { %v1867_v38 = vsel %vm9160_vm2, %v1634_v8, %v1866_v14  ;;  %v9263_v40 = vadd.f32 %v742_v16, %v9076_v45  ;;  %v1658_v41 = vperm.slane %v9228_v2, %v9105_v25  ;;  %1862 = vst [vmem:[#allocation2 + $0x90] sm:$0x11] %v1861_v28  ;;  %v1870_v42 = vsel %vm9160_vm2, %v1638_v9, %v1869_v29  ;;  %v770_v14 = vpop.f32.mrf.mxu1  ;;  %v1899_v29 = vld [vmem:[#allocation2 + $0x168] sm:$0x11] }
  0xcc   : > { %v1429_v47 = vpack.c.bf16 %v1360_v33, %v1359_v30  ;;  %1202 = vmatpush.bf16.msra.mxu0 %v612_v34  ;;  %1216 = vmatpush.bf16.msra.mxu1 %v615_v35  ;;  %v1662_v48 = vperm.slane %v9228_v2, %v9132_v59  ;;  %v1666_v52 = vperm.slane %v9228_v2, %v9134_v61  ;;  %v1887_v2 = vld [vmem:[#allocation2 + $0x120] sm:$0x11]  ;;  %vm12443_vm12 = vcmask 1045508  }
  0xcd   : > { %v1670_v53 = vperm.slane %v9230_v3, %v9105_v25  ;;  %1865 = vst [vmem:[#allocation2 + $0x118] sm:$0x11] %v1864_v31  ;;  %v1873_v54 = vsel %vm9160_vm2, %v1642_v22, %v1872_v32  ;;  %v1674_v56 = vperm.slane %v9230_v3, %v9132_v59  ;;  %v1876_v62 = vsel %vm9160_vm2, %v1646_v23, %v1875_v39  ;;  %v744_v32 = vpop.f32.mrf.mxu3 }
  0xce   : > { %1868 = vst [vmem:[#allocation2 + $0x148] sm:$0x11] %v1867_v38  ;;  %v1465_v44 = vrot.slane %v1429_v47, 4  ;;  %v1466_v58 = vrot.slane %v1429_v47, 7  ;;  %v1678_v63 = vperm.slane %v9230_v3, %v9134_v61  ;;  %v1879_v0 = vsel %vm9160_vm2, %v1650_v36, %v1878_v43  ;;  %v1893_v3 = vld [vmem:[#allocation2 + $0xa8] sm:$0x11] }
  0xcf   : > { %1871 = vst [vmem:[#allocation2 + $0x100] sm:$0x11] %v1870_v42  ;;  %v1882_v1 = vsel %vm9160_vm2, %v1654_v37, %v1881_v46  ;;  %8064 = vmatmul.msk.bf16.vlgmr.msra.gmra.mxu0 %vm12441_vm5, %v8890_v17  ;;  %8065 = vmatmul.msk.bf16.vlgmr.msra.gmra.mxu1 %vm12442_vm11, %v8890_v17  ;;  %v1885_v5 = vsel %vm9160_vm2, %v1658_v41, %v1884_v55  ;;  %v1314_v10 = vmax.f32 %v9263_v40, 0.0  ;;  %vm12444_vm13 = vcmask 1046534   ;;  %v1902_v55 = vld [vmem:[#allocation2 + $0xe8] sm:$0x11] }
  0xd0   : > { %1874 = vst [vmem:[#allocation2 + $0x58] sm:$0x11] %v1873_v54  ;;  %v1525_v7 = vsel %vm1474_vm9, %v9178_v27, %v1465_v44  ;;  %v1532_v8 = vsel %vm1488_vm7, %v9178_v27, %v1465_v44  ;;  %v1539_v9 = vsel %vm1500_vm8, %v9178_v27, %v1465_v44  ;;  %v1546_v12 = vsel %vm12444_vm13, %v9178_v27, %v1465_v44  ;;  %v1908_v44 = vld [vmem:[#allocation2 + $0x20] sm:$0x11] }
  0xd1   : > { %1877 = vst [vmem:[#allocation2 + $0xd8] sm:$0x11] %v1876_v62  ;;  %v1527_v17 = vsel %vm1478_vm14, %v1525_v7, %v1466_v58  ;;  %v1533_v11 = vsel %vm12443_vm12, %v1532_v8, %v1466_v58  ;;  %v1888_v16 = vsel %vm9160_vm2, %v1662_v48, %v1887_v2  ;;  %vm12445_vm4 = vcmask 1042432  }
  0xd2   : > { %1880 = vst [vmem:[#allocation2 + $0x80] sm:$0x11] %v1879_v0  ;;  %v1528_v19 = vsel %vm12445_vm4, %v9204_v50, %v1527_v17  ;;  %vm12446_vm5 = vcmask 1043457   ;;  %v1540_v22 = vsel %vm1502_vm1, %v1539_v9, %v1466_v58  ;;  %vm12447_vm11 = vcmask 1043458  }
  0xd3   : > { %v1534_v21 = vsel %vm12446_vm5, %v9218_v57, %v1533_v11  ;;  %v1538_v23 = vsel %vm12447_vm11, %v9170_v20, %v9176_v26  ;;  %1883 = vst [vmem:[#allocation2 + $0x130] sm:$0x11] %v1882_v1  ;;  %v1891_v27 = vsel %vm9160_vm2, %v1666_v52, %v1890_v6  ;;  %v1894_v28 = vsel %vm9160_vm2, %v1670_v53, %v1893_v3  ;;  %v730_v57 = vpop.f32.mrf.mxu2  ;;  %v1914_v6 = vld [vmem:[#allocation2 + $0xa0] sm:$0x11] }
  0xd4   : > { %v1560_v30 = vunpack.i.h.s16 %v1528_v19  ;;  %1886 = vst [vmem:[#allocation2 + $0x138] sm:$0x11] %v1885_v5  ;;  %v1536_v50 = vrot.slane %v1534_v21, 1  ;;  %vm12448_vm12 = vcmask 1045504   ;;  %v757_v33 = vadd.f32 %v756_v13, %v9076_v45 }
  0xd5   : > { %v1547_v31 = vsel %vm12448_vm12, %v1466_v58, %v1546_v12  ;;  %v771_v34 = vadd.f32 %v770_v14, %v9076_v45  ;;  %1889 = vst [vmem:[#allocation2 + $0x120] sm:$0x11] %v1888_v16  ;;  %v1897_v20 = vsel %vm9160_vm2, %v1674_v56, %v1896_v18  ;;  %v9325_v35 = vpack.c.bf16 %v1314_v10, %v1313_v49  ;;  %v1905_v56 = vld [vmem:[#allocation2 + $0xf8] sm:$0x11]  ;;  %v1911_v58 = vld [vmem:[#allocation2 + $0x88] sm:$0x11]  ;;  %v798_v21 = vpop.f32.mrf.mxu3 }
  0xd6   : > { %v1541_v36 = vsel %vm1504_vm15, %v1538_v23, %v1540_v22  ;;  %v8076_v37 = vpack.i.b16 %v1528_v19, %v1528_v19  ;;  %v1545_v38 = vsel %vm1478_vm14, %v9208_v51, %v9176_v26  ;;  %1892 = vst [vmem:[#allocation2 + $0xe0] sm:$0x11] %v1891_v27  ;;  %v1900_v39 = vsel %vm9160_vm2, %v1678_v63, %v1899_v29  ;;  %v1917_v10 = vld [vmem:[#allocation2 + $0x170] sm:$0x11]  ;;  %v1923_v18 = vld [vmem:[#allocation2 + $0x140] sm:$0x11] }
  0xd7   : > { %v1576_v40 = vpack.i.b16 %v1560_v30, %v1560_v30  ;;  %1895 = vst [vmem:[#allocation2 + $0xa8] sm:$0x11] %v1894_v28  ;;  %v1548_v41 = vsel %vm12426_vm0, %v1545_v38, %v1547_v31  ;;  %v9335_v42 = vadd.f32 %v730_v57, %v9084_v60  ;;  %v1543_v24 = vrot.slane %v1541_v36, 2  ;;  %v1920_v16 = vld [vmem:[#allocation2 + $0xf0] sm:$0x11] }
  0xd8   : > { %1898 = vst [vmem:[#allocation2 + $0xb8] sm:$0x11] %v1897_v20  ;;  %v1562_v49 = vunpack.i.h.s16 %v1536_v50  ;;  %v1315_v43 = vmax.f32 %v757_v33, 0.0  ;;  %v1316_v46 = vmax.f32 %v771_v34, 0.0  ;;  %v9338_v47 = vrot.slane %v9325_v35, 3 }
  0xd9   : > { %1901 = vst [vmem:[#allocation2 + $0x168] sm:$0x11] %v1900_v39  ;;  %v9340_v26 = vpack.i.b16 %v1536_v50, %v1536_v50  ;;  %v1682_v51 = vperm.slane %v8076_v37, %v9105_v25  ;;  %v1686_v48 = vperm.slane %v8076_v37, %v9132_v59  ;;  %v1550_v52 = vrot.slane %v1548_v41, 3  ;;  %v1926_v28 = vld [vmem:[#allocation2 + $0x60] sm:$0x11] }
  0xda   : > { %v1690_v53 = vperm.slane %v8076_v37, %v9134_v61  ;;  %v1694_v54 = vperm.slane %v1576_v40, %v9105_v25  ;;  %v1698_v62 = vperm.slane %v1576_v40, %v9132_v59  ;;  %v1361_v63 = vmax.f32 %v9335_v42, 0.0  ;;  %v1929_v29 = vld [vmem:[#allocation2 + $0xc8] sm:$0x11]  ;;  %v8018_v36 = vld [vmem:[%s8872_s11 + $0xb8] sm:$0xf] }
  0xdb   : > { %v9349_v0 = vadd.f32 %v744_v32, %v9084_v60  ;;  %v1564_v1 = vunpack.i.h.s16 %v1543_v24  ;;  %v9351_v2 = vpack.i.b16 %v1562_v49, %v1562_v49  ;;  %v1702_v5 = vperm.slane %v1576_v40, %v9134_v61  ;;  %v784_v19 = vpop.f32.mrf.mxu2  ;;  %v1932_v32 = vld [vmem:[#allocation2 + $0x28] sm:$0x11]  ;;  %v8572_v37 = vld [vmem:[%s8872_s11 + $0x174] sm:$0x10] }
  0xdc   : > { %v9354_v3 = vpack.c.bf16 %v1316_v46, %v1315_v43  ;;  %v1706_v7 = vperm.slane %v9340_v26, %v9105_v25  ;;  %v1903_v8 = vsel %vm9160_vm2, %v1682_v51, %v1902_v55  ;;  %v1906_v9 = vsel %vm9160_vm2, %v1686_v48, %v1905_v56  ;;  %v8548_v43 = vld [vmem:[%s8872_s11 + $0xbc] sm:$0xf] }
  0xdd   : > { %v9365_v17 = vsel %vm12425_vm3, %v9325_v35, %v9338_v47  ;;  %v1566_v11 = vunpack.i.h.s16 %v1550_v52  ;;  %v1710_v12 = vperm.slane %v9340_v26, %v9132_v59  ;;  %1904 = vst [vmem:[#allocation2 + $0xe8] sm:$0x11] %v1903_v8  ;;  %v1909_v13 = vsel %vm9160_vm2, %v1690_v53, %v1908_v44  ;;  %v8020_v46 = vld [vmem:[%s8872_s11 + $0x178] sm:$0x10] }
  0xde   : > { %v1912_v14 = vsel %vm9160_vm2, %v1694_v54, %v1911_v58  ;;  %v9373_v22 = vpack.i.b16 %v1543_v24, %v1543_v24  ;;  %v1714_v23 = vperm.slane %v9340_v26, %v9134_v61  ;;  %1907 = vst [vmem:[#allocation2 + $0xf8] sm:$0x11] %v1906_v9  ;;  %v1915_v27 = vsel %vm9160_vm2, %v1698_v62, %v1914_v6  ;;  %v1935_v53 = vld [vmem:[#allocation2 + $0x38] sm:$0x11]  ;;  %v1938_v62 = vld [vmem:[#allocation2 + $0xc0] sm:$0x11] }
  0xdf   : > { %vm12449_vm13 = vcmask 1041409   ;;  %v9384_v50 = vpack.i.b16 %v1564_v1, %v1564_v1  ;;  %v1718_v31 = vperm.slane %v9351_v2, %v9105_v25  ;;  %1910 = vst [vmem:[#allocation2 + $0x20] sm:$0x11] %v1909_v13  ;;  %v1918_v57 = vsel %vm9160_vm2, %v1702_v5, %v1917_v10  ;;  %v1941_v1 = vld [vmem:[#allocation2 + $0x18] sm:$0x11] }
  0xe0   : > { %v9382_v30 = vsel %vm12449_vm13, %v9325_v35, %v9338_v47  ;;  %v9391_v33 = vrot.slane %v9354_v3, 6  ;;  %v1722_v34 = vperm.slane %v9351_v2, %v9132_v59  ;;  %1913 = vst [vmem:[#allocation2 + $0x88] sm:$0x11] %v1912_v14  ;;  %v1921_v20 = vsel %vm9160_vm2, %v1706_v7, %v1920_v16  ;;  %v1944_v10 = vld [vmem:[#allocation2 + $0x98] sm:$0x11] }
  0xe1   : > { %v785_v38 = vadd.f32 %v784_v19, %v9076_v45  ;;  %v799_v39 = vadd.f32 %v798_v21, %v9076_v45  ;;  %v9401_v40 = vpack.i.b16 %v1550_v52, %v1550_v52  ;;  %v9403_v41 = vpack.i.b16 %v1566_v11, %v1566_v11  ;;  %1916 = vst [vmem:[#allocation2 + $0xa0] sm:$0x11] %v1915_v27  ;;  %v1947_v11 = vld [vmem:[#allocation2 + $0x8] sm:$0x11]  ;;  %v1950_v14 = vld [vmem:[#allocation2] sm:$0x11] }
  0xe2   : > { %v1726_v24 = vperm.slane %v9351_v2, %v9134_v61  ;;  %v1924_v49 = vsel %vm9160_vm2, %v1710_v12, %v1923_v18  ;;  %v1730_v26 = vperm.slane %v9373_v22, %v9105_v25  ;;  %v1734_v51 = vperm.slane %v9373_v22, %v9132_v59  ;;  %1919 = vst [vmem:[#allocation2 + $0x170] sm:$0x11] %v1918_v57  ;;  %v1953_v27 = vld [vmem:[#allocation2 + $0x78] sm:$0x11] }
  0xe3   : > { %v1738_v48 = vperm.slane %v9373_v22, %v9134_v61  ;;  %v1927_v52 = vsel %vm9160_vm2, %v1714_v23, %v1926_v28  ;;  %v1742_v54 = vperm.slane %v9384_v50, %v9105_v25  ;;  %v1746_v55 = vperm.slane %v9384_v50, %v9132_v59  ;;  %1922 = vst [vmem:[#allocation2 + $0xf0] sm:$0x11] %v1921_v20 }
  0xe4   : > { %v1930_v56 = vsel %vm9160_vm2, %v1718_v31, %v1929_v29  ;;  %v8019_v44 = vor.u32 %v8572_v37, %v8018_v36  ;;  %1925 = vst [vmem:[#allocation2 + $0x140] sm:$0x11] %v1924_v49  ;;  %v1933_v58 = vsel %vm9160_vm2, %v1722_v34, %v1932_v32  ;;  %v8023_v2 = vor.u32 %v8548_v43, %v8020_v46  ;;  %v1959_v37 = vld [vmem:[#allocation2 + $0x68] sm:$0x11]  ;;  %v8010_v49 = vld [vmem:[%s8872_s11 + $0xb0] sm:$0xf] }
  0xe5   : > { %v1317_v5 = vmax.f32 %v785_v38, 0.0  ;;  %v1318_v6 = vmax.f32 %v799_v39, 0.0  ;;  %v1750_v7 = vperm.slane %v9384_v50, %v9134_v61  ;;  %v1754_v8 = vperm.slane %v9401_v40, %v9105_v25  ;;  %1928 = vst [vmem:[#allocation2 + $0x60] sm:$0x11] %v1927_v52  ;;  %v1956_v50 = vld [vmem:[#allocation2 + $0x50] sm:$0x11] }
  0xe6   : > { %v1936_v9 = vsel %vm9160_vm2, %v1726_v24, %v1935_v53  ;;  %v630_v12 = vand.u32 %v8019_v44, %v8874_v4  ;;  %1931 = vst [vmem:[#allocation2 + $0xc8] sm:$0x11] %v1930_v56  ;;  %v1939_v13 = vsel %vm9160_vm2, %v1730_v26, %v1938_v62  ;;  %v1982_v16 = vrot.slane %v9354_v3, 1  ;;  %v1962_v38 = vld [vmem:[#allocation2 + $0x70] sm:$0x11] }
  0xe7   : > { %v633_v18 = vand.u32 %v8023_v2, %v8874_v4  ;;  %v1408_v19 = vpack.c.bf16 %v1318_v6, %v1317_v5  ;;  %v1758_v21 = vperm.slane %v9401_v40, %v9132_v59  ;;  %v1762_v22 = vperm.slane %v9401_v40, %v9134_v61  ;;  %1934 = vst [vmem:[#allocation2 + $0x28] sm:$0x11] %v1933_v58  ;;  %v8571_v43 = vld [vmem:[%s8872_s11 + $0x16c] sm:$0x10] }
  0xe8   : > { %v1942_v23 = vsel %vm9160_vm2, %v1734_v51, %v1941_v1  ;;  %v1362_v28 = vmax.f32 %v9349_v0, 0.0  ;;  %1286 = vmatpush.bf16.msrb.mxu2 %v630_v12  ;;  %v1766_v3 = vperm.slane %v9403_v41, %v9105_v25  ;;  %1937 = vst [vmem:[#allocation2 + $0x38] sm:$0x11] %v1936_v9  ;;  %v1945_v29 = vsel %vm9160_vm2, %v1738_v48, %v1944_v10  ;;  %v1965_v53 = vld [vmem:[#allocation2 + $0x30] sm:$0x11]  ;;  %v9483_v1 = vld [vmem:[%s12414_s1] sm:$0xff]  ;;  %v758_v10 = vpop.f32.mrf.mxu0 }
  0xe9   : > { %1300 = vmatpush.bf16.msrb.mxu3 %v633_v18  ;;  %v1983_v31 = vrot.slane %v1408_v19, 4  ;;  %v1984_v57 = vrot.slane %v1408_v19, 7  ;;  %v1770_v32 = vperm.slane %v9403_v41, %v9132_v59  ;;  %v1774_v34 = vperm.slane %v9403_v41, %v9134_v61  ;;  %1940 = vst [vmem:[#allocation2 + $0xc0] sm:$0x11] %v1939_v13  ;;  %v1971_v62 = vld [vmem:[#allocation2 + $0x150] sm:$0x11] }
  0xea   : > { %v1948_v20 = vsel %vm9160_vm2, %v1742_v54, %v1947_v11  ;;  %v1951_v36 = vsel %vm9160_vm2, %v1746_v55, %v1950_v14  ;;  %1943 = vst [vmem:[#allocation2 + $0x18] sm:$0x11] %v1942_v23  ;;  %v1954_v39 = vsel %vm9160_vm2, %v1750_v7, %v1953_v27  ;;  %vm12450_vm4 = vcmask 1041408   ;;  %v1968_v54 = vld [vmem:[#allocation2 + $0x158] sm:$0x11] }
  0xeb   : > { %v1994_v40 = vsel %vm12450_vm4, %v9365_v17, %v9391_v33  ;;  %v1997_v24 = vsel %vm1474_vm9, %v1982_v16, %v1983_v31  ;;  %v2004_v41 = vsel %vm1488_vm7, %v1982_v16, %v1983_v31  ;;  %1946 = vst [vmem:[#allocation2 + $0x98] sm:$0x11] %v1945_v29  ;;  %v2003_v46 = vsel %vm1486_vm6, %v9382_v30, %v9391_v33  ;;  %v772_v29 = vpop.f32.mrf.mxu1 }
  0xec   : > { %v1999_v26 = vsel %vm1478_vm14, %v1997_v24, %v1984_v57  ;;  %vm12451_vm5 = vcmask 1045508   ;;  %v2011_v48 = vsel %vm1500_vm8, %v1982_v16, %v1983_v31  ;;  %1949 = vst [vmem:[#allocation2 + $0x8] sm:$0x11] %v1948_v20  ;;  %v1957_v17 = vsel %vm9160_vm2, %v1754_v8, %v1956_v50 }
  0xed   : > { %v2005_v51 = vsel %vm12451_vm5, %v2004_v41, %v1984_v57  ;;  %v1960_v52 = vsel %vm9160_vm2, %v1758_v21, %v1959_v37  ;;  %vm12452_vm11 = vcmask 1042432   ;;  %vm12453_vm12 = vcmask 1043457   ;;  %1952 = vst [vmem:[#allocation2] sm:$0x11] %v1951_v36  ;;  %v2357_v21 = vld [vmem:[#allocation2 + $0x108] sm:$0x11] }
  0xee   : > { %v2000_v55 = vsel %vm12452_vm11, %v1994_v40, %v1999_v26  ;;  %v2006_v56 = vsel %vm12453_vm12, %v2003_v46, %v2005_v51  ;;  %v1963_v30 = vsel %vm9160_vm2, %v1762_v22, %v1962_v38  ;;  %vm2328_vm13 = vsmask.f32 7938  ;;  %1955 = vst [vmem:[#allocation2 + $0x78] sm:$0x11] %v1954_v39  ;;  %v2339_v39 = vld [vmem:[#allocation2 + $0x10] sm:$0x11] }
  0xef   : > { %v2057_v44 = vunpack.i.h.s16 %v2000_v55  ;;  %v8011_v58 = vor.u32 %v8571_v43, %v8010_v49  ;;  %vm12454_vm4 = vcmask 72704   ;;  %v2008_v2 = vrot.slane %v2006_v56, 1  ;;  %1958 = vst [vmem:[#allocation2 + $0x50] sm:$0x11] %v1957_v17  ;;  %v2342_v40 = vld [vmem:[#allocation2 + $0x48] sm:$0x11]  ;;  %v800_v56 = vpop.f32.mrf.mxu3 }
  0xf0   : > { %8070 = vmatmul.msk.bf16.vlgmr.msrb.gmra.mxu2 %vm12454_vm4, %v9483_v1  ;;  %vm12455_vm5 = vmmov %vm12454_vm4  ;;  %v2012_v5 = vsel %vm1502_vm1, %v2011_v48, %v1984_v57  ;;  %vm12456_vm11 = vcmask 1046534   ;;  %vm2330_vm12 = vsmask.f32 7954  ;;  %v1966_v7 = vsel %vm9160_vm2, %v1766_v3, %v1965_v53  ;;  %1961 = vst [vmem:[#allocation2 + $0x68] sm:$0x11] %v1960_v52  ;;  %v786_v48 = vpop.f32.mrf.mxu2 }
  0xf1   : > { %8071 = vmatmul.msk.bf16.vlgmr.msrb.gmra.mxu3 %vm12455_vm5, %v9483_v1  ;;  %v2018_v6 = vsel %vm12456_vm11, %v1982_v16, %v1983_v31  ;;  %v2009_v8 = vsel %vm12424_vm10, %v9325_v35, %v9338_v47  ;;  %v8080_v9 = vpack.i.b16 %v2000_v55, %v2000_v55  ;;  %v1969_v11 = vsel %vm9160_vm2, %v1770_v32, %v1968_v54  ;;  %vm9502_vm5 = vmand %vm12425_vm3, %vm2328_vm13  ;;  %v2333_v32 = vld [vmem:[#allocation2 + $0xb0] sm:$0x11]  ;;  %v2345_v55 = vld [vmem:[#allocation2 + $0x160] sm:$0x11] }
  0xf2   : > { %vm12457_vm4 = vcmask 1043458   ;;  %v2073_v13 = vpack.i.b16 %v2057_v44, %v2057_v44  ;;  %1964 = vst [vmem:[#allocation2 + $0x70] sm:$0x11] %v1963_v30  ;;  %v1972_v16 = vsel %vm9160_vm2, %v1774_v34, %v1971_v62  ;;  %vm12460_vm11 = vcmask 1045504   ;;  %vm9512_vm10 = vmand %vm1488_vm7, %vm2330_vm12  ;;  %v2336_v34 = vld [vmem:[#allocation2 + $0xd0] sm:$0x11] }
  0xf3   : > { %v2010_v12 = vsel %vm12457_vm4, %v2009_v8, %v9391_v33  ;;  %v2019_v19 = vsel %vm12460_vm11, %v1984_v57, %v2018_v6  ;;  %v624_v22 = vand.u32 %v8011_v58, %v8874_v4  ;;  %1967 = vst [vmem:[#allocation2 + $0x30] sm:$0x11] %v1966_v7  ;;  %v9521_v23 = vpack.c.bf16 %v1362_v28, %v1361_v63  ;;  %vm9542_vm2 = vmor %vm9512_vm10, %vm9502_vm5  ;;  %v8547_v26 = vld [vmem:[%s8872_s11 + $0xb4] sm:$0xf]  ;;  %v2348_v58 = vld [vmem:[#allocation2 + $0x128] sm:$0x11] }
  0xf4   : > { %v2013_v18 = vsel %vm1504_vm15, %v2010_v12, %v2012_v5  ;;  %v2016_v15 = vsel %vm1474_vm9, %v9325_v35, %v9338_v47  ;;  %v2059_v27 = vunpack.i.h.s16 %v2008_v2  ;;  %v9527_v3 = vadd.f32 %v758_v10, %v9084_v60  ;;  %1970 = vst [vmem:[#allocation2 + $0x158] sm:$0x11] %v1969_v11  ;;  %v8012_v51 = vld [vmem:[%s8872_s11 + $0x170] sm:$0x10]  ;;  %v2351_v7 = vld [vmem:[#allocation2 + $0x40] sm:$0x11] }
  0xf5   : > { %v2017_v50 = vsel %vm1478_vm14, %v2016_v15, %v9391_v33  ;;  %v9531_v31 = vpack.i.b16 %v2008_v2, %v2008_v2  ;;  %v2091_v42 = vperm.slane %v8080_v9, %v9105_v25  ;;  %v2095_v63 = vperm.slane %v8080_v9, %v9132_v59  ;;  %1973 = vst [vmem:[#allocation2 + $0x150] sm:$0x11] %v1972_v16  ;;  %s7762_s11 = sshll.u32 %s7758_s7, 4  ;;  %s7763_s11 = int_to_ptr.hbm [resolvable:$true] %s7762_s11 }
  0xf6   : > { %v2015_v0 = vrot.slane %v2013_v18, 2  ;;  %v2020_v28 = vsel %vm12426_vm0, %v2017_v50, %v2019_v19  ;;  %v2099_v35 = vperm.slane %v8080_v9, %v9134_v61  ;;  %v2103_v47 = vperm.slane %v2073_v13, %v9105_v25  ;;  %1258 = vmatpush.bf16.msrb.mxu0 %v624_v22  ;;  %s8731_s13 = sshra.s32 %s7763_s11, 4  ;;  %s8732_s13 = int_to_ptr.hbm [resolvable:$true] %s8731_s13 }
  0xf7   : > { %v2107_v57 = vperm.slane %v2073_v13, %v9132_v59  ;;  %v773_v20 = vadd.f32 %v772_v29, %v9084_v60  ;;  %v9549_v36 = vrot.slane %v9521_v23, 3  ;;  %v9551_v37 = vpack.i.b16 %v2059_v27, %v2059_v27  ;;  %v2360_v29 = vld [vmem:[#allocation2 + $0x110] sm:$0x11]  ;;  %s8733_s14 = scalar_lea.hbm %s8732_s13, 8  ;;  %p8738_p0 = scmp.lt.s32.totalorder %s8732_s13, %s12418_s5 }
  0xf8   : > { %v2111_v38 = vperm.slane %v2073_v13, %v9134_v61  ;;  %v1363_v24 = vmax.f32 %v9527_v3, 0.0  ;;  %v2022_v41 = vrot.slane %v2020_v28, 3  ;;  %v2115_v49 = vperm.slane %v9531_v31, %v9105_v25  ;;  %v2354_v13 = vld [vmem:[#allocation2 + $0x178] sm:$0x11]  ;;  %p8734_p11 = scmp.ne.s32.totalorder %s8732_s13, %s8733_s14  ;;  %p8739_p1 = scmp.lt.s32.totalorder %s8737_s17, %s8733_s14 }
  0xf9   : > { %v2334_v43 = vsel %vm9542_vm2, %v2091_v42, %v2333_v32  ;;  %v2337_v46 = vsel %vm9542_vm2, %v2095_v63, %v2336_v34  ;;  %v2061_v17 = vunpack.i.h.s16 %v2015_v0  ;;  %v2119_v52 = vperm.slane %v9531_v31, %v9132_v59  ;;  %v2363_v63 = vld [vmem:[#allocation2 + $0x90] sm:$0x11]  ;;  %v2366_v32 = vld [vmem:[#allocation2 + $0x118] sm:$0x11] }
  0xfa   : > { %2335 = vst [vmem:[#allocation2 + $0xb0] sm:$0x11] %v2334_v43  ;;  %v2340_v53 = vsel %vm9542_vm2, %v2099_v35, %v2339_v39  ;;  %v2343_v54 = vsel %vm9542_vm2, %v2103_v47, %v2342_v40  ;;  %v9569_v30 = vpack.i.b16 %v2015_v0, %v2015_v0  ;;  %v2123_v62 = vperm.slane %v9531_v31, %v9134_v61  ;;  %v2372_v39 = vld [vmem:[#allocation2 + $0x100] sm:$0x11]  ;;  %p8735_p12 = pnand %p8734_p11, %p8854_p5  ;;  %p8740_p2 = por %p8739_p1, %p8738_p0 }
  0xfb   : > { %2338 = vst [vmem:[#allocation2 + $0xd0] sm:$0x11] %v2337_v46  ;;  %v2346_v44 = vsel %vm9542_vm2, %v2107_v57, %v2345_v55  ;;  %v1364_v2 = vmax.f32 %v773_v20, 0.0  ;;  %v2127_v5 = vperm.slane %v9551_v37, %v9105_v25  ;;  %v2349_v6 = vsel %vm9542_vm2, %v2111_v38, %v2348_v58  ;;  %v2369_v38 = vld [vmem:[#allocation2 + $0x148] sm:$0x11] }
  0xfc   : > { %2341 = vst [vmem:[#allocation2 + $0x10] sm:$0x11] %v2340_v53  ;;  %v8015_v8 = vor.u32 %v8547_v26, %v8012_v51  ;;  %v787_v9 = vadd.f32 %v786_v48, %v9084_v60  ;;  %v2063_v10 = vunpack.i.h.s16 %v2022_v41  ;;  %v2131_v11 = vperm.slane %v9551_v37, %v9132_v59  ;;  %v2378_v51 = vld [vmem:[#allocation2 + $0xd8] sm:$0x11]  ;;  %p8736_p13 = pneg %p8735_p12 }
  0xfd   : > { %2344 = vst [vmem:[#allocation2 + $0x48] sm:$0x11] %v2343_v54  ;;  %v2352_v12 = vsel %vm9542_vm2, %v2115_v49, %v2351_v7  ;;  %v801_v14 = vadd.f32 %v800_v56, %v9084_v60  ;;  %v2077_v16 = vpack.i.b16 %v2061_v17, %v2061_v17  ;;  %v2135_v18 = vperm.slane %v9551_v37, %v9134_v61  ;;  %v2381_v54 = vld [vmem:[#allocation2 + $0x80] sm:$0x11] }
  0xfe   : > { %2347 = vst [vmem:[#allocation2 + $0x160] sm:$0x11] %v2346_v44  ;;  %v2355_v19 = vsel %vm9542_vm2, %v2119_v52, %v2354_v13  ;;  %v2025_v22 = vsel %vm12425_vm3, %v9521_v23, %v9549_v36  ;;  %v9592_v15 = vpack.i.b16 %v2022_v41, %v2022_v41  ;;  %v2139_v27 = vperm.slane %v9569_v30, %v9105_v25  ;;  %v2375_v41 = vld [vmem:[#allocation2 + $0x58] sm:$0x11]  ;;  %p8741_p3 = pnand %p8740_p2, %p8736_p13 }
  0xff   : > { %2350 = vst [vmem:[#allocation2 + $0x128] sm:$0x11] %v2349_v6  ;;  %v2358_v3 = vsel %vm9542_vm2, %v2123_v62, %v2357_v21  ;;  %v1431_v50 = vpack.c.bf16 %v1364_v2, %v1363_v24  ;;  %v2143_v31 = vperm.slane %v9569_v30, %v9132_v59  ;;  %v2361_v42 = vsel %vm9542_vm2, %v2127_v5, %v2360_v29  ;;  %v2384_v2 = vld [vmem:[#allocation2 + $0x130] sm:$0x11]  ;;  %v812_v5 = vpop.f32.mrf.mxu0  ;;  %v826_v6 = vpop.f32.mrf.mxu1 }
 0x100   : > { %2353 = vst [vmem:[#allocation2 + $0x40] sm:$0x11] %v2352_v12  ;;  %v627_v0 = vand.u32 %v8015_v8, %v8874_v4  ;;  %v1365_v28 = vmax.f32 %v787_v9, 0.0  ;;  %vm12465_vm10 = vcmask 72704   ;;  %v9605_v35 = vpack.i.b16 %v2063_v10, %v2063_v10  ;;  %v2387_v10 = vld [vmem:[#allocation2 + $0x138] sm:$0x11] }
 0x101   : > { %8068 = vmatmul.msk.bf16.vlgmr.msrb.gmra.mxu0 %vm12465_vm10, %v9483_v1  ;;  %v2147_v47 = vperm.slane %v9569_v30, %v9134_v61  ;;  %2356 = vst [vmem:[#allocation2 + $0x178] sm:$0x11] %v2355_v19  ;;  %v2364_v57 = vsel %vm9542_vm2, %v2131_v11, %v2363_v63  ;;  %v1366_v34 = vmax.f32 %v801_v14, 0.0  ;;  %v2151_v20 = vperm.slane %v2077_v16, %v9105_v25  ;;  %vm12467_vm12 = vmmov %vm12465_vm10  ;;  %v2390_v19 = vld [vmem:[#allocation2 + $0x120] sm:$0x11] }
 0x102   : > { %v2155_v37 = vperm.slane %v2077_v16, %v9132_v59  ;;  %2359 = vst [vmem:[#allocation2 + $0x108] sm:$0x11] %v2358_v3  ;;  %v2367_v4 = vsel %vm9542_vm2, %v2135_v18, %v2366_v32  ;;  %1272 = vmatpush.bf16.msrb.mxu1 %v627_v0  ;;  %v2159_v40 = vperm.slane %v2077_v16, %v9134_v61  ;;  %v9618_v49 = vrot.slane %v1431_v50, 6  ;;  %v2393_v3 = vld [vmem:[#allocation2 + $0xe0] sm:$0x11] }
 0x103   : > { %2362 = vst [vmem:[#allocation2 + $0x110] sm:$0x11] %v2361_v42  ;;  %v2370_v24 = vsel %vm9542_vm2, %v2139_v27, %v2369_v38  ;;  %v1432_v43 = vpack.c.bf16 %v1366_v34, %v1365_v28  ;;  %v2163_v46 = vperm.slane %v9592_v15, %v9105_v25  ;;  %v2373_v26 = vsel %vm9542_vm2, %v2143_v31, %v2372_v39  ;;  %v2396_v31 = vld [vmem:[#allocation2 + $0xa8] sm:$0x11] }
 0x104   : > { %2365 = vst [vmem:[#allocation2 + $0x90] sm:$0x11] %v2364_v57  ;;  %v1987_v48 = vrot.slane %v1431_v50, 1  ;;  %vm12466_vm13 = vcmask 1041409   ;;  %v2167_v52 = vperm.slane %v9592_v15, %v9132_v59  ;;  %v2376_v53 = vsel %vm9542_vm2, %v2147_v47, %v2375_v41  ;;  %v2402_v34 = vld [vmem:[#allocation2 + $0x168] sm:$0x11] }
 0x105   : > { %v2035_v17 = vsel %vm12466_vm13, %v9521_v23, %v9549_v36  ;;  %2368 = vst [vmem:[#allocation2 + $0x118] sm:$0x11] %v2367_v4  ;;  %v1988_v55 = vrot.slane %v1432_v43, 4  ;;  %v1989_v56 = vrot.slane %v1432_v43, 7  ;;  %8069 = vmatmul.msk.bf16.vlgmr.msrb.gmra.mxu1 %vm12467_vm12, %v9483_v1  ;;  %v2171_v30 = vperm.slane %v9592_v15, %v9134_v61  ;;  %v840_v43 = vpop.f32.mrf.mxu2 }
 0x106   : > { %v2175_v62 = vperm.slane %v9605_v35, %v9105_v25  ;;  %2371 = vst [vmem:[#allocation2 + $0x148] sm:$0x11] %v2370_v24  ;;  %v2379_v44 = vsel %vm9542_vm2, %v2151_v20, %v2378_v51  ;;  %v2382_v58 = vsel %vm9542_vm2, %v2155_v37, %v2381_v54  ;;  %v2385_v1 = vsel %vm9542_vm2, %v2159_v40, %v2384_v2  ;;  %v2408_v2 = vld [vmem:[#allocation2 + $0xf8] sm:$0x11] }
 0x107   : > { %2374 = vst [vmem:[#allocation2 + $0x100] sm:$0x11] %v2373_v26  ;;  %vm12468_vm4 = vcmask 1041408   ;;  %v2030_v8 = vsel %vm1474_vm9, %v1987_v48, %v1988_v55  ;;  %v2037_v9 = vsel %vm1488_vm7, %v1987_v48, %v1988_v55  ;;  %v2036_v11 = vsel %vm1486_vm6, %v2035_v17, %v9618_v49 }
 0x108   : > { %v2027_v7 = vsel %vm12468_vm4, %v2025_v22, %v9618_v49  ;;  %2377 = vst [vmem:[#allocation2 + $0x58] sm:$0x11] %v2376_v53  ;;  %v2032_v12 = vsel %vm1478_vm14, %v2030_v8, %v1989_v56  ;;  %vm12469_vm5 = vcmask 1045508   ;;  %v2044_v14 = vsel %vm1500_vm8, %v1987_v48, %v1988_v55  ;;  %v828_v53 = vpop.f32.mrf.mxu1 }
 0x109   : > { %v2038_v13 = vsel %vm12469_vm5, %v2037_v9, %v1989_v56  ;;  %v2179_v16 = vperm.slane %v9605_v35, %v9132_v59  ;;  %2380 = vst [vmem:[#allocation2 + $0xd8] sm:$0x11] %v2379_v44  ;;  %v2388_v18 = vsel %vm9542_vm2, %v2163_v46, %v2387_v10  ;;  %vm12470_vm11 = vcmask 1042432   ;;  %v854_v46 = vpop.f32.mrf.mxu3  ;;  %v2411_v10 = vld [vmem:[#allocation2 + $0x20] sm:$0x11] }
 0x10a   : > { %v2033_v21 = vsel %vm12470_vm11, %v2027_v7, %v2032_v12  ;;  %vm12471_vm10 = vcmask 1043457   ;;  %v2183_v15 = vperm.slane %v9605_v35, %v9134_v61  ;;  %2383 = vst [vmem:[#allocation2 + $0x80] sm:$0x11] %v2382_v58  ;;  %v2391_v27 = vsel %vm9542_vm2, %v2167_v52, %v2390_v19  ;;  %v2399_v35 = vld [vmem:[#allocation2 + $0xb8] sm:$0x11]  ;;  %v814_v52 = vpop.f32.mrf.mxu0 }
 0x10b   : > { %v2039_v22 = vsel %vm12471_vm10, %v2036_v11, %v2038_v13  ;;  %v2065_v29 = vunpack.i.h.s16 %v2033_v21  ;;  %2386 = vst [vmem:[#allocation2 + $0x130] sm:$0x11] %v2385_v1  ;;  %v2394_v50 = vsel %vm9542_vm2, %v2171_v30, %v2393_v3  ;;  %v2045_v63 = vsel %vm1502_vm1, %v2044_v14, %v1989_v56  ;;  %v2405_v58 = vld [vmem:[#allocation2 + $0xe8] sm:$0x11] }
 0x10c   : > { %v2041_v42 = vrot.slane %v2039_v22, 1  ;;  %vm12472_vm13 = vcmask 1046534   ;;  %2389 = vst [vmem:[#allocation2 + $0x138] sm:$0x11] %v2388_v18  ;;  %v2397_v28 = vsel %vm9542_vm2, %v2175_v62, %v2396_v31  ;;  %vm12473_vm12 = vcmask 1042434  }
 0x10d   : > { %v2051_v0 = vsel %vm12472_vm13, %v1987_v48, %v1988_v55  ;;  %v2042_v47 = vsel %vm12473_vm12, %v9521_v23, %v9549_v36  ;;  %v8084_v57 = vpack.i.b16 %v2033_v21, %v2033_v21  ;;  %2392 = vst [vmem:[#allocation2 + $0x120] sm:$0x11] %v2391_v27  ;;  %v2400_v32 = vsel %vm9542_vm2, %v2179_v16, %v2399_v35  ;;  %v2414_v11 = vld [vmem:[#allocation2 + $0x88] sm:$0x11]  ;;  %v2417_v18 = vld [vmem:[#allocation2 + $0xa0] sm:$0x11] }
 0x10e   : > { %vm12474_vm4 = vcmask 1043458   ;;  %v2081_v37 = vpack.i.b16 %v2065_v29, %v2065_v29  ;;  %2395 = vst [vmem:[#allocation2 + $0xe0] sm:$0x11] %v2394_v50  ;;  %v2403_v4 = vsel %vm9542_vm2, %v2183_v15, %v2402_v34  ;;  %vm12475_vm5 = vcmask 1045504   ;;  %v2420_v15 = vld [vmem:[#allocation2 + $0x170] sm:$0x11] }
 0x10f   : > { %v2043_v20 = vsel %vm12474_vm4, %v2042_v47, %v9618_v49  ;;  %v2052_v39 = vsel %vm12475_vm5, %v1989_v56, %v2051_v0  ;;  %2398 = vst [vmem:[#allocation2 + $0xa8] sm:$0x11] %v2397_v28  ;;  %v2049_v40 = vsel %vm1474_vm9, %v9521_v23, %v9549_v36  ;;  %v2067_v24 = vunpack.i.h.s16 %v2041_v42  ;;  %v2423_v50 = vld [vmem:[#allocation2 + $0xf0] sm:$0x11]  ;;  %v2426_v28 = vld [vmem:[#allocation2 + $0x140] sm:$0x11] }
 0x110   : > { %v2046_v38 = vsel %vm1504_vm15, %v2043_v20, %v2045_v63  ;;  %v9683_v41 = vadd.f32 %v812_v5, %v9076_v45  ;;  %2401 = vst [vmem:[#allocation2 + $0xb8] sm:$0x11] %v2400_v32  ;;  %v2050_v26 = vsel %vm1478_vm14, %v2049_v40, %v9618_v49  ;;  %v8085_v51 = vpack.i.b16 %v2041_v42, %v2041_v42  ;;  %v2429_v32 = vld [vmem:[#allocation2 + $0x60] sm:$0x11] }
 0x111   : > { %v2187_v48 = vperm.slane %v8084_v57, %v9105_v25  ;;  %v2191_v17 = vperm.slane %v8084_v57, %v9132_v59  ;;  %2404 = vst [vmem:[#allocation2 + $0x168] sm:$0x11] %v2403_v4  ;;  %v2048_v54 = vrot.slane %v2046_v38, 2  ;;  %v2053_v23 = vsel %vm12426_vm0, %v2050_v26, %v2052_v39  ;;  %v2432_v4 = vld [vmem:[#allocation2 + $0xc8] sm:$0x11] }
 0x112   : > { %v2195_v36 = vperm.slane %v8084_v57, %v9134_v61  ;;  %v2199_v55 = vperm.slane %v2081_v37, %v9105_v25  ;;  %v2203_v56 = vperm.slane %v2081_v37, %v9132_v59  ;;  %v827_v30 = vadd.f32 %v826_v6, %v9076_v45  ;;  %v868_v40 = vpop.f32.mrf.mxu0 }
 0x113   : > { %v9695_v49 = vadd.f32 %v840_v43, %v9076_v45  ;;  %v9697_v62 = vpack.i.b16 %v2067_v24, %v2067_v24  ;;  %v2207_v44 = vperm.slane %v2081_v37, %v9134_v61  ;;  %v1319_v5 = vmax.f32 %v9683_v41, 0.0  ;;  %v882_v24 = vpop.f32.mrf.mxu1 }
 0x114   : > { %v9702_v1 = vadd.f32 %v854_v46, %v9076_v45  ;;  %v2055_v7 = vrot.slane %v2053_v23, 3  ;;  %v2211_v8 = vperm.slane %v8085_v51, %v9105_v25  ;;  %v2406_v6 = vsel %vm9542_vm2, %v2187_v48, %v2405_v58  ;;  %v2435_v46 = vld [vmem:[#allocation2 + $0x28] sm:$0x11]  ;;  %v2438_v23 = vld [vmem:[#allocation2 + $0x38] sm:$0x11] }
 0x115   : > { %v2409_v9 = vsel %vm9542_vm2, %v2191_v17, %v2408_v2  ;;  %v2069_v12 = vunpack.i.h.s16 %v2048_v54  ;;  %v2215_v13 = vperm.slane %v8085_v51, %v9132_v59  ;;  %2407 = vst [vmem:[#allocation2 + $0xe8] sm:$0x11] %v2406_v6  ;;  %v2412_v14 = vsel %vm9542_vm2, %v2195_v36, %v2411_v10  ;;  %v2447_v58 = vld [vmem:[#allocation2 + $0x98] sm:$0x11] }
 0x116   : > { %v2415_v16 = vsel %vm9542_vm2, %v2199_v55, %v2414_v11  ;;  %v9714_v19 = vpack.i.b16 %v2048_v54, %v2048_v54  ;;  %v2219_v21 = vperm.slane %v8085_v51, %v9134_v61  ;;  %2410 = vst [vmem:[#allocation2 + $0xf8] sm:$0x11] %v2409_v9  ;;  %v2418_v22 = vsel %vm9542_vm2, %v2203_v56, %v2417_v18  ;;  %v2441_v56 = vld [vmem:[#allocation2 + $0xc0] sm:$0x11] }
 0x117   : > { %v1320_v27 = vmax.f32 %v827_v30, 0.0  ;;  %v2223_v3 = vperm.slane %v9697_v62, %v9105_v25  ;;  %2413 = vst [vmem:[#allocation2 + $0x20] sm:$0x11] %v2412_v14  ;;  %v2421_v29 = vsel %vm9542_vm2, %v2207_v44, %v2420_v15  ;;  %v9724_v31 = vadd.f32 %v814_v52, %v9084_v60 }
 0x118   : > { %v2071_v42 = vunpack.i.h.s16 %v2055_v7  ;;  %v2227_v63 = vperm.slane %v9697_v62, %v9132_v59  ;;  %2416 = vst [vmem:[#allocation2 + $0x88] sm:$0x11] %v2415_v16  ;;  %v2424_v0 = vsel %vm9542_vm2, %v2211_v8, %v2423_v50  ;;  %v9730_v35 = vpack.i.b16 %v2069_v12, %v2069_v12  ;;  %v2450_v8 = vld [vmem:[#allocation2 + $0x8] sm:$0x11] }
 0x119   : > { %v2231_v47 = vperm.slane %v9697_v62, %v9134_v61  ;;  %2419 = vst [vmem:[#allocation2 + $0xa0] sm:$0x11] %v2418_v22  ;;  %v2427_v57 = vsel %vm9542_vm2, %v2215_v13, %v2426_v28  ;;  %v1321_v34 = vmax.f32 %v9695_v49, 0.0  ;;  %v2235_v20 = vperm.slane %v9714_v19, %v9105_v25  ;;  %v2453_v13 = vld [vmem:[#allocation2] sm:$0x11] }
 0x11a   : > { %2422 = vst [vmem:[#allocation2 + $0x170] sm:$0x11] %v2421_v29  ;;  %v2430_v37 = vsel %vm9542_vm2, %v2219_v21, %v2429_v32  ;;  %v9741_v38 = vpack.c.bf16 %v1320_v27, %v1319_v5  ;;  %v1322_v39 = vmax.f32 %v9702_v1, 0.0  ;;  %v2239_v41 = vperm.slane %v9714_v19, %v9132_v59  ;;  %v2456_v21 = vld [vmem:[#allocation2 + $0x78] sm:$0x11] }
 0x11b   : > { %2425 = vst [vmem:[#allocation2 + $0xf0] sm:$0x11] %v2424_v0  ;;  %v2433_v43 = vsel %vm9542_vm2, %v2223_v3, %v2432_v4  ;;  %v1367_v26 = vmax.f32 %v9724_v31, 0.0  ;;  %v829_v51 = vadd.f32 %v828_v53, %v9084_v60  ;;  %v8087_v48 = vpack.i.b16 %v2055_v7, %v2055_v7  ;;  %v2444_v53 = vld [vmem:[#allocation2 + $0x18] sm:$0x11] }
 0x11c   : > { %v9750_v17 = vpack.i.b16 %v2071_v42, %v2071_v42  ;;  %v2243_v52 = vperm.slane %v9714_v19, %v9134_v61  ;;  %2428 = vst [vmem:[#allocation2 + $0x140] sm:$0x11] %v2427_v57  ;;  %v2436_v54 = vsel %vm9542_vm2, %v2227_v63, %v2435_v46  ;;  %v2247_v36 = vperm.slane %v9730_v35, %v9105_v25  ;;  %v2459_v22 = vld [vmem:[#allocation2 + $0x50] sm:$0x11]  ;;  %v2462_v29 = vld [vmem:[#allocation2 + $0x68] sm:$0x11]  ;;  %v856_v46 = vpop.f32.mrf.mxu3 }
 0x11d   : > { %2431 = vst [vmem:[#allocation2 + $0x60] sm:$0x11] %v2430_v37  ;;  %v2439_v55 = vsel %vm9542_vm2, %v2231_v47, %v2438_v23  ;;  %v869_v30 = vadd.f32 %v868_v40, %v9076_v45  ;;  %v883_v49 = vadd.f32 %v882_v24, %v9076_v45  ;;  %v2251_v62 = vperm.slane %v9730_v35, %v9132_v59  ;;  %v2465_v42 = vld [vmem:[#allocation2 + $0x70] sm:$0x11] }
 0x11e   : > { %2434 = vst [vmem:[#allocation2 + $0xc8] sm:$0x11] %v2433_v43  ;;  %v2442_v44 = vsel %vm9542_vm2, %v2235_v20, %v2441_v56  ;;  %v9767_v2 = vrot.slane %v9741_v38, 3  ;;  %v1410_v5 = vpack.c.bf16 %v1322_v39, %v1321_v34  ;;  %v2255_v1 = vperm.slane %v9730_v35, %v9134_v61  ;;  %v2468_v57 = vld [vmem:[#allocation2 + $0x30] sm:$0x11]  ;;  %v842_v43 = vpop.f32.mrf.mxu2 }
 0x11f   : > { %2437 = vst [vmem:[#allocation2 + $0x28] sm:$0x11] %v2436_v54  ;;  %v2445_v7 = vsel %vm9542_vm2, %v2239_v41, %v2444_v53  ;;  %v1323_v6 = vmax.f32 %v869_v30, 0.0  ;;  %v1324_v9 = vmax.f32 %v883_v49, 0.0  ;;  %v2259_v10 = vperm.slane %v8087_v48, %v9105_v25  ;;  %v2471_v39 = vld [vmem:[#allocation2 + $0x158] sm:$0x11] }
 0x120   : > { %v2263_v11 = vperm.slane %v8087_v48, %v9132_v59  ;;  %2440 = vst [vmem:[#allocation2 + $0x38] sm:$0x11] %v2439_v55  ;;  %v2448_v12 = vsel %vm9542_vm2, %v2243_v52, %v2447_v58  ;;  %v1368_v14 = vmax.f32 %v829_v51, 0.0  ;;  %v2267_v16 = vperm.slane %v8087_v48, %v9134_v61 }
 0x121   : > { %v2271_v18 = vperm.slane %v9750_v17, %v9105_v25  ;;  %2443 = vst [vmem:[#allocation2 + $0xc0] sm:$0x11] %v2442_v44  ;;  %v2451_v19 = vsel %vm9542_vm2, %v2247_v36, %v2450_v8  ;;  %v1411_v15 = vpack.c.bf16 %v1324_v9, %v1323_v6  ;;  %v2275_v27 = vperm.slane %v9750_v17, %v9132_v59 }
 0x122   : > { %2446 = vst [vmem:[#allocation2 + $0x18] sm:$0x11] %v2445_v7  ;;  %v2454_v3 = vsel %vm9542_vm2, %v2251_v62, %v2453_v13  ;;  %v2484_v50 = vrot.slane %v1410_v5, 6  ;;  %v2457_v31 = vsel %vm9542_vm2, %v2255_v1, %v2456_v21  ;;  %v2495_v63 = vsel %vm12425_vm3, %v9741_v38, %v9767_v2 }
 0x123   : > { %2449 = vst [vmem:[#allocation2 + $0x98] sm:$0x11] %v2448_v12  ;;  %v2486_v0 = vrot.slane %v1411_v15, 4  ;;  %v2487_v28 = vrot.slane %v1411_v15, 7  ;;  %v2279_v35 = vperm.slane %v9750_v17, %v9134_v61  ;;  %v2460_v47 = vsel %vm9542_vm2, %v2259_v10, %v2459_v22  ;;  %v2474_v17 = vld [vmem:[#allocation2 + $0x150] sm:$0x11] }
 0x124   : > { %2452 = vst [vmem:[#allocation2 + $0x8] sm:$0x11] %v2451_v19  ;;  %v2485_v32 = vrot.slane %v1410_v5, 1  ;;  %vm12476_vm11 = vcmask 1041409   ;;  %v2463_v20 = vsel %vm9542_vm2, %v2263_v11, %v2462_v29  ;;  %v2466_v37 = vsel %vm9542_vm2, %v2267_v16, %v2465_v42  ;;  %v2841_v29 = vld [vmem:[#allocation2 + $0xd0] sm:$0x22] }
 0x125   : > { %v2505_v34 = vsel %vm12476_vm11, %v9741_v38, %v9767_v2  ;;  %2455 = vst [vmem:[#allocation2] sm:$0x11] %v2454_v3  ;;  %v2469_v4 = vsel %vm9542_vm2, %v2271_v18, %v2468_v57  ;;  %v9804_v40 = vpack.c.bf16 %v1368_v14, %v1367_v26  ;;  %v2472_v24 = vsel %vm9542_vm2, %v2275_v27, %v2471_v39  ;;  %v2838_v3 = vld [vmem:[#allocation2 + $0xb0] sm:$0x22]  ;;  %v2850_v57 = vld [vmem:[#allocation2 + $0x160] sm:$0x22] }
 0x126   : > { %2458 = vst [vmem:[#allocation2 + $0x78] sm:$0x11] %v2457_v31  ;;  %vm12477_vm10 = vcmask 1041408   ;;  %v2500_v51 = vsel %vm1474_vm9, %v2485_v32, %v2486_v0  ;;  %v2507_v48 = vsel %vm1488_vm7, %v2485_v32, %v2486_v0  ;;  %v2506_v52 = vsel %vm1486_vm6, %v2505_v34, %v2484_v50  ;;  %v2844_v42 = vld [vmem:[#allocation2 + $0x10] sm:$0x22] }
 0x127   : > { %v2497_v41 = vsel %vm12477_vm10, %v2495_v63, %v2484_v50  ;;  %2461 = vst [vmem:[#allocation2 + $0x50] sm:$0x11] %v2460_v47  ;;  %v2502_v54 = vsel %vm1478_vm14, %v2500_v51, %v2487_v28  ;;  %vm12478_vm13 = vcmask 1045508   ;;  %v2514_v23 = vsel %vm1500_vm8, %v2485_v32, %v2486_v0  ;;  %v2847_v63 = vld [vmem:[#allocation2 + $0x48] sm:$0x22] }
 0x128   : > { %v2508_v26 = vsel %vm12478_vm13, %v2507_v48, %v2487_v28  ;;  %2464 = vst [vmem:[#allocation2 + $0x68] sm:$0x11] %v2463_v20  ;;  %v2475_v36 = vsel %vm9542_vm2, %v2279_v35, %v2474_v17  ;;  %v2512_v55 = vsel %vm12473_vm12, %v9741_v38, %v9767_v2  ;;  %vm12479_vm4 = vcmask 1042432   ;;  %v2853_v39 = vld [vmem:[#allocation2 + $0x128] sm:$0x22]  ;;  %v896_v17 = vpop.f32.mrf.mxu2 }
 0x129   : > { %v2503_v56 = vsel %vm12479_vm4, %v2497_v41, %v2502_v54  ;;  %vm12480_vm5 = vcmask 1043457   ;;  %2467 = vst [vmem:[#allocation2 + $0x70] sm:$0x11] %v2466_v37  ;;  %v843_v30 = vadd.f32 %v842_v43, %v9084_v60  ;;  %v857_v49 = vadd.f32 %v856_v46, %v9084_v60  ;;  %v2856_v48 = vld [vmem:[#allocation2 + $0x40] sm:$0x22] }
 0x12a   : > { %v2509_v53 = vsel %vm12480_vm5, %v2506_v52, %v2508_v26  ;;  %v2560_v62 = vunpack.i.h.s16 %v2503_v56  ;;  %vm2832_vm11 = vsmask.f32 1280  ;;  %2470 = vst [vmem:[#allocation2 + $0x30] sm:$0x11] %v2469_v4  ;;  %v2515_v33 = vsel %vm1502_vm1, %v2514_v23, %v2487_v28  ;;  %v910_v52 = vpop.f32.mrf.mxu3 }
 0x12b   : > { %v2511_v44 = vrot.slane %v2509_v53, 1  ;;  %vm12481_vm2 = vcmask 1046534   ;;  %vm2835_vm10 = vsmask.f32 5376  ;;  %2473 = vst [vmem:[#allocation2 + $0x158] sm:$0x11] %v2472_v24  ;;  %v8088_v5 = vpack.i.b16 %v2503_v56, %v2503_v56  ;;  %v884_v24 = vpop.f32.mrf.mxu1 }
 0x12c   : > { %v2521_v58 = vsel %vm12481_vm2, %v2485_v32, %v2486_v0  ;;  %2476 = vst [vmem:[#allocation2 + $0x150] sm:$0x11] %v2475_v36  ;;  %vm12482_vm13 = vcmask 1043458   ;;  %v2519_v7 = vsel %vm1474_vm9, %v9741_v38, %v9767_v2  ;;  %v2576_v8 = vpack.i.b16 %v2560_v62, %v2560_v62  ;;  %vm2836_vm2 = vmand %vm1500_vm8, %vm2835_vm10  ;;  %v870_v32 = vpop.f32.mrf.mxu0  ;;  %v2859_v36 = vld [vmem:[#allocation2 + $0x178] sm:$0x22] }
 0x12d   : > { %v2513_v1 = vsel %vm12482_vm13, %v2512_v55, %v2484_v50  ;;  %vm12483_vm12 = vcmask 1041409   ;;  %v9836_v9 = vrot.slane %v9804_v40, 3  ;;  %vm12486_vm5 = vcmask 1045504  }
 0x12e   : > { %vm9831_vm4 = vmand %vm12483_vm12, %vm2832_vm11  ;;  %v2516_v10 = vsel %vm1504_vm15, %v2513_v1, %v2515_v33  ;;  %v2522_v11 = vsel %vm12486_vm5, %v2487_v28, %v2521_v58  ;;  %v1369_v12 = vmax.f32 %v843_v30, 0.0  ;;  %v1370_v13 = vmax.f32 %v857_v49, 0.0  ;;  %v2862_v49 = vld [vmem:[#allocation2 + $0x108] sm:$0x22]  ;;  %v2865_v58 = vld [vmem:[#allocation2 + $0x110] sm:$0x22] }
 0x12f   : > { %v2562_v14 = vunpack.i.h.s16 %v2511_v44  ;;  %v2520_v38 = vsel %vm1478_vm14, %v2519_v7, %v2484_v50  ;;  %v9842_v2 = vpack.i.b16 %v2511_v44, %v2511_v44  ;;  %v2594_v16 = vperm.slane %v8088_v5, %v9105_v25  ;;  %vm9851_vm11 = vmor %vm2836_vm2, %vm9831_vm4 }
 0x130   : > { %v2598_v18 = vperm.slane %v8088_v5, %v9132_v59  ;;  %v2518_v19 = vrot.slane %v2516_v10, 2  ;;  %v2523_v21 = vsel %vm12426_vm0, %v2520_v38, %v2522_v11  ;;  %v2602_v22 = vperm.slane %v8088_v5, %v9134_v61  ;;  %vm12489_vm10 = vmmov %vm12483_vm12  ;;  %v2868_v11 = vld [vmem:[#allocation2 + $0x90] sm:$0x22]  ;;  %v2871_v38 = vld [vmem:[#allocation2 + $0x118] sm:$0x22] }
 0x131   : > { %v2606_v15 = vperm.slane %v2576_v8, %v9105_v25  ;;  %v2528_v50 = vsel %vm12425_vm3, %v9804_v40, %v9836_v9  ;;  %v2610_v31 = vperm.slane %v2576_v8, %v9132_v59  ;;  %v1434_v0 = vpack.c.bf16 %v1370_v13, %v1369_v12 }
 0x132   : > { %v2538_v28 = vsel %vm12489_vm10, %v9804_v40, %v9836_v9  ;;  %v9862_v35 = vpack.i.b16 %v2562_v14, %v2562_v14  ;;  %v2614_v47 = vperm.slane %v2576_v8, %v9134_v61  ;;  %v2525_v34 = vrot.slane %v2523_v21, 3  ;;  %v2874_v21 = vld [vmem:[#allocation2 + $0x148] sm:$0x22] }
 0x133   : > { %v2618_v20 = vperm.slane %v9842_v2, %v9105_v25  ;;  %v2839_v37 = vsel %vm9851_vm11, %v2594_v16, %v2838_v3  ;;  %v2842_v4 = vsel %vm9851_vm11, %v2598_v18, %v2841_v29  ;;  %v2564_v41 = vunpack.i.h.s16 %v2518_v19 }
 0x134   : > { %v2622_v43 = vperm.slane %v9842_v2, %v9132_v59  ;;  %2840 = vst [vmem:[#allocation2 + $0xb0] sm:$0x22] %v2839_v37  ;;  %v2845_v46 = vsel %vm9851_vm11, %v2602_v22, %v2844_v42  ;;  %v2848_v51 = vsel %vm9851_vm11, %v2606_v15, %v2847_v63  ;;  %v9877_v54 = vpack.i.b16 %v2518_v19, %v2518_v19 }
 0x135   : > { %v2626_v26 = vperm.slane %v9842_v2, %v9134_v61  ;;  %2843 = vst [vmem:[#allocation2 + $0xd0] sm:$0x22] %v2842_v4  ;;  %v2851_v23 = vsel %vm9851_vm11, %v2610_v31, %v2850_v57  ;;  %v871_v55 = vadd.f32 %v870_v32, %v9084_v60  ;;  %v9884_v56 = vrot.slane %v1434_v0, 6  ;;  %v2877_v31 = vld [vmem:[#allocation2 + $0x100] sm:$0x22] }
 0x136   : > { %v2630_v53 = vperm.slane %v9862_v35, %v9105_v25  ;;  %2846 = vst [vmem:[#allocation2 + $0x10] sm:$0x22] %v2845_v46  ;;  %v2854_v30 = vsel %vm9851_vm11, %v2614_v47, %v2853_v39  ;;  %v885_v62 = vadd.f32 %v884_v24, %v9084_v60  ;;  %v2634_v44 = vperm.slane %v9862_v35, %v9132_v59  ;;  %v2883_v32 = vld [vmem:[#allocation2 + $0xd8] sm:$0x22]  ;;  %v2886_v39 = vld [vmem:[#allocation2 + $0x80] sm:$0x22] }
 0x137   : > { %2849 = vst [vmem:[#allocation2 + $0x48] sm:$0x22] %v2848_v51  ;;  %v2857_v33 = vsel %vm9851_vm11, %v2618_v20, %v2856_v48  ;;  %v9896_v5 = vadd.f32 %v896_v17, %v9076_v45  ;;  %v9899_v1 = vadd.f32 %v910_v52, %v9076_v45  ;;  %v2566_v7 = vunpack.i.h.s16 %v2525_v34  ;;  %v2889_v17 = vld [vmem:[#allocation2 + $0x130] sm:$0x22] }
 0x138   : > { %v9901_v8 = vpack.i.b16 %v2564_v41, %v2564_v41  ;;  %v2638_v6 = vperm.slane %v9862_v35, %v9134_v61  ;;  %2852 = vst [vmem:[#allocation2 + $0x160] sm:$0x22] %v2851_v23  ;;  %v2860_v10 = vsel %vm9851_vm11, %v2622_v43, %v2859_v36  ;;  %v9907_v12 = vrot.slane %v1434_v0, 1  ;;  %v2895_v23 = vld [vmem:[#allocation2 + $0x120] sm:$0x22] }
 0x139   : > { %v2642_v13 = vperm.slane %v9877_v54, %v9105_v25  ;;  %2855 = vst [vmem:[#allocation2 + $0x128] sm:$0x22] %v2854_v30  ;;  %v2863_v14 = vsel %vm9851_vm11, %v2626_v26, %v2862_v49  ;;  %v1371_v2 = vmax.f32 %v871_v55, 0.0  ;;  %vm12490_vm13 = vcmask 1041408   ;;  %v2892_v26 = vld [vmem:[#allocation2 + $0x138] sm:$0x22] }
 0x13a   : > { %v2530_v16 = vsel %vm12490_vm13, %v2528_v50, %v9884_v56  ;;  %v2646_v18 = vperm.slane %v9877_v54, %v9132_v59  ;;  %2858 = vst [vmem:[#allocation2 + $0x40] sm:$0x22] %v2857_v33  ;;  %v2866_v19 = vsel %vm9851_vm11, %v2630_v53, %v2865_v58  ;;  %v1372_v22 = vmax.f32 %v885_v62, 0.0  ;;  %v2898_v58 = vld [vmem:[#allocation2 + $0xe0] sm:$0x22] }
 0x13b   : > { %v2539_v15 = vsel %vm1486_vm6, %v2538_v28, %v9884_v56  ;;  %v9921_v3 = vpack.i.b16 %v2525_v34, %v2525_v34  ;;  %v2650_v29 = vperm.slane %v9877_v54, %v9134_v61  ;;  %2861 = vst [vmem:[#allocation2 + $0x178] sm:$0x22] %v2860_v10  ;;  %v2869_v50 = vsel %vm9851_vm11, %v2634_v44, %v2868_v11  ;;  %v2880_v28 = vld [vmem:[#allocation2 + $0x58] sm:$0x22]  ;;  %v2901_v10 = vld [vmem:[#allocation2 + $0xa8] sm:$0x22] }
 0x13c   : > { %v9927_v42 = vpack.i.b16 %v2566_v7, %v2566_v7  ;;  %v2654_v63 = vperm.slane %v9901_v8, %v9105_v25  ;;  %2864 = vst [vmem:[#allocation2 + $0x108] sm:$0x22] %v2863_v14  ;;  %v2872_v0 = vsel %vm9851_vm11, %v2638_v6, %v2871_v38  ;;  %v1435_v35 = vpack.c.bf16 %v1372_v22, %v1371_v2  ;;  %v2904_v14 = vld [vmem:[#allocation2 + $0xb8] sm:$0x22]  ;;  %v2907_v22 = vld [vmem:[#allocation2 + $0x168] sm:$0x22] }
 0x13d   : > { %v2658_v47 = vperm.slane %v9901_v8, %v9132_v59  ;;  %2867 = vst [vmem:[#allocation2 + $0x110] sm:$0x22] %v2866_v19  ;;  %v2875_v57 = vsel %vm9851_vm11, %v2642_v13, %v2874_v21  ;;  %v1325_v34 = vmax.f32 %v9896_v5, 0.0  ;;  %v1326_v20 = vmax.f32 %v9899_v1, 0.0  ;;  %v898_v13 = vpop.f32.mrf.mxu2 }
 0x13e   : > { %v2662_v37 = vperm.slane %v9901_v8, %v9134_v61  ;;  %2870 = vst [vmem:[#allocation2 + $0x90] sm:$0x22] %v2869_v50  ;;  %v2878_v4 = vsel %vm9851_vm11, %v2646_v18, %v2877_v31  ;;  %v2491_v24 = vrot.slane %v1435_v35, 4  ;;  %v2492_v41 = vrot.slane %v1435_v35, 7 }
 0x13f   : > { %v2666_v43 = vperm.slane %v9921_v3, %v9105_v25  ;;  %v2670_v46 = vperm.slane %v9921_v3, %v9132_v59  ;;  %v2674_v51 = vperm.slane %v9921_v3, %v9134_v61  ;;  %2873 = vst [vmem:[#allocation2 + $0x118] sm:$0x22] %v2872_v0  ;;  %v2881_v48 = vsel %vm9851_vm11, %v2650_v29, %v2880_v28  ;;  %v912_v3 = vpop.f32.mrf.mxu3 }
 0x140   : > { %v2678_v52 = vperm.slane %v9927_v42, %v9105_v25  ;;  %2876 = vst [vmem:[#allocation2 + $0x148] sm:$0x22] %v2875_v57  ;;  %v2884_v54 = vsel %vm9851_vm11, %v2654_v63, %v2883_v32  ;;  %v2533_v36 = vsel %vm1474_vm9, %v9907_v12, %v2491_v24  ;;  %v2540_v55 = vsel %vm1488_vm7, %v9907_v12, %v2491_v24  ;;  %v924_v57 = vpop.f32.mrf.mxu0  ;;  %v938_v32 = vpop.f32.mrf.mxu1 }
 0x141   : > { %2879 = vst [vmem:[#allocation2 + $0x100] sm:$0x22] %v2878_v4  ;;  %v2887_v53 = vsel %vm9851_vm11, %v2658_v47, %v2886_v39  ;;  %v2535_v30 = vsel %vm1478_vm14, %v2533_v36, %v2492_v41  ;;  %vm12491_vm12 = vcmask 1045508   ;;  %v2547_v62 = vsel %vm1500_vm8, %v9907_v12, %v2491_v24  ;;  %v2910_v39 = vld [vmem:[#allocation2 + $0xe8] sm:$0x22] }
 0x142   : > { %v2541_v49 = vsel %vm12491_vm12, %v2540_v55, %v2492_v41  ;;  %v2682_v44 = vperm.slane %v9927_v42, %v9132_v59  ;;  %2882 = vst [vmem:[#allocation2 + $0x58] sm:$0x22] %v2881_v48  ;;  %v2890_v33 = vsel %vm9851_vm11, %v2662_v37, %v2889_v17  ;;  %vm12492_vm4 = vcmask 1042432   ;;  %v2916_v48 = vld [vmem:[#allocation2 + $0x20] sm:$0x22] }
 0x143   : > { %v2536_v5 = vsel %vm12492_vm4, %v2530_v16, %v2535_v30  ;;  %vm12493_vm5 = vcmask 1043457   ;;  %v2686_v7 = vperm.slane %v9927_v42, %v9134_v61  ;;  %2885 = vst [vmem:[#allocation2 + $0xd8] sm:$0x22] %v2884_v54  ;;  %v2893_v8 = vsel %vm9851_vm11, %v2666_v43, %v2892_v26  ;;  %v2919_v17 = vld [vmem:[#allocation2 + $0x88] sm:$0x22] }
 0x144   : > { %v2542_v1 = vsel %vm12493_vm5, %v2539_v15, %v2541_v49  ;;  %v2896_v6 = vsel %vm9851_vm11, %v2670_v46, %v2895_v23  ;;  %v2568_v11 = vunpack.i.h.s16 %v2536_v5  ;;  %2888 = vst [vmem:[#allocation2 + $0x80] sm:$0x22] %v2887_v53  ;;  %v9977_v38 = vpack.c.bf16 %v1326_v20, %v1325_v34  ;;  %v2922_v55 = vld [vmem:[#allocation2 + $0xa0] sm:$0x22] }
 0x145   : > { %v2544_v2 = vrot.slane %v2542_v1, 1  ;;  %v2548_v16 = vsel %vm1502_vm1, %v2547_v62, %v2492_v41  ;;  %vm12494_vm2 = vcmask 1046534   ;;  %vm12495_vm10 = vcmask 1042434   ;;  %2891 = vst [vmem:[#allocation2 + $0x130] sm:$0x22] %v2890_v33 }
 0x146   : > { %v2554_v18 = vsel %vm12494_vm2, %v9907_v12, %v2491_v24  ;;  %v2545_v19 = vsel %vm12495_vm10, %v9804_v40, %v9836_v9  ;;  %v2899_v21 = vsel %vm9851_vm11, %v2674_v51, %v2898_v58  ;;  %v8092_v15 = vpack.i.b16 %v2536_v5, %v2536_v5  ;;  %2894 = vst [vmem:[#allocation2 + $0x138] sm:$0x22] %v2893_v8  ;;  %v2913_v24 = vld [vmem:[#allocation2 + $0xf8] sm:$0x22]  ;;  %v2925_v58 = vld [vmem:[#allocation2 + $0x170] sm:$0x22]  ;;  %v952_v5 = vpop.f32.mrf.mxu2  ;;  %vm12499_vm5 = vmmov %vm12495_vm10 }
 0x147   : > { %vm12496_vm13 = vcmask 1043458   ;;  %v2552_v50 = vsel %vm1474_vm9, %v9804_v40, %v9836_v9  ;;  %v2902_v12 = vsel %vm9851_vm11, %v2678_v52, %v2901_v10  ;;  %v2584_v31 = vpack.i.b16 %v2568_v11, %v2568_v11  ;;  %2897 = vst [vmem:[#allocation2 + $0x120] sm:$0x22] %v2896_v6  ;;  %v2928_v10 = vld [vmem:[#allocation2 + $0xf0] sm:$0x22] }
 0x148   : > { %v2546_v29 = vsel %vm12496_vm13, %v2545_v19, %v9884_v56  ;;  %v2905_v42 = vsel %vm9851_vm11, %v2682_v44, %v2904_v14  ;;  %vm12497_vm12 = vcmask 1045504   ;;  %v9999_v28 = vadd.f32 %v898_v13, %v9084_v60  ;;  %2900 = vst [vmem:[#allocation2 + $0xe0] sm:$0x22] %v2899_v21  ;;  %v2934_v21 = vld [vmem:[#allocation2 + $0x60] sm:$0x22] }
 0x149   : > { %v2549_v63 = vsel %vm1504_vm15, %v2546_v29, %v2548_v16  ;;  %v2555_v0 = vsel %vm12497_vm12, %v2492_v41, %v2554_v18  ;;  %v2908_v40 = vsel %vm9851_vm11, %v2686_v7, %v2907_v22  ;;  %v10004_v9 = vrot.slane %v9977_v38, 3  ;;  %2903 = vst [vmem:[#allocation2 + $0xa8] sm:$0x22] %v2902_v12  ;;  %v2937_v12 = vld [vmem:[#allocation2 + $0xc8] sm:$0x22] }
 0x14a   : > { %v2570_v35 = vunpack.i.h.s16 %v2544_v2  ;;  %v10007_v47 = vadd.f32 %v912_v3, %v9084_v60  ;;  %v2553_v34 = vsel %vm1478_vm14, %v2552_v50, %v9884_v56  ;;  %v10011_v20 = vpack.i.b16 %v2544_v2, %v2544_v2  ;;  %2906 = vst [vmem:[#allocation2 + $0xb8] sm:$0x22] %v2905_v42  ;;  %v2931_v2 = vld [vmem:[#allocation2 + $0x140] sm:$0x22]  ;;  %v966_v42 = vpop.f32.mrf.mxu3 }
 0x14b   : > { %v2690_v37 = vperm.slane %v8092_v15, %v9105_v25  ;;  %v2694_v4 = vperm.slane %v8092_v15, %v9132_v59  ;;  %v2551_v41 = vrot.slane %v2549_v63, 2  ;;  %v2556_v43 = vsel %vm12426_vm0, %v2553_v34, %v2555_v0  ;;  %2909 = vst [vmem:[#allocation2 + $0x168] sm:$0x22] %v2908_v40 }
 0x14c   : > { %v2698_v46 = vperm.slane %v8092_v15, %v9134_v61  ;;  %v2702_v51 = vperm.slane %v2584_v31, %v9105_v25  ;;  %v2706_v56 = vperm.slane %v2584_v31, %v9132_v59  ;;  %v1373_v52 = vmax.f32 %v9999_v28, 0.0 }
 0x14d   : > { %v10021_v54 = vadd.f32 %v924_v57, %v9076_v45  ;;  %v939_v26 = vadd.f32 %v938_v32, %v9076_v45  ;;  %v10024_v23 = vpack.i.b16 %v2570_v35, %v2570_v35  ;;  %v2710_v36 = vperm.slane %v2584_v31, %v9134_v61  ;;  %v2940_v35 = vld [vmem:[#allocation2 + $0x28] sm:$0x22] }
 0x14e   : > { %v1374_v53 = vmax.f32 %v10007_v47, 0.0  ;;  %v10031_v30 = vsel %vm12425_vm3, %v9977_v38, %v10004_v9  ;;  %v2558_v49 = vrot.slane %v2556_v43, 3  ;;  %v2714_v62 = vperm.slane %v10011_v20, %v9105_v25 }
 0x14f   : > { %v2911_v44 = vsel %vm9851_vm11, %v2690_v37, %v2910_v39  ;;  %v2914_v33 = vsel %vm9851_vm11, %v2694_v4, %v2913_v24  ;;  %v2572_v1 = vunpack.i.h.s16 %v2551_v41  ;;  %v2718_v7 = vperm.slane %v10011_v20, %v9132_v59  ;;  %v2946_v24 = vld [vmem:[#allocation2 + $0xc0] sm:$0x22] }
 0x150   : > { %2912 = vst [vmem:[#allocation2 + $0xe8] sm:$0x22] %v2911_v44  ;;  %v2917_v8 = vsel %vm9851_vm11, %v2698_v46, %v2916_v48  ;;  %v2920_v6 = vsel %vm9851_vm11, %v2702_v51, %v2919_v17  ;;  %v10045_v11 = vpack.i.b16 %v2551_v41, %v2551_v41  ;;  %v2722_v13 = vperm.slane %v10011_v20, %v9134_v61  ;;  %v2943_v20 = vld [vmem:[#allocation2 + $0x38] sm:$0x22] }
 0x151   : > { %2915 = vst [vmem:[#allocation2 + $0xf8] sm:$0x22] %v2914_v33  ;;  %v2923_v14 = vsel %vm9851_vm11, %v2706_v56, %v2922_v55  ;;  %vm12498_vm4 = vcmask 1041409   ;;  %v2726_v18 = vperm.slane %v10024_v23, %v9105_v25  ;;  %v2926_v19 = vsel %vm9851_vm11, %v2710_v36, %v2925_v58  ;;  %v2952_v48 = vld [vmem:[#allocation2 + $0x98] sm:$0x22] }
 0x152   : > { %v10054_v16 = vsel %vm12498_vm4, %v9977_v38, %v10004_v9  ;;  %2918 = vst [vmem:[#allocation2 + $0x20] sm:$0x22] %v2917_v8  ;;  %v1327_v22 = vmax.f32 %v10021_v54, 0.0  ;;  %v953_v15 = vadd.f32 %v952_v5, %v9076_v45  ;;  %v2574_v3 = vunpack.i.h.s16 %v2558_v49  ;;  %v2955_v33 = vld [vmem:[#allocation2 + $0x8] sm:$0x22] }
 0x153   : > { %v2730_v29 = vperm.slane %v10024_v23, %v9132_v59  ;;  %2921 = vst [vmem:[#allocation2 + $0x88] sm:$0x22] %v2920_v6  ;;  %v2929_v50 = vsel %vm9851_vm11, %v2714_v62, %v2928_v10  ;;  %v1328_v31 = vmax.f32 %v939_v26, 0.0  ;;  %v2588_v63 = vpack.i.b16 %v2572_v1, %v2572_v1  ;;  %v2964_v26 = vld [vmem:[#allocation2 + $0x50] sm:$0x22] }
 0x154   : > { %v2734_v0 = vperm.slane %v10024_v23, %v9134_v61  ;;  %2924 = vst [vmem:[#allocation2 + $0xa0] sm:$0x22] %v2923_v14  ;;  %v2932_v40 = vsel %vm9851_vm11, %v2718_v7, %v2931_v2  ;;  %v10073_v47 = vsel %vm12499_vm5, %v9977_v38, %v10004_v9  ;;  %v10075_v57 = vpack.i.b16 %v2558_v49, %v2558_v49  ;;  %v2958_v58 = vld [vmem:[#allocation2] sm:$0x22]  ;;  %v2967_v10 = vld [vmem:[#allocation2 + $0x68] sm:$0x22] }
 0x155   : > { %v2738_v32 = vperm.slane %v10045_v11, %v9105_v25  ;;  %2927 = vst [vmem:[#allocation2 + $0x170] sm:$0x22] %v2926_v19  ;;  %v2935_v34 = vsel %vm9851_vm11, %v2722_v13, %v2934_v21  ;;  %v10084_v37 = vsel %vm1474_vm9, %v9977_v38, %v10004_v9  ;;  %v2742_v4 = vperm.slane %v10045_v11, %v9132_v59  ;;  %v2949_v9 = vld [vmem:[#allocation2 + $0x18] sm:$0x22] }
 0x156   : > { %2930 = vst [vmem:[#allocation2 + $0xf0] sm:$0x22] %v2929_v50  ;;  %v2938_v39 = vsel %vm9851_vm11, %v2726_v18, %v2937_v12  ;;  %v1329_v41 = vmax.f32 %v953_v15, 0.0  ;;  %v967_v43 = vadd.f32 %v966_v42, %v9076_v45  ;;  %v10091_v46 = vpack.i.b16 %v2574_v3, %v2574_v3  ;;  %v2970_v3 = vld [vmem:[#allocation2 + $0x70] sm:$0x22]  ;;  %v926_v42 = vpop.f32.mrf.mxu0 }
 0x157   : > { %v2746_v51 = vperm.slane %v10045_v11, %v9134_v61  ;;  %2933 = vst [vmem:[#allocation2 + $0x140] sm:$0x22] %v2932_v40  ;;  %v2941_v38 = vsel %vm9851_vm11, %v2730_v29, %v2940_v35  ;;  %v1413_v56 = vpack.c.bf16 %v1328_v31, %v1327_v22  ;;  %v2750_v17 = vperm.slane %v2588_v63, %v9105_v25 }
 0x158   : > { %2936 = vst [vmem:[#allocation2 + $0x60] sm:$0x22] %v2935_v34  ;;  %v2944_v54 = vsel %vm9851_vm11, %v2734_v0, %v2943_v20  ;;  %v10102_v23 = vpack.c.bf16 %v1374_v53, %v1373_v52  ;;  %v1330_v36 = vmax.f32 %v967_v43, 0.0  ;;  %v2754_v55 = vperm.slane %v2588_v63, %v9132_v59  ;;  %v2961_v52 = vld [vmem:[#allocation2 + $0x78] sm:$0x22] }
 0x159   : > { %v2758_v49 = vperm.slane %v2588_v63, %v9134_v61  ;;  %v2762_v62 = vperm.slane %v10075_v57, %v9105_v25  ;;  %2939 = vst [vmem:[#allocation2 + $0xc8] sm:$0x22] %v2938_v39  ;;  %v2947_v44 = vsel %vm9851_vm11, %v2738_v32, %v2946_v24  ;;  %v2766_v5 = vperm.slane %v10075_v57, %v9132_v59  ;;  %v2973_v63 = vld [vmem:[#allocation2 + $0x30] sm:$0x22]  ;;  %v940_v32 = vpop.f32.mrf.mxu1  ;;  %v2976_v20 = vld [vmem:[#allocation2 + $0x158] sm:$0x22] }
 0x15a   : > { %2942 = vst [vmem:[#allocation2 + $0x28] sm:$0x22] %v2941_v38  ;;  %v2950_v28 = vsel %vm9851_vm11, %v2742_v4, %v2949_v9  ;;  %v2990_v53 = vrot.slane %v1413_v56, 1  ;;  %v1414_v1 = vpack.c.bf16 %v1330_v36, %v1329_v41  ;;  %v2770_v7 = vperm.slane %v10075_v57, %v9134_v61  ;;  %v954_v9 = vpop.f32.mrf.mxu2 }
 0x15b   : > { %v2774_v8 = vperm.slane %v10091_v46, %v9105_v25  ;;  %2945 = vst [vmem:[#allocation2 + $0x38] sm:$0x22] %v2944_v54  ;;  %v2953_v6 = vsel %vm9851_vm11, %v2746_v51, %v2952_v48  ;;  %v2989_v11 = vrot.slane %v1413_v56, 6  ;;  %v2778_v13 = vperm.slane %v10091_v46, %v9132_v59 }
 0x15c   : > { %2948 = vst [vmem:[#allocation2 + $0xc0] sm:$0x22] %v2947_v44  ;;  %v2956_v14 = vsel %vm9851_vm11, %v2750_v17, %v2955_v33  ;;  %v2991_v2 = vrot.slane %v1414_v1, 4  ;;  %v2992_v18 = vrot.slane %v1414_v1, 7  ;;  %v2782_v19 = vperm.slane %v10091_v46, %v9134_v61 }
 0x15d   : > { %2951 = vst [vmem:[#allocation2 + $0x18] sm:$0x22] %v2950_v28  ;;  %v2959_v21 = vsel %vm9851_vm11, %v2754_v55, %v2958_v58  ;;  %v2962_v22 = vsel %vm9851_vm11, %v2758_v49, %v2961_v52  ;;  %v2965_v15 = vsel %vm9851_vm11, %v2762_v62, %v2964_v26  ;;  %v2968_v29 = vsel %vm9851_vm11, %v2766_v5, %v2967_v10  ;;  %v968_v26 = vpop.f32.mrf.mxu3 }
 0x15e   : > { %2954 = vst [vmem:[#allocation2 + $0x98] sm:$0x22] %v2953_v6  ;;  %v3005_v50 = vsel %vm1474_vm9, %v2990_v53, %v2991_v2  ;;  %v3012_v12 = vsel %vm1488_vm7, %v2990_v53, %v2991_v2  ;;  %v3019_v31 = vsel %vm1500_vm8, %v2990_v53, %v2991_v2  ;;  %vm12500_vm2 = vcmask 1041408  }
 0x15f   : > { %2957 = vst [vmem:[#allocation2 + $0x8] sm:$0x22] %v2956_v14  ;;  %v3002_v0 = vsel %vm12500_vm2, %v10031_v30, %v2989_v11  ;;  %v3011_v40 = vsel %vm1486_vm6, %v10054_v16, %v2989_v11  ;;  %v3007_v35 = vsel %vm1478_vm14, %v3005_v50, %v2992_v18  ;;  %vm12501_vm10 = vcmask 1045508   ;;  %v2979_v30 = vld [vmem:[#allocation2 + $0x150] sm:$0x22] }
 0x160   : > { %v3013_v57 = vsel %vm12501_vm10, %v3012_v12, %v2992_v18  ;;  %2960 = vst [vmem:[#allocation2] sm:$0x22] %v2959_v21  ;;  %v2971_v34 = vsel %vm9851_vm11, %v2770_v7, %v2970_v3  ;;  %vm12502_vm13 = vcmask 1042432   ;;  %vm12503_vm12 = vcmask 1043457   ;;  %v3344_v3 = vld [vmem:[#allocation2 + $0xd0] sm:$0x22] }
 0x161   : > { %v3008_v4 = vsel %vm12502_vm13, %v3002_v0, %v3007_v35  ;;  %v3014_v39 = vsel %vm12503_vm12, %v3011_v40, %v3013_v57  ;;  %vm12504_vm4 = vcmask 1046534   ;;  %2963 = vst [vmem:[#allocation2 + $0x78] sm:$0x22] %v2962_v22  ;;  %v3020_v16 = vsel %vm1502_vm1, %v3019_v31, %v2992_v18  ;;  %v3347_v0 = vld [vmem:[#allocation2 + $0x10] sm:$0x22] }
 0x162   : > { %v3026_v24 = vsel %vm12504_vm4, %v2990_v53, %v2991_v2  ;;  %v3065_v41 = vunpack.i.h.s16 %v3008_v4  ;;  %vm3336_vm5 = vsmask.f32 7942  ;;  %v927_v43 = vadd.f32 %v926_v42, %v9084_v60  ;;  %2966 = vst [vmem:[#allocation2 + $0x50] sm:$0x22] %v2965_v15  ;;  %v3341_v15 = vld [vmem:[#allocation2 + $0xb0] sm:$0x22] }
 0x163   : > { %v2974_v46 = vsel %vm9851_vm11, %v2774_v8, %v2973_v63  ;;  %v3016_v51 = vrot.slane %v3014_v39, 1  ;;  %vm3338_vm2 = vsmask.f32 7958  ;;  %v941_v38 = vadd.f32 %v940_v32, %v9084_v60  ;;  %2969 = vst [vmem:[#allocation2 + $0x68] sm:$0x22] %v2968_v29 }
 0x164   : > { %v2977_v48 = vsel %vm9851_vm11, %v2778_v13, %v2976_v20  ;;  %vm12505_vm10 = vcmask 1043458   ;;  %vm12506_vm13 = vcmask 1045504   ;;  %v8096_v54 = vpack.i.b16 %v3008_v4, %v3008_v4  ;;  %2972 = vst [vmem:[#allocation2 + $0x70] sm:$0x22] %v2971_v34  ;;  %v3350_v40 = vld [vmem:[#allocation2 + $0x48] sm:$0x22] }
 0x165   : > { %v3018_v56 = vsel %vm12505_vm10, %v10073_v47, %v2989_v11  ;;  %v3027_v17 = vsel %vm12506_vm13, %v2992_v18, %v3026_v24  ;;  %v2980_v36 = vsel %vm9851_vm11, %v2782_v19, %v2979_v30  ;;  %v2993_v55 = vrot.slane %v10102_v23, 3  ;;  %2975 = vst [vmem:[#allocation2 + $0x30] sm:$0x22] %v2974_v46  ;;  %vm10172_vm10 = vmand %vm1500_vm8, %vm3338_vm2  ;;  %v3353_v34 = vld [vmem:[#allocation2 + $0x160] sm:$0x22] }
 0x166   : > { %v3021_v49 = vsel %vm1504_vm15, %v3018_v56, %v3020_v16  ;;  %v3081_v62 = vpack.i.b16 %v3065_v41, %v3065_v41  ;;  %vm12507_vm12 = vcmask 1041409   ;;  %v3025_v47 = vsel %vm1478_vm14, %v10084_v37, %v2989_v11  ;;  %2978 = vst [vmem:[#allocation2 + $0x158] sm:$0x22] %v2977_v48  ;;  %v3356_v16 = vld [vmem:[#allocation2 + $0x128] sm:$0x22] }
 0x167   : > { %vm10164_vm4 = vmand %vm12507_vm12, %vm3336_vm5  ;;  %v1375_v33 = vmax.f32 %v927_v43, 0.0  ;;  %v955_v58 = vadd.f32 %v954_v9, %v9084_v60  ;;  %v3028_v5 = vsel %vm12426_vm0, %v3025_v47, %v3027_v17  ;;  %v3067_v28 = vunpack.i.h.s16 %v3016_v51  ;;  %2981 = vst [vmem:[#allocation2 + $0x150] sm:$0x22] %v2980_v36  ;;  %v3359_v46 = vld [vmem:[#allocation2 + $0x40] sm:$0x22] }
 0x168   : > { %v1376_v52 = vmax.f32 %v941_v38, 0.0  ;;  %v969_v53 = vadd.f32 %v968_v26, %v9084_v60  ;;  %v3023_v1 = vrot.slane %v3021_v49, 2  ;;  %v8097_v7 = vpack.i.b16 %v3016_v51, %v3016_v51  ;;  %vm10187_vm11 = vmor %vm10172_vm10, %vm10164_vm4  ;;  %v3362_v17 = vld [vmem:[#allocation2 + $0x178] sm:$0x22] }
 0x169   : > { %v3099_v37 = vperm.slane %v8096_v54, %v9105_v25  ;;  %v3103_v8 = vperm.slane %v8096_v54, %v9132_v59  ;;  %v3107_v6 = vperm.slane %v8096_v54, %v9134_v61  ;;  %v3111_v10 = vperm.slane %v3081_v62, %v9105_v25  ;;  %vm12514_vm5 = vmmov %vm12507_vm12 }
 0x16a   : > { %v10193_v13 = vsel %vm12425_vm3, %v10102_v23, %v2993_v55  ;;  %v3030_v14 = vrot.slane %v3028_v5, 3  ;;  %v3115_v2 = vperm.slane %v3081_v62, %v9132_v59  ;;  %v10198_v18 = vsel %vm12514_vm5, %v10102_v23, %v2993_v55 }
 0x16b   : > { %v1377_v19 = vmax.f32 %v955_v58, 0.0  ;;  %v10200_v21 = vpack.i.b16 %v3067_v28, %v3067_v28  ;;  %v3119_v22 = vperm.slane %v3081_v62, %v9134_v61  ;;  %v1437_v29 = vpack.c.bf16 %v1376_v52, %v1375_v33  ;;  %v3368_v33 = vld [vmem:[#allocation2 + $0x110] sm:$0x22] }
 0x16c   : > { %v1378_v50 = vmax.f32 %v969_v53, 0.0  ;;  %v3069_v12 = vunpack.i.h.s16 %v3023_v1  ;;  %v3123_v31 = vperm.slane %v8097_v7, %v9105_v25  ;;  %v3342_v42 = vsel %vm10187_vm11, %v3099_v37, %v3341_v15  ;;  %v3371_v28 = vld [vmem:[#allocation2 + $0x90] sm:$0x22]  ;;  %v10271_v15 = vpop.f32.mrf.mxu1 }
 0x16d   : > { %v3345_v63 = vsel %vm10187_vm11, %v3103_v8, %v3344_v3  ;;  %v3127_v35 = vperm.slane %v8097_v7, %v9132_v59  ;;  %3343 = vst [vmem:[#allocation2 + $0xb0] sm:$0x22] %v3342_v42  ;;  %v3348_v57 = vsel %vm10187_vm11, %v3107_v6, %v3347_v0  ;;  %v3351_v32 = vsel %vm10187_vm11, %v3111_v10, %v3350_v40  ;;  %v3374_v6 = vld [vmem:[#allocation2 + $0x118] sm:$0x22]  ;;  %v10264_v10 = vpop.f32.mrf.mxu0 }
 0x16e   : > { %vm12515_vm2 = vcmask 1042434   ;;  %v3071_v4 = vunpack.i.h.s16 %v3030_v14  ;;  %v10217_v39 = vpack.i.b16 %v3023_v1, %v3023_v1  ;;  %v3131_v24 = vperm.slane %v8097_v7, %v9134_v61  ;;  %3346 = vst [vmem:[#allocation2 + $0xd0] sm:$0x22] %v3345_v63  ;;  %v3383_v63 = vld [vmem:[#allocation2 + $0x58] sm:$0x22] }
 0x16f   : > { %v10215_v20 = vsel %vm12515_vm2, %v10102_v23, %v2993_v55  ;;  %v3354_v30 = vsel %vm10187_vm11, %v3115_v2, %v3353_v34  ;;  %v3135_v41 = vperm.slane %v10200_v21, %v9105_v25  ;;  %3349 = vst [vmem:[#allocation2 + $0x10] sm:$0x22] %v3348_v57  ;;  %v3357_v43 = vsel %vm10187_vm11, %v3119_v22, %v3356_v16  ;;  %v3377_v2 = vld [vmem:[#allocation2 + $0x148] sm:$0x22] }
 0x170   : > { %v10228_v51 = vsel %vm1474_vm9, %v10102_v23, %v2993_v55  ;;  %v1438_v38 = vpack.c.bf16 %v1378_v50, %v1377_v19  ;;  %v10230_v9 = vpack.i.b16 %v3069_v12, %v3069_v12  ;;  %v3139_v48 = vperm.slane %v10200_v21, %v9132_v59  ;;  %3352 = vst [vmem:[#allocation2 + $0x48] sm:$0x22] %v3351_v32  ;;  %v3365_v55 = vld [vmem:[#allocation2 + $0x108] sm:$0x22]  ;;  %v3386_v32 = vld [vmem:[#allocation2 + $0xd8] sm:$0x22] }
 0x171   : > { %v3360_v56 = vsel %vm10187_vm11, %v3123_v31, %v3359_v46  ;;  %v10236_v54 = vrot.slane %v1437_v29, 6  ;;  %v10238_v26 = vpack.i.b16 %v3030_v14, %v3030_v14  ;;  %v3143_v36 = vperm.slane %v10200_v21, %v9134_v61  ;;  %3355 = vst [vmem:[#allocation2 + $0x160] sm:$0x22] %v3354_v30  ;;  %v3389_v30 = vld [vmem:[#allocation2 + $0x80] sm:$0x22] }
 0x172   : > { %v3363_v23 = vsel %vm10187_vm11, %v3127_v35, %v3362_v17  ;;  %v2995_v49 = vrot.slane %v1437_v29, 1  ;;  %v10244_v62 = vpack.i.b16 %v3071_v4, %v3071_v4  ;;  %v3147_v44 = vperm.slane %v10217_v39, %v9105_v25  ;;  %3358 = vst [vmem:[#allocation2 + $0x128] sm:$0x22] %v3357_v43  ;;  %v3380_v29 = vld [vmem:[#allocation2 + $0x100] sm:$0x22] }
 0x173   : > { %v3151_v47 = vperm.slane %v10217_v39, %v9132_v59  ;;  %v3366_v27 = vsel %vm10187_vm11, %v3131_v24, %v3365_v55  ;;  %v3155_v58 = vperm.slane %v10217_v39, %v9134_v61  ;;  %3361 = vst [vmem:[#allocation2 + $0x40] sm:$0x22] %v3360_v56  ;;  %v3369_v5 = vsel %vm10187_vm11, %v3135_v41, %v3368_v33  ;;  %v3392_v43 = vld [vmem:[#allocation2 + $0x130] sm:$0x22]  ;;  %v3395_v17 = vld [vmem:[#allocation2 + $0x138] sm:$0x22] }
 0x174   : > { %v2996_v52 = vrot.slane %v1438_v38, 4  ;;  %v2997_v53 = vrot.slane %v1438_v38, 7  ;;  %v3159_v1 = vperm.slane %v10230_v9, %v9105_v25  ;;  %v3163_v7 = vperm.slane %v10230_v9, %v9132_v59  ;;  %3364 = vst [vmem:[#allocation2 + $0x178] sm:$0x22] %v3363_v23  ;;  %v3398_v55 = vld [vmem:[#allocation2 + $0x120] sm:$0x22] }
 0x175   : > { %v3167_v37 = vperm.slane %v10230_v9, %v9134_v61  ;;  %v3372_v8 = vsel %vm10187_vm11, %v3139_v48, %v3371_v28  ;;  %3367 = vst [vmem:[#allocation2 + $0x108] sm:$0x22] %v3366_v27  ;;  %v3375_v14 = vsel %vm10187_vm11, %v3143_v36, %v3374_v6  ;;  %v3378_v3 = vsel %vm10187_vm11, %v3147_v44, %v3377_v2  ;;  %v3401_v27 = vld [vmem:[#allocation2 + $0xe0] sm:$0x22]  ;;  %v3404_v28 = vld [vmem:[#allocation2 + $0xa8] sm:$0x22] }
 0x176   : > { %v3038_v19 = vsel %vm1474_vm9, %v2995_v49, %v2996_v52  ;;  %v3045_v21 = vsel %vm1488_vm7, %v2995_v49, %v2996_v52  ;;  %v3052_v22 = vsel %vm1500_vm8, %v2995_v49, %v2996_v52  ;;  %3370 = vst [vmem:[#allocation2 + $0x110] sm:$0x22] %v3369_v5  ;;  %vm12516_vm13 = vcmask 1041408   ;;  %v3410_v6 = vld [vmem:[#allocation2 + $0x168] sm:$0x22] }
 0x177   : > { %v3035_v50 = vsel %vm12516_vm13, %v10193_v13, %v10236_v54  ;;  %v3040_v12 = vsel %vm1478_vm14, %v3038_v19, %v2997_v53  ;;  %vm12517_vm12 = vcmask 1045508   ;;  %3373 = vst [vmem:[#allocation2 + $0x90] sm:$0x22] %v3372_v8  ;;  %v3381_v42 = vsel %vm10187_vm11, %v3151_v47, %v3380_v29  ;;  %v3413_v29 = vld [vmem:[#allocation2 + $0xe8] sm:$0x22] }
 0x178   : > { %v3046_v31 = vsel %vm12517_vm12, %v3045_v21, %v2997_v53  ;;  %v3044_v0 = vsel %vm1486_vm6, %v10198_v18, %v10236_v54  ;;  %vm12518_vm4 = vcmask 1042432   ;;  %vm12519_vm10 = vcmask 1046534   ;;  %3376 = vst [vmem:[#allocation2 + $0x118] sm:$0x22] %v3375_v14  ;;  %v1008_v21 = vpop.f32.mrf.mxu2 }
 0x179   : > { %v3041_v40 = vsel %vm12518_vm4, %v3035_v50, %v3040_v12  ;;  %v3059_v35 = vsel %vm12519_vm10, %v2995_v49, %v2996_v52  ;;  %v3171_v13 = vperm.slane %v10238_v26, %v9105_v25  ;;  %v3384_v57 = vsel %vm10187_vm11, %v3155_v58, %v3383_v63  ;;  %3379 = vst [vmem:[#allocation2 + $0x148] sm:$0x22] %v3378_v3  ;;  %v1022_v12 = vpop.f32.mrf.mxu3 }
 0x17a   : > { %vm12520_vm5 = vcmask 1043457   ;;  %v3053_v4 = vsel %vm1502_vm1, %v3052_v22, %v2997_v53  ;;  %v3175_v39 = vperm.slane %v10238_v26, %v9132_v59  ;;  %v3179_v18 = vperm.slane %v10238_v26, %v9134_v61  ;;  %3382 = vst [vmem:[#allocation2 + $0x100] sm:$0x22] %v3381_v42 }
 0x17b   : > { %v3047_v34 = vsel %vm12520_vm5, %v3044_v0, %v3046_v31  ;;  %v3387_v24 = vsel %vm10187_vm11, %v3159_v1, %v3386_v32  ;;  %v3073_v16 = vunpack.i.h.s16 %v3041_v40  ;;  %v3390_v41 = vsel %vm10187_vm11, %v3163_v7, %v3389_v30  ;;  %3385 = vst [vmem:[#allocation2 + $0x58] sm:$0x22] %v3384_v57  ;;  %v3416_v0 = vld [vmem:[#allocation2 + $0xf8] sm:$0x22]  ;;  %v3419_v57 = vld [vmem:[#allocation2 + $0x20] sm:$0x22] }
 0x17c   : > { %vm12521_vm2 = vcmask 1043458   ;;  %vm12522_vm13 = vcmask 1045504   ;;  %v8100_v9 = vpack.i.b16 %v3041_v40, %v3041_v40  ;;  %v3183_v48 = vperm.slane %v10244_v62, %v9105_v25  ;;  %3388 = vst [vmem:[#allocation2 + $0xd8] sm:$0x22] %v3387_v24 }
 0x17d   : > { %v3051_v46 = vsel %vm12521_vm2, %v10215_v20, %v10236_v54  ;;  %v3060_v38 = vsel %vm12522_vm13, %v2997_v53, %v3059_v35  ;;  %v3393_v56 = vsel %vm10187_vm11, %v3167_v37, %v3392_v43  ;;  %v3049_v26 = vrot.slane %v3047_v34, 1  ;;  %3391 = vst [vmem:[#allocation2 + $0x80] sm:$0x22] %v3390_v41  ;;  %v10330_v37 = vpop.f32.mrf.mxu1  ;;  %v3425_v41 = vld [vmem:[#allocation2 + $0xa0] sm:$0x22] }
 0x17e   : > { %v3054_v36 = vsel %vm1504_vm15, %v3051_v46, %v3053_v4  ;;  %v3187_v23 = vperm.slane %v10244_v62, %v9132_v59  ;;  %v3396_v20 = vsel %vm10187_vm11, %v3171_v13, %v3395_v17  ;;  %v3058_v49 = vsel %vm1478_vm14, %v10228_v51, %v10236_v54  ;;  %3394 = vst [vmem:[#allocation2 + $0x130] sm:$0x22] %v3393_v56  ;;  %v10325_v51 = vpop.f32.mrf.mxu0 }
 0x17f   : > { %v3191_v44 = vperm.slane %v10244_v62, %v9134_v61  ;;  %v3399_v47 = vsel %vm10187_vm11, %v3175_v39, %v3398_v55  ;;  %v3061_v33 = vsel %vm12426_vm0, %v3058_v49, %v3060_v38  ;;  %v3089_v58 = vpack.i.b16 %v3073_v16, %v3073_v16  ;;  %3397 = vst [vmem:[#allocation2 + $0x138] sm:$0x22] %v3396_v20  ;;  %v3407_v62 = vld [vmem:[#allocation2 + $0xb8] sm:$0x22]  ;;  %v3422_v39 = vld [vmem:[#allocation2 + $0x88] sm:$0x22] }
 0x180   : > { %v3402_v5 = vsel %vm10187_vm11, %v3179_v18, %v3401_v27  ;;  %v3056_v52 = vrot.slane %v3054_v36, 2  ;;  %v3195_v53 = vperm.slane %v8100_v9, %v9105_v25  ;;  %v3405_v54 = vsel %vm10187_vm11, %v3183_v48, %v3404_v28  ;;  %3400 = vst [vmem:[#allocation2 + $0x120] sm:$0x22] %v3399_v47  ;;  %v3428_v48 = vld [vmem:[#allocation2 + $0x170] sm:$0x22] }
 0x181   : > { %v3075_v1 = vunpack.i.h.s16 %v3049_v26  ;;  %v3199_v7 = vperm.slane %v8100_v9, %v9132_v59  ;;  %v3408_v8 = vsel %vm10187_vm11, %v3187_v23, %v3407_v62  ;;  %v3063_v14 = vrot.slane %v3061_v33, 3  ;;  %3403 = vst [vmem:[#allocation2 + $0xe0] sm:$0x22] %v3402_v5  ;;  %v3431_v23 = vld [vmem:[#allocation2 + $0xf0] sm:$0x22] }
 0x182   : > { %v10334_v2 = vpack.i.b16 %v3049_v26, %v3049_v26  ;;  %v3203_v19 = vperm.slane %v8100_v9, %v9134_v61  ;;  %v3411_v22 = vsel %vm10187_vm11, %v3191_v44, %v3410_v6  ;;  %v3207_v3 = vperm.slane %v3089_v58, %v9105_v25  ;;  %3406 = vst [vmem:[#allocation2 + $0xa8] sm:$0x22] %v3405_v54  ;;  %v3434_v27 = vld [vmem:[#allocation2 + $0x140] sm:$0x22] }
 0x183   : > { %v10342_v50 = vadd.f32 %v10264_v10, %v9076_v45  ;;  %v3077_v31 = vunpack.i.h.s16 %v3056_v52  ;;  %v3211_v42 = vperm.slane %v3089_v58, %v9132_v59  ;;  %v3414_v63 = vsel %vm10187_vm11, %v3195_v53, %v3413_v29  ;;  %3409 = vst [vmem:[#allocation2 + $0xb8] sm:$0x22] %v3408_v8  ;;  %v3437_v53 = vld [vmem:[#allocation2 + $0x60] sm:$0x22]  ;;  %v3440_v8 = vld [vmem:[#allocation2 + $0xc8] sm:$0x22] }
 0x184   : > { %v995_v40 = vadd.f32 %v10271_v15, %v9076_v45  ;;  %v10349_v35 = vpack.i.b16 %v3075_v1, %v3075_v1  ;;  %v3215_v13 = vperm.slane %v3089_v58, %v9134_v61  ;;  %v3417_v10 = vsel %vm10187_vm11, %v3199_v7, %v3416_v0  ;;  %3412 = vst [vmem:[#allocation2 + $0x168] sm:$0x22] %v3411_v22  ;;  %v1010_v22 = vpop.f32.mrf.mxu2 }
 0x185   : > { %v10355_v32 = vadd.f32 %v1008_v21, %v9076_v45  ;;  %v3079_v34 = vunpack.i.h.s16 %v3063_v14  ;;  %v3219_v4 = vperm.slane %v10334_v2, %v9105_v25  ;;  %v3420_v15 = vsel %vm10187_vm11, %v3203_v19, %v3419_v57  ;;  %3415 = vst [vmem:[#allocation2 + $0xe8] sm:$0x22] %v3414_v63  ;;  %v1050_v54 = vpop.f32.mrf.mxu1  ;;  %v3443_v19 = vld [vmem:[#allocation2 + $0x28] sm:$0x22]  ;;  %v3449_v63 = vld [vmem:[#allocation2 + $0xc0] sm:$0x22] }
 0x186   : > { %v10362_v18 = vadd.f32 %v1022_v12, %v9076_v45  ;;  %v10364_v24 = vpack.i.b16 %v3056_v52, %v3056_v52  ;;  %v3223_v30 = vperm.slane %v10334_v2, %v9132_v59  ;;  %v3423_v16 = vsel %vm10187_vm11, %v3207_v3, %v3422_v39  ;;  %3418 = vst [vmem:[#allocation2 + $0xf8] sm:$0x22] %v3417_v10  ;;  %v1036_v33 = vpop.f32.mrf.mxu0  ;;  %v1024_v3 = vpop.f32.mrf.mxu3  ;;  %v3455_v10 = vld [vmem:[#allocation2 + $0x98] sm:$0x22] }
 0x187   : > { %v1331_v43 = vmax.f32 %v10342_v50, 0.0  ;;  %v10371_v46 = vpack.i.b16 %v3077_v31, %v3077_v31  ;;  %v3227_v38 = vperm.slane %v10334_v2, %v9134_v61  ;;  %v3426_v9 = vsel %vm10187_vm11, %v3211_v42, %v3425_v41  ;;  %3421 = vst [vmem:[#allocation2 + $0x20] sm:$0x22] %v3420_v15  ;;  %v3446_v42 = vld [vmem:[#allocation2 + $0x38] sm:$0x22] }
 0x188   : > { %v1332_v56 = vmax.f32 %v995_v40, 0.0  ;;  %v10377_v17 = vpack.i.b16 %v3063_v14, %v3063_v14  ;;  %v3231_v26 = vperm.slane %v10349_v35, %v9105_v25  ;;  %v3429_v36 = vsel %vm10187_vm11, %v3215_v13, %v3428_v48  ;;  %3424 = vst [vmem:[#allocation2 + $0x88] sm:$0x22] %v3423_v16  ;;  %v3452_v13 = vld [vmem:[#allocation2 + $0x18] sm:$0x22] }
 0x189   : > { %v1333_v20 = vmax.f32 %v10355_v32, 0.0  ;;  %v10384_v55 = vpack.i.b16 %v3079_v34, %v3079_v34  ;;  %v3235_v49 = vperm.slane %v10349_v35, %v9132_v59  ;;  %v3239_v44 = vperm.slane %v10349_v35, %v9134_v61  ;;  %3427 = vst [vmem:[#allocation2 + $0xa0] sm:$0x22] %v3426_v9  ;;  %v3461_v15 = vld [vmem:[#allocation2] sm:$0x22] }
 0x18a   : > { %v3432_v47 = vsel %vm10187_vm11, %v3219_v4, %v3431_v23  ;;  %v3243_v58 = vperm.slane %v10364_v24, %v9105_v25  ;;  %v3247_v5 = vperm.slane %v10364_v24, %v9132_v59  ;;  %v3251_v28 = vperm.slane %v10364_v24, %v9134_v61  ;;  %3430 = vst [vmem:[#allocation2 + $0x170] sm:$0x22] %v3429_v36  ;;  %v3458_v4 = vld [vmem:[#allocation2 + $0x8] sm:$0x22]  ;;  %v3464_v16 = vld [vmem:[#allocation2 + $0x78] sm:$0x22] }
 0x18b   : > { %v3435_v52 = vsel %vm10187_vm11, %v3223_v30, %v3434_v27  ;;  %v3255_v62 = vperm.slane %v10371_v46, %v9105_v25  ;;  %v3259_v1 = vperm.slane %v10371_v46, %v9132_v59  ;;  %v3438_v7 = vsel %vm10187_vm11, %v3227_v38, %v3437_v53  ;;  %3433 = vst [vmem:[#allocation2 + $0xf0] sm:$0x22] %v3432_v47  ;;  %v3467_v9 = vld [vmem:[#allocation2 + $0x50] sm:$0x22]  ;;  %v3470_v48 = vld [vmem:[#allocation2 + $0x68] sm:$0x22] }
 0x18c   : > { %v1334_v6 = vmax.f32 %v10362_v18, 0.0  ;;  %v3263_v14 = vperm.slane %v10371_v46, %v9134_v61  ;;  %v3441_v2 = vsel %vm10187_vm11, %v3231_v26, %v3440_v8  ;;  %v10411_v21 = vpack.c.bf16 %v1332_v56, %v1331_v43  ;;  %3436 = vst [vmem:[#allocation2 + $0x140] sm:$0x22] %v3435_v52  ;;  %v3473_v36 = vld [vmem:[#allocation2 + $0x70] sm:$0x22] }
 0x18d   : > { %v1037_v29 = vadd.f32 %v1036_v33, %v9076_v45  ;;  %v3267_v50 = vperm.slane %v10377_v17, %v9105_v25  ;;  %v3271_v12 = vperm.slane %v10377_v17, %v9132_v59  ;;  %v3444_v31 = vsel %vm10187_vm11, %v3235_v49, %v3443_v19  ;;  %3439 = vst [vmem:[#allocation2 + $0x60] sm:$0x22] %v3438_v7  ;;  %v3482_v7 = vld [vmem:[#allocation2 + $0x150] sm:$0x22] }
 0x18e   : > { %v1051_v0 = vadd.f32 %v1050_v54, %v9076_v45  ;;  %v3275_v40 = vperm.slane %v10377_v17, %v9134_v61  ;;  %v3447_v35 = vsel %vm10187_vm11, %v3239_v44, %v3446_v42  ;;  %v983_v57 = vadd.f32 %v10325_v51, %v9084_v60  ;;  %3442 = vst [vmem:[#allocation2 + $0xc8] sm:$0x22] %v3441_v2 }
 0x18f   : > { %v997_v32 = vadd.f32 %v10330_v37, %v9084_v60  ;;  %v3450_v34 = vsel %vm10187_vm11, %v3243_v58, %v3449_v63  ;;  %v1416_v39 = vpack.c.bf16 %v1334_v6, %v1333_v20  ;;  %v1011_v18 = vadd.f32 %v1010_v22, %v9084_v60  ;;  %3445 = vst [vmem:[#allocation2 + $0x28] sm:$0x22] %v3444_v31  ;;  %v3476_v58 = vld [vmem:[#allocation2 + $0x30] sm:$0x22] }
 0x190   : > { %v1025_v24 = vadd.f32 %v1024_v3, %v9084_v60  ;;  %v3279_v30 = vperm.slane %v10384_v55, %v9105_v25  ;;  %v3453_v51 = vsel %vm10187_vm11, %v3247_v5, %v3452_v13  ;;  %v3491_v37 = vrot.slane %v10411_v21, 3  ;;  %3448 = vst [vmem:[#allocation2 + $0x38] sm:$0x22] %v3447_v35  ;;  %v3479_v5 = vld [vmem:[#allocation2 + $0x158] sm:$0x22] }
 0x191   : > { %v1335_v41 = vmax.f32 %v1037_v29, 0.0  ;;  %v3283_v43 = vperm.slane %v10384_v55, %v9132_v59  ;;  %v3287_v46 = vperm.slane %v10384_v55, %v9134_v61  ;;  %v3456_v38 = vsel %vm10187_vm11, %v3251_v28, %v3455_v10  ;;  %3451 = vst [vmem:[#allocation2 + $0xc0] sm:$0x22] %v3450_v34 }
 0x192   : > { %v1336_v56 = vmax.f32 %v1051_v0, 0.0  ;;  %v3459_v17 = vsel %vm10187_vm11, %v3255_v62, %v3458_v4  ;;  %v3462_v26 = vsel %vm10187_vm11, %v3259_v1, %v3461_v15  ;;  %v1379_v23 = vmax.f32 %v983_v57, 0.0  ;;  %3454 = vst [vmem:[#allocation2 + $0x18] sm:$0x22] %v3453_v51 }
 0x193   : > { %v1380_v20 = vmax.f32 %v997_v32, 0.0  ;;  %v3465_v55 = vsel %vm10187_vm11, %v3263_v14, %v3464_v16  ;;  %v3492_v49 = vrot.slane %v1416_v39, 6  ;;  %v1381_v44 = vmax.f32 %v1011_v18, 0.0  ;;  %3457 = vst [vmem:[#allocation2 + $0x98] sm:$0x22] %v3456_v38  ;;  %v1064_v32 = vpop.f32.mrf.mxu2 }
 0x194   : > { %v1382_v47 = vmax.f32 %v1025_v24, 0.0  ;;  %v3468_v27 = vsel %vm10187_vm11, %v3267_v50, %v3467_v9  ;;  %v3471_v33 = vsel %vm10187_vm11, %v3271_v12, %v3470_v48  ;;  %v3503_v28 = vsel %vm12425_vm3, %v10411_v21, %v3491_v37  ;;  %3460 = vst [vmem:[#allocation2 + $0x8] sm:$0x22] %v3459_v17 }
 0x195   : > { %v1417_v52 = vpack.c.bf16 %v1336_v56, %v1335_v41  ;;  %v3474_v53 = vsel %vm10187_vm11, %v3275_v40, %v3473_v36  ;;  %v3477_v54 = vsel %vm10187_vm11, %v3279_v30, %v3476_v58  ;;  %v3480_v62 = vsel %vm10187_vm11, %v3283_v43, %v3479_v5  ;;  %3463 = vst [vmem:[#allocation2] sm:$0x22] %v3462_v26  ;;  %v1038_v41 = vpop.f32.mrf.mxu0 }
 0x196   : > { %v3493_v1 = vrot.slane %v1416_v39, 1  ;;  %vm12523_vm12 = vcmask 1041409   ;;  %v1439_v6 = vpack.c.bf16 %v1380_v20, %v1379_v23  ;;  %3466 = vst [vmem:[#allocation2 + $0x78] sm:$0x22] %v3465_v55  ;;  %v3483_v19 = vsel %vm10187_vm11, %v3287_v46, %v3482_v7  ;;  %v1078_v39 = vpop.f32.mrf.mxu3 }
 0x197   : > { %v3513_v8 = vsel %vm12523_vm12, %v10411_v21, %v3491_v37  ;;  %v3494_v14 = vrot.slane %v1417_v52, 4  ;;  %v3495_v2 = vrot.slane %v1417_v52, 7  ;;  %vm12524_vm4 = vcmask 1041408   ;;  %3469 = vst [vmem:[#allocation2 + $0x50] sm:$0x22] %v3468_v27 }
 0x198   : > { %v3505_v22 = vsel %vm12524_vm4, %v3503_v28, %v3492_v49  ;;  %vm12525_vm10 = vcmask 1042434   ;;  %v1440_v29 = vpack.c.bf16 %v1382_v47, %v1381_v44  ;;  %vm12526_vm5 = vcmask 1046534   ;;  %3472 = vst [vmem:[#allocation2 + $0x68] sm:$0x22] %v3471_v33  ;;  %v1052_v44 = vpop.f32.mrf.mxu1 }
 0x199   : > { %v3520_v3 = vsel %vm12525_vm10, %v10411_v21, %v3491_v37  ;;  %v3508_v50 = vsel %vm1474_vm9, %v3493_v1, %v3494_v14  ;;  %v3515_v12 = vsel %vm1488_vm7, %v3493_v1, %v3494_v14  ;;  %v3522_v31 = vsel %vm1500_vm8, %v3493_v1, %v3494_v14  ;;  %3475 = vst [vmem:[#allocation2 + $0x70] sm:$0x22] %v3474_v53 }
 0x19a   : > { %v3529_v42 = vsel %vm12526_vm5, %v3493_v1, %v3494_v14  ;;  %v3514_v63 = vsel %vm1486_vm6, %v3513_v8, %v3492_v49  ;;  %v3510_v11 = vsel %vm1478_vm14, %v3508_v50, %v3495_v2  ;;  %vm12527_vm11 = vcmask 1045508   ;;  %3478 = vst [vmem:[#allocation2 + $0x30] sm:$0x22] %v3477_v54  ;;  %v3849_v1 = vld [vmem:[#allocation2 + $0xd0] sm:$0x44] }
 0x19b   : > { %v3516_v0 = vsel %vm12527_vm11, %v3515_v12, %v3495_v2  ;;  %v3523_v40 = vsel %vm1502_vm1, %v3522_v31, %v3495_v2  ;;  %v3527_v35 = vsel %vm1474_vm9, %v10411_v21, %v3491_v37  ;;  %v3496_v13 = vrot.slane %v1439_v6, 3  ;;  %3481 = vst [vmem:[#allocation2 + $0x158] sm:$0x22] %v3480_v62  ;;  %v3846_v62 = vld [vmem:[#allocation2 + $0xb0] sm:$0x44] }
 0x19c   : > { %vm12528_vm2 = vcmask 1042432   ;;  %vm12529_vm13 = vcmask 1043457   ;;  %vm12530_vm12 = vcmask 1043458   ;;  %vm12531_vm4 = vcmask 1045504   ;;  %3484 = vst [vmem:[#allocation2 + $0x150] sm:$0x22] %v3483_v19 }
 0x19d   : > { %v3511_v10 = vsel %vm12528_vm2, %v3505_v22, %v3510_v11  ;;  %v3517_v57 = vsel %vm12529_vm13, %v3514_v63, %v3516_v0  ;;  %v3521_v34 = vsel %vm12530_vm12, %v3520_v3, %v3492_v49  ;;  %v3530_v4 = vsel %vm12531_vm4, %v3495_v2, %v3529_v42  ;;  %v3855_v14 = vld [vmem:[#allocation2 + $0x48] sm:$0x44] }
 0x19e   : > { %v3568_v15 = vunpack.i.h.s16 %v3511_v10  ;;  %vm3840_vm10 = vsmask.f32 2304  ;;  %v3497_v18 = vrot.slane %v1440_v29, 6  ;;  %v3519_v24 = vrot.slane %v3517_v57, 1  ;;  %v3861_v0 = vld [vmem:[#allocation2 + $0x128] sm:$0x44] }
 0x19f   : > { %v3524_v30 = vsel %vm1504_vm15, %v3521_v34, %v3523_v40  ;;  %vm3843_vm5 = vsmask.f32 6400  ;;  %v3528_v21 = vsel %vm1478_vm14, %v3527_v35, %v3492_v49  ;;  %v10485_v51 = vrot.slane %v1440_v29, 1  ;;  %v3858_v29 = vld [vmem:[#allocation2 + $0x160] sm:$0x44] }
 0x1a0   : > { %v8104_v16 = vpack.i.b16 %v3511_v10, %v3511_v10  ;;  %v1065_v37 = vadd.f32 %v1064_v32, %v9076_v45  ;;  %v3536_v43 = vsel %vm12425_vm3, %v1439_v6, %v3496_v13  ;;  %v3531_v46 = vsel %vm12426_vm0, %v3528_v21, %v3530_v4  ;;  %v3864_v57 = vld [vmem:[#allocation2 + $0x40] sm:$0x44]  ;;  %v3870_v21 = vld [vmem:[#allocation2 + $0x108] sm:$0x44] }
 0x1a1   : > { %v3584_v38 = vpack.i.b16 %v3568_v15, %v3568_v15  ;;  %vm12532_vm11 = vcmask 1042434   ;;  %v1079_v48 = vadd.f32 %v1078_v39, %v9076_v45  ;;  %vm12535_vm13 = vcmask 1041409   ;;  %v3867_v15 = vld [vmem:[#allocation2 + $0x178] sm:$0x44] }
 0x1a2   : > { %vm10492_vm2 = vmand %vm12532_vm11, %vm3840_vm10  ;;  %v3546_v56 = vsel %vm12535_vm13, %v1439_v6, %v3496_v13  ;;  %v3560_v26 = vsel %vm1474_vm9, %v1439_v6, %v3496_v13  ;;  %v3526_v36 = vrot.slane %v3524_v30, 2  ;;  %vm12537_vm4 = vcmask 1046534  }
 0x1a3   : > { %vm12536_vm12 = vmmov %vm12532_vm11  ;;  %vm12538_vm0 = vcmask 1041408   ;;  %v10506_v20 = vsel %vm1486_vm6, %v3546_v56, %v3497_v18  ;;  %v3570_v55 = vunpack.i.h.s16 %v3519_v24  ;;  %v10509_v49 = vadd.f32 %v1038_v41, %v9084_v60 }
 0x1a4   : > { %v3553_v17 = vsel %vm12536_vm12, %v1439_v6, %v3496_v13  ;;  %vm3844_vm3 = vmand %vm12537_vm4, %vm3843_vm5  ;;  %v10503_v23 = vsel %vm12538_vm0, %v3536_v43, %v3497_v18  ;;  %v3533_v47 = vrot.slane %v3531_v46, 3  ;;  %v8105_v27 = vpack.i.b16 %v3519_v24, %v3519_v24  ;;  %v3852_v6 = vld [vmem:[#allocation2 + $0x10] sm:$0x44] }
 0x1a5   : > { %v3602_v33 = vperm.slane %v8104_v16, %v9105_v25  ;;  %v3606_v58 = vperm.slane %v8104_v16, %v9132_v59  ;;  %vm12539_vm10 = vcmask 1043458   ;;  %v10517_v28 = vsel %vm1478_vm14, %v3560_v26, %v3497_v18  ;;  %vm10523_vm0 = vmor %vm3844_vm3, %vm10492_vm2  ;;  %v3876_v26 = vld [vmem:[#allocation2 + $0x90] sm:$0x44] }
 0x1a6   : > { %v10514_v5 = vsel %vm12539_vm10, %v3553_v17, %v3497_v18  ;;  %v3610_v52 = vperm.slane %v8104_v16, %v9134_v61  ;;  %v3614_v53 = vperm.slane %v3584_v38, %v9105_v25  ;;  %v3572_v7 = vunpack.i.h.s16 %v3526_v36  ;;  %vm12542_vm3 = vmmov %vm12537_vm4 }
 0x1a7   : > { %v3618_v8 = vperm.slane %v3584_v38, %v9132_v59  ;;  %v1337_v2 = vmax.f32 %v1065_v37, 0.0  ;;  %v1053_v19 = vadd.f32 %v1052_v44, %v9084_v60  ;;  %v10529_v22 = vpack.i.b16 %v3570_v55, %v3570_v55  ;;  %v3879_v44 = vld [vmem:[#allocation2 + $0x118] sm:$0x44] }
 0x1a8   : > { %v3622_v3 = vperm.slane %v3584_v38, %v9134_v61  ;;  %v1338_v50 = vmax.f32 %v1079_v48, 0.0  ;;  %v1383_v12 = vmax.f32 %v10509_v49, 0.0  ;;  %v3574_v31 = vunpack.i.h.s16 %v3533_v47  ;;  %v3873_v38 = vld [vmem:[#allocation2 + $0x110] sm:$0x44] }
 0x1a9   : > { %v3626_v42 = vperm.slane %v8105_v27, %v9105_v25  ;;  %v3847_v63 = vsel %vm10523_vm0, %v3602_v33, %v3846_v62  ;;  %v3850_v11 = vsel %vm10523_vm0, %v3606_v58, %v3849_v1  ;;  %v10538_v40 = vpack.i.b16 %v3526_v36, %v3526_v36 }
 0x1aa   : > { %v3630_v35 = vperm.slane %v8105_v27, %v9132_v59  ;;  %3848 = vst [vmem:[#allocation2 + $0xb0] sm:$0x44] %v3847_v63  ;;  %v3853_v13 = vsel %vm10523_vm0, %v3610_v52, %v3852_v6  ;;  %v3856_v10 = vsel %vm10523_vm0, %v3614_v53, %v3855_v14  ;;  %v10545_v32 = vpack.i.b16 %v3572_v7, %v3572_v7  ;;  %v3885_v7 = vld [vmem:[#allocation2 + $0x100] sm:$0x44] }
 0x1ab   : > { %v3634_v34 = vperm.slane %v8105_v27, %v9134_v61  ;;  %3851 = vst [vmem:[#allocation2 + $0xd0] sm:$0x44] %v3850_v11  ;;  %v3859_v4 = vsel %vm10523_vm0, %v3618_v8, %v3858_v29  ;;  %v1384_v39 = vmax.f32 %v1053_v19, 0.0  ;;  %v10550_v18 = vpack.i.b16 %v3533_v47, %v3533_v47  ;;  %v3882_v47 = vld [vmem:[#allocation2 + $0x148] sm:$0x44] }
 0x1ac   : > { %v3638_v24 = vperm.slane %v10529_v22, %v9105_v25  ;;  %3854 = vst [vmem:[#allocation2 + $0x10] sm:$0x44] %v3853_v13  ;;  %v3862_v30 = vsel %vm10523_vm0, %v3622_v3, %v3861_v0  ;;  %v10556_v16 = vpack.c.bf16 %v1338_v50, %v1337_v2  ;;  %v10558_v37 = vpack.i.b16 %v3574_v31, %v3574_v31  ;;  %v3888_v3 = vld [vmem:[#allocation2 + $0x58] sm:$0x44]  ;;  %v3894_v0 = vld [vmem:[#allocation2 + $0x80] sm:$0x44] }
 0x1ad   : > { %v3642_v41 = vperm.slane %v10529_v22, %v9132_v59  ;;  %v3646_v43 = vperm.slane %v10529_v22, %v9134_v61  ;;  %3857 = vst [vmem:[#allocation2 + $0x48] sm:$0x44] %v3856_v10  ;;  %v3865_v46 = vsel %vm10523_vm0, %v3626_v42, %v3864_v57  ;;  %v3650_v9 = vperm.slane %v10538_v40, %v9105_v25  ;;  %v3891_v29 = vld [vmem:[#allocation2 + $0xd8] sm:$0x44]  ;;  %v1066_v57 = vpop.f32.mrf.mxu2 }
 0x1ae   : > { %v3654_v48 = vperm.slane %v10538_v40, %v9132_v59  ;;  %v3658_v56 = vperm.slane %v10538_v40, %v9134_v61  ;;  %3860 = vst [vmem:[#allocation2 + $0x160] sm:$0x44] %v3859_v4  ;;  %v3868_v17 = vsel %vm10523_vm0, %v3630_v35, %v3867_v15  ;;  %v3662_v36 = vperm.slane %v10545_v32, %v9105_v25  ;;  %v3900_v50 = vld [vmem:[#allocation2 + $0x138] sm:$0x44]  ;;  %v3897_v40 = vld [vmem:[#allocation2 + $0x130] sm:$0x44] }
 0x1af   : > { %v3666_v55 = vperm.slane %v10545_v32, %v9132_v59  ;;  %3863 = vst [vmem:[#allocation2 + $0x128] sm:$0x44] %v3862_v30  ;;  %v3871_v49 = vsel %vm10523_vm0, %v3634_v34, %v3870_v21  ;;  %v1441_v27 = vpack.c.bf16 %v1384_v39, %v1383_v12  ;;  %v3670_v33 = vperm.slane %v10545_v32, %v9134_v61  ;;  %v1080_v32 = vpop.f32.mrf.mxu3  ;;  %v3903_v4 = vld [vmem:[#allocation2 + $0x120] sm:$0x44]  ;;  %v3909_v21 = vld [vmem:[#allocation2 + $0xa8] sm:$0x44] }
 0x1b0   : > { %v3674_v58 = vperm.slane %v10550_v18, %v9105_v25  ;;  %v3678_v52 = vperm.slane %v10550_v18, %v9132_v59  ;;  %3866 = vst [vmem:[#allocation2 + $0x40] sm:$0x44] %v3865_v46  ;;  %v3874_v53 = vsel %vm10523_vm0, %v3638_v24, %v3873_v38  ;;  %v3682_v62 = vperm.slane %v10550_v18, %v9134_v61 }
 0x1b1   : > { %3869 = vst [vmem:[#allocation2 + $0x178] sm:$0x44] %v3868_v17  ;;  %v3877_v1 = vsel %vm10523_vm0, %v3642_v41, %v3876_v26  ;;  %v3499_v8 = vrot.slane %v1441_v27, 4  ;;  %v3500_v6 = vrot.slane %v1441_v27, 7  ;;  %v3686_v14 = vperm.slane %v10558_v37, %v9105_v25  ;;  %v3912_v41 = vld [vmem:[#allocation2 + $0xb8] sm:$0x44] }
 0x1b2   : > { %v3690_v2 = vperm.slane %v10558_v37, %v9132_v59  ;;  %3872 = vst [vmem:[#allocation2 + $0x108] sm:$0x44] %v3871_v49  ;;  %v3880_v19 = vsel %vm10523_vm0, %v3646_v43, %v3879_v44  ;;  %v3883_v22 = vsel %vm10523_vm0, %v3650_v9, %v3882_v47  ;;  %v3886_v11 = vsel %vm10523_vm0, %v3654_v48, %v3885_v7  ;;  %v1092_v44 = vpop.f32.mrf.mxu0  ;;  %v1106_v47 = vpop.f32.mrf.mxu1 }
 0x1b3   : > { %3875 = vst [vmem:[#allocation2 + $0x110] sm:$0x44] %v3874_v53  ;;  %v3541_v12 = vsel %vm1474_vm9, %v10485_v51, %v3499_v8  ;;  %v3548_v31 = vsel %vm1488_vm7, %v10485_v51, %v3499_v8  ;;  %v3555_v42 = vsel %vm1500_vm8, %v10485_v51, %v3499_v8  ;;  %v3562_v63 = vsel %vm12542_vm3, %v10485_v51, %v3499_v8  ;;  %v3906_v51 = vld [vmem:[#allocation2 + $0xe0] sm:$0x44] }
 0x1b4   : > { %3878 = vst [vmem:[#allocation2 + $0x90] sm:$0x44] %v3877_v1  ;;  %v3543_v35 = vsel %vm1478_vm14, %v3541_v12, %v3500_v6  ;;  %vm12543_vm5 = vcmask 1045508   ;;  %v3556_v10 = vsel %vm1502_vm1, %v3555_v42, %v3500_v6  ;;  %v3889_v34 = vsel %vm10523_vm0, %v3658_v56, %v3888_v3  ;;  %v3918_v3 = vld [vmem:[#allocation2 + $0xe8] sm:$0x44] }
 0x1b5   : > { %v3549_v13 = vsel %vm12543_vm5, %v3548_v31, %v3500_v6  ;;  %3881 = vst [vmem:[#allocation2 + $0x118] sm:$0x44] %v3880_v19  ;;  %vm12544_vm11 = vcmask 1042432   ;;  %vm12545_vm2 = vcmask 1043457   ;;  %vm12546_vm13 = vcmask 1045504  }
 0x1b6   : > { %v3544_v15 = vsel %vm12544_vm11, %v10503_v23, %v3543_v35  ;;  %v3550_v39 = vsel %vm12545_vm2, %v10506_v20, %v3549_v13  ;;  %v3563_v18 = vsel %vm12546_vm13, %v3500_v6, %v3562_v63  ;;  %v3694_v24 = vperm.slane %v10558_v37, %v9134_v61  ;;  %3884 = vst [vmem:[#allocation2 + $0x148] sm:$0x44] %v3883_v22  ;;  %v3915_v20 = vld [vmem:[#allocation2 + $0x168] sm:$0x44]  ;;  %v3924_v31 = vld [vmem:[#allocation2 + $0x20] sm:$0x44] }
 0x1b7   : > { %v3892_v30 = vsel %vm10523_vm0, %v3662_v36, %v3891_v29  ;;  %v3557_v43 = vsel %vm1504_vm15, %v10514_v5, %v3556_v10  ;;  %v3576_v46 = vunpack.i.h.s16 %v3544_v15  ;;  %3887 = vst [vmem:[#allocation2 + $0x100] sm:$0x44] %v3886_v11  ;;  %v3895_v23 = vsel %vm10523_vm0, %v3666_v55, %v3894_v0  ;;  %v3921_v29 = vld [vmem:[#allocation2 + $0xf8] sm:$0x44]  ;;  %v1120_v0 = vpop.f32.mrf.mxu2  ;;  %v3927_v10 = vld [vmem:[#allocation2 + $0x88] sm:$0x44] }
 0x1b8   : > { %v3552_v38 = vrot.slane %v3550_v39, 1  ;;  %v1067_v9 = vadd.f32 %v1066_v57, %v9084_v60  ;;  %v1081_v37 = vadd.f32 %v1080_v32, %v9084_v60  ;;  %3890 = vst [vmem:[#allocation2 + $0x58] sm:$0x44] %v3889_v34  ;;  %v3898_v48 = vsel %vm10523_vm0, %v3670_v33, %v3897_v40  ;;  %v1134_v32 = vpop.f32.mrf.mxu3 }
 0x1b9   : > { %v3901_v56 = vsel %vm10523_vm0, %v3674_v58, %v3900_v50  ;;  %vm12547_vm12 = vcmask 1045507   ;;  %v8108_v17 = vpack.i.b16 %v3544_v15, %v3544_v15  ;;  %3893 = vst [vmem:[#allocation2 + $0xd8] sm:$0x44] %v3892_v30  ;;  %v3904_v26 = vsel %vm10523_vm0, %v3678_v52, %v3903_v4  ;;  %v3930_v15 = vld [vmem:[#allocation2 + $0xa0] sm:$0x44] }
 0x1ba   : > { %v3564_v5 = vsel %vm12547_vm12, %v10517_v28, %v3563_v18  ;;  %v3907_v36 = vsel %vm10523_vm0, %v3682_v62, %v3906_v51  ;;  %v3996_v55 = vrot.slane %v10556_v16, 3  ;;  %v3559_v49 = vrot.slane %v3557_v43, 2  ;;  %3896 = vst [vmem:[#allocation2 + $0x80] sm:$0x44] %v3895_v23  ;;  %v3933_v30 = vld [vmem:[#allocation2 + $0x170] sm:$0x44] }
 0x1bb   : > { %v3910_v27 = vsel %vm10523_vm0, %v3686_v14, %v3909_v21  ;;  %v3913_v28 = vsel %vm10523_vm0, %v3690_v2, %v3912_v41  ;;  %v3916_v33 = vsel %vm10523_vm0, %v3694_v24, %v3915_v20  ;;  %v3592_v58 = vpack.i.b16 %v3576_v46, %v3576_v46  ;;  %3899 = vst [vmem:[#allocation2 + $0x130] sm:$0x44] %v3898_v48  ;;  %v3936_v23 = vld [vmem:[#allocation2 + $0xf0] sm:$0x44] }
 0x1bc   : > { %v3566_v52 = vrot.slane %v3564_v5, 3  ;;  %v3578_v53 = vunpack.i.h.s16 %v3552_v38  ;;  %v1385_v62 = vmax.f32 %v1067_v9, 0.0  ;;  %v1386_v1 = vmax.f32 %v1081_v37, 0.0  ;;  %3902 = vst [vmem:[#allocation2 + $0x138] sm:$0x44] %v3901_v56 }
 0x1bd   : > { %v3698_v7 = vperm.slane %v8108_v17, %v9105_v25  ;;  %v3702_v8 = vperm.slane %v8108_v17, %v9132_v59  ;;  %v10650_v6 = vadd.f32 %v1092_v44, %v9076_v45  ;;  %v10653_v14 = vadd.f32 %v1106_v47, %v9076_v45  ;;  %3905 = vst [vmem:[#allocation2 + $0x120] sm:$0x44] %v3904_v26  ;;  %v3939_v56 = vld [vmem:[#allocation2 + $0x140] sm:$0x44] }
 0x1be   : > { %v3580_v2 = vunpack.i.h.s16 %v3559_v49  ;;  %v10655_v19 = vpack.i.b16 %v3552_v38, %v3552_v38  ;;  %v3706_v22 = vperm.slane %v8108_v17, %v9134_v61  ;;  %vm12548_vm4 = vcmask 1040384   ;;  %3908 = vst [vmem:[#allocation2 + $0xe0] sm:$0x44] %v3907_v36 }
 0x1bf   : > { %v10660_v50 = vsel %vm12548_vm4, %v10556_v16, %v3996_v55  ;;  %v3710_v12 = vperm.slane %v3592_v58, %v9105_v25  ;;  %vm12549_vm10 = vcmask 1041409   ;;  %vm12550_vm3 = vcmask 1042434   ;;  %3911 = vst [vmem:[#allocation2 + $0xa8] sm:$0x44] %v3910_v27 }
 0x1c0   : > { %v10665_v42 = vsel %vm12549_vm10, %v10556_v16, %v3996_v55  ;;  %v10669_v63 = vsel %vm12550_vm3, %v10556_v16, %v3996_v55  ;;  %v10673_v11 = vsel %vm1474_vm9, %v10556_v16, %v3996_v55  ;;  %v3582_v40 = vunpack.i.h.s16 %v3566_v52  ;;  %3914 = vst [vmem:[#allocation2 + $0xb8] sm:$0x44] %v3913_v28  ;;  %v3942_v55 = vld [vmem:[#allocation2 + $0x60] sm:$0x44]  ;;  %v3945_v28 = vld [vmem:[#allocation2 + $0xc8] sm:$0x44] }
 0x1c1   : > { %v10675_v35 = vpack.i.b16 %v3578_v53, %v3578_v53  ;;  %v3714_v13 = vperm.slane %v3592_v58, %v9132_v59  ;;  %v10678_v57 = vpack.c.bf16 %v1386_v1, %v1385_v62  ;;  %v10680_v34 = vpack.i.b16 %v3559_v49, %v3559_v49  ;;  %3917 = vst [vmem:[#allocation2 + $0x168] sm:$0x44] %v3916_v33  ;;  %v3948_v33 = vld [vmem:[#allocation2 + $0x28] sm:$0x44]  ;;  %v3951_v1 = vld [vmem:[#allocation2 + $0x38] sm:$0x44] }
 0x1c2   : > { %v3718_v4 = vperm.slane %v3592_v58, %v9134_v61  ;;  %v3919_v16 = vsel %vm10523_vm0, %v3698_v7, %v3918_v3  ;;  %v3922_v51 = vsel %vm10523_vm0, %v3702_v8, %v3921_v29  ;;  %v10687_v39 = vpack.i.b16 %v3580_v2, %v3580_v2  ;;  %v3954_v58 = vld [vmem:[#allocation2 + $0xc0] sm:$0x44]  ;;  %v3957_v2 = vld [vmem:[#allocation2 + $0x18] sm:$0x44] }
 0x1c3   : > { %v3722_v18 = vperm.slane %v10655_v19, %v9105_v25  ;;  %v3925_v24 = vsel %vm10523_vm0, %v3706_v22, %v3924_v31  ;;  %v1121_v21 = vadd.f32 %v1120_v0, %v9076_v45  ;;  %v10694_v41 = vpack.i.b16 %v3566_v52, %v3566_v52  ;;  %3920 = vst [vmem:[#allocation2 + $0xe8] sm:$0x44] %v3919_v16  ;;  %v3960_v0 = vld [vmem:[#allocation2 + $0x98] sm:$0x44] }
 0x1c4   : > { %v3726_v43 = vperm.slane %v10655_v19, %v9132_v59  ;;  %v3928_v46 = vsel %vm10523_vm0, %v3710_v12, %v3927_v10  ;;  %v1135_v20 = vadd.f32 %v1134_v32, %v9076_v45  ;;  %v10701_v38 = vpack.i.b16 %v3582_v40, %v3582_v40  ;;  %3923 = vst [vmem:[#allocation2 + $0xf8] sm:$0x44] %v3922_v51  ;;  %v3972_v40 = vld [vmem:[#allocation2 + $0x50] sm:$0x44]  ;;  %v3966_v10 = vld [vmem:[#allocation2] sm:$0x44] }
 0x1c5   : > { %v3730_v9 = vperm.slane %v10655_v19, %v9134_v61  ;;  %v3734_v37 = vperm.slane %v10675_v35, %v9105_v25  ;;  %v3931_v48 = vsel %vm10523_vm0, %v3714_v13, %v3930_v15  ;;  %v3738_v5 = vperm.slane %v10675_v35, %v9132_v59  ;;  %3926 = vst [vmem:[#allocation2 + $0x20] sm:$0x44] %v3925_v24  ;;  %v3963_v13 = vld [vmem:[#allocation2 + $0x8] sm:$0x44] }
 0x1c6   : > { %v3742_v17 = vperm.slane %v10675_v35, %v9134_v61  ;;  %v3746_v26 = vperm.slane %v10680_v34, %v9105_v25  ;;  %v3934_v36 = vsel %vm10523_vm0, %v3718_v4, %v3933_v30  ;;  %v3750_v49 = vperm.slane %v10680_v34, %v9132_v59  ;;  %3929 = vst [vmem:[#allocation2 + $0x88] sm:$0x44] %v3928_v46 }
 0x1c7   : > { %v3754_v44 = vperm.slane %v10680_v34, %v9134_v61  ;;  %v3758_v47 = vperm.slane %v10687_v39, %v9105_v25  ;;  %v3937_v27 = vsel %vm10523_vm0, %v3722_v18, %v3936_v23  ;;  %v3762_v52 = vperm.slane %v10687_v39, %v9132_v59  ;;  %3932 = vst [vmem:[#allocation2 + $0xa0] sm:$0x44] %v3931_v48  ;;  %v3975_v18 = vld [vmem:[#allocation2 + $0x68] sm:$0x44] }
 0x1c8   : > { %v3766_v53 = vperm.slane %v10687_v39, %v9134_v61  ;;  %v3940_v62 = vsel %vm10523_vm0, %v3726_v43, %v3939_v56  ;;  %v1339_v7 = vmax.f32 %v10650_v6, 0.0  ;;  %3935 = vst [vmem:[#allocation2 + $0x170] sm:$0x44] %v3934_v36  ;;  %v3943_v8 = vsel %vm10523_vm0, %v3730_v9, %v3942_v55  ;;  %v3969_v39 = vld [vmem:[#allocation2 + $0x78] sm:$0x44] }
 0x1c9   : > { %v1340_v19 = vmax.f32 %v10653_v14, 0.0  ;;  %v1341_v22 = vmax.f32 %v1121_v21, 0.0  ;;  %v1342_v3 = vmax.f32 %v1135_v20, 0.0  ;;  %v3770_v29 = vperm.slane %v10694_v41, %v9105_v25  ;;  %3938 = vst [vmem:[#allocation2 + $0xf0] sm:$0x44] %v3937_v27 }
 0x1ca   : > { %v3774_v12 = vperm.slane %v10694_v41, %v9132_v59  ;;  %v3778_v31 = vperm.slane %v10694_v41, %v9134_v61  ;;  %v3946_v6 = vsel %vm10523_vm0, %v3734_v37, %v3945_v28  ;;  %v3782_v14 = vperm.slane %v10701_v38, %v9105_v25  ;;  %3941 = vst [vmem:[#allocation2 + $0x140] sm:$0x44] %v3940_v62 }
 0x1cb   : > { %v3949_v35 = vsel %vm10523_vm0, %v3738_v5, %v3948_v33  ;;  %v1419_v32 = vpack.c.bf16 %v1340_v19, %v1339_v7  ;;  %v1420_v34 = vpack.c.bf16 %v1342_v3, %v1341_v22  ;;  %v3786_v4 = vperm.slane %v10701_v38, %v9132_v59  ;;  %3944 = vst [vmem:[#allocation2 + $0x60] sm:$0x44] %v3943_v8  ;;  %v3987_v8 = vld [vmem:[#allocation2 + $0x150] sm:$0x44] }
 0x1cc   : > { %v3790_v16 = vperm.slane %v10701_v38, %v9134_v61  ;;  %v3952_v51 = vsel %vm10523_vm0, %v3742_v17, %v3951_v1  ;;  %v3955_v15 = vsel %vm10523_vm0, %v3746_v26, %v3954_v58  ;;  %3947 = vst [vmem:[#allocation2 + $0xc8] sm:$0x44] %v3946_v6  ;;  %v3958_v46 = vsel %vm10523_vm0, %v3750_v49, %v3957_v2  ;;  %v1094_v17 = vpop.f32.mrf.mxu0  ;;  %v1108_v58 = vpop.f32.mrf.mxu1 }
 0x1cd   : > { %v3997_v24 = vrot.slane %v1419_v32, 6  ;;  %v3998_v30 = vrot.slane %v1419_v32, 1  ;;  %v3999_v21 = vrot.slane %v1420_v34, 4  ;;  %v4000_v43 = vrot.slane %v1420_v34, 7  ;;  %3950 = vst [vmem:[#allocation2 + $0x28] sm:$0x44] %v3949_v35 }
 0x1ce   : > { %v3961_v23 = vsel %vm10523_vm0, %v3754_v44, %v3960_v0  ;;  %v3964_v20 = vsel %vm10523_vm0, %v3758_v47, %v3963_v13  ;;  %v3967_v9 = vsel %vm10523_vm0, %v3762_v52, %v3966_v10  ;;  %3953 = vst [vmem:[#allocation2 + $0x38] sm:$0x44] %v3952_v51  ;;  %v3970_v37 = vsel %vm10523_vm0, %v3766_v53, %v3969_v39  ;;  %v3978_v44 = vld [vmem:[#allocation2 + $0x70] sm:$0x44]  ;;  %v3984_v52 = vld [vmem:[#allocation2 + $0x158] sm:$0x44]  ;;  %v1122_v51 = vpop.f32.mrf.mxu2  ;;  %v1136_v39 = vpop.f32.mrf.mxu3 }
 0x1cf   : > { %v3973_v48 = vsel %vm10523_vm0, %v3770_v29, %v3972_v40  ;;  %v3976_v56 = vsel %vm10523_vm0, %v3774_v12, %v3975_v18  ;;  %vm12551_vm5 = vcmask 1041408   ;;  %3956 = vst [vmem:[#allocation2 + $0xc0] sm:$0x44] %v3955_v15  ;;  %v4013_v26 = vsel %vm1474_vm9, %v3998_v30, %v3999_v21  ;;  %v3981_v47 = vld [vmem:[#allocation2 + $0x30] sm:$0x44] }
 0x1d0   : > { %v4010_v5 = vsel %vm12551_vm5, %v10660_v50, %v3997_v24  ;;  %v4020_v36 = vsel %vm1488_vm7, %v3998_v30, %v3999_v21  ;;  %v4027_v55 = vsel %vm1500_vm8, %v3998_v30, %v3999_v21  ;;  %vm12552_vm11 = vcmask 1046534   ;;  %3959 = vst [vmem:[#allocation2 + $0x18] sm:$0x44] %v3958_v46 }
 0x1d1   : > { %v4034_v49 = vsel %vm12552_vm11, %v3998_v30, %v3999_v21  ;;  %v4019_v27 = vsel %vm1486_vm6, %v10665_v42, %v3997_v24  ;;  %v4015_v28 = vsel %vm1478_vm14, %v4013_v26, %v4000_v43  ;;  %vm12553_vm2 = vcmask 1045508   ;;  %3962 = vst [vmem:[#allocation2 + $0x98] sm:$0x44] %v3961_v23 }
 0x1d2   : > { %v4021_v50 = vsel %vm12553_vm2, %v4020_v36, %v4000_v43  ;;  %v4028_v33 = vsel %vm1502_vm1, %v4027_v55, %v4000_v43  ;;  %v4001_v53 = vrot.slane %v10678_v57, 3  ;;  %vm12554_vm13 = vcmask 1042432   ;;  %3965 = vst [vmem:[#allocation2 + $0x8] sm:$0x44] %v3964_v20 }
 0x1d3   : > { %v4016_v62 = vsel %vm12554_vm13, %v4010_v5, %v4015_v28  ;;  %vm12555_vm12 = vcmask 1043457   ;;  %v1095_v7 = vadd.f32 %v1094_v17, %v9084_v60  ;;  %vm12556_vm4 = vcmask 1043458   ;;  %3968 = vst [vmem:[#allocation2] sm:$0x44] %v3967_v9  ;;  %v4352_v5 = vld [vmem:[#allocation2 + $0xd0] sm:$0x44] }
 0x1d4   : > { %v4022_v1 = vsel %vm12555_vm12, %v4019_v27, %v4021_v50  ;;  %v4026_v42 = vsel %vm12556_vm4, %v10669_v63, %v3997_v24  ;;  %vm12557_vm10 = vcmask 1045504   ;;  %v4073_v19 = vunpack.i.h.s16 %v4016_v62  ;;  %3971 = vst [vmem:[#allocation2 + $0x78] sm:$0x44] %v3970_v37 }
 0x1d5   : > { %v4035_v2 = vsel %vm12557_vm10, %v4000_v43, %v4034_v49  ;;  %vm4344_vm3 = vsmask.f32 7946  ;;  %v4024_v22 = vrot.slane %v4022_v1, 1  ;;  %v4029_v3 = vsel %vm1504_vm15, %v4026_v42, %v4028_v33  ;;  %3974 = vst [vmem:[#allocation2 + $0x50] sm:$0x44] %v3973_v48 }
 0x1d6   : > { %vm4346_vm5 = vsmask.f32 7962  ;;  %v1109_v29 = vadd.f32 %v1108_v58, %v9084_v60  ;;  %v3979_v12 = vsel %vm10523_vm0, %v3778_v31, %v3978_v44  ;;  %v4033_v63 = vsel %vm1478_vm14, %v10673_v11, %v3997_v24  ;;  %3977 = vst [vmem:[#allocation2 + $0x68] sm:$0x44] %v3976_v56  ;;  %v4349_v56 = vld [vmem:[#allocation2 + $0xb0] sm:$0x44] }
 0x1d7   : > { %v8112_v6 = vpack.i.b16 %v4016_v62, %v4016_v62  ;;  %v3982_v0 = vsel %vm10523_vm0, %v3782_v14, %v3981_v47  ;;  %vm12558_vm11 = vcmask 1045507   ;;  %v4089_v35 = vpack.i.b16 %v4073_v19, %v4073_v19  ;;  %3980 = vst [vmem:[#allocation2 + $0x70] sm:$0x44] %v3979_v12  ;;  %v4355_v44 = vld [vmem:[#allocation2 + $0x10] sm:$0x44] }
 0x1d8   : > { %v4036_v40 = vsel %vm12558_vm11, %v4033_v63, %v4035_v2  ;;  %vm12559_vm2 = vcmask 1042434   ;;  %v3985_v11 = vsel %vm10523_vm0, %v3786_v4, %v3984_v52  ;;  %v3988_v31 = vsel %vm10523_vm0, %v3790_v16, %v3987_v8  ;;  %3983 = vst [vmem:[#allocation2 + $0x30] sm:$0x44] %v3982_v0  ;;  %v4358_v47 = vld [vmem:[#allocation2 + $0x48] sm:$0x44] }
 0x1d9   : > { %vm10803_vm13 = vmand %vm12559_vm2, %vm4344_vm3  ;;  %v4031_v14 = vrot.slane %v4029_v3, 2  ;;  %vm12562_vm12 = vcmask 1046534   ;;  %v4075_v10 = vunpack.i.h.s16 %v4024_v22  ;;  %v1387_v32 = vmax.f32 %v1095_v7, 0.0  ;;  %3986 = vst [vmem:[#allocation2 + $0x158] sm:$0x44] %v3985_v11 }
 0x1da   : > { %vm10819_vm4 = vmand %vm12562_vm12, %vm4346_vm5  ;;  %v1388_v34 = vmax.f32 %v1109_v29, 0.0  ;;  %vm12565_vm10 = vcmask 1040384   ;;  %v4038_v38 = vrot.slane %v4036_v40, 3  ;;  %v10827_v54 = vpack.i.b16 %v4024_v22, %v4024_v22  ;;  %3989 = vst [vmem:[#allocation2 + $0x150] sm:$0x44] %v3988_v31 }
 0x1db   : > { %v10825_v4 = vsel %vm12565_vm10, %v10678_v57, %v4001_v53  ;;  %v4107_v16 = vperm.slane %v8112_v6, %v9105_v25  ;;  %v4111_v15 = vperm.slane %v8112_v6, %v9132_v59  ;;  %v4115_v18 = vperm.slane %v8112_v6, %v9134_v61  ;;  %vm10837_vm0 = vmor %vm10819_vm4, %vm10803_vm13  ;;  %v4361_v58 = vld [vmem:[#allocation2 + $0x160] sm:$0x44]  ;;  %v4364_v1 = vld [vmem:[#allocation2 + $0x128] sm:$0x44] }
 0x1dc   : > { %v4119_v24 = vperm.slane %v4089_v35, %v9105_v25  ;;  %vm12568_vm3 = vcmask 1041409   ;;  %vm12569_vm5 = vmmov %vm12559_vm2  ;;  %v4077_v46 = vunpack.i.h.s16 %v4031_v14  ;;  %v4123_v23 = vperm.slane %v4089_v35, %v9132_v59  ;;  %v4367_v2 = vld [vmem:[#allocation2 + $0x40] sm:$0x44]  ;;  %v4370_v63 = vld [vmem:[#allocation2 + $0x178] sm:$0x44] }
 0x1dd   : > { %v10843_v21 = vsel %vm12568_vm3, %v10678_v57, %v4001_v53  ;;  %v10847_v43 = vsel %vm12569_vm5, %v10678_v57, %v4001_v53  ;;  %v10852_v20 = vsel %vm1474_vm9, %v10678_v57, %v4001_v53  ;;  %v1123_v9 = vadd.f32 %v1122_v51, %v9084_v60  ;;  %v4373_v11 = vld [vmem:[#allocation2 + $0x108] sm:$0x44]  ;;  %vm12571_vm2 = vmmov %vm12562_vm12 }
 0x1de   : > { %v10855_v37 = vpack.i.b16 %v4075_v10, %v4075_v10  ;;  %v4127_v48 = vperm.slane %v4089_v35, %v9134_v61  ;;  %v1443_v17 = vpack.c.bf16 %v1388_v34, %v1387_v32  ;;  %v1137_v26 = vadd.f32 %v1136_v39, %v9084_v60  ;;  %v4376_v32 = vld [vmem:[#allocation2 + $0x110] sm:$0x44] }
 0x1df   : > { %v4079_v36 = vunpack.i.h.s16 %v4038_v38  ;;  %v4131_v55 = vperm.slane %v10827_v54, %v9105_v25  ;;  %v4350_v49 = vsel %vm10837_vm0, %v4107_v16, %v4349_v56  ;;  %v4353_v57 = vsel %vm10837_vm0, %v4111_v15, %v4352_v5  ;;  %v4382_v16 = vld [vmem:[#allocation2 + $0x118] sm:$0x44] }
 0x1e0   : > { %v10865_v27 = vpack.i.b16 %v4031_v14, %v4031_v14  ;;  %v4135_v28 = vperm.slane %v10827_v54, %v9132_v59  ;;  %4351 = vst [vmem:[#allocation2 + $0xb0] sm:$0x44] %v4350_v49  ;;  %v4356_v50 = vsel %vm10837_vm0, %v4115_v18, %v4355_v44  ;;  %v4359_v33 = vsel %vm10837_vm0, %v4119_v24, %v4358_v47  ;;  %v4391_v5 = vld [vmem:[#allocation2 + $0x58] sm:$0x44] }
 0x1e1   : > { %v10873_v52 = vpack.i.b16 %v4077_v46, %v4077_v46  ;;  %v4139_v53 = vperm.slane %v10827_v54, %v9134_v61  ;;  %4354 = vst [vmem:[#allocation2 + $0xd0] sm:$0x44] %v4353_v57  ;;  %v4362_v62 = vsel %vm10837_vm0, %v4123_v23, %v4361_v58  ;;  %v1389_v7 = vmax.f32 %v1123_v9, 0.0  ;;  %v4379_v54 = vld [vmem:[#allocation2 + $0x90] sm:$0x44] }
 0x1e2   : > { %v4143_v8 = vperm.slane %v10855_v37, %v9105_v25  ;;  %4357 = vst [vmem:[#allocation2 + $0x10] sm:$0x44] %v4356_v50  ;;  %v4365_v42 = vsel %vm10837_vm0, %v4127_v48, %v4364_v1  ;;  %v10883_v19 = vrot.slane %v1443_v17, 6  ;;  %v1390_v22 = vmax.f32 %v1137_v26, 0.0  ;;  %v4385_v23 = vld [vmem:[#allocation2 + $0x148] sm:$0x44] }
 0x1e3   : > { %v10885_v3 = vpack.i.b16 %v4038_v38, %v4038_v38  ;;  %v4147_v29 = vperm.slane %v10855_v37, %v9132_v59  ;;  %4360 = vst [vmem:[#allocation2 + $0x48] sm:$0x44] %v4359_v33  ;;  %v4368_v12 = vsel %vm10837_vm0, %v4131_v55, %v4367_v2  ;;  %v4003_v6 = vrot.slane %v1443_v17, 1  ;;  %v4388_v9 = vld [vmem:[#allocation2 + $0x100] sm:$0x44] }
 0x1e4   : > { %v10891_v0 = vpack.i.b16 %v4079_v36, %v4079_v36  ;;  %v4151_v40 = vperm.slane %v10855_v37, %v9134_v61  ;;  %v4155_v35 = vperm.slane %v10865_v27, %v9105_v25  ;;  %4363 = vst [vmem:[#allocation2 + $0x160] sm:$0x44] %v4362_v62  ;;  %v4371_v41 = vsel %vm10837_vm0, %v4135_v28, %v4370_v63  ;;  %v1148_v37 = vpop.f32.mrf.mxu0  ;;  %v1162_v36 = vpop.f32.mrf.mxu1  ;;  %v4394_v33 = vld [vmem:[#allocation2 + $0xd8] sm:$0x44]  ;;  %v4400_v2 = vld [vmem:[#allocation2 + $0x130] sm:$0x44] }
 0x1e5   : > { %v4159_v31 = vperm.slane %v10865_v27, %v9132_v59  ;;  %v4163_v14 = vperm.slane %v10865_v27, %v9134_v61  ;;  %v4167_v13 = vperm.slane %v10873_v52, %v9105_v25  ;;  %4366 = vst [vmem:[#allocation2 + $0x128] sm:$0x44] %v4365_v42  ;;  %v4374_v10 = vsel %vm10837_vm0, %v4139_v53, %v4373_v11 }
 0x1e6   : > { %v4171_v34 = vperm.slane %v10873_v52, %v9132_v59  ;;  %v4175_v51 = vperm.slane %v10873_v52, %v9134_v61  ;;  %4369 = vst [vmem:[#allocation2 + $0x40] sm:$0x44] %v4368_v12  ;;  %v4377_v38 = vsel %vm10837_vm0, %v4143_v8, %v4376_v32  ;;  %v1444_v15 = vpack.c.bf16 %v1390_v22, %v1389_v7  ;;  %v4397_v7 = vld [vmem:[#allocation2 + $0x80] sm:$0x44]  ;;  %v4403_v22 = vld [vmem:[#allocation2 + $0x138] sm:$0x44] }
 0x1e7   : > { %v4179_v39 = vperm.slane %v10885_v3, %v9105_v25  ;;  %v4183_v18 = vperm.slane %v10885_v3, %v9132_v59  ;;  %v4187_v24 = vperm.slane %v10885_v3, %v9134_v61  ;;  %4372 = vst [vmem:[#allocation2 + $0x178] sm:$0x44] %v4371_v41  ;;  %v4380_v46 = vsel %vm10837_vm0, %v4147_v29, %v4379_v54 }
 0x1e8   : > { %v4191_v48 = vperm.slane %v10891_v0, %v9105_v25  ;;  %4375 = vst [vmem:[#allocation2 + $0x108] sm:$0x44] %v4374_v10  ;;  %v4383_v56 = vsel %vm10837_vm0, %v4151_v40, %v4382_v16  ;;  %v4004_v17 = vrot.slane %v1444_v15, 4  ;;  %v4005_v26 = vrot.slane %v1444_v15, 7  ;;  %v4406_v40 = vld [vmem:[#allocation2 + $0x120] sm:$0x44]  ;;  %v1190_v10 = vpop.f32.mrf.mxu3 }
 0x1e9   : > { %4378 = vst [vmem:[#allocation2 + $0x110] sm:$0x44] %v4377_v38  ;;  %v4386_v55 = vsel %vm10837_vm0, %v4155_v35, %v4385_v23  ;;  %v4389_v49 = vsel %vm10837_vm0, %v4159_v31, %v4388_v9  ;;  %v4392_v57 = vsel %vm10837_vm0, %v4163_v14, %v4391_v5  ;;  %vm12570_vm11 = vcmask 1041408   ;;  %v4409_v31 = vld [vmem:[#allocation2 + $0xe0] sm:$0x44] }
 0x1ea   : > { %v4043_v44 = vsel %vm12570_vm11, %v10825_v4, %v10883_v19  ;;  %4381 = vst [vmem:[#allocation2 + $0x90] sm:$0x44] %v4380_v46  ;;  %v4046_v47 = vsel %vm1474_vm9, %v4003_v6, %v4004_v17  ;;  %v4053_v27 = vsel %vm1488_vm7, %v4003_v6, %v4004_v17  ;;  %v4060_v28 = vsel %vm1500_vm8, %v4003_v6, %v4004_v17 }
 0x1eb   : > { %v4067_v50 = vsel %vm12571_vm2, %v4003_v6, %v4004_v17  ;;  %4384 = vst [vmem:[#allocation2 + $0x118] sm:$0x44] %v4383_v56  ;;  %v4052_v58 = vsel %vm1486_vm6, %v10843_v21, %v10883_v19  ;;  %v4048_v52 = vsel %vm1478_vm14, %v4046_v47, %v4005_v26  ;;  %vm12572_vm13 = vcmask 1045508  }
 0x1ec   : > { %v4054_v53 = vsel %vm12572_vm13, %v4053_v27, %v4005_v26  ;;  %v4061_v4 = vsel %vm1502_vm1, %v4060_v28, %v4005_v26  ;;  %v4195_v62 = vperm.slane %v10891_v0, %v9132_v59  ;;  %4387 = vst [vmem:[#allocation2 + $0x148] sm:$0x44] %v4386_v55  ;;  %v4395_v1 = vsel %vm10837_vm0, %v4167_v13, %v4394_v33  ;;  %v1176_v13 = vpop.f32.mrf.mxu2  ;;  %v1150_v46 = vpop.f32.mrf.mxu0  ;;  %v4421_v27 = vld [vmem:[#allocation2 + $0xe8] sm:$0x44] }
 0x1ed   : > { %vm12573_vm12 = vcmask 1042432   ;;  %vm12574_vm4 = vcmask 1043457   ;;  %4390 = vst [vmem:[#allocation2 + $0x100] sm:$0x44] %v4389_v49  ;;  %v4398_v21 = vsel %vm10837_vm0, %v4171_v34, %v4397_v7  ;;  %vm12575_vm10 = vcmask 1043458   ;;  %v1164_v56 = vpop.f32.mrf.mxu1 }
 0x1ee   : > { %v4049_v8 = vsel %vm12573_vm12, %v4043_v44, %v4048_v52  ;;  %v4055_v42 = vsel %vm12574_vm4, %v4052_v58, %v4054_v53  ;;  %v4059_v3 = vsel %vm12575_vm10, %v10847_v43, %v10883_v19  ;;  %vm12576_vm3 = vcmask 1045504   ;;  %4393 = vst [vmem:[#allocation2 + $0x58] sm:$0x44] %v4392_v57  ;;  %v4412_v34 = vld [vmem:[#allocation2 + $0xa8] sm:$0x44]  ;;  %vm12582_vm4 = vmmov %vm12575_vm10 }
 0x1ef   : > { %v4068_v29 = vsel %vm12576_vm3, %v4005_v26, %v4067_v50  ;;  %v4081_v12 = vunpack.i.h.s16 %v4049_v8  ;;  %v4199_v63 = vperm.slane %v10891_v0, %v9134_v61  ;;  %v4401_v6 = vsel %vm10837_vm0, %v4175_v51, %v4400_v2  ;;  %4396 = vst [vmem:[#allocation2 + $0xd8] sm:$0x44] %v4395_v1  ;;  %v4415_v51 = vld [vmem:[#allocation2 + $0xb8] sm:$0x44] }
 0x1f0   : > { %v4057_v35 = vrot.slane %v4055_v42, 1  ;;  %v4062_v41 = vsel %vm1504_vm15, %v4059_v3, %v4061_v4  ;;  %v4404_v11 = vsel %vm10837_vm0, %v4179_v39, %v4403_v22  ;;  %v4407_v43 = vsel %vm10837_vm0, %v4183_v18, %v4406_v40  ;;  %4399 = vst [vmem:[#allocation2 + $0x80] sm:$0x44] %v4398_v21  ;;  %v4424_v52 = vld [vmem:[#allocation2 + $0xf8] sm:$0x44] }
 0x1f1   : > { %v4066_v0 = vsel %vm1478_vm14, %v10852_v20, %v10883_v19  ;;  %v8116_v14 = vpack.i.b16 %v4049_v8, %v4049_v8  ;;  %v4410_v32 = vsel %vm10837_vm0, %v4187_v24, %v4409_v31  ;;  %vm12577_vm5 = vcmask 1045507   ;;  %4402 = vst [vmem:[#allocation2 + $0x130] sm:$0x44] %v4401_v6  ;;  %v4418_v19 = vld [vmem:[#allocation2 + $0x168] sm:$0x44] }
 0x1f2   : > { %v4069_v38 = vsel %vm12577_vm5, %v4066_v0, %v4068_v29  ;;  %v4097_v54 = vpack.i.b16 %v4081_v12, %v4081_v12  ;;  %v1149_v16 = vadd.f32 %v1148_v37, %v9076_v45  ;;  %v4413_v15 = vsel %vm10837_vm0, %v4191_v48, %v4412_v34  ;;  %4405 = vst [vmem:[#allocation2 + $0x138] sm:$0x44] %v4404_v11  ;;  %v4427_v42 = vld [vmem:[#allocation2 + $0x20] sm:$0x44]  ;;  %v4430_v21 = vld [vmem:[#allocation2 + $0x88] sm:$0x44] }
 0x1f3   : > { %v4416_v20 = vsel %vm10837_vm0, %v4195_v62, %v4415_v51  ;;  %v4064_v39 = vrot.slane %v4062_v41, 2  ;;  %v1163_v18 = vadd.f32 %v1162_v36, %v9076_v45  ;;  %v4419_v24 = vsel %vm10837_vm0, %v4199_v63, %v4418_v19  ;;  %4408 = vst [vmem:[#allocation2 + $0x120] sm:$0x44] %v4407_v43  ;;  %v4433_v12 = vld [vmem:[#allocation2 + $0xa0] sm:$0x44] }
 0x1f4   : > { %v4083_v23 = vunpack.i.h.s16 %v4057_v35  ;;  %v1177_v9 = vadd.f32 %v1176_v13, %v9076_v45  ;;  %v1191_v37 = vadd.f32 %v1190_v10, %v9076_v45  ;;  %v4071_v48 = vrot.slane %v4069_v38, 3  ;;  %4411 = vst [vmem:[#allocation2 + $0xe0] sm:$0x44] %v4410_v32  ;;  %v4439_v0 = vld [vmem:[#allocation2 + $0xf0] sm:$0x44] }
 0x1f5   : > { %v10981_v5 = vpack.i.b16 %v4057_v35, %v4057_v35  ;;  %v4203_v17 = vperm.slane %v8116_v14, %v9105_v25  ;;  %v4207_v26 = vperm.slane %v8116_v14, %v9132_v59  ;;  %v4211_v36 = vperm.slane %v8116_v14, %v9134_v61  ;;  %4414 = vst [vmem:[#allocation2 + $0xa8] sm:$0x44] %v4413_v15  ;;  %v4436_v35 = vld [vmem:[#allocation2 + $0x170] sm:$0x44]  ;;  %v4442_v34 = vld [vmem:[#allocation2 + $0x140] sm:$0x44] }
 0x1f6   : > { %v4215_v55 = vperm.slane %v4097_v54, %v9105_v25  ;;  %v1343_v49 = vmax.f32 %v1149_v16, 0.0  ;;  %v10988_v57 = vadd.f32 %v1150_v46, %v9084_v60  ;;  %v4085_v44 = vunpack.i.h.s16 %v4064_v39  ;;  %4417 = vst [vmem:[#allocation2 + $0xb8] sm:$0x44] %v4416_v20  ;;  %v4445_v15 = vld [vmem:[#allocation2 + $0x60] sm:$0x44] }
 0x1f7   : > { %v4219_v47 = vperm.slane %v4097_v54, %v9132_v59  ;;  %v1344_v28 = vmax.f32 %v1163_v18, 0.0  ;;  %v10992_v50 = vadd.f32 %v1164_v56, %v9084_v60  ;;  %v10994_v33 = vpack.i.b16 %v4083_v23, %v4083_v23  ;;  %4420 = vst [vmem:[#allocation2 + $0x168] sm:$0x44] %v4419_v24  ;;  %v4448_v24 = vld [vmem:[#allocation2 + $0xc8] sm:$0x44] }
 0x1f8   : > { %v4223_v58 = vperm.slane %v4097_v54, %v9134_v61  ;;  %v1345_v53 = vmax.f32 %v1177_v9, 0.0  ;;  %v1346_v4 = vmax.f32 %v1191_v37, 0.0  ;;  %v4087_v62 = vunpack.i.h.s16 %v4071_v48  ;;  %v4451_v23 = vld [vmem:[#allocation2 + $0x28] sm:$0x44]  ;;  %v1178_v9 = vpop.f32.mrf.mxu2 }
 0x1f9   : > { %v4227_v1 = vperm.slane %v10981_v5, %v9105_v25  ;;  %v4422_v7 = vsel %vm10837_vm0, %v4203_v17, %v4421_v27  ;;  %v4425_v8 = vsel %vm10837_vm0, %v4207_v26, %v4424_v52  ;;  %v11003_v2 = vpack.i.b16 %v4064_v39, %v4064_v39  ;;  %v4454_v17 = vld [vmem:[#allocation2 + $0x38] sm:$0x44]  ;;  %v4457_v26 = vld [vmem:[#allocation2 + $0xc0] sm:$0x44] }
 0x1fa   : > { %v4231_v22 = vperm.slane %v10981_v5, %v9132_v59  ;;  %4423 = vst [vmem:[#allocation2 + $0xe8] sm:$0x44] %v4422_v7  ;;  %v4428_v3 = vsel %vm10837_vm0, %v4211_v36, %v4427_v42  ;;  %v4431_v29 = vsel %vm10837_vm0, %v4215_v55, %v4430_v21  ;;  %v11011_v63 = vpack.i.b16 %v4085_v44, %v4085_v44  ;;  %v1192_v36 = vpop.f32.mrf.mxu3  ;;  %v1204_v55 = vpop.f32.mrf.mxu0  ;;  %v4472_v7 = vld [vmem:[#allocation2 + $0x78] sm:$0x44] }
 0x1fb   : > { %v4235_v6 = vperm.slane %v10981_v5, %v9134_v61  ;;  %4426 = vst [vmem:[#allocation2 + $0xf8] sm:$0x44] %v4425_v8  ;;  %v4434_v40 = vsel %vm10837_vm0, %v4219_v47, %v4433_v12  ;;  %v1391_v41 = vmax.f32 %v10988_v57, 0.0  ;;  %v11018_v11 = vpack.i.b16 %v4071_v48, %v4071_v48  ;;  %v4475_v12 = vld [vmem:[#allocation2 + $0x50] sm:$0x44] }
 0x1fc   : > { %v4239_v43 = vperm.slane %v10994_v33, %v9105_v25  ;;  %4429 = vst [vmem:[#allocation2 + $0x20] sm:$0x44] %v4428_v3  ;;  %v4437_v31 = vsel %vm10837_vm0, %v4223_v58, %v4436_v35  ;;  %v11024_v14 = vpack.c.bf16 %v1344_v28, %v1343_v49  ;;  %v11026_v13 = vpack.i.b16 %v4087_v62, %v4087_v62  ;;  %v4460_v28 = vld [vmem:[#allocation2 + $0x18] sm:$0x44]  ;;  %v4466_v62 = vld [vmem:[#allocation2 + $0x8] sm:$0x44] }
 0x1fd   : > { %v4243_v10 = vperm.slane %v10994_v33, %v9132_v59  ;;  %4432 = vst [vmem:[#allocation2 + $0x88] sm:$0x44] %v4431_v29  ;;  %v4440_v32 = vsel %vm10837_vm0, %v4227_v1, %v4439_v0  ;;  %v11032_v51 = vpack.c.bf16 %v1346_v4, %v1345_v53  ;;  %v4247_v38 = vperm.slane %v10994_v33, %v9134_v61  ;;  %v1218_v33 = vpop.f32.mrf.mxu1  ;;  %v4469_v1 = vld [vmem:[#allocation2] sm:$0x44]  ;;  %v4490_v57 = vld [vmem:[#allocation2 + $0x150] sm:$0x44] }
 0x1fe   : > { %v4251_v54 = vperm.slane %v11003_v2, %v9105_v25  ;;  %4435 = vst [vmem:[#allocation2 + $0xa0] sm:$0x44] %v4434_v40  ;;  %v4443_v16 = vsel %vm10837_vm0, %v4231_v22, %v4442_v34  ;;  %v1392_v20 = vmax.f32 %v10992_v50, 0.0  ;;  %v4255_v19 = vperm.slane %v11003_v2, %v9132_v59  ;;  %v4463_v50 = vld [vmem:[#allocation2 + $0x98] sm:$0x44] }
 0x1ff   : > { %v4259_v39 = vperm.slane %v11003_v2, %v9134_v61  ;;  %v4263_v18 = vperm.slane %v11011_v63, %v9105_v25  ;;  %4438 = vst [vmem:[#allocation2 + $0x170] sm:$0x44] %v4437_v31  ;;  %v4446_v46 = vsel %vm10837_vm0, %v4235_v6, %v4445_v15  ;;  %v4267_v37 = vperm.slane %v11011_v63, %v9132_v59  ;;  %v4481_v31 = vld [vmem:[#allocation2 + $0x70] sm:$0x44] }
 0x200   : > { %v4271_v56 = vperm.slane %v11011_v63, %v9134_v61  ;;  %v4275_v48 = vperm.slane %v11018_v11, %v9105_v25  ;;  %4441 = vst [vmem:[#allocation2 + $0xf0] sm:$0x44] %v4440_v32  ;;  %v4449_v5 = vsel %vm10837_vm0, %v4239_v43, %v4448_v24  ;;  %v4279_v49 = vperm.slane %v11018_v11, %v9132_v59  ;;  %v4478_v63 = vld [vmem:[#allocation2 + $0x68] sm:$0x44]  ;;  %v4484_v34 = vld [vmem:[#allocation2 + $0x30] sm:$0x44] }
 0x201   : > { %v4283_v44 = vperm.slane %v11018_v11, %v9134_v61  ;;  %v4287_v47 = vperm.slane %v11026_v13, %v9105_v25  ;;  %4444 = vst [vmem:[#allocation2 + $0x140] sm:$0x44] %v4443_v16  ;;  %v4452_v27 = vsel %vm10837_vm0, %v4243_v10, %v4451_v23  ;;  %v4291_v58 = vperm.slane %v11026_v13, %v9132_v59 }
 0x202   : > { %v4295_v52 = vperm.slane %v11026_v13, %v9134_v61  ;;  %4447 = vst [vmem:[#allocation2 + $0x60] sm:$0x44] %v4446_v46  ;;  %v4455_v53 = vsel %vm10837_vm0, %v4247_v38, %v4454_v17  ;;  %v4458_v4 = vsel %vm10837_vm0, %v4251_v54, %v4457_v26  ;;  %v4499_v8 = vrot.slane %v11024_v14, 3 }
 0x203   : > { %4450 = vst [vmem:[#allocation2 + $0xc8] sm:$0x44] %v4449_v5  ;;  %v1179_v42 = vadd.f32 %v1178_v9, %v9084_v60  ;;  %v1193_v21 = vadd.f32 %v1192_v36, %v9084_v60  ;;  %v1205_v2 = vadd.f32 %v1204_v55, %v9076_v45  ;;  %v4461_v22 = vsel %vm10837_vm0, %v4255_v19, %v4460_v28 }
 0x204   : > { %4453 = vst [vmem:[#allocation2 + $0x28] sm:$0x44] %v4452_v27  ;;  %v4464_v3 = vsel %vm10837_vm0, %v4259_v39, %v4463_v50  ;;  %v4467_v29 = vsel %vm10837_vm0, %v4263_v18, %v4466_v62  ;;  %v1219_v6 = vadd.f32 %v1218_v33, %v9076_v45  ;;  %v4470_v40 = vsel %vm10837_vm0, %v4267_v37, %v4469_v1  ;;  %v4487_v39 = vld [vmem:[#allocation2 + $0x158] sm:$0x44] }
 0x205   : > { %4456 = vst [vmem:[#allocation2 + $0x38] sm:$0x44] %v4455_v53  ;;  %v4473_v35 = vsel %vm10837_vm0, %v4271_v56, %v4472_v7  ;;  %v4476_v11 = vsel %vm10837_vm0, %v4275_v48, %v4475_v12  ;;  %v4479_v43 = vsel %vm10837_vm0, %v4279_v49, %v4478_v63  ;;  %v4500_v0 = vrot.slane %v11032_v51, 6 }
 0x206   : > { %4459 = vst [vmem:[#allocation2 + $0xc0] sm:$0x44] %v4458_v4  ;;  %v11095_v13 = vpack.c.bf16 %v1392_v20, %v1391_v41  ;;  %v1347_v10 = vmax.f32 %v1205_v2, 0.0  ;;  %v1348_v32 = vmax.f32 %v1219_v6, 0.0  ;;  %vm12578_vm11 = vcmask 1040384  }
 0x207   : > { %4462 = vst [vmem:[#allocation2 + $0x18] sm:$0x44] %v4461_v22  ;;  %v4511_v38 = vsel %vm12578_vm11, %v11024_v14, %v4499_v8  ;;  %vm12579_vm2 = vcmask 1041409   ;;  %v1393_v16 = vmax.f32 %v1179_v42, 0.0  ;;  %v1394_v15 = vmax.f32 %v1193_v21, 0.0 }
 0x208   : > { %v4521_v54 = vsel %vm12579_vm2, %v11024_v14, %v4499_v8  ;;  %4465 = vst [vmem:[#allocation2 + $0x98] sm:$0x44] %v4464_v3  ;;  %v4482_v19 = vsel %vm10837_vm0, %v4283_v44, %v4481_v31  ;;  %vm12580_vm13 = vcmask 1042434   ;;  %v4535_v20 = vsel %vm1474_vm9, %v11024_v14, %v4499_v8  ;;  %v1232_v44 = vpop.f32.mrf.mxu2  ;;  %v1206_v3 = vpop.f32.mrf.mxu0 }
 0x209   : > { %v4528_v41 = vsel %vm12580_vm13, %v11024_v14, %v4499_v8  ;;  %v1423_v18 = vpack.c.bf16 %v1348_v32, %v1347_v10  ;;  %4468 = vst [vmem:[#allocation2 + $0x8] sm:$0x44] %v4467_v29  ;;  %v4485_v46 = vsel %vm10837_vm0, %v4287_v47, %v4484_v34  ;;  %v4488_v24 = vsel %vm10837_vm0, %v4291_v58, %v4487_v39  ;;  %v1246_v47 = vpop.f32.mrf.mxu3  ;;  %v1220_v29 = vpop.f32.mrf.mxu1 }
 0x20a   : > { %v4491_v23 = vsel %vm10837_vm0, %v4295_v52, %v4490_v57  ;;  %v4501_v9 = vrot.slane %v11032_v51, 1  ;;  %4471 = vst [vmem:[#allocation2] sm:$0x44] %v4470_v40  ;;  %vm12581_vm12 = vcmask 1041408   ;;  %v4522_v56 = vsel %vm1486_vm6, %v4521_v54, %v4500_v0 }
 0x20b   : > { %v4513_v37 = vsel %vm12581_vm12, %v4511_v38, %v4500_v0  ;;  %v4502_v48 = vrot.slane %v1423_v18, 4  ;;  %v4503_v14 = vrot.slane %v1423_v18, 7  ;;  %4474 = vst [vmem:[#allocation2 + $0x78] sm:$0x44] %v4473_v35  ;;  %v4529_v5 = vsel %vm12582_vm4, %v4528_v41, %v4500_v0 }
 0x20c   : > { %v4536_v17 = vsel %vm1478_vm14, %v4535_v20, %v4500_v0  ;;  %v4504_v26 = vrot.slane %v11095_v13, 3  ;;  %v1446_v36 = vpack.c.bf16 %v1394_v15, %v1393_v16  ;;  %4477 = vst [vmem:[#allocation2 + $0x50] sm:$0x44] %v4476_v11  ;;  %vm12583_vm0 = vcmask 1046534  }
 0x20d   : > { %v4516_v30 = vsel %vm1474_vm9, %v4501_v9, %v4502_v48  ;;  %v4523_v51 = vsel %vm1488_vm7, %v4501_v9, %v4502_v48  ;;  %v4530_v55 = vsel %vm1500_vm8, %v4501_v9, %v4502_v48  ;;  %v4537_v49 = vsel %vm12583_vm0, %v4501_v9, %v4502_v48  ;;  %4480 = vst [vmem:[#allocation2 + $0x68] sm:$0x44] %v4479_v43  ;;  %v4863_v48 = vld [vmem:[#allocation2 + $0x48] sm:$0x88] }
 0x20e   : > { %v4518_v27 = vsel %vm1478_vm14, %v4516_v30, %v4503_v14  ;;  %vm12584_vm10 = vcmask 1045508   ;;  %v4531_v50 = vsel %vm1502_vm1, %v4530_v55, %v4503_v14  ;;  %v4538_v33 = vsel %vm12576_vm3, %v4503_v14, %v4537_v49  ;;  %4483 = vst [vmem:[#allocation2 + $0x70] sm:$0x44] %v4482_v19 }
 0x20f   : > { %v4524_v28 = vsel %vm12584_vm10, %v4523_v51, %v4503_v14  ;;  %vm12585_vm5 = vcmask 1042432   ;;  %vm12586_vm11 = vcmask 1043457   ;;  %vm4848_vm2 = vsmask.f32 3328  ;;  %4486 = vst [vmem:[#allocation2 + $0x30] sm:$0x44] %v4485_v46 }
 0x210   : > { %v4519_v58 = vsel %vm12585_vm5, %v4513_v37, %v4518_v27  ;;  %v4525_v52 = vsel %vm12586_vm11, %v4522_v56, %v4524_v28  ;;  %vm4850_vm13 = vcmask 1047559   ;;  %v4532_v53 = vsel %vm1504_vm15, %v4529_v5, %v4531_v50  ;;  %4489 = vst [vmem:[#allocation2 + $0x158] sm:$0x44] %v4488_v24  ;;  %vm11143_vm5 = vmand %vm1474_vm9, %vm4848_vm2  ;;  %v4854_v46 = vld [vmem:[#allocation2 + $0xb0] sm:$0x88] }
 0x211   : > { %v4576_v4 = vunpack.i.h.s16 %v4519_v58  ;;  %v1233_v62 = vadd.f32 %v1232_v44, %v9076_v45  ;;  %v1247_v1 = vadd.f32 %v1246_v47, %v9076_v45  ;;  %v4505_v7 = vrot.slane %v1446_v36, 6  ;;  %4492 = vst [vmem:[#allocation2 + $0x150] sm:$0x44] %v4491_v23  ;;  %v4857_v24 = vld [vmem:[#allocation2 + $0xd0] sm:$0x88] }
 0x212   : > { %v4527_v8 = vrot.slane %v4525_v52, 1  ;;  %vm12587_vm12 = vcmask 1045507   ;;  %vm4851_vm4 = vsmask.f32 7424  ;;  %vm12588_vm0 = vcmask 1040384  }
 0x213   : > { %v4539_v42 = vsel %vm12587_vm12, %v4536_v17, %v4538_v33  ;;  %v4544_v21 = vsel %vm12588_vm0, %v11095_v13, %v4504_v26  ;;  %vm12589_vm10 = vcmask 1041409   ;;  %v8120_v22 = vpack.i.b16 %v4519_v58, %v4519_v58  ;;  %vm11150_vm11 = vmand %vm4850_vm13, %vm4851_vm4  ;;  %v4860_v56 = vld [vmem:[#allocation2 + $0x10] sm:$0x88]  ;;  %v4869_v47 = vld [vmem:[#allocation2 + $0x128] sm:$0x88] }
 0x214   : > { %v4554_v2 = vsel %vm12589_vm10, %v11095_v13, %v4504_v26  ;;  %vm12590_vm3 = vcmask 1042434   ;;  %v4568_v63 = vsel %vm1474_vm9, %v11095_v13, %v4504_v26  ;;  %v4534_v6 = vrot.slane %v4532_v53, 2  ;;  %vm11179_vm4 = vmor %vm11150_vm11, %vm11143_vm5  ;;  %v4872_v58 = vld [vmem:[#allocation2 + $0x40] sm:$0x88] }
 0x215   : > { %v4561_v12 = vsel %vm12590_vm3, %v11095_v13, %v4504_v26  ;;  %v4592_v40 = vpack.i.b16 %v4576_v4, %v4576_v4  ;;  %v11147_v11 = vrot.slane %v1446_v36, 1  ;;  %v4541_v43 = vrot.slane %v4539_v42, 3  ;;  %v4866_v26 = vld [vmem:[#allocation2 + $0x160] sm:$0x88] }
 0x216   : > { %v1349_v0 = vmax.f32 %v1233_v62, 0.0  ;;  %v1350_v10 = vmax.f32 %v1247_v1, 0.0  ;;  %vm12595_vm12 = vcmask 1041408   ;;  %v4578_v32 = vunpack.i.h.s16 %v4527_v8  ;;  %v4875_v1 = vld [vmem:[#allocation2 + $0x178] sm:$0x88] }
 0x217   : > { %v11155_v13 = vsel %vm12595_vm12, %v4544_v21, %v4505_v7  ;;  %v11158_v34 = vadd.f32 %v1206_v3, %v9084_v60  ;;  %v11161_v38 = vadd.f32 %v1220_v29, %v9084_v60  ;;  %v11164_v54 = vsel %vm1486_vm6, %v4554_v2, %v4505_v7  ;;  %v4878_v2 = vld [vmem:[#allocation2 + $0x108] sm:$0x88] }
 0x218   : > { %v11166_v16 = vpack.i.b16 %v4527_v8, %v4527_v8  ;;  %v4610_v15 = vperm.slane %v8120_v22, %v9105_v25  ;;  %v4614_v19 = vperm.slane %v8120_v22, %v9132_v59  ;;  %vm12596_vm2 = vcmask 1043458  }
 0x219   : > { %v11171_v39 = vsel %vm12596_vm2, %v4561_v12, %v4505_v7  ;;  %v4580_v57 = vunpack.i.h.s16 %v4534_v6  ;;  %v4618_v41 = vperm.slane %v8120_v22, %v9134_v61  ;;  %v4622_v20 = vperm.slane %v4592_v40, %v9105_v25 }
 0x21a   : > { %v11184_v23 = vsel %vm1478_vm14, %v4568_v63, %v4505_v7  ;;  %v4582_v9 = vunpack.i.h.s16 %v4541_v43  ;;  %v4626_v37 = vperm.slane %v4592_v40, %v9132_v59  ;;  %v11187_v14 = vpack.c.bf16 %v1350_v10, %v1349_v0  ;;  %v4881_v63 = vld [vmem:[#allocation2 + $0x110] sm:$0x88]  ;;  %v4887_v10 = vld [vmem:[#allocation2 + $0x118] sm:$0x88] }
 0x21b   : > { %v4594_v5 = vpack.i.b16 %v4578_v32, %v4578_v32  ;;  %v4630_v17 = vperm.slane %v4592_v40, %v9134_v61  ;;  %v1395_v36 = vmax.f32 %v11158_v34, 0.0  ;;  %v1396_v30 = vmax.f32 %v11161_v38, 0.0  ;;  %v4890_v40 = vld [vmem:[#allocation2 + $0x148] sm:$0x88]  ;;  %v4893_v32 = vld [vmem:[#allocation2 + $0x100] sm:$0x88] }
 0x21c   : > { %v8122_v51 = vpack.i.b16 %v4534_v6, %v4534_v6  ;;  %v4634_v55 = vperm.slane %v11166_v16, %v9105_v25  ;;  %v4855_v49 = vsel %vm11179_vm4, %v4610_v15, %v4854_v46  ;;  %v4858_v44 = vsel %vm11179_vm4, %v4614_v19, %v4857_v24  ;;  %v4884_v6 = vld [vmem:[#allocation2 + $0x90] sm:$0x88]  ;;  %v4896_v15 = vld [vmem:[#allocation2 + $0x58] sm:$0x88] }
 0x21d   : > { %v11198_v27 = vpack.i.b16 %v4580_v57, %v4580_v57  ;;  %v4638_v28 = vperm.slane %v11166_v16, %v9132_v59  ;;  %4856 = vst [vmem:[#allocation2 + $0xb0] sm:$0x88] %v4855_v49  ;;  %v4861_v50 = vsel %vm11179_vm4, %v4618_v41, %v4860_v56  ;;  %v4864_v33 = vsel %vm11179_vm4, %v4622_v20, %v4863_v48  ;;  %v4899_v19 = vld [vmem:[#allocation2 + $0xd8] sm:$0x88]  ;;  %v4905_v49 = vld [vmem:[#allocation2 + $0x130] sm:$0x88] }
 0x21e   : > { %v11206_v52 = vpack.i.b16 %v4541_v43, %v4541_v43  ;;  %v11208_v53 = vpack.i.b16 %v4582_v9, %v4582_v9  ;;  %v4642_v4 = vperm.slane %v11166_v16, %v9134_v61  ;;  %4859 = vst [vmem:[#allocation2 + $0xd0] sm:$0x88] %v4858_v44  ;;  %v4867_v62 = vsel %vm11179_vm4, %v4626_v37, %v4866_v26 }
 0x21f   : > { %v4646_v7 = vperm.slane %v4594_v5, %v9105_v25  ;;  %v4650_v8 = vperm.slane %v4594_v5, %v9132_v59  ;;  %v4654_v42 = vperm.slane %v4594_v5, %v9134_v61  ;;  %4862 = vst [vmem:[#allocation2 + $0x10] sm:$0x88] %v4861_v50  ;;  %v4870_v21 = vsel %vm11179_vm4, %v4630_v17, %v4869_v47  ;;  %v4908_v50 = vld [vmem:[#allocation2 + $0x138] sm:$0x88] }
 0x220   : > { %v4658_v22 = vperm.slane %v8122_v51, %v9105_v25  ;;  %v4662_v3 = vperm.slane %v8122_v51, %v9132_v59  ;;  %v4666_v29 = vperm.slane %v8122_v51, %v9134_v61  ;;  %4865 = vst [vmem:[#allocation2 + $0x48] sm:$0x88] %v4864_v33  ;;  %v4873_v12 = vsel %vm11179_vm4, %v4634_v55, %v4872_v58  ;;  %v1248_v51 = vpop.f32.mrf.mxu3  ;;  %v4902_v55 = vld [vmem:[#allocation2 + $0x80] sm:$0x88] }
 0x221   : > { %v4670_v35 = vperm.slane %v11198_v27, %v9105_v25  ;;  %v4674_v43 = vperm.slane %v11198_v27, %v9132_v59  ;;  %v4678_v31 = vperm.slane %v11198_v27, %v9134_v61  ;;  %4868 = vst [vmem:[#allocation2 + $0x160] sm:$0x88] %v4867_v62  ;;  %v4876_v0 = vsel %vm11179_vm4, %v4638_v28, %v4875_v1  ;;  %v4911_v33 = vld [vmem:[#allocation2 + $0x120] sm:$0x88] }
 0x222   : > { %v4682_v34 = vperm.slane %v11206_v52, %v9105_v25  ;;  %v4686_v38 = vperm.slane %v11206_v52, %v9132_v59  ;;  %4871 = vst [vmem:[#allocation2 + $0x128] sm:$0x88] %v4870_v21  ;;  %v4879_v16 = vsel %vm11179_vm4, %v4642_v4, %v4878_v2  ;;  %v1447_v57 = vpack.c.bf16 %v1396_v30, %v1395_v36  ;;  %v1234_v30 = vpop.f32.mrf.mxu2  ;;  %v4914_v1 = vld [vmem:[#allocation2 + $0xe0] sm:$0x88]  ;;  %v4920_v2 = vld [vmem:[#allocation2 + $0xb8] sm:$0x88] }
 0x223   : > { %v4690_v41 = vperm.slane %v11206_v52, %v9134_v61  ;;  %v4694_v20 = vperm.slane %v11208_v53, %v9105_v25  ;;  %v4698_v46 = vperm.slane %v11208_v53, %v9132_v59  ;;  %4874 = vst [vmem:[#allocation2 + $0x40] sm:$0x88] %v4873_v12  ;;  %v4882_v24 = vsel %vm11179_vm4, %v4646_v7, %v4881_v63  ;;  %v4917_v7 = vld [vmem:[#allocation2 + $0xa8] sm:$0x88] }
 0x224   : > { %4877 = vst [vmem:[#allocation2 + $0x178] sm:$0x88] %v4876_v0  ;;  %v4885_v9 = vsel %vm11179_vm4, %v4650_v8, %v4884_v6  ;;  %v4888_v37 = vsel %vm11179_vm4, %v4654_v42, %v4887_v10  ;;  %v4507_v56 = vrot.slane %v1447_v57, 4  ;;  %v4508_v48 = vrot.slane %v1447_v57, 7  ;;  %v1274_v10 = vpop.f32.mrf.mxu1 }
 0x225   : > { %4880 = vst [vmem:[#allocation2 + $0x108] sm:$0x88] %v4879_v16  ;;  %v4891_v5 = vsel %vm11179_vm4, %v4658_v22, %v4890_v40  ;;  %v4894_v17 = vsel %vm11179_vm4, %v4662_v3, %v4893_v32  ;;  %v4897_v26 = vsel %vm11179_vm4, %v4666_v29, %v4896_v15  ;;  %v4900_v36 = vsel %vm11179_vm4, %v4670_v35, %v4899_v19  ;;  %v4923_v40 = vld [vmem:[#allocation2 + $0x168] sm:$0x88] }
 0x226   : > { %4883 = vst [vmem:[#allocation2 + $0x110] sm:$0x88] %v4882_v24  ;;  %v4549_v44 = vsel %vm1474_vm9, %v11147_v11, %v4507_v56  ;;  %v4556_v47 = vsel %vm1488_vm7, %v11147_v11, %v4507_v56  ;;  %v4563_v27 = vsel %vm1500_vm8, %v11147_v11, %v4507_v56  ;;  %vm12599_vm0 = vcmask 1046534  }
 0x227   : > { %v4570_v28 = vsel %vm12599_vm0, %v11147_v11, %v4507_v56  ;;  %4886 = vst [vmem:[#allocation2 + $0x90] sm:$0x88] %v4885_v9  ;;  %v4551_v58 = vsel %vm1478_vm14, %v4549_v44, %v4508_v48  ;;  %vm12600_vm10 = vcmask 1045508   ;;  %v4564_v4 = vsel %vm1502_vm1, %v4563_v27, %v4508_v48 }
 0x228   : > { %v4557_v52 = vsel %vm12600_vm10, %v4556_v47, %v4508_v48  ;;  %vm12601_vm3 = vcmask 1045504   ;;  %4889 = vst [vmem:[#allocation2 + $0x118] sm:$0x88] %v4888_v37  ;;  %vm12602_vm5 = vcmask 1042432   ;;  %vm12603_vm11 = vcmask 1043457  }
 0x229   : > { %v4571_v62 = vsel %vm12601_vm3, %v4508_v48, %v4570_v28  ;;  %v4552_v8 = vsel %vm12602_vm5, %v11155_v13, %v4551_v58  ;;  %v4558_v11 = vsel %vm12603_vm11, %v11164_v54, %v4557_v52  ;;  %v4565_v42 = vsel %vm1504_vm15, %v11171_v39, %v4564_v4  ;;  %4892 = vst [vmem:[#allocation2 + $0x148] sm:$0x88] %v4891_v5  ;;  %v1302_v5 = vpop.f32.mrf.mxu3  ;;  %v4932_v47 = vld [vmem:[#allocation2 + $0x20] sm:$0x88]  ;;  %v4935_v58 = vld [vmem:[#allocation2 + $0x88] sm:$0x88] }
 0x22a   : > { %v1235_v21 = vadd.f32 %v1234_v30, %v9084_v60  ;;  %v4560_v22 = vrot.slane %v4558_v11, 1  ;;  %vm12604_vm12 = vcmask 1045507   ;;  %v4584_v29 = vunpack.i.h.s16 %v4552_v8  ;;  %4895 = vst [vmem:[#allocation2 + $0x100] sm:$0x88] %v4894_v17  ;;  %v1288_v48 = vpop.f32.mrf.mxu2  ;;  %v4926_v30 = vld [vmem:[#allocation2 + $0xe8] sm:$0x88] }
 0x22b   : > { %v4572_v3 = vsel %vm12604_vm12, %v11184_v23, %v4571_v62  ;;  %v1249_v12 = vadd.f32 %v1248_v51, %v9084_v60  ;;  %v4702_v13 = vperm.slane %v11208_v53, %v9134_v61  ;;  %v4903_v54 = vsel %vm11179_vm4, %v4674_v43, %v4902_v55  ;;  %4898 = vst [vmem:[#allocation2 + $0x58] sm:$0x88] %v4897_v26  ;;  %v1260_v53 = vpop.f32.mrf.mxu0  ;;  %v4929_v51 = vld [vmem:[#allocation2 + $0xf8] sm:$0x88] }
 0x22c   : > { %v4906_v39 = vsel %vm11179_vm4, %v4678_v31, %v4905_v49  ;;  %v5004_v63 = vrot.slane %v11187_v14, 3  ;;  %v4909_v6 = vsel %vm11179_vm4, %v4682_v34, %v4908_v50  ;;  %v4912_v23 = vsel %vm11179_vm4, %v4686_v38, %v4911_v33  ;;  %4901 = vst [vmem:[#allocation2 + $0xd8] sm:$0x88] %v4900_v36 }
 0x22d   : > { %v4567_v35 = vrot.slane %v4565_v42, 2  ;;  %v8124_v0 = vpack.i.b16 %v4552_v8, %v4552_v8  ;;  %v4915_v43 = vsel %vm11179_vm4, %v4690_v41, %v4914_v1  ;;  %v4918_v31 = vsel %vm11179_vm4, %v4694_v20, %v4917_v7  ;;  %4904 = vst [vmem:[#allocation2 + $0x80] sm:$0x88] %v4903_v54  ;;  %v4938_v8 = vld [vmem:[#allocation2 + $0xa0] sm:$0x88] }
 0x22e   : > { %v4921_v32 = vsel %vm11179_vm4, %v4698_v46, %v4920_v2  ;;  %v4574_v16 = vrot.slane %v4572_v3, 3  ;;  %v4586_v34 = vunpack.i.h.s16 %v4560_v22  ;;  %v11297_v15 = vpack.i.b16 %v4584_v29, %v4584_v29  ;;  %4907 = vst [vmem:[#allocation2 + $0x130] sm:$0x88] %v4906_v39  ;;  %v4941_v2 = vld [vmem:[#allocation2 + $0x170] sm:$0x88] }
 0x22f   : > { %v1397_v38 = vmax.f32 %v1235_v21, 0.0  ;;  %v1398_v19 = vmax.f32 %v1249_v12, 0.0  ;;  %v4924_v57 = vsel %vm11179_vm4, %v4702_v13, %v4923_v40  ;;  %v11302_v24 = vadd.f32 %v1260_v53, %v9076_v45  ;;  %4910 = vst [vmem:[#allocation2 + $0x138] sm:$0x88] %v4909_v6  ;;  %v4944_v13 = vld [vmem:[#allocation2 + $0xf0] sm:$0x88] }
 0x230   : > { %v11305_v41 = vadd.f32 %v1274_v10, %v9076_v45  ;;  %vm12605_vm2 = vcmask 1040384   ;;  %v4588_v46 = vunpack.i.h.s16 %v4567_v35  ;;  %v4706_v9 = vperm.slane %v8124_v0, %v9105_v25  ;;  %4913 = vst [vmem:[#allocation2 + $0x120] sm:$0x88] %v4912_v23  ;;  %v4947_v54 = vld [vmem:[#allocation2 + $0x140] sm:$0x88] }
 0x231   : > { %v11309_v20 = vsel %vm12605_vm2, %v11187_v14, %v5004_v63  ;;  %v4710_v37 = vperm.slane %v8124_v0, %v9132_v59  ;;  %vm12606_vm0 = vcmask 1041409   ;;  %v4590_v17 = vunpack.i.h.s16 %v4574_v16  ;;  %4916 = vst [vmem:[#allocation2 + $0xe0] sm:$0x88] %v4915_v43  ;;  %v4950_v40 = vld [vmem:[#allocation2 + $0x60] sm:$0x88] }
 0x232   : > { %v11315_v56 = vsel %vm12606_vm0, %v11187_v14, %v5004_v63  ;;  %v11317_v26 = vpack.i.b16 %v4560_v22, %v4560_v22  ;;  %v4714_v36 = vperm.slane %v8124_v0, %v9134_v61  ;;  %vm12607_vm10 = vcmask 1042434   ;;  %4919 = vst [vmem:[#allocation2 + $0xa8] sm:$0x88] %v4918_v31  ;;  %v4956_v31 = vld [vmem:[#allocation2 + $0x28] sm:$0x88] }
 0x233   : > { %v11322_v55 = vsel %vm12607_vm10, %v11187_v14, %v5004_v63  ;;  %v11324_v49 = vpack.i.b16 %v4586_v34, %v4586_v34  ;;  %v4718_v44 = vperm.slane %v11297_v15, %v9105_v25  ;;  %v11328_v27 = vpack.c.bf16 %v1398_v19, %v1397_v38  ;;  %4922 = vst [vmem:[#allocation2 + $0xb8] sm:$0x88] %v4921_v32  ;;  %v4959_v32 = vld [vmem:[#allocation2 + $0x38] sm:$0x88]  ;;  %v4962_v19 = vld [vmem:[#allocation2 + $0xc0] sm:$0x88] }
 0x234   : > { %v11332_v28 = vsel %vm1474_vm9, %v11187_v14, %v5004_v63  ;;  %v11334_v50 = vpack.i.b16 %v4567_v35, %v4567_v35  ;;  %v4722_v33 = vperm.slane %v11297_v15, %v9132_v59  ;;  %v11339_v52 = vadd.f32 %v1288_v48, %v9076_v45  ;;  %4925 = vst [vmem:[#allocation2 + $0x168] sm:$0x88] %v4924_v57  ;;  %v4953_v35 = vld [vmem:[#allocation2 + $0xc8] sm:$0x88]  ;;  %v4965_v57 = vld [vmem:[#allocation2 + $0x18] sm:$0x88] }
 0x235   : > { %v11342_v4 = vadd.f32 %v1302_v5, %v9076_v45  ;;  %v11344_v62 = vpack.i.b16 %v4588_v46, %v4588_v46  ;;  %v4726_v14 = vperm.slane %v11297_v15, %v9134_v61  ;;  %v4927_v1 = vsel %vm11179_vm4, %v4706_v9, %v4926_v30  ;;  %v4968_v46 = vld [vmem:[#allocation2 + $0x98] sm:$0x88]  ;;  %v4971_v5 = vld [vmem:[#allocation2 + $0x8] sm:$0x88] }
 0x236   : > { %v4930_v7 = vsel %vm11179_vm4, %v4710_v37, %v4929_v51  ;;  %v11352_v11 = vpack.i.b16 %v4574_v16, %v4574_v16  ;;  %v11354_v42 = vpack.i.b16 %v4590_v17, %v4590_v17  ;;  %v4730_v45 = vperm.slane %v11317_v26, %v9105_v25  ;;  %4928 = vst [vmem:[#allocation2 + $0xe8] sm:$0x88] %v4927_v1 }
 0x237   : > { %v4933_v21 = vsel %vm11179_vm4, %v4714_v36, %v4932_v47  ;;  %v4734_v22 = vperm.slane %v11317_v26, %v9132_v59  ;;  %v4738_v3 = vperm.slane %v11317_v26, %v9134_v61  ;;  %v4742_v29 = vperm.slane %v11324_v49, %v9105_v25  ;;  %4931 = vst [vmem:[#allocation2 + $0xf8] sm:$0x88] %v4930_v7 }
 0x238   : > { %v4936_v12 = vsel %vm11179_vm4, %v4718_v44, %v4935_v58  ;;  %v4746_v39 = vperm.slane %v11324_v49, %v9132_v59  ;;  %v4750_v63 = vperm.slane %v11324_v49, %v9134_v61  ;;  %v4754_v6 = vperm.slane %v11334_v50, %v9105_v25  ;;  %4934 = vst [vmem:[#allocation2 + $0x20] sm:$0x88] %v4933_v21  ;;  %v1262_v21 = vpop.f32.mrf.mxu0 }
 0x239   : > { %v4939_v23 = vsel %vm11179_vm4, %v4722_v33, %v4938_v8  ;;  %v4758_v0 = vperm.slane %v11334_v50, %v9132_v59  ;;  %v4762_v53 = vperm.slane %v11334_v50, %v9134_v61  ;;  %v4766_v10 = vperm.slane %v11344_v62, %v9105_v25  ;;  %4937 = vst [vmem:[#allocation2 + $0x88] sm:$0x88] %v4936_v12  ;;  %v4974_v50 = vld [vmem:[#allocation2] sm:$0x88]  ;;  %v4980_v33 = vld [vmem:[#allocation2 + $0x50] sm:$0x88] }
 0x23a   : > { %v4942_v43 = vsel %vm11179_vm4, %v4726_v14, %v4941_v2  ;;  %v4770_v16 = vperm.slane %v11344_v62, %v9132_v59  ;;  %v4774_v34 = vperm.slane %v11344_v62, %v9134_v61  ;;  %v4778_v15 = vperm.slane %v11352_v11, %v9105_v25  ;;  %4940 = vst [vmem:[#allocation2 + $0xa0] sm:$0x88] %v4939_v23  ;;  %v1276_v2 = vpop.f32.mrf.mxu1 }
 0x23b   : > { %v4945_v38 = vsel %vm11179_vm4, %v4730_v45, %v4944_v13  ;;  %v4782_v9 = vperm.slane %v11352_v11, %v9132_v59  ;;  %v4786_v37 = vperm.slane %v11352_v11, %v9134_v61  ;;  %v4948_v48 = vsel %vm11179_vm4, %v4734_v22, %v4947_v54  ;;  %4943 = vst [vmem:[#allocation2 + $0x170] sm:$0x88] %v4942_v43  ;;  %v4986_v43 = vld [vmem:[#allocation2 + $0x70] sm:$0x88] }
 0x23c   : > { %v1351_v17 = vmax.f32 %v11302_v24, 0.0  ;;  %v4951_v26 = vsel %vm11179_vm4, %v4738_v3, %v4950_v40  ;;  %v1352_v36 = vmax.f32 %v11305_v41, 0.0  ;;  %v1353_v30 = vmax.f32 %v11339_v52, 0.0  ;;  %4946 = vst [vmem:[#allocation2 + $0xf0] sm:$0x88] %v4945_v38 }
 0x23d   : > { %v1354_v51 = vmax.f32 %v11342_v4, 0.0  ;;  %v4790_v49 = vperm.slane %v11354_v42, %v9105_v25  ;;  %v4794_v44 = vperm.slane %v11354_v42, %v9132_v59  ;;  %v4798_v47 = vperm.slane %v11354_v42, %v9134_v61  ;;  %4949 = vst [vmem:[#allocation2 + $0x140] sm:$0x88] %v4948_v48  ;;  %v4977_v52 = vld [vmem:[#allocation2 + $0x78] sm:$0x88]  ;;  %v1304_v42 = vpop.f32.mrf.mxu3 }
 0x23e   : > { %v4954_v24 = vsel %vm11179_vm4, %v4742_v29, %v4953_v35  ;;  %v4957_v41 = vsel %vm11179_vm4, %v4746_v39, %v4956_v31  ;;  %v4960_v58 = vsel %vm11179_vm4, %v4750_v63, %v4959_v32  ;;  %v4983_v4 = vld [vmem:[#allocation2 + $0x68] sm:$0x88]  ;;  %v1425_v62 = vpack.c.bf16 %v1352_v36, %v1351_v17  ;;  %4952 = vst [vmem:[#allocation2 + $0x60] sm:$0x88] %v4951_v26 }
 0x23f   : > { %v1426_v14 = vpack.c.bf16 %v1354_v51, %v1353_v30  ;;  %v4963_v1 = vsel %vm11179_vm4, %v4754_v6, %v4962_v19  ;;  %v4966_v7 = vsel %vm11179_vm4, %v4758_v0, %v4965_v57  ;;  %v4969_v8 = vsel %vm11179_vm4, %v4762_v53, %v4968_v46  ;;  %4955 = vst [vmem:[#allocation2 + $0xc8] sm:$0x88] %v4954_v24  ;;  %v1290_v30 = vpop.f32.mrf.mxu2 }
 0x240   : > { %v4972_v45 = vsel %vm11179_vm4, %v4766_v10, %v4971_v5  ;;  %v4975_v22 = vsel %vm11179_vm4, %v4770_v16, %v4974_v50  ;;  %v5005_v3 = vrot.slane %v1425_v62, 6  ;;  %4958 = vst [vmem:[#allocation2 + $0x28] sm:$0x88] %v4957_v41  ;;  %v4978_v13 = vsel %vm11179_vm4, %v4774_v34, %v4977_v52  ;;  %v4989_v34 = vld [vmem:[#allocation2 + $0x30] sm:$0x88] }
 0x241   : > { %v5007_v29 = vrot.slane %v1426_v14, 4  ;;  %v5008_v12 = vrot.slane %v1426_v14, 7  ;;  %v4981_v54 = vsel %vm11179_vm4, %v4778_v15, %v4980_v33  ;;  %v4984_v39 = vsel %vm11179_vm4, %v4782_v9, %v4983_v4  ;;  %4961 = vst [vmem:[#allocation2 + $0x38] sm:$0x88] %v4960_v58  ;;  %v4992_v15 = vld [vmem:[#allocation2 + $0x158] sm:$0x88] }
 0x242   : > { %v5006_v63 = vrot.slane %v1425_v62, 1  ;;  %vm12608_vm3 = vcmask 1041408   ;;  %vm5352_vm5 = vsmask.f32 7950  ;;  %v1263_v23 = vadd.f32 %v1262_v21, %v9084_v60  ;;  %4964 = vst [vmem:[#allocation2 + $0xc0] sm:$0x88] %v4963_v1 }
 0x243   : > { %v5018_v6 = vsel %vm12608_vm3, %v11309_v20, %v5005_v3  ;;  %v1277_v40 = vadd.f32 %v1276_v2, %v9084_v60  ;;  %vm12609_vm11 = vcmask 1046534   ;;  %4967 = vst [vmem:[#allocation2 + $0x18] sm:$0x88] %v4966_v7  ;;  %v5027_v31 = vsel %vm1486_vm6, %v11315_v56, %v5005_v3  ;;  %v4995_v56 = vld [vmem:[#allocation2 + $0x150] sm:$0x88] }
 0x244   : > { %v5021_v35 = vsel %vm1474_vm9, %v5006_v63, %v5007_v29  ;;  %v5028_v0 = vsel %vm1488_vm7, %v5006_v63, %v5007_v29  ;;  %v5035_v53 = vsel %vm1500_vm8, %v5006_v63, %v5007_v29  ;;  %v5042_v10 = vsel %vm12609_vm11, %v5006_v63, %v5007_v29  ;;  %4970 = vst [vmem:[#allocation2 + $0x98] sm:$0x88] %v4969_v8 }
 0x245   : > { %v5023_v20 = vsel %vm1478_vm14, %v5021_v35, %v5008_v12  ;;  %vm12610_vm12 = vcmask 1045508   ;;  %v5036_v16 = vsel %vm1502_vm1, %v5035_v53, %v5008_v12  ;;  %vm12611_vm2 = vcmask 1043458   ;;  %4973 = vst [vmem:[#allocation2 + $0x8] sm:$0x88] %v4972_v45 }
 0x246   : > { %v5029_v32 = vsel %vm12610_vm12, %v5028_v0, %v5008_v12  ;;  %v5034_v38 = vsel %vm12611_vm2, %v11322_v55, %v5005_v3  ;;  %vm12612_vm0 = vcmask 1042432   ;;  %vm12613_vm10 = vcmask 1043457   ;;  %4976 = vst [vmem:[#allocation2] sm:$0x88] %v4975_v22  ;;  %vm11467_vm2 = vmand %vm1474_vm9, %vm5352_vm5  ;;  %v8585_v22 = vld [vmem:[%s12416_s3 + $0x64] sm:$0xf] }
 0x247   : > { %v5024_v19 = vsel %vm12612_vm0, %v5018_v6, %v5023_v20  ;;  %v5030_v57 = vsel %vm12613_vm10, %v5027_v31, %v5029_v32  ;;  %vm12614_vm3 = vcmask 1045504   ;;  %v5037_v9 = vsel %vm1504_vm15, %v5034_v38, %v5036_v16  ;;  %4979 = vst [vmem:[#allocation2 + $0x78] sm:$0x88] %v4978_v13 }
 0x248   : > { %v5043_v46 = vsel %vm12614_vm3, %v5008_v12, %v5042_v10  ;;  %v5081_v48 = vunpack.i.h.s16 %v5024_v19  ;;  %v1399_v5 = vmax.f32 %v1263_v23, 0.0  ;;  %v1400_v17 = vmax.f32 %v1277_v40, 0.0  ;;  %4982 = vst [vmem:[#allocation2 + $0x50] sm:$0x88] %v4981_v54  ;;  %v5357_v23 = vld [vmem:[#allocation2 + $0xb0] sm:$0x88] }
 0x249   : > { %v5009_v26 = vrot.slane %v11328_v27, 3  ;;  %v5041_v36 = vsel %vm1478_vm14, %v11332_v28, %v5005_v3  ;;  %v5032_v55 = vrot.slane %v5030_v57, 1  ;;  %vm5354_vm11 = vsmask.f32 7966  ;;  %4985 = vst [vmem:[#allocation2 + $0x68] sm:$0x88] %v4984_v39 }
 0x24a   : > { %v4987_v51 = vsel %vm11179_vm4, %v4786_v37, %v4986_v43  ;;  %vm12615_vm12 = vcmask 1045507   ;;  %v8128_v50 = vpack.i.b16 %v5024_v19, %v5024_v19  ;;  %v4990_v28 = vsel %vm11179_vm4, %v4790_v49, %v4989_v34  ;;  %vm11482_vm0 = vmand %vm4850_vm13, %vm5354_vm11  ;;  %v5360_v40 = vld [vmem:[#allocation2 + $0xd0] sm:$0x88]  ;;  %v5366_v43 = vld [vmem:[#allocation2 + $0x48] sm:$0x88] }
 0x24b   : > { %v5044_v24 = vsel %vm12615_vm12, %v5041_v36, %v5043_v46  ;;  %v5039_v33 = vrot.slane %v5037_v9, 2  ;;  %v5097_v41 = vpack.i.b16 %v5081_v48, %v5081_v48  ;;  %v4993_v11 = vsel %vm11179_vm4, %v4794_v44, %v4992_v15  ;;  %4988 = vst [vmem:[#allocation2 + $0x70] sm:$0x88] %v4987_v51  ;;  %v5363_v10 = vld [vmem:[#allocation2 + $0x10] sm:$0x88] }
 0x24c   : > { %v4996_v37 = vsel %vm11179_vm4, %v4798_v47, %v4995_v56  ;;  %v1449_v52 = vpack.c.bf16 %v1400_v17, %v1399_v5  ;;  %v11487_v4 = vadd.f32 %v1290_v30, %v9084_v60  ;;  %v5046_v62 = vrot.slane %v5044_v24, 3  ;;  %4991 = vst [vmem:[#allocation2 + $0x30] sm:$0x88] %v4990_v28  ;;  %vm11511_vm4 = vmor %vm11482_vm0, %vm11467_vm2  ;;  %v5369_v34 = vld [vmem:[#allocation2 + $0x160] sm:$0x88] }
 0x24d   : > { %v5083_v14 = vunpack.i.h.s16 %v5032_v55  ;;  %vm12620_vm5 = vcmask 1040384   ;;  %vm12621_vm10 = vcmask 1041409   ;;  %v11497_v47 = vpack.i.b16 %v5032_v55, %v5032_v55  ;;  %4994 = vst [vmem:[#allocation2 + $0x158] sm:$0x88] %v4993_v11  ;;  %v5372_v57 = vld [vmem:[#allocation2 + $0x128] sm:$0x88] }
 0x24e   : > { %v11491_v44 = vsel %vm12620_vm5, %v11328_v27, %v5009_v26  ;;  %v11495_v18 = vsel %vm12621_vm10, %v11328_v27, %v5009_v26  ;;  %v5115_v1 = vperm.slane %v8128_v50, %v9105_v25  ;;  %v5119_v7 = vperm.slane %v8128_v50, %v9132_v59  ;;  %4997 = vst [vmem:[#allocation2 + $0x150] sm:$0x88] %v4996_v37  ;;  %v5375_v17 = vld [vmem:[#allocation2 + $0x40] sm:$0x88]  ;;  %v5381_v24 = vld [vmem:[#allocation2 + $0x108] sm:$0x88] }
 0x24f   : > { %vm12622_vm13 = vcmask 1042434   ;;  %v5085_v45 = vunpack.i.h.s16 %v5039_v33  ;;  %v5123_v21 = vperm.slane %v8128_v50, %v9134_v61  ;;  %v5127_v2 = vperm.slane %v5097_v41, %v9105_v25  ;;  %v5384_v50 = vld [vmem:[#allocation2 + $0x110] sm:$0x88]  ;;  %v5390_v37 = vld [vmem:[#allocation2 + $0x118] sm:$0x88] }
 0x250   : > { %v11503_v8 = vsel %vm12622_vm13, %v11328_v27, %v5009_v26  ;;  %v11517_v3 = vsel %vm1474_vm9, %v11328_v27, %v5009_v26  ;;  %v5131_v29 = vperm.slane %v5097_v41, %v9132_v59  ;;  %v11520_v12 = vrot.slane %v1449_v52, 6  ;;  %v5378_v26 = vld [vmem:[#allocation2 + $0x178] sm:$0x88]  ;;  %v5387_v11 = vld [vmem:[#allocation2 + $0x90] sm:$0x88] }
 0x251   : > { %v1401_v13 = vmax.f32 %v11487_v4, 0.0  ;;  %v1305_v54 = vadd.f32 %v1304_v42, %v9084_v60  ;;  %v5087_v39 = vunpack.i.h.s16 %v5046_v62  ;;  %v11524_v63 = vpack.i.b16 %v5083_v14, %v5083_v14  ;;  %v5393_v49 = vld [vmem:[#allocation2 + $0x148] sm:$0x88]  ;;  %v5396_v42 = vld [vmem:[#allocation2 + $0x100] sm:$0x88] }
 0x252   : > { %v5135_v6 = vperm.slane %v5097_v41, %v9134_v61  ;;  %v11527_v35 = vrot.slane %v1449_v52, 1  ;;  %v11529_v27 = vpack.i.b16 %v5039_v33, %v5039_v33  ;;  %v5139_v0 = vperm.slane %v11497_v47, %v9105_v25 }
 0x253   : > { %v5358_v53 = vsel %vm11511_vm4, %v5115_v1, %v5357_v23  ;;  %v5361_v60 = vsel %vm11511_vm4, %v5119_v7, %v5360_v40  ;;  %v11537_v31 = vpack.i.b16 %v5085_v45, %v5085_v45  ;;  %v5143_v20 = vperm.slane %v11497_v47, %v9132_v59  ;;  %v8146_v1 = vld [vmem:[%s12416_s3 + $0x8] sm:$0xf]  ;;  %v8577_v7 = vld [vmem:[%s12416_s3 + $0x1c] sm:$0x10]  ;;  %v8574_v40 = vld [vmem:[%s12416_s3 + $0xc] sm:$0xf] }
 0x254   : > { %5359 = vst [vmem:[#allocation2 + $0xb0] sm:$0x88] %v5358_v53  ;;  %v5364_v32 = vsel %vm11511_vm4, %v5123_v21, %v5363_v10  ;;  %v5367_v16 = vsel %vm11511_vm4, %v5127_v2, %v5366_v43  ;;  %v11545_v15 = vpack.i.b16 %v5046_v62, %v5046_v62  ;;  %v5147_v38 = vperm.slane %v11497_v47, %v9134_v61  ;;  %v5399_v47 = vld [vmem:[#allocation2 + $0x58] sm:$0x88] }
 0x255   : > { %5362 = vst [vmem:[#allocation2 + $0xd0] sm:$0x88] %v5361_v60  ;;  %v5370_v19 = vsel %vm11511_vm4, %v5131_v29, %v5369_v34  ;;  %v1402_v46 = vmax.f32 %v1305_v54, 0.0  ;;  %v11551_v56 = vpack.i.b16 %v5087_v39, %v5087_v39  ;;  %v5151_v9 = vperm.slane %v11524_v63, %v9105_v25  ;;  %v8138_v54 = vld [vmem:[%s12416_s3] sm:$0xf] }
 0x256   : > { %v5155_v48 = vperm.slane %v11524_v63, %v9132_v59  ;;  %5365 = vst [vmem:[#allocation2 + $0x10] sm:$0x88] %v5364_v32  ;;  %v5373_v5 = vsel %vm11511_vm4, %v5135_v6, %v5372_v57  ;;  %v5159_v36 = vperm.slane %v11524_v63, %v9134_v61  ;;  %v5163_v55 = vperm.slane %v11529_v27, %v9105_v25  ;;  %v8576_v39 = vld [vmem:[%s12416_s3 + $0x14] sm:$0x10]  ;;  %v5402_v60 = vld [vmem:[#allocation2 + $0xd8] sm:$0x88] }
 0x257   : > { %v5167_v30 = vperm.slane %v11529_v27, %v9132_v59  ;;  %5368 = vst [vmem:[#allocation2 + $0x48] sm:$0x88] %v5367_v16  ;;  %v5376_v51 = vsel %vm11511_vm4, %v5139_v0, %v5375_v17  ;;  %v5171_v28 = vperm.slane %v11529_v27, %v9134_v61  ;;  %v5175_v33 = vperm.slane %v11537_v31, %v9105_v25  ;;  %v8148_v27 = vld [vmem:[%s12416_s3 + $0x20] sm:$0x10] }
 0x258   : > { %v5179_v41 = vperm.slane %v11537_v31, %v9132_v59  ;;  %5371 = vst [vmem:[#allocation2 + $0x160] sm:$0x88] %v5370_v19  ;;  %v5379_v58 = vsel %vm11511_vm4, %v5143_v20, %v5378_v26  ;;  %v5183_v52 = vperm.slane %v11537_v31, %v9134_v61  ;;  %v5187_v4 = vperm.slane %v11545_v15, %v9105_v25 }
 0x259   : > { %v5191_v62 = vperm.slane %v11545_v15, %v9132_v59  ;;  %5374 = vst [vmem:[#allocation2 + $0x128] sm:$0x88] %v5373_v5  ;;  %v5382_v14 = vsel %vm11511_vm4, %v5147_v38, %v5381_v24  ;;  %v5195_v45 = vperm.slane %v11545_v15, %v9134_v61  ;;  %v5385_v21 = vsel %vm11511_vm4, %v5151_v9, %v5384_v50  ;;  %v5411_v50 = vld [vmem:[#allocation2 + $0x138] sm:$0x88] }
 0x25a   : > { %5377 = vst [vmem:[#allocation2 + $0x40] sm:$0x88] %v5376_v51  ;;  %v1450_v2 = vpack.c.bf16 %v1402_v46, %v1401_v13  ;;  %v8147_v29 = vor.u32 %v8577_v7, %v8146_v1  ;;  %v5388_v63 = vsel %vm11511_vm4, %v5155_v48, %v5387_v11  ;;  %v5391_v6 = vsel %vm11511_vm4, %v5159_v36, %v5390_v37  ;;  %v5405_v48 = vld [vmem:[#allocation2 + $0x80] sm:$0x88]  ;;  %v5408_v36 = vld [vmem:[#allocation2 + $0x130] sm:$0x88] }
 0x25b   : > { %5380 = vst [vmem:[#allocation2 + $0x178] sm:$0x88] %v5379_v58  ;;  %v5394_v23 = vsel %vm11511_vm4, %v5163_v55, %v5393_v49  ;;  %v8139_v13 = vor.u32 %v8576_v39, %v8138_v54  ;;  %v5397_v0 = vsel %vm11511_vm4, %v5167_v30, %v5396_v42  ;;  %v5400_v53 = vsel %vm11511_vm4, %v5171_v28, %v5399_v47  ;;  %v5414_v58 = vld [vmem:[#allocation2 + $0x120] sm:$0x88]  ;;  %v5423_v47 = vld [vmem:[#allocation2 + $0xb8] sm:$0x88] }
 0x25c   : > { %5383 = vst [vmem:[#allocation2 + $0x108] sm:$0x88] %v5382_v14  ;;  %v5012_v10 = vrot.slane %v1450_v2, 4  ;;  %v5013_v43 = vrot.slane %v1450_v2, 7  ;;  %5729 = vmatpush.bf16.xpose.msra.mxu2 %v8147_v29  ;;  %v5403_v31 = vsel %vm11511_vm4, %v5175_v33, %v5402_v60  ;;  %vm12625_vm3 = vcmask 1041408   ;;  %v11688_v39 = vld [vmem:[#allocation2 + $0xb0] sm:$0xff] }
 0x25d   : > { %5386 = vst [vmem:[#allocation2 + $0x110] sm:$0x88] %v5385_v21  ;;  %v5051_v20 = vsel %vm12625_vm3, %v11491_v44, %v11520_v12  ;;  %5703 = vmatpush.bf16.xpose.msra.mxu0 %v8139_v13  ;;  %v8151_v32 = vor.u32 %v8574_v40, %v8148_v27  ;;  %vm12626_vm11 = vcmask 1046534   ;;  %v5060_v44 = vsel %vm1486_vm6, %v11495_v18, %v11520_v12  ;;  %v5417_v11 = vld [vmem:[#allocation2 + $0xe0] sm:$0x88] }
 0x25e   : > { %5389 = vst [vmem:[#allocation2 + $0x90] sm:$0x88] %v5388_v63  ;;  %v5054_v16 = vsel %vm1474_vm9, %v11527_v35, %v5012_v10  ;;  %v5061_v34 = vsel %vm1488_vm7, %v11527_v35, %v5012_v10  ;;  %v5068_v38 = vsel %vm1500_vm8, %v11527_v35, %v5012_v10  ;;  %v5075_v19 = vsel %vm12626_vm11, %v11527_v35, %v5012_v10  ;;  %v5426_v1 = vld [vmem:[#allocation2 + $0x168] sm:$0x88]  ;;  %v11686_v54 = vld [vmem:[%s12416_s3 + $0x18] sm:$0x10] }
 0x25f   : > { %5392 = vst [vmem:[#allocation2 + $0x118] sm:$0x88] %v5391_v6  ;;  %v5056_v57 = vsel %vm1478_vm14, %v5054_v16, %v5013_v43  ;;  %vm12627_vm12 = vcmask 1045508   ;;  %v5069_v9 = vsel %vm1502_vm1, %v5068_v38, %v5013_v43  ;;  %vm12628_vm7 = vcmask 1043458   ;;  %5742 = vmatpush.bf16.xpose.msra.mxu3 %v8151_v32 }
 0x260   : > { %v5062_v46 = vsel %vm12627_vm12, %v5061_v34, %v5013_v43  ;;  %5395 = vst [vmem:[#allocation2 + $0x148] sm:$0x88] %v5394_v23  ;;  %v5067_v5 = vsel %vm12628_vm7, %v11503_v8, %v11520_v12  ;;  %vm12629_vm8 = vcmask 1042432   ;;  %vm12630_vm9 = vcmask 1043457  }
 0x261   : > { %v5057_v17 = vsel %vm12629_vm8, %v5051_v20, %v5056_v57  ;;  %v5063_v35 = vsel %vm12630_vm9, %v5060_v44, %v5062_v46  ;;  %vm12631_vm2 = vcmask 1045504   ;;  %5398 = vst [vmem:[#allocation2 + $0x100] sm:$0x88] %v5397_v0  ;;  %v5406_v18 = vsel %vm11511_vm4, %v5179_v41, %v5405_v48  ;;  %v5429_v0 = vld [vmem:[#allocation2 + $0xe8] sm:$0x88] }
 0x262   : > { %v5076_v26 = vsel %vm12631_vm2, %v5013_v43, %v5075_v19  ;;  %v5065_v55 = vrot.slane %v5063_v35, 1  ;;  %v5070_v30 = vsel %vm1504_vm15, %v5067_v5, %v5069_v9  ;;  %v5089_v51 = vunpack.i.h.s16 %v5057_v17  ;;  %5401 = vst [vmem:[#allocation2 + $0x58] sm:$0x88] %v5400_v53  ;;  %v5432_v53 = vld [vmem:[#allocation2 + $0xf8] sm:$0x88]  ;;  %v5502_v35 = vld [vmem:[#allocation2 + $0xd0] sm:$0xff] }
 0x263   : > { %v5199_v24 = vperm.slane %v11551_v56, %v9105_v25  ;;  %v5409_v8 = vsel %vm11511_vm4, %v5183_v52, %v5408_v36  ;;  %v5074_v28 = vsel %vm1478_vm14, %v11517_v3, %v11520_v12  ;;  %v5203_v33 = vperm.slane %v11551_v56, %v9132_v59  ;;  %5404 = vst [vmem:[#allocation2 + $0xd8] sm:$0x88] %v5403_v31  ;;  %v5420_v12 = vld [vmem:[#allocation2 + $0xa8] sm:$0x88]  ;;  %v5435_v43 = vld [vmem:[#allocation2 + $0x20] sm:$0x88] }
 0x264   : > { %v5412_v41 = vsel %vm11511_vm4, %v5187_v4, %v5411_v50  ;;  %vm12632_vm6 = vcmask 1045507   ;;  %v8132_v49 = vpack.i.b16 %v5057_v17, %v5057_v17  ;;  %v5207_v52 = vperm.slane %v11551_v56, %v9134_v61  ;;  %5407 = vst [vmem:[#allocation2 + $0x80] sm:$0x88] %v5406_v18  ;;  %v5438_v31 = vld [vmem:[#allocation2 + $0x88] sm:$0x88] }
 0x265   : > { %v5077_v37 = vsel %vm12632_vm6, %v5074_v28, %v5076_v26  ;;  %v5415_v3 = vsel %vm11511_vm4, %v5191_v62, %v5414_v58  ;;  %v5072_v14 = vrot.slane %v5070_v30, 2  ;;  %v5105_v42 = vpack.i.b16 %v5089_v51, %v5089_v51  ;;  %5410 = vst [vmem:[#allocation2 + $0x130] sm:$0x88] %v5409_v8  ;;  %v11675_v62 = vld [vmem:[%s12416_s3 + $0x4] sm:$0xf] }
 0x266   : > { %v5418_v4 = vsel %vm11511_vm4, %v5195_v45, %v5417_v11  ;;  %v5091_v56 = vunpack.i.h.s16 %v5065_v55  ;;  %5413 = vst [vmem:[#allocation2 + $0x138] sm:$0x88] %v5412_v41  ;;  %v5421_v7 = vsel %vm11511_vm4, %v5199_v24, %v5420_v12  ;;  %v5079_v21 = vrot.slane %v5077_v37, 3  ;;  %v5441_v44 = vld [vmem:[#allocation2 + $0xa0] sm:$0x88] }
 0x267   : > { %5416 = vst [vmem:[#allocation2 + $0x120] sm:$0x88] %v5415_v3  ;;  %v5424_v15 = vsel %vm11511_vm4, %v5203_v33, %v5423_v47  ;;  %v11679_v2 = vpack.i.b16 %v5065_v55, %v5065_v55  ;;  %v5211_v45 = vperm.slane %v8132_v49, %v9105_v25  ;;  %v5215_v29 = vperm.slane %v8132_v49, %v9132_v59  ;;  %v5444_v57 = vld [vmem:[#allocation2 + $0x170] sm:$0x88]  ;;  %v5450_v55 = vld [vmem:[#allocation2 + $0x140] sm:$0x88] }
 0x268   : > { %5419 = vst [vmem:[#allocation2 + $0xe0] sm:$0x88] %v5418_v4  ;;  %v5427_v63 = vsel %vm11511_vm4, %v5207_v52, %v5426_v1  ;;  %v5093_v6 = vunpack.i.h.s16 %v5072_v14  ;;  %v5219_v23 = vperm.slane %v8132_v49, %v9134_v61  ;;  %v5223_v13 = vperm.slane %v5105_v42, %v9105_v25  ;;  %v5447_v17 = vld [vmem:[#allocation2 + $0xf0] sm:$0x88]  ;;  %v8582_v24 = vld [vmem:[%s12416_s3 + $0x44] sm:$0x10] }
 0x269   : > { %5422 = vst [vmem:[#allocation2 + $0xa8] sm:$0x88] %v5421_v7  ;;  %v11694_v40 = vpack.i.b16 %v5091_v56, %v5091_v56  ;;  %v5227_v27 = vperm.slane %v5105_v42, %v9132_v59  ;;  %v5095_v60 = vunpack.i.h.s16 %v5079_v21  ;;  %v5231_v10 = vperm.slane %v5105_v42, %v9134_v61  ;;  %v8162_v51 = vld [vmem:[%s12416_s3 + $0x30] sm:$0xf]  ;;  %v5453_v41 = vld [vmem:[#allocation2 + $0x60] sm:$0x88] }
 0x26a   : > { %5425 = vst [vmem:[#allocation2 + $0xb8] sm:$0x88] %v5424_v15  ;;  %v8143_v20 = vor.u32 %v11675_v62, %v11686_v54  ;;  %v5648_v32 = vunpack.c.l.b16 %v11688_v39  ;;  %v11701_v16 = vpack.i.b16 %v5072_v14, %v5072_v14  ;;  %v5235_v34 = vperm.slane %v11679_v2, %v9105_v25  ;;  %v5456_v58 = vld [vmem:[#allocation2 + $0xc8] sm:$0x88]  ;;  %v8154_v11 = vld [vmem:[%s12416_s3 + $0x10] sm:$0xf] }
 0x26b   : > { %5428 = vst [vmem:[#allocation2 + $0x168] sm:$0x88] %v5427_v63  ;;  %v5430_v38 = vsel %vm11511_vm4, %v5211_v45, %v5429_v0  ;;  %v5433_v19 = vsel %vm11511_vm4, %v5215_v29, %v5432_v53  ;;  %v11709_v46 = vpack.i.b16 %v5093_v6, %v5093_v6  ;;  %v5239_v9 = vperm.slane %v11679_v2, %v9132_v59  ;;  %v8578_v37 = vld [vmem:[%s12416_s3 + $0x24] sm:$0x10]  ;;  %v5459_v14 = vld [vmem:[#allocation2 + $0x28] sm:$0x88] }
 0x26c   : > { %5431 = vst [vmem:[#allocation2 + $0xe8] sm:$0x88] %v5430_v38  ;;  %v5436_v48 = vsel %vm11511_vm4, %v5219_v23, %v5435_v43  ;;  %v5439_v5 = vsel %vm11511_vm4, %v5223_v13, %v5438_v31  ;;  %v5243_v26 = vperm.slane %v11679_v2, %v9134_v61  ;;  %v5247_v18 = vperm.slane %v11694_v40, %v9105_v25  ;;  %v8579_v42 = vld [vmem:[%s12416_s3 + $0x34] sm:$0xf]  ;;  %v8164_v4 = vld [vmem:[%s12416_s3 + $0x48] sm:$0x10] }
 0x26d   : > { %5434 = vst [vmem:[#allocation2 + $0xf8] sm:$0x88] %v5433_v19  ;;  %v5442_v36 = vsel %vm11511_vm4, %v5227_v27, %v5441_v44  ;;  %v5649_v30 = vunpack.c.h.b16 %v11688_v39  ;;  %v11730_v8 = vpack.i.b16 %v5079_v21, %v5079_v21  ;;  %v11732_v50 = vpack.i.b16 %v5095_v60, %v5095_v60  ;;  %v8575_v21 = vld [vmem:[%s12416_s3 + $0x14] sm:$0xf]  ;;  %v8156_v62 = vld [vmem:[%s12416_s3 + $0x28] sm:$0x10]  ;;  %5716 = vmatpush.bf16.xpose.msra.mxu1 %v8143_v20 }
 0x26e   : > { %v5251_v28 = vperm.slane %v11694_v40, %v9132_v59  ;;  %5437 = vst [vmem:[#allocation2 + $0x20] sm:$0x88] %v5436_v48  ;;  %v5445_v33 = vsel %vm11511_vm4, %v5231_v10, %v5444_v57  ;;  %v5255_v49 = vperm.slane %v11694_v40, %v9134_v61  ;;  %v5259_v52 = vperm.slane %v11701_v16, %v9105_v25  ;;  %v5462_v45 = vld [vmem:[#allocation2 + $0x38] sm:$0x88]  ;;  %v8178_v39 = vld [vmem:[%s12416_s3 + $0x40] sm:$0xf] }
 0x26f   : > { %v5263_v3 = vperm.slane %v11701_v16, %v9132_v59  ;;  %5440 = vst [vmem:[#allocation2 + $0x88] sm:$0x88] %v5439_v5  ;;  %v5448_v12 = vsel %vm11511_vm4, %v5235_v34, %v5447_v17  ;;  %v5267_v47 = vperm.slane %v11701_v16, %v9134_v61  ;;  %v5271_v1 = vperm.slane %v11709_v46, %v9105_v25  ;;  %v8584_v63 = vld [vmem:[%s12416_s3 + $0x54] sm:$0x10]  ;;  %v5465_v23 = vld [vmem:[#allocation2 + $0xc0] sm:$0x88] }
 0x270   : > { %v5275_v56 = vperm.slane %v11709_v46, %v9132_v59  ;;  %5443 = vst [vmem:[#allocation2 + $0xa0] sm:$0x88] %v5442_v36  ;;  %v5451_v7 = vsel %vm11511_vm4, %v5239_v9, %v5450_v55  ;;  %v5454_v15 = vsel %vm11511_vm4, %v5243_v26, %v5453_v41  ;;  %v5457_v2 = vsel %vm11511_vm4, %v5247_v18, %v5456_v58  ;;  %v8170_v0 = vld [vmem:[%s12416_s3 + $0x38] sm:$0xf]  ;;  %v8583_v53 = vld [vmem:[%s12416_s3 + $0x4c] sm:$0x10] }
 0x271   : > { %5446 = vst [vmem:[#allocation2 + $0x170] sm:$0x88] %v5445_v33  ;;  %v5654_v29 = vpack.c.b16 %v5648_v32, %v5648_v32  ;;  %v5650_v54 = vunpack.c.l.b16 %v5502_v35  ;;  %v5460_v6 = vsel %vm11511_vm4, %v5251_v28, %v5459_v14  ;;  %v5651_v13 = vunpack.c.h.b16 %v5502_v35  ;;  %v8581_v31 = vld [vmem:[%s12416_s3 + $0x44] sm:$0xf]  ;;  %v8180_v20 = vld [vmem:[%s12416_s3 + $0x58] sm:$0x10] }
 0x272   : > { %5449 = vst [vmem:[#allocation2 + $0xf0] sm:$0x88] %v5448_v12  ;;  %v8163_v40 = vor.u32 %v8582_v24, %v8162_v51  ;;  %v8155_v27 = vor.u32 %v8578_v37, %v8154_v11  ;;  %v8167_v10 = vor.u32 %v8579_v42, %v8164_v4  ;;  %v8159_v43 = vor.u32 %v8575_v21, %v8156_v62  ;;  %v8580_v38 = vld [vmem:[%s12416_s3 + $0x3c] sm:$0xf]  ;;  %v8172_v19 = vld [vmem:[%s12416_s3 + $0x50] sm:$0x10] }
 0x273   : > { %5452 = vst [vmem:[#allocation2 + $0x140] sm:$0x88] %v5451_v7  ;;  %5704 = vmatmul.bf16.vlgmr.msra.gmra.mxu0 %v5654_v29  ;;  %v5656_v60 = vpack.c.b16 %v5650_v54, %v5650_v54  ;;  %v5463_v32 = vsel %vm11511_vm4, %v5255_v49, %v5462_v45  ;;  %v5655_v16 = vpack.c.b16 %v5649_v30, %v5649_v30  ;;  %v5468_v57 = vld [vmem:[#allocation2 + $0x18] sm:$0x88]  ;;  %v5474_v36 = vld [vmem:[#allocation2 + $0x8] sm:$0x88] }
 0x274   : > { %5455 = vst [vmem:[#allocation2 + $0x60] sm:$0x88] %v5454_v15  ;;  %v5657_v34 = vpack.c.b16 %v5651_v13, %v5651_v13  ;;  %5832 = vmatpush.bf16.xpose.msrb.mxu2 %v8163_v40  ;;  %5755 = vmatpush.bf16.xpose.msrb.mxu0 %v8155_v27  ;;  %v5466_v44 = vsel %vm11511_vm4, %v5259_v52, %v5465_v23  ;;  %v5471_v26 = vld [vmem:[#allocation2 + $0x98] sm:$0x88]  ;;  %v5477_v28 = vld [vmem:[#allocation2] sm:$0x88] }
 0x275   : > { %5458 = vst [vmem:[#allocation2 + $0xc8] sm:$0x88] %v5457_v2  ;;  %5730 = vmatmul.bf16.vlgmr.msra.gmra.mxu2 %v5656_v60  ;;  %5845 = vmatpush.bf16.xpose.msrb.mxu3 %v8167_v10  ;;  %v8179_v9 = vor.u32 %v8584_v63, %v8178_v39  ;;  %v8171_v48 = vor.u32 %v8583_v53, %v8170_v0  ;;  %v5480_v58 = vld [vmem:[#allocation2 + $0x78] sm:$0x88]  ;;  %v5483_v49 = vld [vmem:[#allocation2 + $0x50] sm:$0x88] }
 0x276   : > { %v5279_v5 = vperm.slane %v11709_v46, %v9134_v61  ;;  %v5283_v17 = vperm.slane %v11730_v8, %v9105_v25  ;;  %5461 = vst [vmem:[#allocation2 + $0x28] sm:$0x88] %v5460_v6  ;;  %v5469_v35 = vsel %vm11511_vm4, %v5263_v3, %v5468_v57  ;;  %5743 = vmatmul.bf16.vlgmr.msra.gmra.mxu3 %v5657_v34  ;;  %v5503_v52 = vld [vmem:[#allocation2 + $0x10] sm:$0xff]  ;;  %v5486_v3 = vld [vmem:[#allocation2 + $0x68] sm:$0x88]  ;;  %vm7709_vm14 = vcmask 80896  }
 0x277   : > { %5768 = vmatpush.bf16.xpose.msrb.mxu1 %v8159_v43  ;;  %5464 = vst [vmem:[#allocation2 + $0x38] sm:$0x88] %v5463_v32  ;;  %v5472_v18 = vsel %vm11511_vm4, %v5267_v47, %v5471_v26  ;;  %v8183_v55 = vor.u32 %v8581_v31, %v8180_v20  ;;  %v8175_v30 = vor.u32 %v8580_v38, %v8172_v19  ;;  %v5489_v12 = vld [vmem:[#allocation2 + $0x70] sm:$0x88]  ;;  %v5504_v4 = vld [vmem:[#allocation2 + $0x48] sm:$0xff]  ;;  %v5653_v23 = vunpack.c.h.b16 %v5503_v52  ;;  %v5505_v43 = vld [vmem:[#allocation2 + $0x160] sm:$0xff] }
 0x278   : > { %v5287_v51 = vperm.slane %v11730_v8, %v9132_v59  ;;  %5467 = vst [vmem:[#allocation2 + $0xc0] sm:$0x88] %v5466_v44  ;;  %v5475_v24 = vsel %vm11511_vm4, %v5271_v1, %v5474_v36  ;;  %5717 = vmatmul.bf16.vlgmr.msra.gmra.mxu1 %v5655_v16  ;;  %v5291_v33 = vperm.slane %v11730_v8, %v9134_v61  ;;  %v5492_v42 = vld [vmem:[#allocation2 + $0x30] sm:$0x88]  ;;  %v8186_v1 = vld [vmem:[%s12416_s3 + $0x60] sm:$0xf]  ;;  %v5777_v62 = vunpack.c.l.b16 %v5504_v4 }
 0x279   : > { %5470 = vst [vmem:[#allocation2 + $0x18] sm:$0x88] %v5469_v35  ;;  %v5478_v41 = vsel %vm11511_vm4, %v5275_v56, %v5477_v28  ;;  %v5295_v11 = vperm.slane %v11732_v50, %v9105_v25  ;;  %v5481_v37 = vsel %vm11511_vm4, %v5279_v5, %v5480_v58  ;;  %v5299_v8 = vperm.slane %v11732_v50, %v9132_v59  ;;  %v8588_v56 = vld [vmem:[%s12416_s3 + $0x74] sm:$0x10]  ;;  %v5498_v7 = vld [vmem:[#allocation2 + $0x150] sm:$0x88] }
 0x27a   : > { %5473 = vst [vmem:[#allocation2 + $0x98] sm:$0x88] %v5472_v18  ;;  %v5484_v46 = vsel %vm11511_vm4, %v5283_v17, %v5483_v49  ;;  %v5303_v14 = vperm.slane %v11732_v50, %v9134_v61  ;;  %v5487_v25 = vsel %vm11511_vm4, %v5287_v51, %v5486_v3  ;;  %v5490_v47 = vsel %vm11511_vm4, %v5291_v33, %v5489_v12  ;;  %v5495_v50 = vld [vmem:[#allocation2 + $0x158] sm:$0x88]  ;;  %v8194_v15 = vld [vmem:[%s12416_s3 + $0x68] sm:$0xf] }
 0x27b   : > { %5476 = vst [vmem:[#allocation2 + $0x8] sm:$0x88] %v5475_v24  ;;  %v5652_v59 = vunpack.c.l.b16 %v5503_v52  ;;  %v5493_v61 = vsel %vm11511_vm4, %v5295_v11, %v5492_v42  ;;  %v5496_v21 = vsel %vm11511_vm4, %v5299_v8, %v5495_v50  ;;  %v8589_v2 = vld [vmem:[%s12416_s3 + $0x7c] sm:$0x10]  ;;  %v5778_v29 = vunpack.c.h.b16 %v5504_v4  ;;  %v8586_v39 = vld [vmem:[%s12416_s3 + $0x6c] sm:$0xf] }
 0x27c   : > { %5884 = vmatpush.bf16.xpose.msra.mxu2 %v8179_v9  ;;  %5858 = vmatpush.bf16.xpose.msra.mxu0 %v8171_v48  ;;  %5479 = vst [vmem:[#allocation2] sm:$0x88] %v5478_v41  ;;  %v5499_v45 = vsel %vm11511_vm4, %v5303_v14, %v5498_v7  ;;  %v8187_v54 = vor.u32 %v8588_v56, %v8186_v1  ;;  %v8196_v63 = vld [vmem:[%s12416_s3 + $0x80] sm:$0x10]  ;;  %v8188_v40 = vld [vmem:[%s12416_s3 + $0x78] sm:$0x10]  ;;  %v5779_v20 = vunpack.c.l.b16 %v5505_v43  ;;  %v5780_v17 = vunpack.c.h.b16 %v5505_v43 }
 0x27d   : > { %5897 = vmatpush.bf16.xpose.msra.mxu3 %v8183_v55  ;;  %5482 = vst [vmem:[#allocation2 + $0x78] sm:$0x88] %v5481_v37  ;;  %v5658_v6 = vpack.c.b16 %v5652_v59, %v5652_v59  ;;  %v8195_v13 = vor.u32 %v8589_v2, %v8194_v15  ;;  %v5783_v27 = vpack.c.b16 %v5777_v62, %v5777_v62  ;;  %v5506_v31 = vld [vmem:[#allocation2 + $0x128] sm:$0xff]  ;;  %v8202_v32 = vld [vmem:[%s12416_s3 + $0x70] sm:$0xf]  ;;  %v5507_v28 = vld [vmem:[#allocation2 + $0x40] sm:$0xff] }
 0x27e   : > { %5485 = vst [vmem:[#allocation2 + $0x50] sm:$0x88] %v5484_v46  ;;  %v8199_v0 = vor.u32 %v8586_v39, %v8196_v63  ;;  %v5784_v53 = vpack.c.b16 %v5778_v29, %v5778_v29  ;;  %v8191_v60 = vor.u32 %v8585_v22, %v8188_v40  ;;  %v5659_v10 = vpack.c.b16 %v5653_v23, %v5653_v23  ;;  %v8590_v16 = vld [vmem:[%s12416_s3 + $0x84] sm:$0x10]  ;;  %v8210_v38 = vld [vmem:[%s12416_s3 + $0x90] sm:$0xf] }
 0x27f   : > { %5871 = vmatpush.bf16.xpose.msra.mxu1 %v8175_v30  ;;  %5488 = vst [vmem:[#allocation2 + $0x68] sm:$0x88] %v5487_v25  ;;  %v5781_v34 = vunpack.c.l.b16 %v5506_v31  ;;  %v8594_v19 = vld [vmem:[%s12416_s3 + $0xa4] sm:$0x10]  ;;  %v5782_v44 = vunpack.c.h.b16 %v5506_v31  ;;  %v8203_v57 = vor.u32 %v8590_v16, %v8202_v32  ;;  %v8591_v9 = vld [vmem:[%s12416_s3 + $0x94] sm:$0xf]  ;;  %v5785_v5 = vpack.c.b16 %v5779_v20, %v5779_v20 }
 0x280   : > { %5491 = vst [vmem:[#allocation2 + $0x70] sm:$0x88] %v5490_v47  ;;  %v8212_v48 = vld [vmem:[%s12416_s3 + $0xa8] sm:$0x10]  ;;  %v8211_v35 = vor.u32 %v8594_v19, %v8210_v38  ;;  %v8587_v26 = vld [vmem:[%s12416_s3 + $0x74] sm:$0xf]  ;;  %v5786_v24 = vpack.c.b16 %v5780_v17, %v5780_v17  ;;  %v5906_v41 = vunpack.c.l.b16 %v5507_v28  ;;  %v5907_v25 = vunpack.c.h.b16 %v5507_v28 }
 0x281   : > { %5494 = vst [vmem:[#allocation2 + $0x30] sm:$0x88] %v5493_v61  ;;  %v8204_v18 = vld [vmem:[%s12416_s3 + $0x88] sm:$0x10]  ;;  %v5787_v36 = vpack.c.b16 %v5781_v34, %v5781_v34  ;;  %v8215_v55 = vor.u32 %v8591_v9, %v8212_v48  ;;  %v5788_v30 = vpack.c.b16 %v5782_v44, %v5782_v44  ;;  %v5508_v33 = vld [vmem:[#allocation2 + $0x178] sm:$0xff]  ;;  %v5511_v20 = vld [vmem:[#allocation2 + $0x90] sm:$0xff] }
 0x282   : > { %5497 = vst [vmem:[#allocation2 + $0x158] sm:$0x88] %v5496_v21  ;;  %v8207_v51 = vor.u32 %v8587_v26, %v8204_v18  ;;  %v8218_v58 = vld [vmem:[%s12416_s3 + $0x98] sm:$0xf]  ;;  %v8595_v11 = vld [vmem:[%s12416_s3 + $0xac] sm:$0x10]  ;;  %v5908_v37 = vunpack.c.l.b16 %v5508_v33  ;;  %v5909_v8 = vunpack.c.h.b16 %v5508_v33  ;;  %v5912_v14 = vpack.c.b16 %v5906_v41, %v5906_v41 }
 0x283   : > { %5500 = vst [vmem:[#allocation2 + $0x150] sm:$0x88] %v5499_v45  ;;  %5756 = vmatmul.bf16.vlgmr.msrb.gmra.mxu0 %v5658_v6  ;;  %v8226_v49 = vld [vmem:[%s12416_s3 + $0xa0] sm:$0xf]  ;;  %v8596_v52 = vld [vmem:[%s12416_s3 + $0xb4] sm:$0x10]  ;;  %v8219_v46 = vor.u32 %v8595_v11, %v8218_v58  ;;  %v5913_v50 = vpack.c.b16 %v5907_v25, %v5907_v25  ;;  %v6037_v16 = vunpack.c.l.b16 %v5511_v20  ;;  %v6038_v26 = vunpack.c.h.b16 %v5511_v20 }
 0x284   : > { %5961 = vmatpush.bf16.xpose.msrb.mxu0 %v8187_v54  ;;  %v8593_v3 = vld [vmem:[%s12416_s3 + $0xa4] sm:$0xf]  ;;  %v8228_v12 = vld [vmem:[%s12416_s3 + $0xb8] sm:$0x10]  ;;  %v8227_v42 = vor.u32 %v8596_v52, %v8226_v49  ;;  %v8220_v47 = vld [vmem:[%s12416_s3 + $0xb0] sm:$0x10]  ;;  %v5914_v59 = vpack.c.b16 %v5908_v37, %v5908_v37  ;;  %v5915_v56 = vpack.c.b16 %v5909_v8, %v5909_v8 }
 0x285   : > { %5833 = vmatmul.bf16.vlgmr.msrb.gmra.mxu2 %v5783_v27  ;;  %v8592_v4 = vld [vmem:[%s12416_s3 + $0x9c] sm:$0xf]  ;;  %v8231_v1 = vor.u32 %v8593_v3, %v8228_v12  ;;  %v5509_v7 = vld [vmem:[#allocation2 + $0x108] sm:$0xff]  ;;  %v5510_v21 = vld [vmem:[#allocation2 + $0x110] sm:$0xff]  ;;  %v6044_v33 = vpack.c.b16 %v6038_v26, %v6038_v26 }
 0x286   : > { %5846 = vmatmul.bf16.vlgmr.msrb.gmra.mxu3 %v5784_v53  ;;  %5987 = vmatpush.bf16.xpose.msrb.mxu2 %v8195_v13  ;;  %v8223_v61 = vor.u32 %v8592_v4, %v8220_v47  ;;  %v5910_v62 = vunpack.c.l.b16 %v5509_v7  ;;  %v8234_v15 = vld [vmem:[%s12416_s3 + $0xc0] sm:$0xf]  ;;  %v8600_v2 = vld [vmem:[%s12416_s3 + $0xd4] sm:$0x10]  ;;  %v6035_v45 = vunpack.c.l.b16 %v5510_v21  ;;  %v8242_v29 = vld [vmem:[%s12416_s3 + $0xc8] sm:$0xf]  ;;  %v6036_v39 = vunpack.c.h.b16 %v5510_v21 }
 0x287   : > { %6000 = vmatpush.bf16.xpose.msrb.mxu3 %v8199_v0  ;;  %v8601_v54 = vld [vmem:[%s12416_s3 + $0xdc] sm:$0x10]  ;;  %v8235_v63 = vor.u32 %v8600_v2, %v8234_v15  ;;  %v8598_v6 = vld [vmem:[%s12416_s3 + $0xcc] sm:$0xf]  ;;  %v8244_v23 = vld [vmem:[%s12416_s3 + $0xe0] sm:$0x10]  ;;  %v5911_v22 = vunpack.c.h.b16 %v5509_v7 }
 0x288   : > { %5769 = vmatmul.bf16.vlgmr.msrb.gmra.mxu1 %v5659_v10  ;;  %v5916_v13 = vpack.c.b16 %v5910_v62, %v5910_v62  ;;  %v8243_v40 = vor.u32 %v8601_v54, %v8242_v29  ;;  %v8597_v27 = vld [vmem:[%s12416_s3 + $0xc4] sm:$0xf]  ;;  %v8236_v0 = vld [vmem:[%s12416_s3 + $0xd8] sm:$0x10]  ;;  %v6041_v53 = vpack.c.b16 %v6035_v45, %v6035_v45  ;;  %v6042_v10 = vpack.c.b16 %v6036_v39, %v6036_v39  ;;  %v8250_v34 = vld [vmem:[%s12416_s3 + $0xd0] sm:$0xf] }
 0x289   : > { %5974 = vmatpush.bf16.xpose.msrb.mxu1 %v8191_v60  ;;  %v8247_v60 = vor.u32 %v8598_v6, %v8244_v23  ;;  %v8239_v43 = vor.u32 %v8597_v27, %v8236_v0  ;;  %v5917_v31 = vpack.c.b16 %v5911_v22, %v5911_v22  ;;  %v5512_v32 = vld [vmem:[#allocation2 + $0x118] sm:$0xff]  ;;  %v8602_v38 = vld [vmem:[%s12416_s3 + $0xe4] sm:$0x10]  ;;  %v8258_v44 = vld [vmem:[%s12416_s3 + $0xf0] sm:$0xf] }
 0x28a   : > { %v6039_v19 = vunpack.c.l.b16 %v5512_v32  ;;  %v6040_v9 = vunpack.c.h.b16 %v5512_v32  ;;  %v8251_v48 = vor.u32 %v8602_v38, %v8250_v34  ;;  %v8260_v17 = vld [vmem:[%s12416_s3 + $0x108] sm:$0x10]  ;;  %v5514_v58 = vld [vmem:[#allocation2 + $0x100] sm:$0xff]  ;;  %v8266_v37 = vld [vmem:[%s12416_s3 + $0xf8] sm:$0xf] }
 0x28b   : > { %v5513_v41 = vld [vmem:[#allocation2 + $0x148] sm:$0xff]  ;;  %v8607_v49 = vld [vmem:[%s12416_s3 + $0x10c] sm:$0x10]  ;;  %v6166_v52 = vunpack.c.l.b16 %v5514_v58  ;;  %v8274_v8 = vld [vmem:[%s12416_s3 + $0x100] sm:$0xf]  ;;  %v6167_v3 = vunpack.c.h.b16 %v5514_v58 }
 0x28c   : > { %v6164_v11 = vunpack.c.l.b16 %v5513_v41  ;;  %v8267_v12 = vor.u32 %v8607_v49, %v8266_v37  ;;  %v8276_v25 = vld [vmem:[%s12416_s3 + $0x118] sm:$0x10]  ;;  %v6165_v4 = vunpack.c.h.b16 %v5513_v41  ;;  %v8282_v45 = vld [vmem:[%s12416_s3 + $0x120] sm:$0xf]  ;;  %v8612_v29 = vld [vmem:[%s12416_s3 + $0x134] sm:$0x10] }
 0x28d   : > { %v5515_v62 = vld [vmem:[#allocation2 + $0x58] sm:$0xff]  ;;  %v8290_v39 = vld [vmem:[%s12416_s3 + $0x128] sm:$0xf]  ;;  %v8283_v23 = vor.u32 %v8612_v29, %v8282_v45  ;;  %v8292_v22 = vld [vmem:[%s12416_s3 + $0x140] sm:$0x10] }
 0x28e   : > { %v6171_v21 = vpack.c.b16 %v6165_v4, %v6165_v4  ;;  %v5516_v15 = vld [vmem:[#allocation2 + $0xd8] sm:$0xff]  ;;  %v6168_v2 = vunpack.c.l.b16 %v5515_v62  ;;  %v6169_v27 = vunpack.c.h.b16 %v5515_v62  ;;  %v5518_v34 = vld [vmem:[#allocation2 + $0x130] sm:$0xff] }
 0x28f   : > { %v6293_v54 = vunpack.c.l.b16 %v5516_v15  ;;  %v6294_v6 = vunpack.c.h.b16 %v5516_v15  ;;  %v8615_v26 = vld [vmem:[%s12416_s3 + $0x154] sm:$0xf]  ;;  %v8617_v15 = vld [vmem:[%s12416_s3 + $0x164] sm:$0xf] }
 0x290   : > { %v6175_v32 = vpack.c.b16 %v6169_v27, %v6169_v27 }
 0x293   : > { %5859 = vmatmul.bf16.vlgmr.msra.gmra.mxu0 %v5785_v5  ;;  %v8603_v5 = vld [vmem:[%s12416_s3 + $0xf4] sm:$0xf] }
 0x294   : > { %6013 = vmatpush.bf16.xpose.msra.mxu0 %v8203_v57  ;;  %v8606_v57 = vld [vmem:[%s12416_s3 + $0x104] sm:$0x10] }
 0x295   : > { %5885 = vmatmul.bf16.vlgmr.msra.gmra.mxu2 %v5787_v36  ;;  %v8259_v18 = vor.u32 %v8606_v57, %v8258_v44  ;;  %v8599_v36 = vld [vmem:[%s12416_s3 + $0xd4] sm:$0xf]  ;;  %v8614_v44 = vld [vmem:[%s12416_s3 + $0x144] sm:$0x10]  ;;  %v6297_v57 = vunpack.c.l.b16 %v5518_v34 }
 0x296   : > { %5898 = vmatmul.bf16.vlgmr.msra.gmra.mxu3 %v5788_v30  ;;  %6090 = vmatpush.bf16.xpose.msra.mxu2 %v8211_v35  ;;  %v6043_v35 = vpack.c.b16 %v6037_v16, %v6037_v16  ;;  %v6045_v30 = vpack.c.b16 %v6039_v19, %v6039_v19  ;;  %v5517_v16 = vld [vmem:[#allocation2 + $0x80] sm:$0xff]  ;;  %v8298_v19 = vld [vmem:[%s12416_s3 + $0x130] sm:$0xf] }
 0x297   : > { %6103 = vmatpush.bf16.xpose.msra.mxu3 %v8215_v55  ;;  %v8252_v55 = vld [vmem:[%s12416_s3 + $0xe8] sm:$0x10]  ;;  %v6295_v38 = vunpack.c.l.b16 %v5517_v16 }
 0x298   : > { %5872 = vmatmul.bf16.vlgmr.msra.gmra.mxu1 %v5786_v24  ;;  %v6046_v24 = vpack.c.b16 %v6040_v9, %v6040_v9  ;;  %v8255_v28 = vor.u32 %v8599_v36, %v8252_v55  ;;  %v8306_v9 = vld [vmem:[%s12416_s3 + $0x150] sm:$0xf]  ;;  %v6296_v55 = vunpack.c.h.b16 %v5517_v16  ;;  %v5522_v16 = vld [vmem:[#allocation2 + $0xa8] sm:$0xff] }
 0x299   : > { %6026 = vmatpush.bf16.xpose.msra.mxu1 %v8207_v51  ;;  %v8263_v51 = vor.u32 %v8603_v5, %v8260_v17  ;;  %v6298_v17 = vunpack.c.h.b16 %v5518_v34  ;;  %v6301_v36 = vpack.c.b16 %v6295_v38, %v6295_v38 }
 0x29a   : > { %v6302_v49 = vpack.c.b16 %v6296_v55, %v6296_v55 }
 0x29b   : > { %v6304_v41 = vpack.c.b16 %v6298_v17, %v6298_v17 }
 0x2a3   : > { %5962 = vmatmul.bf16.vlgmr.msrb.gmra.mxu0 %v5912_v14  ;;  %v8605_v14 = vld [vmem:[%s12416_s3 + $0x104] sm:$0xf] }
 0x2a4   : > { %6116 = vmatpush.bf16.xpose.msrb.mxu0 %v8219_v46  ;;  %v8608_v46 = vld [vmem:[%s12416_s3 + $0x114] sm:$0x10] }
 0x2a5   : > { %5988 = vmatmul.bf16.vlgmr.msrb.gmra.mxu2 %v5914_v59  ;;  %v8275_v47 = vor.u32 %v8608_v46, %v8274_v8  ;;  %v8604_v59 = vld [vmem:[%s12416_s3 + $0xfc] sm:$0xf] }
 0x2a6   : > { %6001 = vmatmul.bf16.vlgmr.msrb.gmra.mxu3 %v5915_v56  ;;  %6142 = vmatpush.bf16.xpose.msrb.mxu2 %v8227_v42  ;;  %v6170_v42 = vpack.c.b16 %v6164_v11, %v6164_v11  ;;  %v6172_v56 = vpack.c.b16 %v6166_v52, %v6166_v52 }
 0x2a7   : > { %6155 = vmatpush.bf16.xpose.msrb.mxu3 %v8231_v1  ;;  %v8268_v1 = vld [vmem:[%s12416_s3 + $0x110] sm:$0x10] }
 0x2a8   : > { %5975 = vmatmul.bf16.vlgmr.msrb.gmra.mxu1 %v5913_v50  ;;  %v6173_v50 = vpack.c.b16 %v6167_v3, %v6167_v3  ;;  %v8271_v7 = vor.u32 %v8604_v59, %v8268_v1  ;;  %v8619_v59 = vld [vmem:[%s12416_s3 + $0x16c] sm:$0x10] }
 0x2a9   : > { %6129 = vmatpush.bf16.xpose.msrb.mxu1 %v8223_v61  ;;  %v8279_v61 = vor.u32 %v8605_v14, %v8276_v25  ;;  %v5520_v25 = vld [vmem:[#allocation2 + $0x120] sm:$0xff] }
 0x2aa   : > { %v6424_v1 = vunpack.c.l.b16 %v5520_v25 }
 0x2b3   : > { %6014 = vmatmul.bf16.vlgmr.msra.gmra.mxu0 %v5916_v13  ;;  %v8610_v13 = vld [vmem:[%s12416_s3 + $0x12c] sm:$0xf] }
 0x2b4   : > { %6219 = vmatpush.bf16.xpose.msra.mxu0 %v8235_v63  ;;  %v8613_v63 = vld [vmem:[%s12416_s3 + $0x13c] sm:$0x10] }
 0x2b5   : > { %6091 = vmatmul.bf16.vlgmr.msra.gmra.mxu2 %v6041_v53  ;;  %v8291_v0 = vor.u32 %v8613_v63, %v8290_v39  ;;  %v8609_v53 = vld [vmem:[%s12416_s3 + $0x124] sm:$0xf] }
 0x2b6   : > { %6104 = vmatmul.bf16.vlgmr.msra.gmra.mxu3 %v6042_v10  ;;  %6245 = vmatpush.bf16.xpose.msra.mxu2 %v8243_v40  ;;  %v6174_v40 = vpack.c.b16 %v6168_v2, %v6168_v2  ;;  %v6299_v10 = vpack.c.b16 %v6293_v54, %v6293_v54  ;;  %v8324_v2 = vld [vmem:[%s12416_s3 + $0x178] sm:$0x10] }
 0x2b7   : > { %6258 = vmatpush.bf16.xpose.msra.mxu3 %v8247_v60  ;;  %v8284_v60 = vld [vmem:[%s12416_s3 + $0x138] sm:$0x10] }
 0x2b8   : > { %6027 = vmatmul.bf16.vlgmr.msra.gmra.mxu1 %v5917_v31  ;;  %v6300_v31 = vpack.c.b16 %v6294_v6, %v6294_v6  ;;  %v8287_v20 = vor.u32 %v8609_v53, %v8284_v60  ;;  %v8616_v6 = vld [vmem:[%s12416_s3 + $0x15c] sm:$0xf] }
 0x2b9   : > { %6232 = vmatpush.bf16.xpose.msra.mxu1 %v8239_v43  ;;  %v8295_v43 = vor.u32 %v8610_v13, %v8292_v22  ;;  %v6430_v13 = vpack.c.b16 %v6424_v1, %v6424_v1  ;;  %v8327_v22 = vor.u32 %v8617_v15, %v8324_v2  ;;  %v8354_v15 = vld [vmem:[%s12416_s3 + $0x1b0] sm:$0xf]  ;;  %v8630_v2 = vld [vmem:[%s12416_s3 + $0x1c4] sm:$0x10] }
 0x2c3   : > { %6117 = vmatmul.bf16.vlgmr.msrb.gmra.mxu0 %v6043_v35  ;;  %v8299_v35 = vor.u32 %v8614_v44, %v8298_v19  ;;  %v8330_v19 = vld [vmem:[%s12416_s3 + $0x180] sm:$0xf]  ;;  %v8624_v44 = vld [vmem:[%s12416_s3 + $0x194] sm:$0x10] }
 0x2c4   : > { %6271 = vmatpush.bf16.xpose.msrb.mxu0 %v8251_v48  ;;  %v8618_v48 = vld [vmem:[%s12416_s3 + $0x164] sm:$0x10] }
 0x2c5   : > { %6143 = vmatmul.bf16.vlgmr.msrb.gmra.mxu2 %v6045_v30  ;;  %v8307_v30 = vor.u32 %v8618_v48, %v8306_v9  ;;  %v8338_v9 = vld [vmem:[%s12416_s3 + $0x188] sm:$0xf]  ;;  %v8625_v48 = vld [vmem:[%s12416_s3 + $0x19c] sm:$0x10] }
 0x2c6   : > { %6156 = vmatmul.bf16.vlgmr.msrb.gmra.mxu3 %v6046_v24  ;;  %6348 = vmatpush.bf16.xpose.msrb.mxu2 %v8259_v18  ;;  %v8308_v18 = vld [vmem:[%s12416_s3 + $0x168] sm:$0x10] }
 0x2c7   : > { %6361 = vmatpush.bf16.xpose.msrb.mxu3 %v8263_v51  ;;  %v8611_v51 = vld [vmem:[%s12416_s3 + $0x134] sm:$0xf]  ;;  %v8300_v24 = vld [vmem:[%s12416_s3 + $0x148] sm:$0x10] }
 0x2c8   : > { %6130 = vmatmul.bf16.vlgmr.msrb.gmra.mxu1 %v6044_v33  ;;  %v8311_v33 = vor.u32 %v8615_v26, %v8308_v18  ;;  %v8303_v11 = vor.u32 %v8611_v51, %v8300_v24  ;;  %v8331_v26 = vor.u32 %v8624_v44, %v8330_v19  ;;  %v8622_v18 = vld [vmem:[%s12416_s3 + $0x18c] sm:$0xf] }
 0x2c9   : > { %6284 = vmatpush.bf16.xpose.msrb.mxu1 %v8255_v28  ;;  %v6303_v28 = vpack.c.b16 %v6297_v57, %v6297_v57  ;;  %v6551_v57 = vunpack.c.l.b16 %v5522_v16  ;;  %v5525_v44 = vld [vmem:[#allocation2 + $0xe8] sm:$0xff] }
 0x2d3   : > { %6220 = vmatmul.bf16.vlgmr.msra.gmra.mxu0 %v6170_v42 }
 0x2d4   : > { %6374 = vmatpush.bf16.xpose.msra.mxu0 %v8267_v12  ;;  %v5519_v12 = vld [vmem:[#allocation2 + $0x138] sm:$0xff] }
 0x2d5   : > { %6246 = vmatmul.bf16.vlgmr.msra.gmra.mxu2 %v6172_v56  ;;  %v6422_v4 = vunpack.c.l.b16 %v5519_v12  ;;  %v8322_v56 = vld [vmem:[%s12416_s3 + $0x160] sm:$0xf]  ;;  %v6423_v39 = vunpack.c.h.b16 %v5519_v12 }
 0x2d6   : > { %6259 = vmatmul.bf16.vlgmr.msra.gmra.mxu3 %v6173_v50  ;;  %6400 = vmatpush.bf16.xpose.msra.mxu2 %v8275_v47  ;;  %v8314_v47 = vld [vmem:[%s12416_s3 + $0x158] sm:$0xf] }
 0x2d7   : > { %6413 = vmatpush.bf16.xpose.msra.mxu3 %v8279_v61  ;;  %v8620_v61 = vld [vmem:[%s12416_s3 + $0x174] sm:$0x10]  ;;  %v8315_v62 = vor.u32 %v8619_v59, %v8314_v47  ;;  %v6428_v54 = vpack.c.b16 %v6422_v4, %v6422_v4  ;;  %v6429_v60 = vpack.c.b16 %v6423_v39, %v6423_v39  ;;  %v5524_v47 = vld [vmem:[#allocation2 + $0x168] sm:$0xff] }
 0x2d8   : > { %6233 = vmatmul.bf16.vlgmr.msra.gmra.mxu1 %v6171_v21  ;;  %v6425_v21 = vunpack.c.h.b16 %v5520_v25  ;;  %v8323_v63 = vor.u32 %v8620_v61, %v8322_v56 }
 0x2d9   : > { %6387 = vmatpush.bf16.xpose.msra.mxu1 %v8271_v7 }
 0x2e3   : > { %6272 = vmatmul.bf16.vlgmr.msrb.gmra.mxu0 %v6174_v40  ;;  %v6431_v40 = vpack.c.b16 %v6425_v21, %v6425_v21 }
 0x2e4   : > { %6477 = vmatpush.bf16.xpose.msrb.mxu0 %v8283_v23  ;;  %v8316_v23 = vld [vmem:[%s12416_s3 + $0x170] sm:$0x10] }
 0x2e5   : > { %6349 = vmatmul.bf16.vlgmr.msrb.gmra.mxu2 %v6299_v10 }
 0x2e6   : > { %6362 = vmatmul.bf16.vlgmr.msrb.gmra.mxu3 %v6300_v31  ;;  %6503 = vmatpush.bf16.xpose.msrb.mxu2 %v8291_v0  ;;  %v8319_v0 = vor.u32 %v8616_v6, %v8316_v23  ;;  %v8356_v6 = vld [vmem:[%s12416_s3 + $0x1c8] sm:$0x10] }
 0x2e7   : > { %6516 = vmatpush.bf16.xpose.msrb.mxu3 %v8295_v43 }
 0x2e8   : > { %6285 = vmatmul.bf16.vlgmr.msrb.gmra.mxu1 %v6175_v32  ;;  %v5521_v32 = vld [vmem:[#allocation2 + $0xe0] sm:$0xff] }
 0x2e9   : > { %6490 = vmatpush.bf16.xpose.msrb.mxu1 %v8287_v20  ;;  %v6426_v38 = vunpack.c.l.b16 %v5521_v32  ;;  %v6427_v24 = vunpack.c.h.b16 %v5521_v32 }
 0x2eb   : > { %v6432_v51 = vpack.c.b16 %v6426_v38, %v6426_v38 }
 0x2f0   : > { %v5705_v5 = vpop.f32.mrf.mxu0 }
 0x2f3   : > { %6375 = vmatmul.bf16.vlgmr.msra.gmra.mxu0 %v6301_v36  ;;  %v8340_v36 = vld [vmem:[%s12416_s3 + $0x1a0] sm:$0x10] }
 0x2f4   : > { %6529 = vmatpush.bf16.xpose.msra.mxu0 %v8299_v35  ;;  %v6552_v35 = vunpack.c.h.b16 %v5522_v16 }
 0x2f5   : > { %v5718_v58 = vpop.f32.mrf.mxu1  ;;  %6401 = vmatmul.bf16.vlgmr.msra.gmra.mxu2 %v6303_v28  ;;  %v8339_v28 = vor.u32 %v8625_v48, %v8338_v9  ;;  %v5526_v9 = vld [vmem:[#allocation2 + $0xf8] sm:$0xff] }
 0x2f6   : > { %v5719_v37 = vadd.f32 %v5718_v58, %v5705_v5  ;;  %6414 = vmatmul.bf16.vlgmr.msra.gmra.mxu3 %v6304_v41  ;;  %6606 = vmatpush.bf16.xpose.msra.mxu2 %v8307_v30  ;;  %v8332_v41 = vld [vmem:[%s12416_s3 + $0x198] sm:$0x10]  ;;  %v6557_v58 = vpack.c.b16 %v6551_v57, %v6551_v57 }
 0x2f7   : > { %6619 = vmatpush.bf16.xpose.msra.mxu3 %v8311_v33  ;;  %v8621_v33 = vld [vmem:[%s12416_s3 + $0x184] sm:$0xf] }
 0x2f8   : > { %6388 = vmatmul.bf16.vlgmr.msra.gmra.mxu1 %v6302_v49  ;;  %v5731_v52 = vpop.f32.mrf.mxu2  ;;  %v5707_v8 = vpop.f32.mrf.mxu0 }
 0x2f9   : > { %v5732_v46 = vadd.f32 %v5731_v52, %v5719_v37  ;;  %v5744_v3 = vpop.f32.mrf.mxu3  ;;  %6542 = vmatpush.bf16.xpose.msra.mxu1 %v8303_v11  ;;  %v8343_v11 = vor.u32 %v8622_v18, %v8340_v36  ;;  %v6558_v37 = vpack.c.b16 %v6552_v35, %v6552_v35  ;;  %v8335_v52 = vor.u32 %v8621_v33, %v8332_v41  ;;  %v8631_v35 = vld [vmem:[%s12416_s3 + $0x1cc] sm:$0x10]  ;;  %v8370_v18 = vld [vmem:[%s12416_s3 + $0x1c0] sm:$0xf]  ;;  %v8632_v36 = vld [vmem:[%s12416_s3 + $0x1d4] sm:$0x10] }
 0x2fa   : > { %v8372_v33 = vld [vmem:[%s12416_s3 + $0x1d8] sm:$0x10] }
 0x2fb   : > { %v5745_v14 = vadd.f32 %v5744_v3, %v5732_v46  ;;  %v6433_v46 = vpack.c.b16 %v6427_v24, %v6427_v24 }
 0x2fd   : > { %v5720_v42 = vpop.f32.mrf.mxu1 }
 0x2fe   : > { %v5523_v42 = vld [vmem:[#allocation2 + $0xb8] sm:$0xff] }
 0x2ff   : > { %v6553_v61 = vunpack.c.l.b16 %v5523_v42 }
 0x300   : > { %v5733_v50 = vpop.f32.mrf.mxu2  ;;  %v5757_v7 = vpop.f32.mrf.mxu0 }
 0x301   : > { %v5746_v45 = vpop.f32.mrf.mxu3  ;;  %v5758_v29 = vadd.f32 %v5757_v7, %v5745_v14  ;;  %v8346_v50 = vld [vmem:[%s12416_s3 + $0x190] sm:$0xf]  ;;  %v8626_v7 = vld [vmem:[%s12416_s3 + $0x1a4] sm:$0x10] }
 0x302   : > { %v8347_v39 = vor.u32 %v8626_v7, %v8346_v50  ;;  %v5527_v7 = vld [vmem:[#allocation2 + $0x20] sm:$0xff] }
 0x303   : > { %6478 = vmatmul.bf16.vlgmr.msrb.gmra.mxu0 %v6428_v54  ;;  %v6556_v54 = vunpack.c.h.b16 %v5524_v47 }
 0x304   : > { %6632 = vmatpush.bf16.xpose.msrb.mxu0 %v8315_v62  ;;  %v6555_v62 = vunpack.c.l.b16 %v5524_v47 }
 0x305   : > { %v5770_v27 = vpop.f32.mrf.mxu1  ;;  %6504 = vmatmul.bf16.vlgmr.msrb.gmra.mxu2 %v6430_v13  ;;  %v6559_v13 = vpack.c.b16 %v6553_v61, %v6553_v61 }
 0x306   : > { %v5771_v53 = vadd.f32 %v5770_v27, %v5758_v29  ;;  %6517 = vmatmul.bf16.vlgmr.msrb.gmra.mxu3 %v6431_v40  ;;  %6658 = vmatpush.bf16.xpose.msrb.mxu2 %v8323_v63  ;;  %v8627_v63 = vld [vmem:[%s12416_s3 + $0x1b4] sm:$0xf]  ;;  %v8355_v40 = vor.u32 %v8630_v2, %v8354_v15  ;;  %v6684_v2 = vunpack.c.l.b16 %v5527_v7 }
 0x307   : > { %6671 = vmatpush.bf16.xpose.msrb.mxu3 %v8327_v22  ;;  %v6554_v22 = vunpack.c.h.b16 %v5523_v42  ;;  %v8623_v27 = vld [vmem:[%s12416_s3 + $0x194] sm:$0xf] }
 0x308   : > { %6491 = vmatmul.bf16.vlgmr.msrb.gmra.mxu1 %v6429_v60  ;;  %v5834_v10 = vpop.f32.mrf.mxu2  ;;  %v5759_v43 = vpop.f32.mrf.mxu0  ;;  %v7710_v59 = vsel %vm7709_vm14, %v5771_v53, 0.0  ;;  %v6561_v53 = vpack.c.b16 %v6555_v62, %v6555_v62  ;;  %v8359_v60 = vor.u32 %v8627_v63, %v8356_v6  ;;  %v5528_v62 = vld [vmem:[#allocation2 + $0x88] sm:$0xff] }
 0x309   : > { %v5847_v31 = vpop.f32.mrf.mxu3  ;;  %6645 = vmatpush.bf16.xpose.msrb.mxu1 %v8319_v0  ;;  %v8348_v0 = vld [vmem:[%s12416_s3 + $0x1a8] sm:$0x10]  ;;  %v6560_v32 = vpack.c.b16 %v6554_v22, %v6554_v22 }
 0x30a   : > { %v5848_v20 = vadd.f32 %v5847_v31, %v5834_v10  ;;  %v6562_v10 = vpack.c.b16 %v6556_v54, %v6556_v54  ;;  %v8351_v31 = vor.u32 %v8623_v27, %v8348_v0  ;;  %v6809_v54 = vunpack.c.l.b16 %v5528_v62  ;;  %v8634_v22 = vld [vmem:[%s12416_s3 + $0x1ec] sm:$0xf] }
 0x30d   : > { %v5772_v34 = vpop.f32.mrf.mxu1 }
 0x310   : > { %v5836_v5 = vpop.f32.mrf.mxu2  ;;  %v5860_v17 = vpop.f32.mrf.mxu0 }
 0x311   : > { %v5849_v55 = vpop.f32.mrf.mxu3  ;;  %v5861_v30 = vadd.f32 %v5860_v17, %v5848_v20  ;;  %v6680_v5 = vunpack.c.l.b16 %v5525_v44  ;;  %v8362_v17 = vld [vmem:[%s12416_s3 + $0x1b8] sm:$0xf] }
 0x312   : > { %v8363_v24 = vor.u32 %v8631_v35, %v8362_v17  ;;  %v5529_v17 = vld [vmem:[#allocation2 + $0xa0] sm:$0xff] }
 0x313   : > { %6530 = vmatmul.bf16.vlgmr.msra.gmra.mxu0 %v6432_v51  ;;  %v6683_v51 = vunpack.c.h.b16 %v5526_v9 }
 0x314   : > { %6735 = vmatpush.bf16.xpose.msra.mxu0 %v8331_v26  ;;  %v6682_v26 = vunpack.c.l.b16 %v5526_v9 }
 0x315   : > { %v5873_v49 = vpop.f32.mrf.mxu1  ;;  %6607 = vmatmul.bf16.vlgmr.msra.gmra.mxu2 %v6557_v58 }
 0x316   : > { %v5874_v8 = vadd.f32 %v5873_v49, %v5861_v30  ;;  %6620 = vmatmul.bf16.vlgmr.msra.gmra.mxu3 %v6558_v37  ;;  %6761 = vmatpush.bf16.xpose.msra.mxu2 %v8339_v28  ;;  %v8629_v28 = vld [vmem:[%s12416_s3 + $0x1c4] sm:$0xf]  ;;  %v6681_v37 = vunpack.c.h.b16 %v5525_v44  ;;  %v8371_v49 = vor.u32 %v8632_v36, %v8370_v18 }
 0x317   : > { %6774 = vmatpush.bf16.xpose.msra.mxu3 %v8343_v11  ;;  %v6686_v11 = vpack.c.b16 %v6680_v5, %v6680_v5 }
 0x318   : > { %6543 = vmatmul.bf16.vlgmr.msra.gmra.mxu1 %v6433_v46  ;;  %v5886_v3 = vpop.f32.mrf.mxu2  ;;  %v5862_v12 = vpop.f32.mrf.mxu0  ;;  %v6688_v46 = vpack.c.b16 %v6682_v26, %v6682_v26  ;;  %v5530_v26 = vld [vmem:[#allocation2 + $0x170] sm:$0xff] }
 0x319   : > { %v5887_v14 = vadd.f32 %v5886_v3, %v5874_v8  ;;  %v5899_v25 = vpop.f32.mrf.mxu3  ;;  %6748 = vmatpush.bf16.xpose.msra.mxu1 %v8335_v52  ;;  %v8628_v52 = vld [vmem:[%s12416_s3 + $0x1bc] sm:$0xf]  ;;  %v8364_v8 = vld [vmem:[%s12416_s3 + $0x1d0] sm:$0x10]  ;;  %v8375_v3 = vor.u32 %v8629_v28, %v8372_v33  ;;  %v6689_v12 = vpack.c.b16 %v6683_v51, %v6683_v51  ;;  %v8638_v51 = vld [vmem:[%s12416_s3 + $0x204] sm:$0x10]  ;;  %v6813_v28 = vunpack.c.l.b16 %v5530_v26 }
 0x31a   : > { %v8402_v33 = vld [vmem:[%s12416_s3 + $0x210] sm:$0xf] }
 0x31b   : > { %v5900_v4 = vadd.f32 %v5899_v25, %v5887_v14  ;;  %v8367_v25 = vor.u32 %v8628_v52, %v8364_v8  ;;  %v8639_v52 = vld [vmem:[%s12416_s3 + $0x214] sm:$0xf]  ;;  %v8404_v8 = vld [vmem:[%s12416_s3 + $0x228] sm:$0x10] }
 0x31d   : > { %v7711_v1 = vsel %vm7709_vm14, %v5900_v4, 0.0  ;;  %v5875_v56 = vpop.f32.mrf.mxu1  ;;  %v6687_v4 = vpack.c.b16 %v6681_v37, %v6681_v37  ;;  %v6814_v37 = vunpack.c.h.b16 %v5530_v26 }
 0x31e   : > { %v12093_v21 = vadd.f32 %v7711_v1, %v7710_v59 }
 0x320   : > { %v5888_v45 = vpop.f32.mrf.mxu2  ;;  %v5963_v29 = vpop.f32.mrf.mxu0 }
 0x321   : > { %v5901_v23 = vpop.f32.mrf.mxu3  ;;  %v8378_v45 = vld [vmem:[%s12416_s3 + $0x1e0] sm:$0xf] }
 0x322   : > { %v6810_v23 = vunpack.c.h.b16 %v5528_v62 }
 0x323   : > { %6633 = vmatmul.bf16.vlgmr.msrb.gmra.mxu0 %v6559_v13 }
 0x324   : > { %6787 = vmatpush.bf16.xpose.msrb.mxu0 %v8347_v39  ;;  %v8637_v39 = vld [vmem:[%s12416_s3 + $0x1fc] sm:$0x10] }
 0x325   : > { %v5976_v43 = vpop.f32.mrf.mxu1  ;;  %6659 = vmatmul.bf16.vlgmr.msrb.gmra.mxu2 %v6561_v53  ;;  %v6690_v53 = vpack.c.b16 %v6684_v2, %v6684_v2 }
 0x326   : > { %v5977_v20 = vadd.f32 %v5976_v43, %v5963_v29  ;;  %6672 = vmatmul.bf16.vlgmr.msrb.gmra.mxu3 %v6562_v10  ;;  %6864 = vmatpush.bf16.xpose.msrb.mxu2 %v8355_v40  ;;  %v8636_v29 = vld [vmem:[%s12416_s3 + $0x1f4] sm:$0x10]  ;;  %v8388_v40 = vld [vmem:[%s12416_s3 + $0x200] sm:$0x10] }
 0x327   : > { %6877 = vmatpush.bf16.xpose.msrb.mxu3 %v8359_v60  ;;  %v8379_v13 = vor.u32 %v8636_v29, %v8378_v45  ;;  %v6685_v60 = vunpack.c.h.b16 %v5527_v7  ;;  %v8633_v43 = vld [vmem:[%s12416_s3 + $0x1e4] sm:$0xf]  ;;  %v5531_v45 = vld [vmem:[#allocation2 + $0xf0] sm:$0xff] }
 0x328   : > { %6646 = vmatmul.bf16.vlgmr.msrb.gmra.mxu1 %v6560_v32  ;;  %v5989_v16 = vpop.f32.mrf.mxu2  ;;  %v5965_v34 = vpop.f32.mrf.mxu0  ;;  %v8391_v32 = vor.u32 %v8634_v22, %v8388_v40  ;;  %v8644_v22 = vld [vmem:[%s12416_s3 + $0x234] sm:$0x10] }
 0x329   : > { %v5990_v38 = vadd.f32 %v5989_v16, %v5977_v20  ;;  %v6002_v19 = vpop.f32.mrf.mxu3  ;;  %6800 = vmatpush.bf16.xpose.msrb.mxu1 %v8351_v31  ;;  %v8380_v31 = vld [vmem:[%s12416_s3 + $0x1f8] sm:$0x10]  ;;  %v6815_v20 = vpack.c.b16 %v6809_v54, %v6809_v54  ;;  %v6816_v16 = vpack.c.b16 %v6810_v23, %v6810_v23  ;;  %v6691_v44 = vpack.c.b16 %v6685_v60, %v6685_v60  ;;  %v5532_v54 = vld [vmem:[#allocation2 + $0x140] sm:$0xff] }
 0x32a   : > { %v6940_v23 = vunpack.c.l.b16 %v5532_v54  ;;  %v8641_v60 = vld [vmem:[%s12416_s3 + $0x224] sm:$0xf] }
 0x32b   : > { %v6003_v57 = vadd.f32 %v6002_v19, %v5990_v38  ;;  %v8383_v38 = vor.u32 %v8633_v43, %v8380_v31 }
 0x32d   : > { %v5978_v48 = vpop.f32.mrf.mxu1 }
 0x330   : > { %v5991_v55 = vpop.f32.mrf.mxu2  ;;  %v6015_v30 = vpop.f32.mrf.mxu0 }
 0x331   : > { %v6004_v41 = vpop.f32.mrf.mxu3  ;;  %v6016_v58 = vadd.f32 %v6015_v30, %v6003_v57  ;;  %v6811_v55 = vunpack.c.l.b16 %v5529_v17  ;;  %v8394_v30 = vld [vmem:[%s12416_s3 + $0x1f0] sm:$0xf] }
 0x332   : > { %v8642_v41 = vld [vmem:[%s12416_s3 + $0x224] sm:$0x10] }
 0x333   : > { %6736 = vmatmul.bf16.vlgmr.msra.gmra.mxu0 %v6686_v11 }
 0x334   : > { %6890 = vmatpush.bf16.xpose.msra.mxu0 %v8363_v24 }
 0x335   : > { %v6028_v14 = vpop.f32.mrf.mxu1  ;;  %6762 = vmatmul.bf16.vlgmr.msra.gmra.mxu2 %v6688_v46 }
 0x336   : > { %v6029_v42 = vadd.f32 %v6028_v14, %v6016_v58  ;;  %6775 = vmatmul.bf16.vlgmr.msra.gmra.mxu3 %v6689_v12  ;;  %6916 = vmatpush.bf16.xpose.msra.mxu2 %v8371_v49  ;;  %v8395_v49 = vor.u32 %v8638_v51, %v8394_v30  ;;  %v6812_v12 = vunpack.c.h.b16 %v5529_v17  ;;  %v8403_v14 = vor.u32 %v8642_v41, %v8402_v33  ;;  %v5533_v51 = vld [vmem:[#allocation2 + $0x60] sm:$0xff] }
 0x337   : > { %6929 = vmatpush.bf16.xpose.msra.mxu3 %v8375_v3  ;;  %v6817_v3 = vpack.c.b16 %v6811_v55, %v6811_v55  ;;  %v6942_v41 = vunpack.c.l.b16 %v5533_v51 }
 0x338   : > { %v7713_v47 = vsel %vm7709_vm14, %v6029_v42, 0.0  ;;  %6749 = vmatmul.bf16.vlgmr.msra.gmra.mxu1 %v6687_v4  ;;  %v6092_v59 = vpop.f32.mrf.mxu2  ;;  %v6017_v1 = vpop.f32.mrf.mxu0  ;;  %v8396_v42 = vld [vmem:[%s12416_s3 + $0x208] sm:$0x10]  ;;  %v6819_v4 = vpack.c.b16 %v6813_v28, %v6813_v28 }
 0x339   : > { %v7714_v56 = vadd.f32 %v7713_v47, %v12093_v21  ;;  %v6105_v61 = vpop.f32.mrf.mxu3  ;;  %6903 = vmatpush.bf16.xpose.msra.mxu1 %v8367_v25  ;;  %v8386_v21 = vld [vmem:[%s12416_s3 + $0x1e8] sm:$0xf]  ;;  %v8635_v25 = vld [vmem:[%s12416_s3 + $0x1f4] sm:$0xf]  ;;  %v8407_v47 = vor.u32 %v8639_v52, %v8404_v8 }
 0x33a   : > { %v6106_v50 = vadd.f32 %v6105_v61, %v6092_v59  ;;  %v8387_v10 = vor.u32 %v8637_v39, %v8386_v21  ;;  %v6820_v59 = vpack.c.b16 %v6814_v37, %v6814_v37  ;;  %v6938_v39 = vunpack.c.l.b16 %v5531_v45  ;;  %v5534_v28 = vld [vmem:[#allocation2 + $0xc8] sm:$0xff] }
 0x33b   : > { %v7067_v37 = vunpack.c.l.b16 %v5534_v28 }
 0x33d   : > { %v6030_v15 = vpop.f32.mrf.mxu1 }
 0x340   : > { %v6094_v63 = vpop.f32.mrf.mxu2  ;;  %v6118_v6 = vpop.f32.mrf.mxu0 }
 0x341   : > { %v6107_v27 = vpop.f32.mrf.mxu3  ;;  %v6119_v0 = vadd.f32 %v6118_v6, %v6106_v50  ;;  %v6818_v50 = vpack.c.b16 %v6812_v12, %v6812_v12  ;;  %v8410_v63 = vld [vmem:[%s12416_s3 + $0x218] sm:$0xf]  ;;  %v8643_v6 = vld [vmem:[%s12416_s3 + $0x22c] sm:$0x10]  ;;  %v8646_v12 = vld [vmem:[%s12416_s3 + $0x24c] sm:$0xf] }
 0x343   : > { %6788 = vmatmul.bf16.vlgmr.msrb.gmra.mxu0 %v6690_v53  ;;  %v8411_v53 = vor.u32 %v8643_v6, %v8410_v63  ;;  %v5535_v63 = vld [vmem:[#allocation2 + $0x28] sm:$0xff] }
 0x344   : > { %6993 = vmatpush.bf16.xpose.msrb.mxu0 %v8379_v13  ;;  %v8418_v13 = vld [vmem:[%s12416_s3 + $0x220] sm:$0xf] }
 0x345   : > { %v6131_v34 = vpop.f32.mrf.mxu1  ;;  %6865 = vmatmul.bf16.vlgmr.msrb.gmra.mxu2 %v6815_v20  ;;  %v6944_v20 = vpack.c.b16 %v6938_v39, %v6938_v39 }
 0x346   : > { %v6132_v19 = vadd.f32 %v6131_v34, %v6119_v0  ;;  %6878 = vmatmul.bf16.vlgmr.msrb.gmra.mxu3 %v6816_v16  ;;  %7019 = vmatpush.bf16.xpose.msrb.mxu2 %v8387_v10  ;;  %v6941_v0 = vunpack.c.h.b16 %v5532_v54  ;;  %v8420_v10 = vld [vmem:[%s12416_s3 + $0x238] sm:$0x10]  ;;  %v8419_v16 = vor.u32 %v8644_v22, %v8418_v13 }
 0x347   : > { %7032 = vmatpush.bf16.xpose.msrb.mxu3 %v8391_v32  ;;  %v6939_v32 = vunpack.c.h.b16 %v5531_v45  ;;  %v8640_v34 = vld [vmem:[%s12416_s3 + $0x21c] sm:$0xf] }
 0x348   : > { %6801 = vmatmul.bf16.vlgmr.msrb.gmra.mxu1 %v6691_v44  ;;  %v6144_v57 = vpop.f32.mrf.mxu2  ;;  %v6120_v9 = vpop.f32.mrf.mxu0  ;;  %v8423_v44 = vor.u32 %v8641_v60, %v8420_v10  ;;  %v8450_v10 = vld [vmem:[%s12416_s3 + $0x270] sm:$0xf] }
 0x349   : > { %v6145_v48 = vadd.f32 %v6144_v57, %v6132_v19  ;;  %v6157_v5 = vpop.f32.mrf.mxu3  ;;  %7006 = vmatpush.bf16.xpose.msrb.mxu1 %v8383_v38  ;;  %v8412_v38 = vld [vmem:[%s12416_s3 + $0x230] sm:$0x10]  ;;  %v6946_v19 = vpack.c.b16 %v6940_v23, %v6940_v23  ;;  %v6947_v57 = vpack.c.b16 %v6941_v0, %v6941_v0  ;;  %v6945_v17 = vpack.c.b16 %v6939_v32, %v6939_v32  ;;  %v5536_v23 = vld [vmem:[#allocation2 + $0x38] sm:$0xff]  ;;  %v8650_v0 = vld [vmem:[%s12416_s3 + $0x264] sm:$0x10] }
 0x34a   : > { %v7071_v60 = vunpack.c.l.b16 %v5536_v23  ;;  %v7072_v32 = vunpack.c.h.b16 %v5536_v23 }
 0x34b   : > { %v6158_v35 = vadd.f32 %v6157_v5, %v6145_v48  ;;  %v8415_v48 = vor.u32 %v8640_v34, %v8412_v38  ;;  %v8651_v34 = vld [vmem:[%s12416_s3 + $0x274] sm:$0xf]  ;;  %v8452_v38 = vld [vmem:[%s12416_s3 + $0x288] sm:$0x10] }
 0x34d   : > { %v7715_v18 = vsel %vm7709_vm14, %v6158_v35, 0.0  ;;  %v6133_v36 = vpop.f32.mrf.mxu1 }
 0x34e   : > { %v12170_v24 = vadd.f32 %v7715_v18, %v7714_v56  ;;  %v8399_v56 = vor.u32 %v8635_v25, %v8396_v42 }
 0x350   : > { %v6146_v58 = vpop.f32.mrf.mxu2  ;;  %v6221_v11 = vpop.f32.mrf.mxu0 }
 0x351   : > { %v6159_v46 = vpop.f32.mrf.mxu3  ;;  %v8426_v58 = vld [vmem:[%s12416_s3 + $0x240] sm:$0xf] }
 0x352   : > { %v7068_v46 = vunpack.c.h.b16 %v5534_v28 }
 0x353   : > { %6891 = vmatmul.bf16.vlgmr.msra.gmra.mxu0 %v6817_v3 }
 0x354   : > { %7045 = vmatpush.bf16.xpose.msra.mxu0 %v8395_v49  ;;  %v8649_v49 = vld [vmem:[%s12416_s3 + $0x25c] sm:$0x10] }
 0x355   : > { %v6234_v1 = vpop.f32.mrf.mxu1  ;;  %6917 = vmatmul.bf16.vlgmr.msra.gmra.mxu2 %v6819_v4  ;;  %v6948_v4 = vpack.c.b16 %v6942_v41, %v6942_v41 }
 0x356   : > { %v6235_v61 = vadd.f32 %v6234_v1, %v6221_v11  ;;  %6930 = vmatmul.bf16.vlgmr.msra.gmra.mxu3 %v6820_v59  ;;  %7122 = vmatpush.bf16.xpose.msra.mxu2 %v8403_v14  ;;  %v8648_v11 = vld [vmem:[%s12416_s3 + $0x254] sm:$0x10]  ;;  %v8436_v14 = vld [vmem:[%s12416_s3 + $0x260] sm:$0x10] }
 0x357   : > { %7135 = vmatpush.bf16.xpose.msra.mxu3 %v8407_v47  ;;  %v8427_v3 = vor.u32 %v8648_v11, %v8426_v58  ;;  %v6943_v47 = vunpack.c.h.b16 %v5533_v51  ;;  %v8645_v1 = vld [vmem:[%s12416_s3 + $0x244] sm:$0xf] }
 0x358   : > { %6904 = vmatmul.bf16.vlgmr.msra.gmra.mxu1 %v6818_v50  ;;  %v6247_v7 = vpop.f32.mrf.mxu2  ;;  %v6223_v62 = vpop.f32.mrf.mxu0  ;;  %v8439_v50 = vor.u32 %v8646_v12, %v8436_v14  ;;  %v5537_v58 = vld [vmem:[#allocation2 + $0xc0] sm:$0xff]  ;;  %v8656_v12 = vld [vmem:[%s12416_s3 + $0x294] sm:$0x10] }
 0x359   : > { %v6248_v15 = vadd.f32 %v6247_v7, %v6235_v61  ;;  %v6260_v2 = vpop.f32.mrf.mxu3  ;;  %7058 = vmatpush.bf16.xpose.msra.mxu1 %v8399_v56  ;;  %v8428_v56 = vld [vmem:[%s12416_s3 + $0x258] sm:$0x10]  ;;  %v7073_v61 = vpack.c.b16 %v7067_v37, %v7067_v37  ;;  %v7074_v7 = vpack.c.b16 %v7068_v46, %v7068_v46  ;;  %v6949_v45 = vpack.c.b16 %v6943_v47, %v6943_v47  ;;  %v8653_v47 = vld [vmem:[%s12416_s3 + $0x284] sm:$0xf] }
 0x35a   : > { %v5538_v37 = vld [vmem:[#allocation2 + $0x18] sm:$0xff] }
 0x35b   : > { %v6261_v29 = vadd.f32 %v6260_v2, %v6248_v15  ;;  %v8431_v15 = vor.u32 %v8645_v1, %v8428_v56  ;;  %v7198_v46 = vunpack.c.l.b16 %v5538_v37 }
 0x35d   : > { %v6236_v21 = vpop.f32.mrf.mxu1 }
 0x360   : > { %v6249_v40 = vpop.f32.mrf.mxu2  ;;  %v6273_v27 = vpop.f32.mrf.mxu0 }
 0x361   : > { %v6262_v43 = vpop.f32.mrf.mxu3  ;;  %v6274_v31 = vadd.f32 %v6273_v27, %v6261_v29  ;;  %v7069_v40 = vunpack.c.l.b16 %v5535_v63  ;;  %v8442_v27 = vld [vmem:[%s12416_s3 + $0x250] sm:$0xf] }
 0x362   : > { %v8654_v43 = vld [vmem:[%s12416_s3 + $0x284] sm:$0x10] }
 0x363   : > { %6994 = vmatmul.bf16.vlgmr.msrb.gmra.mxu0 %v6944_v20 }
 0x364   : > { %7148 = vmatpush.bf16.xpose.msrb.mxu0 %v8411_v53 }
 0x365   : > { %v6286_v9 = vpop.f32.mrf.mxu1  ;;  %7020 = vmatmul.bf16.vlgmr.msrb.gmra.mxu2 %v6946_v19 }
 0x366   : > { %v6287_v5 = vadd.f32 %v6286_v9, %v6274_v31  ;;  %7033 = vmatmul.bf16.vlgmr.msrb.gmra.mxu3 %v6947_v57  ;;  %7174 = vmatpush.bf16.xpose.msrb.mxu2 %v8419_v16  ;;  %v8443_v16 = vor.u32 %v8650_v0, %v8442_v27  ;;  %v7070_v57 = vunpack.c.h.b16 %v5535_v63  ;;  %v8451_v9 = vor.u32 %v8654_v43, %v8450_v10  ;;  %v5539_v0 = vld [vmem:[#allocation2 + $0x98] sm:$0xff] }
 0x367   : > { %7187 = vmatpush.bf16.xpose.msrb.mxu3 %v8423_v44  ;;  %v7075_v44 = vpack.c.b16 %v7069_v40, %v7069_v40  ;;  %v7200_v43 = vunpack.c.l.b16 %v5539_v0 }
 0x368   : > { %v7717_v35 = vsel %vm7709_vm14, %v6287_v5, 0.0  ;;  %7007 = vmatmul.bf16.vlgmr.msrb.gmra.mxu1 %v6945_v17  ;;  %v6350_v26 = vpop.f32.mrf.mxu2  ;;  %v6275_v18 = vpop.f32.mrf.mxu0  ;;  %v8444_v5 = vld [vmem:[%s12416_s3 + $0x268] sm:$0x10]  ;;  %v7077_v17 = vpack.c.b16 %v7071_v60, %v7071_v60 }
 0x369   : > { %v7718_v36 = vadd.f32 %v7717_v35, %v12170_v24  ;;  %v6363_v55 = vpop.f32.mrf.mxu3  ;;  %7161 = vmatpush.bf16.xpose.msrb.mxu1 %v8415_v48  ;;  %v8434_v24 = vld [vmem:[%s12416_s3 + $0x248] sm:$0xf]  ;;  %v8647_v48 = vld [vmem:[%s12416_s3 + $0x254] sm:$0xf]  ;;  %v8455_v35 = vor.u32 %v8651_v34, %v8452_v38 }
 0x36a   : > { %v6364_v30 = vadd.f32 %v6363_v55, %v6350_v26  ;;  %v8435_v59 = vor.u32 %v8649_v49, %v8434_v24  ;;  %v7078_v26 = vpack.c.b16 %v7072_v32, %v7072_v32  ;;  %v7196_v49 = vunpack.c.l.b16 %v5537_v58  ;;  %v5540_v60 = vld [vmem:[#allocation2 + $0x8] sm:$0xff] }
 0x36b   : > { %v7325_v32 = vunpack.c.l.b16 %v5540_v60 }
 0x36d   : > { %v6288_v33 = vpop.f32.mrf.mxu1 }
 0x370   : > { %v6352_v52 = vpop.f32.mrf.mxu2  ;;  %v6376_v8 = vpop.f32.mrf.mxu0 }
 0x371   : > { %v6365_v25 = vpop.f32.mrf.mxu3  ;;  %v6377_v42 = vadd.f32 %v6376_v8, %v6364_v30  ;;  %v7076_v30 = vpack.c.b16 %v7070_v57, %v7070_v57  ;;  %v8458_v52 = vld [vmem:[%s12416_s3 + $0x278] sm:$0xf]  ;;  %v8655_v8 = vld [vmem:[%s12416_s3 + $0x28c] sm:$0x10]  ;;  %v8658_v57 = vld [vmem:[%s12416_s3 + $0x2ac] sm:$0xf] }
 0x373   : > { %7046 = vmatmul.bf16.vlgmr.msra.gmra.mxu0 %v6948_v4  ;;  %v8459_v4 = vor.u32 %v8655_v8, %v8458_v52  ;;  %v5541_v52 = vld [vmem:[#allocation2] sm:$0xff] }
 0x374   : > { %7251 = vmatpush.bf16.xpose.msra.mxu0 %v8427_v3  ;;  %v8466_v3 = vld [vmem:[%s12416_s3 + $0x280] sm:$0xf] }
 0x375   : > { %v6389_v62 = vpop.f32.mrf.mxu1  ;;  %7123 = vmatmul.bf16.vlgmr.msra.gmra.mxu2 %v7073_v61  ;;  %v7202_v61 = vpack.c.b16 %v7196_v49, %v7196_v49 }
 0x376   : > { %v6390_v2 = vadd.f32 %v6389_v62, %v6377_v42  ;;  %7136 = vmatmul.bf16.vlgmr.msra.gmra.mxu3 %v7074_v7  ;;  %7277 = vmatpush.bf16.xpose.msra.mxu2 %v8435_v59  ;;  %v7199_v42 = vunpack.c.h.b16 %v5538_v37  ;;  %v8468_v59 = vld [vmem:[%s12416_s3 + $0x298] sm:$0x10]  ;;  %v8467_v7 = vor.u32 %v8656_v12, %v8466_v3 }
 0x377   : > { %7290 = vmatpush.bf16.xpose.msra.mxu3 %v8439_v50  ;;  %v7197_v50 = vunpack.c.h.b16 %v5537_v58  ;;  %v8652_v62 = vld [vmem:[%s12416_s3 + $0x27c] sm:$0xf] }
 0x378   : > { %7059 = vmatmul.bf16.vlgmr.msra.gmra.mxu1 %v6949_v45  ;;  %v6402_v29 = vpop.f32.mrf.mxu2  ;;  %v6378_v54 = vpop.f32.mrf.mxu0  ;;  %v8471_v45 = vor.u32 %v8653_v47, %v8468_v59  ;;  %v8498_v59 = vld [vmem:[%s12416_s3 + $0x2d0] sm:$0xf] }
 0x379   : > { %v6403_v21 = vadd.f32 %v6402_v29, %v6390_v2  ;;  %v6415_v39 = vpop.f32.mrf.mxu3  ;;  %7264 = vmatpush.bf16.xpose.msra.mxu1 %v8431_v15  ;;  %v8460_v15 = vld [vmem:[%s12416_s3 + $0x290] sm:$0x10]  ;;  %v7204_v2 = vpack.c.b16 %v7198_v46, %v7198_v46  ;;  %v7205_v29 = vpack.c.b16 %v7199_v42, %v7199_v42  ;;  %v7203_v63 = vpack.c.b16 %v7197_v50, %v7197_v50  ;;  %v5542_v46 = vld [vmem:[#allocation2 + $0x78] sm:$0xff]  ;;  %v8662_v42 = vld [vmem:[%s12416_s3 + $0x2c4] sm:$0x10] }
 0x37a   : > { %v7329_v47 = vunpack.c.l.b16 %v5542_v46  ;;  %v7330_v50 = vunpack.c.h.b16 %v5542_v46 }
 0x37b   : > { %v6416_v6 = vadd.f32 %v6415_v39, %v6403_v21  ;;  %v8463_v21 = vor.u32 %v8652_v62, %v8460_v15  ;;  %v8663_v62 = vld [vmem:[%s12416_s3 + $0x2d4] sm:$0xf]  ;;  %v8500_v15 = vld [vmem:[%s12416_s3 + $0x2e8] sm:$0x10] }
 0x37d   : > { %v7719_v13 = vsel %vm7709_vm14, %v6416_v6, 0.0  ;;  %v6391_v22 = vpop.f32.mrf.mxu1 }
 0x37e   : > { %v12247_v53 = vadd.f32 %v7719_v13, %v7718_v36  ;;  %v8447_v36 = vor.u32 %v8647_v48, %v8444_v5 }
 0x380   : > { %v6404_v31 = vpop.f32.mrf.mxu2  ;;  %v6479_v20 = vpop.f32.mrf.mxu0 }
 0x381   : > { %v6417_v19 = vpop.f32.mrf.mxu3  ;;  %v8474_v31 = vld [vmem:[%s12416_s3 + $0x2a0] sm:$0xf] }
 0x382   : > { %v7326_v19 = vunpack.c.h.b16 %v5540_v60 }
 0x383   : > { %7149 = vmatmul.bf16.vlgmr.msrb.gmra.mxu0 %v7075_v44 }
 0x384   : > { %7303 = vmatpush.bf16.xpose.msrb.mxu0 %v8443_v16  ;;  %v8661_v16 = vld [vmem:[%s12416_s3 + $0x2bc] sm:$0x10] }
 0x385   : > { %v6492_v18 = vpop.f32.mrf.mxu1  ;;  %7175 = vmatmul.bf16.vlgmr.msrb.gmra.mxu2 %v7077_v17  ;;  %v7206_v17 = vpack.c.b16 %v7200_v43, %v7200_v43 }
 0x386   : > { %v6493_v55 = vadd.f32 %v6492_v18, %v6479_v20  ;;  %7188 = vmatmul.bf16.vlgmr.msrb.gmra.mxu3 %v7078_v26  ;;  %7380 = vmatpush.bf16.xpose.msrb.mxu2 %v8451_v9  ;;  %v8660_v20 = vld [vmem:[%s12416_s3 + $0x2b4] sm:$0x10]  ;;  %v8484_v9 = vld [vmem:[%s12416_s3 + $0x2c0] sm:$0x10] }
 0x387   : > { %7393 = vmatpush.bf16.xpose.msrb.mxu3 %v8455_v35  ;;  %v8475_v44 = vor.u32 %v8660_v20, %v8474_v31  ;;  %v7201_v35 = vunpack.c.h.b16 %v5539_v0  ;;  %v8657_v18 = vld [vmem:[%s12416_s3 + $0x2a4] sm:$0xf]  ;;  %v5543_v31 = vld [vmem:[#allocation2 + $0x50] sm:$0xff] }
 0x388   : > { %7162 = vmatmul.bf16.vlgmr.msrb.gmra.mxu1 %v7076_v30  ;;  %v6505_v51 = vpop.f32.mrf.mxu2  ;;  %v6481_v28 = vpop.f32.mrf.mxu0  ;;  %v8487_v30 = vor.u32 %v8658_v57, %v8484_v9  ;;  %v8668_v57 = vld [vmem:[%s12416_s3 + $0x2f4] sm:$0x10] }
 0x389   : > { %v6506_v33 = vadd.f32 %v6505_v51, %v6493_v55  ;;  %v6518_v41 = vpop.f32.mrf.mxu3  ;;  %7316 = vmatpush.bf16.xpose.msrb.mxu1 %v8447_v36  ;;  %v8476_v36 = vld [vmem:[%s12416_s3 + $0x2b8] sm:$0x10]  ;;  %v7331_v55 = vpack.c.b16 %v7325_v32, %v7325_v32  ;;  %v7332_v51 = vpack.c.b16 %v7326_v19, %v7326_v19  ;;  %v7207_v58 = vpack.c.b16 %v7201_v35, %v7201_v35  ;;  %v5544_v32 = vld [vmem:[#allocation2 + $0x68] sm:$0xff]  ;;  %v8665_v35 = vld [vmem:[%s12416_s3 + $0x2e4] sm:$0xf] }
 0x38a   : > { %v7456_v19 = vunpack.c.l.b16 %v5544_v32 }
 0x38b   : > { %v6519_v11 = vadd.f32 %v6518_v41, %v6506_v33  ;;  %v8479_v33 = vor.u32 %v8657_v18, %v8476_v36 }
 0x38d   : > { %v6494_v24 = vpop.f32.mrf.mxu1 }
 0x390   : > { %v6507_v14 = vpop.f32.mrf.mxu2  ;;  %v6531_v25 = vpop.f32.mrf.mxu0 }
 0x391   : > { %v6520_v1 = vpop.f32.mrf.mxu3  ;;  %v6532_v56 = vadd.f32 %v6531_v25, %v6519_v11  ;;  %v7327_v14 = vunpack.c.l.b16 %v5541_v52  ;;  %v8490_v25 = vld [vmem:[%s12416_s3 + $0x2b0] sm:$0xf] }
 0x392   : > { %v8666_v1 = vld [vmem:[%s12416_s3 + $0x2e4] sm:$0x10] }
 0x393   : > { %7252 = vmatmul.bf16.vlgmr.msra.gmra.mxu0 %v7202_v61 }
 0x394   : > { %7406 = vmatpush.bf16.xpose.msra.mxu0 %v8459_v4 }
 0x395   : > { %v6544_v54 = vpop.f32.mrf.mxu1  ;;  %7278 = vmatmul.bf16.vlgmr.msra.gmra.mxu2 %v7204_v2 }
 0x396   : > { %v6545_v39 = vadd.f32 %v6544_v54, %v6532_v56  ;;  %7291 = vmatmul.bf16.vlgmr.msra.gmra.mxu3 %v7205_v29  ;;  %7432 = vmatpush.bf16.xpose.msra.mxu2 %v8467_v7  ;;  %v8491_v7 = vor.u32 %v8662_v42, %v8490_v25  ;;  %v7328_v29 = vunpack.c.h.b16 %v5541_v52  ;;  %v8499_v54 = vor.u32 %v8666_v1, %v8498_v59  ;;  %v5545_v42 = vld [vmem:[#allocation2 + $0x70] sm:$0xff] }
 0x397   : > { %7445 = vmatpush.bf16.xpose.msra.mxu3 %v8471_v45  ;;  %v7333_v45 = vpack.c.b16 %v7327_v14, %v7327_v14  ;;  %v7458_v1 = vunpack.c.l.b16 %v5545_v42 }
 0x398   : > { %v7721_v6 = vsel %vm7709_vm14, %v6545_v39, 0.0  ;;  %7265 = vmatmul.bf16.vlgmr.msra.gmra.mxu1 %v7203_v63  ;;  %v6608_v23 = vpop.f32.mrf.mxu2  ;;  %v6533_v13 = vpop.f32.mrf.mxu0  ;;  %v8492_v39 = vld [vmem:[%s12416_s3 + $0x2c8] sm:$0x10]  ;;  %v7335_v63 = vpack.c.b16 %v7329_v47, %v7329_v47  ;;  %v5546_v47 = vld [vmem:[#allocation2 + $0x30] sm:$0xff] }
 0x399   : > { %v7722_v22 = vadd.f32 %v7721_v6, %v12247_v53  ;;  %v6621_v40 = vpop.f32.mrf.mxu3  ;;  %7419 = vmatpush.bf16.xpose.msra.mxu1 %v8463_v21  ;;  %v8482_v53 = vld [vmem:[%s12416_s3 + $0x2a8] sm:$0xf]  ;;  %v8659_v21 = vld [vmem:[%s12416_s3 + $0x2b4] sm:$0xf]  ;;  %v8503_v6 = vor.u32 %v8663_v62, %v8500_v15 }
 0x39a   : > { %v6622_v27 = vadd.f32 %v6621_v40, %v6608_v23  ;;  %v8483_v26 = vor.u32 %v8661_v16, %v8482_v53  ;;  %v7336_v23 = vpack.c.b16 %v7330_v50, %v7330_v50  ;;  %v7454_v16 = vunpack.c.l.b16 %v5543_v31 }
 0x39d   : > { %v6546_v10 = vpop.f32.mrf.mxu1 }
 0x3a0   : > { %v6610_v34 = vpop.f32.mrf.mxu2  ;;  %v6634_v38 = vpop.f32.mrf.mxu0 }
 0x3a1   : > { %v6623_v48 = vpop.f32.mrf.mxu3  ;;  %v6635_v5 = vadd.f32 %v6634_v38, %v6622_v27  ;;  %v7334_v27 = vpack.c.b16 %v7328_v29, %v7328_v29  ;;  %v8506_v34 = vld [vmem:[%s12416_s3 + $0x2d8] sm:$0xf]  ;;  %v8667_v38 = vld [vmem:[%s12416_s3 + $0x2ec] sm:$0x10] }
 0x3a3   : > { %7304 = vmatmul.bf16.vlgmr.msrb.gmra.mxu0 %v7206_v17  ;;  %v8507_v17 = vor.u32 %v8667_v38, %v8506_v34 }
 0x3a4   : > { %7509 = vmatpush.bf16.xpose.msrb.mxu0 %v8475_v44  ;;  %v8514_v44 = vld [vmem:[%s12416_s3 + $0x2e0] sm:$0xf] }
 0x3a5   : > { %v6647_v28 = vpop.f32.mrf.mxu1  ;;  %7381 = vmatmul.bf16.vlgmr.msrb.gmra.mxu2 %v7331_v55  ;;  %v7460_v55 = vpack.c.b16 %v7454_v16, %v7454_v16 }
 0x3a6   : > { %v6648_v41 = vadd.f32 %v6647_v28, %v6635_v5  ;;  %7394 = vmatmul.bf16.vlgmr.msrb.gmra.mxu3 %v7332_v51  ;;  %7535 = vmatpush.bf16.xpose.msrb.mxu2 %v8483_v26  ;;  %v7457_v5 = vunpack.c.h.b16 %v5544_v32  ;;  %v8516_v26 = vld [vmem:[%s12416_s3 + $0x2f8] sm:$0x10]  ;;  %v8515_v51 = vor.u32 %v8668_v57, %v8514_v44 }
 0x3a7   : > { %7548 = vmatpush.bf16.xpose.msrb.mxu3 %v8487_v30  ;;  %v7455_v30 = vunpack.c.h.b16 %v5543_v31  ;;  %v8664_v28 = vld [vmem:[%s12416_s3 + $0x2dc] sm:$0xf] }
 0x3a8   : > { %7317 = vmatmul.bf16.vlgmr.msrb.gmra.mxu1 %v7207_v58  ;;  %v6660_v11 = vpop.f32.mrf.mxu2  ;;  %v6636_v37 = vpop.f32.mrf.mxu0  ;;  %v8519_v58 = vor.u32 %v8665_v35, %v8516_v26 }
 0x3a9   : > { %v6661_v24 = vadd.f32 %v6660_v11, %v6648_v41  ;;  %v6673_v49 = vpop.f32.mrf.mxu3  ;;  %7522 = vmatpush.bf16.xpose.msrb.mxu1 %v8479_v33  ;;  %v8508_v33 = vld [vmem:[%s12416_s3 + $0x2f0] sm:$0x10]  ;;  %v7462_v41 = vpack.c.b16 %v7456_v19, %v7456_v19  ;;  %v7463_v11 = vpack.c.b16 %v7457_v5, %v7457_v5  ;;  %v7461_v52 = vpack.c.b16 %v7455_v30, %v7455_v30 }
 0x3ab   : > { %v6674_v8 = vadd.f32 %v6673_v49, %v6661_v24  ;;  %v8511_v24 = vor.u32 %v8664_v28, %v8508_v33 }
 0x3ad   : > { %v7723_v3 = vsel %vm7709_vm14, %v6674_v8, 0.0  ;;  %v6649_v12 = vpop.f32.mrf.mxu1 }
 0x3ae   : > { %v12324_v4 = vadd.f32 %v7723_v3, %v7722_v22  ;;  %v8495_v22 = vor.u32 %v8659_v21, %v8492_v39 }
 0x3b0   : > { %v6662_v56 = vpop.f32.mrf.mxu2  ;;  %v6737_v61 = vpop.f32.mrf.mxu0 }
 0x3b1   : > { %v6675_v2 = vpop.f32.mrf.mxu3  ;;  %v7583_v56 = vunpack.c.l.b16 %v5546_v47 }
 0x3b2   : > { %v7464_v2 = vpack.c.b16 %v7458_v1, %v7458_v1 }
 0x3b3   : > { %7407 = vmatmul.bf16.vlgmr.msra.gmra.mxu0 %v7333_v45  ;;  %v7459_v45 = vunpack.c.h.b16 %v5545_v42  ;;  %v7589_v29 = vpack.c.b16 %v7583_v56, %v7583_v56 }
 0x3b4   : > { %7561 = vmatpush.bf16.xpose.msra.mxu0 %v8491_v7  ;;  %v7584_v7 = vunpack.c.h.b16 %v5546_v47 }
 0x3b5   : > { %v6750_v13 = vpop.f32.mrf.mxu1  ;;  %7433 = vmatmul.bf16.vlgmr.msra.gmra.mxu2 %v7335_v63  ;;  %v7465_v39 = vpack.c.b16 %v7459_v45, %v7459_v45 }
 0x3b6   : > { %v6751_v40 = vadd.f32 %v6750_v13, %v6737_v61  ;;  %7446 = vmatmul.bf16.vlgmr.msra.gmra.mxu3 %v7336_v23  ;;  %7638 = vmatpush.bf16.xpose.msra.mxu2 %v8499_v54  ;;  %v7590_v54 = vpack.c.b16 %v7584_v7, %v7584_v7 }
 0x3b7   : > { %7651 = vmatpush.bf16.xpose.msra.mxu3 %v8503_v6 }
 0x3b8   : > { %7420 = vmatmul.bf16.vlgmr.msra.gmra.mxu1 %v7334_v27  ;;  %v6763_v0 = vpop.f32.mrf.mxu2  ;;  %v6739_v60 = vpop.f32.mrf.mxu0  ;;  %v5548_v27 = vld [vmem:[#allocation2 + $0x150] sm:$0xff] }
 0x3b9   : > { %v6764_v10 = vadd.f32 %v6763_v0, %v6751_v40  ;;  %v6776_v43 = vpop.f32.mrf.mxu3  ;;  %7574 = vmatpush.bf16.xpose.msra.mxu1 %v8495_v22  ;;  %v5547_v22 = vld [vmem:[#allocation2 + $0x158] sm:$0xff]  ;;  %v7587_v31 = vunpack.c.l.b16 %v5548_v27 }
 0x3ba   : > { %v7586_v38 = vunpack.c.h.b16 %v5547_v22 }
 0x3bb   : > { %v6777_v20 = vadd.f32 %v6776_v43, %v6764_v10  ;;  %v7585_v10 = vunpack.c.l.b16 %v5547_v22  ;;  %v7593_v19 = vpack.c.b16 %v7587_v31, %v7587_v31 }
 0x3bd   : > { %v6752_v53 = vpop.f32.mrf.mxu1  ;;  %v7591_v34 = vpack.c.b16 %v7585_v10, %v7585_v10 }
 0x3be   : > { %v7588_v53 = vunpack.c.h.b16 %v5548_v27 }
 0x3c0   : > { %v6765_v9 = vpop.f32.mrf.mxu2  ;;  %v6789_v48 = vpop.f32.mrf.mxu0  ;;  %v7594_v44 = vpack.c.b16 %v7588_v53, %v7588_v53 }
 0x3c1   : > { %v6778_v18 = vpop.f32.mrf.mxu3  ;;  %v6790_v36 = vadd.f32 %v6789_v48, %v6777_v20  ;;  %v7592_v48 = vpack.c.b16 %v7586_v38, %v7586_v38 }
 0x3c3   : > { %7510 = vmatmul.bf16.vlgmr.msrb.gmra.mxu0 %v7460_v55 }
 0x3c4   : > { %7664 = vmatpush.bf16.xpose.msrb.mxu0 %v8507_v17 }
 0x3c5   : > { %v6802_v37 = vpop.f32.mrf.mxu1  ;;  %7536 = vmatmul.bf16.vlgmr.msrb.gmra.mxu2 %v7462_v41 }
 0x3c6   : > { %v6803_v49 = vadd.f32 %v6802_v37, %v6790_v36  ;;  %7549 = vmatmul.bf16.vlgmr.msrb.gmra.mxu3 %v7463_v11  ;;  %7690 = vmatpush.bf16.xpose.msrb.mxu2 %v8515_v51 }
 0x3c7   : > { %7703 = vmatpush.bf16.xpose.msrb.mxu3 %v8519_v58 }
 0x3c8   : > { %v7725_v8 = vsel %vm7709_vm14, %v6803_v49, 0.0  ;;  %7523 = vmatmul.bf16.vlgmr.msrb.gmra.mxu1 %v7461_v52  ;;  %v6866_v46 = vpop.f32.mrf.mxu2  ;;  %v6791_v3 = vpop.f32.mrf.mxu0 }
 0x3c9   : > { %v7726_v12 = vadd.f32 %v7725_v8, %v12324_v4  ;;  %v6879_v14 = vpop.f32.mrf.mxu3  ;;  %7677 = vmatpush.bf16.xpose.msrb.mxu1 %v8511_v24 }
 0x3ca   : > { %v6880_v25 = vadd.f32 %v6879_v14, %v6866_v46 }
 0x3cd   : > { %v6804_v59 = vpop.f32.mrf.mxu1 }
 0x3d0   : > { %v6868_v61 = vpop.f32.mrf.mxu2  ;;  %v6892_v50 = vpop.f32.mrf.mxu0 }
 0x3d1   : > { %v6881_v62 = vpop.f32.mrf.mxu3  ;;  %v6893_v15 = vadd.f32 %v6892_v50, %v6880_v25 }
 0x3d3   : > { %7562 = vmatmul.bf16.vlgmr.msra.gmra.mxu0 %v7464_v2 }
 0x3d5   : > { %v6905_v21 = vpop.f32.mrf.mxu1  ;;  %7639 = vmatmul.bf16.vlgmr.msra.gmra.mxu2 %v7589_v29 }
 0x3d6   : > { %v6906_v4 = vadd.f32 %v6905_v21, %v6893_v15  ;;  %7652 = vmatmul.bf16.vlgmr.msra.gmra.mxu3 %v7590_v54 }
 0x3d8   : > { %7575 = vmatmul.bf16.vlgmr.msra.gmra.mxu1 %v7465_v39  ;;  %v6918_v63 = vpop.f32.mrf.mxu2  ;;  %v6894_v6 = vpop.f32.mrf.mxu0 }
 0x3d9   : > { %v6919_v23 = vadd.f32 %v6918_v63, %v6906_v4  ;;  %v6931_v13 = vpop.f32.mrf.mxu3 }
 0x3db   : > { %v6932_v40 = vadd.f32 %v6931_v13, %v6919_v23 }
 0x3dd   : > { %v7727_v0 = vsel %vm7709_vm14, %v6932_v40, 0.0  ;;  %v6907_v60 = vpop.f32.mrf.mxu1 }
 0x3de   : > { %v7728_v43 = vadd.f32 %v7727_v0, %v7726_v12 }
 0x3e0   : > { %v6920_v20 = vpop.f32.mrf.mxu2  ;;  %v6995_v32 = vpop.f32.mrf.mxu0 }
 0x3e1   : > { %v6933_v16 = vpop.f32.mrf.mxu3 }
 0x3e3   : > { %7665 = vmatmul.bf16.vlgmr.msrb.gmra.mxu0 %v7591_v34 }
 0x3e5   : > { %v7008_v57 = vpop.f32.mrf.mxu1  ;;  %7691 = vmatmul.bf16.vlgmr.msrb.gmra.mxu2 %v7593_v19 }
 0x3e6   : > { %v7009_v9 = vadd.f32 %v7008_v57, %v6995_v32  ;;  %7704 = vmatmul.bf16.vlgmr.msrb.gmra.mxu3 %v7594_v44 }
 0x3e8   : > { %7678 = vmatmul.bf16.vlgmr.msrb.gmra.mxu1 %v7592_v48  ;;  %v7021_v5 = vpop.f32.mrf.mxu2  ;;  %v6997_v17 = vpop.f32.mrf.mxu0 }
 0x3e9   : > { %v7022_v35 = vadd.f32 %v7021_v5, %v7009_v9  ;;  %v7034_v26 = vpop.f32.mrf.mxu3 }
 0x3eb   : > { %v7035_v18 = vadd.f32 %v7034_v26, %v7022_v35 }
 0x3ed   : > { %v7010_v36 = vpop.f32.mrf.mxu1 }
 0x3f0   : > { %v7023_v55 = vpop.f32.mrf.mxu2  ;;  %v7047_v30 = vpop.f32.mrf.mxu0 }
 0x3f1   : > { %v7036_v51 = vpop.f32.mrf.mxu3  ;;  %v7048_v28 = vadd.f32 %v7047_v30, %v7035_v18 }
 0x3f5   : > { %v7060_v33 = vpop.f32.mrf.mxu1 }
 0x3f6   : > { %v7061_v41 = vadd.f32 %v7060_v33, %v7048_v28 }
 0x3f8   : > { %v7729_v58 = vsel %vm7709_vm14, %v7061_v41, 0.0  ;;  %v7124_v11 = vpop.f32.mrf.mxu2  ;;  %v7049_v37 = vpop.f32.mrf.mxu0 }
 0x3f9   : > { %v7730_v24 = vadd.f32 %v7729_v58, %v7728_v43  ;;  %v7137_v49 = vpop.f32.mrf.mxu3 }
 0x3fa   : > { %v7138_v52 = vadd.f32 %v7137_v49, %v7124_v11 }
 0x3fd   : > { %v7062_v8 = vpop.f32.mrf.mxu1 }
 0x400   : > { %v7126_v46 = vpop.f32.mrf.mxu2  ;;  %v7150_v3 = vpop.f32.mrf.mxu0 }
 0x401   : > { %v7139_v12 = vpop.f32.mrf.mxu3  ;;  %v7151_v14 = vadd.f32 %v7150_v3, %v7138_v52 }
 0x405   : > { %v7163_v25 = vpop.f32.mrf.mxu1 }
 0x406   : > { %v7164_v42 = vadd.f32 %v7163_v25, %v7151_v14 }
 0x408   : > { %v7176_v47 = vpop.f32.mrf.mxu2  ;;  %v7152_v59 = vpop.f32.mrf.mxu0 }
 0x409   : > { %v7177_v1 = vadd.f32 %v7176_v47, %v7164_v42  ;;  %v7189_v56 = vpop.f32.mrf.mxu3 }
 0x40b   : > { %v7190_v61 = vadd.f32 %v7189_v56, %v7177_v1 }
 0x40d   : > { %v7731_v50 = vsel %vm7709_vm14, %v7190_v61, 0.0  ;;  %v7165_v7 = vpop.f32.mrf.mxu1 }
 0x40e   : > { %v7732_v62 = vadd.f32 %v7731_v50, %v7730_v24 }
 0x410   : > { %v7178_v15 = vpop.f32.mrf.mxu2  ;;  %v7253_v2 = vpop.f32.mrf.mxu0 }
 0x411   : > { %v7191_v45 = vpop.f32.mrf.mxu3 }
 0x415   : > { %v7266_v29 = vpop.f32.mrf.mxu1 }
 0x416   : > { %v7267_v54 = vadd.f32 %v7266_v29, %v7253_v2 }
 0x418   : > { %v7279_v21 = vpop.f32.mrf.mxu2  ;;  %v7255_v4 = vpop.f32.mrf.mxu0 }
 0x419   : > { %v7280_v39 = vadd.f32 %v7279_v21, %v7267_v54  ;;  %v7292_v63 = vpop.f32.mrf.mxu3 }
 0x41b   : > { %v7293_v6 = vadd.f32 %v7292_v63, %v7280_v39 }
 0x41d   : > { %v7268_v23 = vpop.f32.mrf.mxu1 }
 0x420   : > { %v7281_v13 = vpop.f32.mrf.mxu2  ;;  %v7305_v22 = vpop.f32.mrf.mxu0 }
 0x421   : > { %v7294_v40 = vpop.f32.mrf.mxu3  ;;  %v7306_v27 = vadd.f32 %v7305_v22, %v7293_v6  ;;  %v8715_v6 = vld [vmem:[%s12417_s4] ss:$0 sm:$0xff] }
 0x425   : > { %v7318_v0 = vpop.f32.mrf.mxu1 }
 0x426   : > { %v7319_v60 = vadd.f32 %v7318_v0, %v7306_v27 }
 0x428   : > { %v7733_v10 = vsel %vm7709_vm14, %v7319_v60, 0.0  ;;  %v7382_v43 = vpop.f32.mrf.mxu2  ;;  %v7307_v31 = vpop.f32.mrf.mxu0 }
 0x429   : > { %v7734_v20 = vadd.f32 %v7733_v10, %v7732_v62  ;;  %v7395_v32 = vpop.f32.mrf.mxu3 }
 0x42a   : > { %v7396_v58 = vadd.f32 %v7395_v32, %v7382_v43 }
 0x42d   : > { %v7320_v53 = vpop.f32.mrf.mxu1 }
 0x430   : > { %v7384_v16 = vpop.f32.mrf.mxu2  ;;  %v7408_v34 = vpop.f32.mrf.mxu0 }
 0x431   : > { %v7397_v38 = vpop.f32.mrf.mxu3  ;;  %v7409_v24 = vadd.f32 %v7408_v34, %v7396_v58 }
 0x435   : > { %v7421_v19 = vpop.f32.mrf.mxu1 }
 0x436   : > { %v7422_v46 = vadd.f32 %v7421_v19, %v7409_v24 }
 0x438   : > { %v7434_v44 = vpop.f32.mrf.mxu2  ;;  %v7410_v57 = vpop.f32.mrf.mxu0 }
 0x439   : > { %v7447_v9 = vpop.f32.mrf.mxu3  ;;  %v7435_v12 = vadd.f32 %v7434_v44, %v7422_v46 }
 0x43b   : > { %v7448_v56 = vadd.f32 %v7447_v9, %v7435_v12 }
 0x43d   : > { %v7423_v48 = vpop.f32.mrf.mxu1  ;;  %v7735_v62 = vsel %vm7709_vm14, %v7448_v56, 0.0 }
 0x43e   : > { %v7736_v4 = vadd.f32 %v7735_v62, %v7734_v20 }
 0x440   : > { %v7436_v5 = vpop.f32.mrf.mxu2  ;;  %v7511_v17 = vpop.f32.mrf.mxu0 }
 0x441   : > { %v7449_v35 = vpop.f32.mrf.mxu3 }
 0x445   : > { %v7524_v26 = vpop.f32.mrf.mxu1 }
 0x446   : > { %v7525_v49 = vadd.f32 %v7524_v26, %v7511_v17 }
 0x448   : > { %v7537_v18 = vpop.f32.mrf.mxu2  ;;  %v7513_v36 = vpop.f32.mrf.mxu0 }
 0x449   : > { %v7550_v55 = vpop.f32.mrf.mxu3  ;;  %v7538_v8 = vadd.f32 %v7537_v18, %v7525_v49 }
 0x44b   : > { %v7551_v14 = vadd.f32 %v7550_v55, %v7538_v8 }
 0x44d   : > { %v7526_v30 = vpop.f32.mrf.mxu1 }
 0x450   : > { %v7539_v51 = vpop.f32.mrf.mxu2  ;;  %v7563_v28 = vpop.f32.mrf.mxu0 }
 0x451   : > { %v7552_v33 = vpop.f32.mrf.mxu3  ;;  %v7564_v47 = vadd.f32 %v7563_v28, %v7551_v14 }
 0x455   : > { %v7576_v41 = vpop.f32.mrf.mxu1 }
 0x456   : > { %v7577_v50 = vadd.f32 %v7576_v41, %v7564_v47 }
 0x458   : > { %v7640_v11 = vpop.f32.mrf.mxu2  ;;  %v7565_v37 = vpop.f32.mrf.mxu0  ;;  %v7737_v29 = vsel %vm7709_vm14, %v7577_v50, 0.0 }
 0x459   : > { %v7653_v52 = vpop.f32.mrf.mxu3  ;;  %v7738_v63 = vadd.f32 %v7737_v29, %v7736_v4 }
 0x45a   : > { %v7654_v59 = vadd.f32 %v7653_v52, %v7640_v11 }
 0x45d   : > { %v7578_v3 = vpop.f32.mrf.mxu1 }
 0x460   : > { %v7642_v25 = vpop.f32.mrf.mxu2  ;;  %v7666_v42 = vpop.f32.mrf.mxu0 }
 0x461   : > { %v7655_v1 = vpop.f32.mrf.mxu3  ;;  %v7667_v61 = vadd.f32 %v7666_v42, %v7654_v59 }
 0x465   : > { %v7679_v7 = vpop.f32.mrf.mxu1 }
 0x466   : > { %v7680_v15 = vadd.f32 %v7679_v7, %v7667_v61 }
 0x468   : > { %v7692_v2 = vpop.f32.mrf.mxu2  ;;  %v7668_v45 = vpop.f32.mrf.mxu0 }
 0x469   : > { %v7693_v54 = vadd.f32 %v7692_v2, %v7680_v15  ;;  %v7705_v21 = vpop.f32.mrf.mxu3 }
 0x46b   : > { %v7706_v39 = vadd.f32 %v7705_v21, %v7693_v54 }
 0x46d   : > { %v7739_v23 = vsel %vm7709_vm14, %v7706_v39, 0.0  ;;  %v7681_v13 = vpop.f32.mrf.mxu1 }
 0x46e   : > { %v7740_v22 = vadd.f32 %v7739_v23, %v7738_v63 }
 0x470   : > { %v7745_v40 = vadd.f32 %v8715_v6, %v7740_v22  ;;  %v7694_v27 = vpop.f32.mrf.mxu2 }
 0x471   : > { %v7707_v0 = vpop.f32.mrf.mxu3 }
 0x472   : > { %7746 = vst.msk [vmem:[%s217_s22] sm:$0xff] %vm7709_vm14, %v7745_v40 }
 0x473   : > { %8744 = shalt.err (!%p8741_p3)
}
 0x474   : > { %8670 = dma.vmem_to_hbm [thread:$0]  (%p8854_p5), %s7761_s10, 128, %s7763_s11, %s7748_s12  }
 0x475 PF: > { %p8676_p4 = scmp.ge.s32.totalorder %s8779_s21, 2  ;;  %s7774_s23 = sand.u32 1, %s8767_s18  }
 0x476   : > { %s7775_s30 = scalar_lea.sflag [#allocation4], %s7774_s23 }
 0x477   : > { %p8673_p7 = pnand %p8676_p4, %p8858_p6 }
 0x479   : > { %p8674_p8 = pneg %p8673_p7 }
 0x47b   : > { %8762 = dma.done.wait (%p8674_p8), %s7775_s30, 128  }
 0x47c   : > { %8764 = vsyncadd (%p8674_p8), %s7775_s30, 4294967168  ;;  %p15_p9 = scmp.ge.s32.totalorder %s8841_s24, 4   ;;  %s12633_s18 = smov %s8771_s19 }
 0x47d   : > { %s12634_s19 = smov %s8775_s20  ;;  %s12635_s20 = smov %s8852_s27 }
 0x47e   : > { %s12636_s21 = smov %s8841_s24  ;;  %17 = sbr.rel (!%p15_p9) target bundleno = 3 (0x3), region = 75 }
 0x483   :  { %7781 = vsyncpa [#allocation4], 1 }
 0x484   :  { %7783 = vsyncpa [#allocation4 + $0x1], 1 }

</bundles_post_ra>
